<compile_context>
chip_gen: v7x
topology: tpu7x:2x2x1
jax: 0.10.0
libtpu: 0.0.40
codegen_flags: <defaults>
</compile_context>

<pallas_src>
import functools

import jax
import jax.numpy as jnp
from jax.experimental import pallas as pl
from jax.experimental.pallas import tpu as pltpu

EPS = 1e-5          # nn.InstanceNorm2d eps
NEG_SLOPE = 0.01    # nn.LeakyReLU default negative_slope


def _leaky_relu(x):
    return jnp.where(x >= 0, x, NEG_SLOPE * x)


def fusion_block_kernel(o_ref, s_ref, p_ref, w_ref, out_ref, *, H, W, C):
    Nb = o_ref.shape[0]
    HW = H * W

    o = o_ref[...].astype(jnp.float32)      # (Nb, H, W, C)
    s = s_ref[...].astype(jnp.float32)      # (Nb, H, W, C)
    p = p_ref[...].astype(jnp.float32)      # (4, C): rows = [g1, b1, g2, b2]
    w = w_ref[...]                          # (9*C, C) f32, im2col-ordered (dy, dx, cin)

    g1, b1, g2, b2 = p[0:1], p[1:2], p[2:3], p[3:4]   # each (1, C), broadcast on lanes

    # ---- IN1(o) (affine, per-sample/per-channel, biased var) + s, LeakyReLU ----
    # Lane dim (C) stays last through all reshapes -> cheap shape casts only.
    o2 = o.reshape(Nb, HW, C)
    mu = jnp.mean(o2, axis=1, keepdims=True)
    oc = o2 - mu                                       # hoisted; reused for var & normalize
    var = jnp.mean(oc * oc, axis=1, keepdims=True)
    scale1 = g1 * jax.lax.rsqrt(var + EPS)             # (Nb, 1, C) -- affine gain folded in
    x = oc * scale1 + b1 + s.reshape(Nb, HW, C)
    x = _leaky_relu(x).reshape(Nb, H, W, C)

    # ---- ReflectionPad2d(1) along H (axis 1) and W (axis 2) ----
    xp = jnp.concatenate([x[:, 1:2], x, x[:, H - 2:H - 1]], axis=1)
    xp = jnp.concatenate([xp[:, :, 1:2], xp, xp[:, :, W - 2:W - 1]], axis=2)

    # ---- 3x3 conv (no bias) as ONE im2col matmul on the MXU ----
    # col: (Nb*H*W, 9*C); K index ordered (dy, dx, cin) to match the wrapper's weight reshape.
    col = jnp.concatenate(
        [xp[:, dy:dy + H, dx:dx + W, :] for dy in range(3) for dx in range(3)],
        axis=-1,
    ).reshape(Nb * HW, 9 * C)
    y = jnp.dot(col, w, preferred_element_type=jnp.float32).reshape(Nb, HW, C)

    # ---- IN2 (affine) + trailing LeakyReLU of the merge Sequential ----
    mu2 = jnp.mean(y, axis=1, keepdims=True)
    yc = y - mu2
    var2 = jnp.mean(yc * yc, axis=1, keepdims=True)
    scale2 = g2 * jax.lax.rsqrt(var2 + EPS)
    y = _leaky_relu(yc * scale2 + b2)

    out_ref[...] = y.reshape(Nb, H, W, C).astype(out_ref.dtype)


def fusion_block(o_nhwc, s_nhwc, g1, b1, w_hwio, g2, b2, *, vmem_budget_bytes=24 * 2**20):
    N, H, W, C = o_nhwc.shape
    assert H >= 2 and W >= 2, "ReflectionPad2d(1) requires H >= 2 and W >= 2"

    # Stack the 4 per-channel affine params into one (4, C) array (fewer operands).
    params = jnp.stack(
        [g1.reshape(C), b1.reshape(C), g2.reshape(C), b2.reshape(C)], axis=0
    ).astype(jnp.float32)
    # im2col weight: HWIO (3,3,Cin,Cout) -> (9*Cin, Cout); flattening order (dy, dx, cin)
    # matches the tap concatenation order in the kernel.  Free layout plumbing.
    w2 = w_hwio.reshape(9 * C, C).astype(jnp.float32)

    # --- VMEM budgeting: pick samples-per-step (Nb) so the working set fits. ---
    # Per sample: o,s,out double-buffered (~6x) + in-kernel temporaries
    # (x, xp, 9-tap im2col buffer, y, norm intermediates ~ 14x) of f32 sample size.
    per_sample_f32 = H * W * C * 4
    working_per_sample = 20 * per_sample_f32
    nb = 1
    for cand in range(N, 0, -1):
        if N % cand == 0 and cand * working_per_sample <= vmem_budget_bytes:
            nb = cand
            break
    grid = (N // nb,)
    # TODO(synk): for samples too large to fit whole in VMEM (e.g. 256x256x64 on v7x's
    # 64 MiB), switch to H-row tiles with a 1-row halo plus a separate InstanceNorm
    # stats pass; whole-sample residency is kept here because IN needs full-sample stats.

    vmem_limit = int(max(32 * 2**20, min(64 * 2**20, 2 * nb * working_per_sample)))

    sample_spec = pl.BlockSpec((nb, H, W, C), lambda i: (i, 0, 0, 0))
    p_spec = pl.BlockSpec((4, C), lambda i: (0, 0))
    w_spec = pl.BlockSpec((9 * C, C), lambda i: (0, 0))

    return pl.pallas_call(
        functools.partial(fusion_block_kernel, H=H, W=W, C=C),
        out_shape=jax.ShapeDtypeStruct((N, H, W, C), o_nhwc.dtype),
        grid_spec=pltpu.PrefetchScalarGridSpec(
            num_scalar_prefetch=0,
            grid=grid,
            in_specs=[sample_spec, sample_spec, p_spec, w_spec],
            out_specs=sample_spec,
        ),
        compiler_params=pltpu.CompilerParams(
            dimension_semantics=("parallel",),   # samples independent -> 2x on v7x megacore
            vmem_limit_bytes=vmem_limit,
        ),
    )(o_nhwc, s_nhwc, params, w2)


def reference(o_nhwc, s_nhwc, g1, b1, w_hwio, g2, b2):
    # Pure-JAX reference of the same forward pass (NHWC).
    def inorm(x, g, b):
        m = jnp.mean(x, axis=(1, 2), keepdims=True)
        v = jnp.mean((x - m) ** 2, axis=(1, 2), keepdims=True)
        return (x - m) / jnp.sqrt(v + EPS) * g + b

    x = inorm(o_nhwc, g1, b1) + s_nhwc
    x = _leaky_relu(x)
    xp = jnp.pad(x, ((0, 0), (1, 1), (1, 1), (0, 0)), mode="reflect")
    y = jax.lax.conv_general_dilated(
        xp, w_hwio, window_strides=(1, 1), padding="VALID",
        dimension_numbers=("NHWC", "HWIO", "NHWC"))
    return _leaky_relu(inorm(y, g2, b2))


if __name__ == "__main__":
    key = jax.random.PRNGKey(0)
    k_o, k_s, k_w, k_g1, k_b1, k_g2, k_b2 = jax.random.split(key, 7)
    N, C, H, W = 2, 4, 16, 16

    # Inputs in PyTorch NCHW convention
    o_nchw = jax.random.normal(k_o, (N, C, H, W), jnp.float32)
    s_nchw = jax.random.normal(k_s, (N, C, H, W), jnp.float32)

    # Deterministic synthetic parameters (not a checkpoint load)
    w_oihw = 0.2 * jax.random.normal(k_w, (C, C, 3, 3), jnp.float32)   # Conv2d weight, bias=False
    g1 = 1.0 + 0.1 * jax.random.normal(k_g1, (C,), jnp.float32)        # IN1 affine weight
    b1 = 0.1 * jax.random.normal(k_b1, (C,), jnp.float32)              # IN1 affine bias
    g2 = 1.0 + 0.1 * jax.random.normal(k_g2, (C,), jnp.float32)        # IN2 affine weight
    b2 = 0.1 * jax.random.normal(k_b2, (C,), jnp.float32)              # IN2 affine bias

    # Layout: NCHW -> NHWC for the kernel, OIHW -> HWIO for the conv weight
    o = jnp.transpose(o_nchw, (0, 2, 3, 1))
    s = jnp.transpose(s_nchw, (0, 2, 3, 1))
    w_hwio = jnp.transpose(w_oihw, (2, 3, 1, 0))

    out = jax.block_until_ready(fusion_block(o, s, g1, b1, w_hwio, g2, b2))
    ref = reference(o, s, g1, b1, w_hwio, g2, b2)

    assert out.shape == (N, H, W, C)
    max_err = float(jnp.max(jnp.abs(out - ref)))
    assert jnp.allclose(out, ref, atol=1e-4, rtol=1e-4), max_err
    print("KERNEL_OK")
</pallas_src>

<mosaic_0001>
module attributes {stable_mosaic.version = 11 : i64} {
  func.func @fusion_block_kernel(%arg0: i32, %arg1: memref<2x16x16x4xf32, #tpu.memory_space<vmem>>, %arg2: memref<2x16x16x4xf32, #tpu.memory_space<vmem>>, %arg3: memref<4x4xf32, #tpu.memory_space<vmem>>, %arg4: memref<36x4xf32, #tpu.memory_space<vmem>>, %arg5: memref<2x16x16x4xf32, #tpu.memory_space<vmem>>) attributes {dimension_semantics = [#tpu.dimension_semantics<parallel>], iteration_bounds = array<i64: 1>, scalar_prefetch = 0 : i64, scratch_operands = 0 : i64, tpu.core_type = #tpu.core_type<tc>, window_params = [{transform_indices = @transform_0, window_bounds = array<i64: 2, 16, 16, 4>}, {transform_indices = @transform_1, window_bounds = array<i64: 2, 16, 16, 4>}, {pipeline_mode = #tpu.pipeline_mode<synchronous>, transform_indices = @transform_2, window_bounds = array<i64: 4, 4>}, {pipeline_mode = #tpu.pipeline_mode<synchronous>, transform_indices = @transform_3, window_bounds = array<i64: 36, 4>}, {transform_indices = @transform_4, window_bounds = array<i64: 2, 16, 16, 4>}]} {
    %c0 = arith.constant 0 : index
    %c0_0 = arith.constant 0 : index
    %c0_1 = arith.constant 0 : index
    %c0_2 = arith.constant 0 : index
    %0 = vector.load %arg1[%c0, %c0_0, %c0_1, %c0_2] : memref<2x16x16x4xf32, #tpu.memory_space<vmem>>, vector<2x16x16x4xf32>
    %c0_3 = arith.constant 0 : index
    %c0_4 = arith.constant 0 : index
    %c0_5 = arith.constant 0 : index
    %c0_6 = arith.constant 0 : index
    %1 = vector.load %arg2[%c0_3, %c0_4, %c0_5, %c0_6] : memref<2x16x16x4xf32, #tpu.memory_space<vmem>>, vector<2x16x16x4xf32>
    %c0_7 = arith.constant 0 : index
    %c0_8 = arith.constant 0 : index
    %2 = vector.load %arg3[%c0_7, %c0_8] : memref<4x4xf32, #tpu.memory_space<vmem>>, vector<4x4xf32>
    %c0_9 = arith.constant 0 : index
    %c0_10 = arith.constant 0 : index
    %3 = vector.load %arg4[%c0_9, %c0_10] : memref<36x4xf32, #tpu.memory_space<vmem>>, vector<36x4xf32>
    %4 = vector.extract_strided_slice %2 {offsets = [0, 0], sizes = [1, 4], strides = [1, 1]} : vector<4x4xf32> to vector<1x4xf32>
    %5 = vector.extract_strided_slice %2 {offsets = [1, 0], sizes = [1, 4], strides = [1, 1]} : vector<4x4xf32> to vector<1x4xf32>
    %6 = vector.extract_strided_slice %2 {offsets = [2, 0], sizes = [1, 4], strides = [1, 1]} : vector<4x4xf32> to vector<1x4xf32>
    %7 = vector.extract_strided_slice %2 {offsets = [3, 0], sizes = [1, 4], strides = [1, 1]} : vector<4x4xf32> to vector<1x4xf32>
    %8 = vector.shape_cast %0 : vector<2x16x16x4xf32> to vector<2x256x4xf32>
    %cst = arith.constant dense<0.000000e+00> : vector<2x4xf32>
    %9 = vector.multi_reduction <add>, %8, %cst [1] : vector<2x256x4xf32> to vector<2x4xf32>
    %10 = vector.shape_cast %9 : vector<2x4xf32> to vector<2x1x4xf32>
    %cst_11 = arith.constant 2.560000e+02 : f32
    %11 = vector.broadcast %cst_11 : f32 to vector<2x1x4xf32>
    %12 = arith.divf %10, %11 : vector<2x1x4xf32>
    %13 = vector.broadcast %12 : vector<2x1x4xf32> to vector<2x256x4xf32>
    %14 = arith.subf %8, %13 : vector<2x256x4xf32>
    %15 = arith.mulf %14, %14 : vector<2x256x4xf32>
    %cst_12 = arith.constant dense<0.000000e+00> : vector<2x4xf32>
    %16 = vector.multi_reduction <add>, %15, %cst_12 [1] : vector<2x256x4xf32> to vector<2x4xf32>
    %17 = vector.shape_cast %16 : vector<2x4xf32> to vector<2x1x4xf32>
    %cst_13 = arith.constant 2.560000e+02 : f32
    %18 = vector.broadcast %cst_13 : f32 to vector<2x1x4xf32>
    %19 = arith.divf %17, %18 : vector<2x1x4xf32>
    %cst_14 = arith.constant 9.99999974E-6 : f32
    %20 = vector.broadcast %cst_14 : f32 to vector<2x1x4xf32>
    %21 = arith.addf %19, %20 : vector<2x1x4xf32>
    %22 = math.rsqrt %21 : vector<2x1x4xf32>
    %23 = vector.shape_cast %4 : vector<1x4xf32> to vector<1x1x4xf32>
    %24 = vector.broadcast %23 : vector<1x1x4xf32> to vector<2x1x4xf32>
    %25 = arith.mulf %24, %22 : vector<2x1x4xf32>
    %26 = vector.broadcast %25 : vector<2x1x4xf32> to vector<2x256x4xf32>
    %27 = arith.mulf %14, %26 : vector<2x256x4xf32>
    %28 = vector.shape_cast %5 : vector<1x4xf32> to vector<1x1x4xf32>
    %29 = vector.broadcast %28 : vector<1x1x4xf32> to vector<2x256x4xf32>
    %30 = arith.addf %27, %29 : vector<2x256x4xf32>
    %31 = vector.shape_cast %1 : vector<2x16x16x4xf32> to vector<2x256x4xf32>
    %32 = arith.addf %30, %31 : vector<2x256x4xf32>
    %cst_15 = arith.constant 0.000000e+00 : f32
    %33 = vector.broadcast %cst_15 : f32 to vector<2x256x4xf32>
    %34 = arith.cmpf oge, %32, %33 : vector<2x256x4xf32>
    %cst_16 = arith.constant 0.00999999977 : f32
    %35 = vector.broadcast %cst_16 : f32 to vector<2x256x4xf32>
    %36 = arith.mulf %35, %32 : vector<2x256x4xf32>
    %37 = arith.select %34, %32, %36 : vector<2x256x4xi1>, vector<2x256x4xf32>
    %38 = vector.shape_cast %37 : vector<2x256x4xf32> to vector<2x16x16x4xf32>
    %39 = vector.extract_strided_slice %38 {offsets = [0, 1, 0, 0], sizes = [2, 1, 16, 4], strides = [1, 1, 1, 1]} : vector<2x16x16x4xf32> to vector<2x1x16x4xf32>
    %40 = vector.extract_strided_slice %38 {offsets = [0, 14, 0, 0], sizes = [2, 1, 16, 4], strides = [1, 1, 1, 1]} : vector<2x16x16x4xf32> to vector<2x1x16x4xf32>
    %41 = tpu.concatenate %39, %38, %40 in 1 : vector<2x1x16x4xf32>, vector<2x16x16x4xf32>, vector<2x1x16x4xf32> -> vector<2x18x16x4xf32>
    %42 = vector.extract_strided_slice %41 {offsets = [0, 0, 1, 0], sizes = [2, 18, 1, 4], strides = [1, 1, 1, 1]} : vector<2x18x16x4xf32> to vector<2x18x1x4xf32>
    %43 = vector.extract_strided_slice %41 {offsets = [0, 0, 14, 0], sizes = [2, 18, 1, 4], strides = [1, 1, 1, 1]} : vector<2x18x16x4xf32> to vector<2x18x1x4xf32>
    %44 = tpu.concatenate %42, %41, %43 in 2 : vector<2x18x1x4xf32>, vector<2x18x16x4xf32>, vector<2x18x1x4xf32> -> vector<2x18x18x4xf32>
    %45 = vector.extract_strided_slice %44 {offsets = [0, 0, 0, 0], sizes = [2, 16, 16, 4], strides = [1, 1, 1, 1]} : vector<2x18x18x4xf32> to vector<2x16x16x4xf32>
    %46 = vector.extract_strided_slice %44 {offsets = [0, 0, 1, 0], sizes = [2, 16, 16, 4], strides = [1, 1, 1, 1]} : vector<2x18x18x4xf32> to vector<2x16x16x4xf32>
    %47 = vector.extract_strided_slice %44 {offsets = [0, 0, 2, 0], sizes = [2, 16, 16, 4], strides = [1, 1, 1, 1]} : vector<2x18x18x4xf32> to vector<2x16x16x4xf32>
    %48 = vector.extract_strided_slice %44 {offsets = [0, 1, 0, 0], sizes = [2, 16, 16, 4], strides = [1, 1, 1, 1]} : vector<2x18x18x4xf32> to vector<2x16x16x4xf32>
    %49 = vector.extract_strided_slice %44 {offsets = [0, 1, 1, 0], sizes = [2, 16, 16, 4], strides = [1, 1, 1, 1]} : vector<2x18x18x4xf32> to vector<2x16x16x4xf32>
    %50 = vector.extract_strided_slice %44 {offsets = [0, 1, 2, 0], sizes = [2, 16, 16, 4], strides = [1, 1, 1, 1]} : vector<2x18x18x4xf32> to vector<2x16x16x4xf32>
    %51 = vector.extract_strided_slice %44 {offsets = [0, 2, 0, 0], sizes = [2, 16, 16, 4], strides = [1, 1, 1, 1]} : vector<2x18x18x4xf32> to vector<2x16x16x4xf32>
    %52 = vector.extract_strided_slice %44 {offsets = [0, 2, 1, 0], sizes = [2, 16, 16, 4], strides = [1, 1, 1, 1]} : vector<2x18x18x4xf32> to vector<2x16x16x4xf32>
    %53 = vector.extract_strided_slice %44 {offsets = [0, 2, 2, 0], sizes = [2, 16, 16, 4], strides = [1, 1, 1, 1]} : vector<2x18x18x4xf32> to vector<2x16x16x4xf32>
    %54 = tpu.concatenate %45, %46, %47, %48, %49, %50, %51, %52, %53 in 3 : vector<2x16x16x4xf32>, vector<2x16x16x4xf32>, vector<2x16x16x4xf32>, vector<2x16x16x4xf32>, vector<2x16x16x4xf32>, vector<2x16x16x4xf32>, vector<2x16x16x4xf32>, vector<2x16x16x4xf32>, vector<2x16x16x4xf32> -> vector<2x16x16x36xf32>
    %55 = vector.shape_cast %54 : vector<2x16x16x36xf32> to vector<512x36xf32>
    %cst_17 = arith.constant dense<0.000000e+00> : vector<512x4xf32>
    %56 = tpu.matmul %55, %3, %cst_17 {dimension_numbers = #tpu.dot_dimension_numbers<[1], [0], [0], [1], [0, 0, 1, 1], [], []>} : vector<512x36xf32>, vector<36x4xf32>, vector<512x4xf32> -> vector<512x4xf32>
    %57 = vector.shape_cast %56 : vector<512x4xf32> to vector<2x256x4xf32>
    %cst_18 = arith.constant dense<0.000000e+00> : vector<2x4xf32>
    %58 = vector.multi_reduction <add>, %57, %cst_18 [1] : vector<2x256x4xf32> to vector<2x4xf32>
    %59 = vector.shape_cast %58 : vector<2x4xf32> to vector<2x1x4xf32>
    %cst_19 = arith.constant 2.560000e+02 : f32
    %60 = vector.broadcast %cst_19 : f32 to vector<2x1x4xf32>
    %61 = arith.divf %59, %60 : vector<2x1x4xf32>
    %62 = vector.broadcast %61 : vector<2x1x4xf32> to vector<2x256x4xf32>
    %63 = arith.subf %57, %62 : vector<2x256x4xf32>
    %64 = arith.mulf %63, %63 : vector<2x256x4xf32>
    %cst_20 = arith.constant dense<0.000000e+00> : vector<2x4xf32>
    %65 = vector.multi_reduction <add>, %64, %cst_20 [1] : vector<2x256x4xf32> to vector<2x4xf32>
    %66 = vector.shape_cast %65 : vector<2x4xf32> to vector<2x1x4xf32>
    %cst_21 = arith.constant 2.560000e+02 : f32
    %67 = vector.broadcast %cst_21 : f32 to vector<2x1x4xf32>
    %68 = arith.divf %66, %67 : vector<2x1x4xf32>
    %cst_22 = arith.constant 9.99999974E-6 : f32
    %69 = vector.broadcast %cst_22 : f32 to vector<2x1x4xf32>
    %70 = arith.addf %68, %69 : vector<2x1x4xf32>
    %71 = math.rsqrt %70 : vector<2x1x4xf32>
    %72 = vector.shape_cast %6 : vector<1x4xf32> to vector<1x1x4xf32>
    %73 = vector.broadcast %72 : vector<1x1x4xf32> to vector<2x1x4xf32>
    %74 = arith.mulf %73, %71 : vector<2x1x4xf32>
    %75 = vector.broadcast %74 : vector<2x1x4xf32> to vector<2x256x4xf32>
    %76 = arith.mulf %63, %75 : vector<2x256x4xf32>
    %77 = vector.shape_cast %7 : vector<1x4xf32> to vector<1x1x4xf32>
    %78 = vector.broadcast %77 : vector<1x1x4xf32> to vector<2x256x4xf32>
    %79 = arith.addf %76, %78 : vector<2x256x4xf32>
    %cst_23 = arith.constant 0.000000e+00 : f32
    %80 = vector.broadcast %cst_23 : f32 to vector<2x256x4xf32>
    %81 = arith.cmpf oge, %79, %80 : vector<2x256x4xf32>
    %cst_24 = arith.constant 0.00999999977 : f32
    %82 = vector.broadcast %cst_24 : f32 to vector<2x256x4xf32>
    %83 = arith.mulf %82, %79 : vector<2x256x4xf32>
    %84 = arith.select %81, %79, %83 : vector<2x256x4xi1>, vector<2x256x4xf32>
    %85 = vector.shape_cast %84 : vector<2x256x4xf32> to vector<2x16x16x4xf32>
    %c0_25 = arith.constant 0 : index
    %c0_26 = arith.constant 0 : index
    %c0_27 = arith.constant 0 : index
    %c0_28 = arith.constant 0 : index
    %86 = vector.load %arg5[%c0_25, %c0_26, %c0_27, %c0_28] : memref<2x16x16x4xf32, #tpu.memory_space<vmem>>, vector<2x16x16x4xf32>
    tpu.vector_store %arg5[%c0_25, %c0_26, %c0_27, %c0_28], %85 {strides = array<i32>} : memref<2x16x16x4xf32, #tpu.memory_space<vmem>>, vector<2x16x16x4xf32>,
    return
  }
  func.func @transform_0(%arg0: i32) -> (i32, i32, i32, i32) {
    %c0_i32 = arith.constant 0 : i32
    %c0_i32_0 = arith.constant 0 : i32
    %c0_i32_1 = arith.constant 0 : i32
    %c0_i32_2 = arith.constant 0 : i32
    return %arg0, %c0_i32, %c0_i32_0, %c0_i32_1 : i32, i32, i32, i32
  }
  func.func @transform_1(%arg0: i32) -> (i32, i32, i32, i32) {
    %c0_i32 = arith.constant 0 : i32
    %c0_i32_0 = arith.constant 0 : i32
    %c0_i32_1 = arith.constant 0 : i32
    %c0_i32_2 = arith.constant 0 : i32
    return %arg0, %c0_i32, %c0_i32_0, %c0_i32_1 : i32, i32, i32, i32
  }
  func.func @transform_2(%arg0: i32) -> (i32, i32) {
    %c0_i32 = arith.constant 0 : i32
    %c0_i32_0 = arith.constant 0 : i32
    %c0_i32_1 = arith.constant 0 : i32
    return %c0_i32, %c0_i32_0 : i32, i32
  }
  func.func @transform_3(%arg0: i32) -> (i32, i32) {
    %c0_i32 = arith.constant 0 : i32
    %c0_i32_0 = arith.constant 0 : i32
    %c0_i32_1 = arith.constant 0 : i32
    return %c0_i32, %c0_i32_0 : i32, i32
  }
  func.func @transform_4(%arg0: i32) -> (i32, i32, i32, i32) {
    %c0_i32 = arith.constant 0 : i32
    %c0_i32_0 = arith.constant 0 : i32
    %c0_i32_1 = arith.constant 0 : i32
    %c0_i32_2 = arith.constant 0 : i32
    return %arg0, %c0_i32, %c0_i32_0, %c0_i32_1 : i32, i32, i32, i32
  }
}

</mosaic_0001>

<bundles_post_ra>
// kernel: tpu_custom_call.1
= control target key start
LH: loop header
LB: loop body
LE: loop exit
PB: predicated region body
PF: predicated region fallthrough
CT: control target
= control target key end

     0   :  { %vm151_vm0 = vcmask 31744   ;;  %vm1091_vm1 = vcmask 1040384   ;;  %vm1470_vm2 = vcmask 1046528   ;;  %s5450_s30 = smov 4   ;;  %s5451_s5 = smov 8   ;;  %s11715_s0 = inlined_call_operand.vmem [shape: f32[2,16,16,4], index: 0, kind: input, shape index: {}]   ;;  %s11716_s2 = inlined_call_operand.vmem [shape: f32[4,4], index: 2, kind: input, shape index: {}]   ;;  %s11717_s1 = inlined_call_operand.vmem [shape: f32[2,16,16,4], index: 1, kind: input, shape index: {}]   ;;  %s11718_s3 = inlined_call_operand.vmem [shape: f32[36,4], index: 3, kind: input, shape index: {}]   ;;  %s11719_s4 = inlined_call_operand.vmem [shape: f32[2,16,16,4], index: 4, kind: output, shape index: {}]  }
   0x1   :  { %v5486_v0 = vld [vmem:[%s11715_s0] sm:$0xff]  ;;  %v5491_v1 = vld [vmem:[%s11715_s0 + $0x8] sm:$0xff]  ;;  %v5496_v2 = vld [vmem:[%s11715_s0 + $0x10] sm:$0xff]  ;;  %s5454_s13 = smov 20   ;;  %s5455_s22 = smov 24  }
   0x2   :  { %v5501_v3 = vld [vmem:[%s11715_s0 + $0x18] sm:$0xff]  ;;  %v152_v4 = vsel %vm151_vm0, %v5486_v0, 0.0  ;;  %v153_v5 = vsel %vm151_vm0, %v5491_v1, 0.0  ;;  %v155_v6 = vsel %vm151_vm0, %v5496_v2, 0.0  ;;  %v5512_v7 = vld [vmem:[%s11715_s0 + $0x20] sm:$0xff]  ;;  %v5519_v10 = vld [vmem:[%s11715_s0 + $0x28] sm:$0xff] }
   0x3   :  { %v154_v8 = vadd.f32 %v153_v5, %v152_v4  ;;  %v157_v9 = vsel %vm151_vm0, %v5501_v3, 0.0  ;;  %v159_v12 = vsel %vm151_vm0, %v5512_v7, 0.0  ;;  %v5526_v13 = vld [vmem:[%s11715_s0 + $0x30] sm:$0xff]  ;;  %v161_v15 = vsel %vm151_vm0, %v5519_v10, 0.0  ;;  %v5533_v16 = vld [vmem:[%s11715_s0 + $0x38] sm:$0xff]  ;;  %v5540_v19 = vld [vmem:[%s11715_s0 + $0x40] sm:$0xff] }
   0x4   :  { %v163_v18 = vsel %vm151_vm0, %v5526_v13, 0.0  ;;  %v5545_v21 = vld [vmem:[%s11715_s0 + $0x48] sm:$0xff]  ;;  %v165_v22 = vsel %vm151_vm0, %v5533_v16, 0.0  ;;  %v5552_v23 = vld [vmem:[%s11715_s0 + $0x100] sm:$0xff]  ;;  %v5562_v26 = vld [vmem:[%s11715_s0 + $0x110] sm:$0xff]  ;;  %v167_v29 = vsel %vm151_vm0, %v5540_v19, 0.0 }
   0x5   :  { %v156_v11 = vadd.f32 %v155_v6, %v154_v8  ;;  %v5557_v25 = vld [vmem:[%s11715_s0 + $0x108] sm:$0xff]  ;;  %v5567_v27 = vld [vmem:[%s11715_s0 + $0x118] sm:$0xff]  ;;  %v221_v28 = vsel %vm151_vm0, %v5552_v23, 0.0  ;;  %v224_v31 = vsel %vm151_vm0, %v5562_v26, 0.0  ;;  %v5580_v32 = vld [vmem:[%s11715_s0 + $0x50] sm:$0xff]  ;;  %v169_v36 = vsel %vm151_vm0, %v5545_v21, 0.0 }
   0x6   :  { %v222_v30 = vsel %vm151_vm0, %v5557_v25, 0.0  ;;  %v5585_v34 = vld [vmem:[%s11715_s0 + $0x120] sm:$0xff]  ;;  %v226_v37 = vsel %vm151_vm0, %v5567_v27, 0.0  ;;  %v5594_v38 = vld [vmem:[%s11715_s0 + $0x58] sm:$0xff]  ;;  %v5599_v40 = vld [vmem:[%s11715_s0 + $0x128] sm:$0xff]  ;;  %v171_v42 = vsel %vm151_vm0, %v5580_v32, 0.0 }
   0x7   :  { %v158_v14 = vadd.f32 %v157_v9, %v156_v11  ;;  %v223_v35 = vadd.f32 %v222_v30, %v221_v28  ;;  %v228_v43 = vsel %vm151_vm0, %v5585_v34, 0.0  ;;  %v5608_v44 = vld [vmem:[%s11715_s0 + $0x60] sm:$0xff]  ;;  %v5613_v46 = vld [vmem:[%s11715_s0 + $0x130] sm:$0xff]  ;;  %v173_v48 = vsel %vm151_vm0, %v5594_v38, 0.0  ;;  %v5622_v50 = vld [vmem:[%s11715_s0 + $0x68] sm:$0xff]  ;;  %s5456_s25 = smov 28  }
   0x8   :  { %v230_v49 = vsel %vm151_vm0, %v5599_v40, 0.0  ;;  %v5627_v52 = vld [vmem:[%s11715_s0 + $0x138] sm:$0xff]  ;;  %v175_v54 = vsel %vm151_vm0, %v5608_v44, 0.0  ;;  %v232_v55 = vsel %vm151_vm0, %v5613_v46, 0.0  ;;  %v5636_v56 = vld [vmem:[%s11715_s0 + $0x70] sm:$0xff]  ;;  %v5641_v58 = vld [vmem:[%s11715_s0 + $0x140] sm:$0xff] }
   0x9   :  { %v160_v17 = vadd.f32 %v159_v12, %v158_v14  ;;  %v225_v41 = vadd.f32 %v224_v31, %v223_v35  ;;  %v177_v60 = vsel %vm151_vm0, %v5622_v50, 0.0  ;;  %v234_v61 = vsel %vm151_vm0, %v5627_v52, 0.0  ;;  %v5650_v62 = vld [vmem:[%s11715_s0 + $0x78] sm:$0xff]  ;;  %v5655_v4 = vld [vmem:[%s11715_s0 + $0x148] sm:$0xff]  ;;  %v5664_v9 = vld [vmem:[%s11715_s0 + $0x80] sm:$0xff] }
   0xa   :  { %v179_v6 = vsel %vm151_vm0, %v5636_v56, 0.0  ;;  %v236_v8 = vsel %vm151_vm0, %v5641_v58, 0.0  ;;  %v5669_v12 = vld [vmem:[%s11715_s0 + $0x150] sm:$0xff]  ;;  %v183_v28 = vsel %vm151_vm0, %v5664_v9, 0.0 }
   0xb   :  { %v162_v20 = vadd.f32 %v161_v15, %v160_v17  ;;  %v227_v47 = vadd.f32 %v226_v37, %v225_v41  ;;  %v181_v15 = vsel %vm151_vm0, %v5650_v62, 0.0  ;;  %v238_v17 = vsel %vm151_vm0, %v5655_v4, 0.0  ;;  %v5692_v30 = vld [vmem:[%s11715_s0 + $0x90] sm:$0xff] }
   0xd   :  { %v164_v24 = vadd.f32 %v163_v18, %v162_v20  ;;  %v229_v53 = vadd.f32 %v228_v43, %v227_v47  ;;  %v5678_v18 = vld [vmem:[%s11715_s0 + $0x88] sm:$0xff] }
   0xf   :  { %v166_v33 = vadd.f32 %v165_v22, %v164_v24  ;;  %v231_v59 = vadd.f32 %v230_v49, %v229_v53  ;;  %v5683_v22 = vld [vmem:[%s11715_s0 + $0x158] sm:$0xff] }
  0x10   :  { %v242_v37 = vsel %vm151_vm0, %v5683_v22, 0.0 }
  0x11   :  { %v168_v39 = vadd.f32 %v167_v29, %v166_v33  ;;  %v233_v5 = vadd.f32 %v232_v55, %v231_v59  ;;  %v240_v29 = vsel %vm151_vm0, %v5669_v12, 0.0  ;;  %v5697_v33 = vld [vmem:[%s11715_s0 + $0x160] sm:$0xff] }
  0x12   :  { %v244_v47 = vsel %vm151_vm0, %v5697_v33, 0.0 }
  0x13   :  { %v170_v45 = vadd.f32 %v169_v36, %v168_v39  ;;  %v235_v14 = vadd.f32 %v234_v61, %v233_v5  ;;  %v185_v36 = vsel %vm151_vm0, %v5678_v18, 0.0  ;;  %v5706_v39 = vld [vmem:[%s11715_s0 + $0x98] sm:$0xff] }
  0x15   :  { %v172_v51 = vadd.f32 %v171_v42, %v170_v45  ;;  %v237_v24 = vadd.f32 %v236_v8, %v235_v14  ;;  %v5711_v42 = vld [vmem:[%s11715_s0 + $0x168] sm:$0xff]  ;;  %v187_v45 = vsel %vm151_vm0, %v5692_v30, 0.0 }
  0x16   :  { %v246_v55 = vsel %vm151_vm0, %v5711_v42, 0.0 }
  0x17   :  { %v174_v57 = vadd.f32 %v173_v48, %v172_v51  ;;  %v239_v35 = vadd.f32 %v238_v17, %v237_v24  ;;  %v5720_v48 = vld [vmem:[%s11715_s0 + $0xa0] sm:$0xff]  ;;  %v5725_v51 = vld [vmem:[%s11715_s0 + $0x170] sm:$0xff] }
  0x18   :  { %v248_v5 = vsel %vm151_vm0, %v5725_v51, 0.0 }
  0x19   :  { %v176_v63 = vadd.f32 %v175_v54, %v174_v57  ;;  %v241_v43 = vadd.f32 %v240_v29, %v239_v35  ;;  %v189_v54 = vsel %vm151_vm0, %v5706_v39, 0.0  ;;  %v5734_v57 = vld [vmem:[%s11715_s0 + $0xa8] sm:$0xff] }
  0x1b   :  { %v178_v11 = vadd.f32 %v177_v60, %v176_v63  ;;  %v243_v53 = vadd.f32 %v242_v37, %v241_v43  ;;  %v5739_v60 = vld [vmem:[%s11715_s0 + $0x178] sm:$0xff]  ;;  %v191_v63 = vsel %vm151_vm0, %v5720_v48, 0.0 }
  0x1c   :  { %v250_v17 = vsel %vm151_vm0, %v5739_v60, 0.0 }
  0x1d   :  { %v180_v20 = vadd.f32 %v179_v6, %v178_v11  ;;  %v245_v61 = vadd.f32 %v244_v47, %v243_v53  ;;  %v5748_v6 = vld [vmem:[%s11715_s0 + $0xb0] sm:$0xff]  ;;  %v5753_v11 = vld [vmem:[%s11715_s0 + $0x180] sm:$0xff] }
  0x1e   :  { %12209 = vst [vmem:[#allocation2_spill] sm:$0xff] %v5753_v11  ;;  %v252_v35 = vsel %vm151_vm0, %v5753_v11, 0.0 }
  0x1f   :  { %v182_v31 = vadd.f32 %v181_v15, %v180_v20  ;;  %v247_v14 = vadd.f32 %v246_v55, %v245_v61  ;;  %v193_v15 = vsel %vm151_vm0, %v5734_v57, 0.0  ;;  %v5762_v20 = vld [vmem:[%s11715_s0 + $0xb8] sm:$0xff] }
  0x21   :  { %v184_v41 = vadd.f32 %v183_v28, %v182_v31  ;;  %v5767_v28 = vld [vmem:[%s11715_s0 + $0x188] sm:$0xff]  ;;  %v249_v29 = vadd.f32 %v248_v5, %v247_v14  ;;  %v195_v31 = vsel %vm151_vm0, %v5748_v6, 0.0 }
  0x22   :  { %12210 = vst [vmem:[#allocation3_spill] sm:$0xff] %v5767_v28  ;;  %v254_v47 = vsel %vm151_vm0, %v5767_v28, 0.0 }
  0x23   :  { %v186_v49 = vadd.f32 %v185_v36, %v184_v41  ;;  %v5776_v36 = vld [vmem:[%s11715_s0 + $0xc0] sm:$0xff]  ;;  %v5781_v41 = vld [vmem:[%s11715_s0 + $0x190] sm:$0xff]  ;;  %v251_v43 = vadd.f32 %v250_v17, %v249_v29 }
  0x24   :  { %12211 = vst [vmem:[#allocation4_spill] sm:$0xff] %v5781_v41  ;;  %v256_v61 = vsel %vm151_vm0, %v5781_v41, 0.0 }
  0x25   :  { %v188_v59 = vadd.f32 %v187_v45, %v186_v49  ;;  %v197_v45 = vsel %vm151_vm0, %v5762_v20, 0.0  ;;  %v5790_v49 = vld [vmem:[%s11715_s0 + $0xc8] sm:$0xff]  ;;  %v253_v55 = vadd.f32 %v252_v35, %v251_v43 }
  0x27   :  { %v190_v8 = vadd.f32 %v189_v54, %v188_v59  ;;  %v5795_v54 = vld [vmem:[%s11715_s0 + $0x198] sm:$0xff]  ;;  %v199_v59 = vsel %vm151_vm0, %v5776_v36, 0.0  ;;  %v255_v14 = vadd.f32 %v254_v47, %v253_v55 }
  0x28   :  { %12212 = vst [vmem:[#allocation5_spill] sm:$0xff] %v5795_v54  ;;  %v258_v17 = vsel %vm151_vm0, %v5795_v54, 0.0 }
  0x29   :  { %v192_v24 = vadd.f32 %v191_v63, %v190_v8  ;;  %v5804_v63 = vld [vmem:[%s11715_s0 + $0xd0] sm:$0xff]  ;;  %v5809_v8 = vld [vmem:[%s11715_s0 + $0x1a0] sm:$0xff] }
  0x2a   :  { %12213 = vst [vmem:[#allocation6_spill] sm:$0xff] %v5809_v8  ;;  %v203_v35 = vsel %vm151_vm0, %v5804_v63, 0.0  ;;  %v260_v43 = vsel %vm151_vm0, %v5809_v8, 0.0 }
  0x2b   :  { %v194_v37 = vadd.f32 %v193_v15, %v192_v24  ;;  %v201_v15 = vsel %vm151_vm0, %v5790_v49, 0.0  ;;  %v5818_v24 = vld [vmem:[%s11715_s0 + $0xd8] sm:$0xff] }
  0x2c   :  { %v205_v55 = vsel %vm151_vm0, %v5818_v24, 0.0 }
  0x2d   :  { %v196_v53 = vadd.f32 %v195_v31, %v194_v37  ;;  %v257_v31 = vadd.f32 %v256_v61, %v255_v14  ;;  %v5825_v37 = vld [vmem:[%s11715_s0 + $0x1a8] sm:$0xff] }
  0x2e   :  { %12214 = vst [vmem:[#allocation7_spill] sm:$0xff] %v5825_v37  ;;  %v262_v14 = vsel %vm151_vm0, %v5825_v37, 0.0 }
  0x2f   :  { %v198_v5 = vadd.f32 %v197_v45, %v196_v53  ;;  %v5832_v45 = vld [vmem:[%s11715_s0 + $0xe0] sm:$0xff]  ;;  %v259_v53 = vadd.f32 %v258_v17, %v257_v31  ;;  %v5853_v17 = vld [vmem:[%s11715_s0 + $0xf0] sm:$0xff] }
  0x30   :  { %v207_v8 = vsel %vm151_vm0, %v5832_v45, 0.0  ;;  %v211_v37 = vsel %vm151_vm0, %v5853_v17, 0.0 }
  0x31   :  { %v200_v29 = vadd.f32 %v199_v59, %v198_v5  ;;  %v5839_v59 = vld [vmem:[%s11715_s0 + $0xe8] sm:$0xff]  ;;  %v261_v5 = vadd.f32 %v260_v43, %v259_v53  ;;  %v5860_v43 = vld [vmem:[%s11715_s0 + $0xf8] sm:$0xff] }
  0x32   :  { %v209_v31 = vsel %vm151_vm0, %v5839_v59, 0.0 }
  0x33   :  { %v202_v47 = vadd.f32 %v201_v15, %v200_v29  ;;  %v5848_v15 = vld [vmem:[%s11715_s0 + $0x1b0] sm:$0xff] }
  0x34   :  { %12215 = vst [vmem:[#allocation8_spill] sm:$0xff] %v5848_v15  ;;  %v264_v53 = vsel %vm151_vm0, %v5848_v15, 0.0 }
  0x35   :  { %v204_v61 = vadd.f32 %v203_v35, %v202_v47  ;;  %v263_v35 = vadd.f32 %v262_v14, %v261_v5  ;;  %v213_v5 = vsel %vm151_vm0, %v5860_v43, 0.0 }
  0x37   :  { %v206_v29 = vadd.f32 %v205_v55, %v204_v61  ;;  %v5869_v55 = vld [vmem:[%s11715_s0 + $0x1b8] sm:$0xff]  ;;  %v265_v14 = vadd.f32 %v264_v53, %v263_v35 }
  0x39   :  { %v208_v47 = vadd.f32 %v207_v8, %v206_v29  ;;  %v266_v8 = vsel %vm151_vm0, %v5869_v55, 0.0  ;;  %v5878_v29 = vld [vmem:[%s11715_s0 + $0x1c0] sm:$0xff] }
  0x3a   :  { %v267_v41 = vadd.f32 %v266_v8, %v265_v14  ;;  %v268_v11 = vsel %vm151_vm0, %v5878_v29, 0.0  ;;  %v5899_v8 = vld [vmem:[%s11715_s0 + $0x1d8] sm:$0xff] }
  0x3b   :  { %v210_v61 = vadd.f32 %v209_v31, %v208_v47  ;;  %v5885_v31 = vld [vmem:[%s11715_s0 + $0x1c8] sm:$0xff]  ;;  %12217 = vst [vmem:[#allocation10_spill] sm:$0xff] %v5899_v8 }
  0x3c   :  { %v269_v35 = vadd.f32 %v268_v11, %v267_v41  ;;  %v270_v53 = vsel %vm151_vm0, %v5885_v31, 0.0  ;;  %v274_v41 = vsel %vm151_vm0, %v5899_v8, 0.0  ;;  %v5922_v8 = vld [vmem:[%s11715_s0 + $0x1f0] sm:$0xff] }
  0x3d   :  { %v212_v54 = vadd.f32 %v211_v37, %v210_v61  ;;  %12220 = vst [vmem:[#allocation13_spill] sm:$0xff] %v5922_v8 }
  0x3f   :  { %v214_v15 = vadd.f32 %v213_v5, %v212_v54  ;;  %v5892_v54 = vld [vmem:[%s11715_s0 + $0x1d0] sm:$0xff]  ;;  %v271_v5 = vadd.f32 %v270_v53, %v269_v35  ;;  %v5913_v53 = vld [vmem:[%s11715_s0 + $0x1e8] sm:$0xff] }
  0x40   :  { %12216 = vst [vmem:[#allocation9_spill] sm:$0xff] %v5892_v54  ;;  %v272_v14 = vsel %vm151_vm0, %v5892_v54, 0.0  ;;  %12219 = vst [vmem:[#allocation12_spill] sm:$0xff] %v5913_v53 }
  0x41   :  { %v215_v28 = vrot.slane %v214_v15, 4 }
  0x43   :  { %v216_v37 = vadd.f32 %v215_v28, %v214_v15  ;;  %v273_v28 = vadd.f32 %v272_v14, %v271_v5  ;;  %v5906_v15 = vld [vmem:[%s11715_s0 + $0x1e0] sm:$0xff]  ;;  %v278_v14 = vsel %vm151_vm0, %v5913_v53, 0.0 }
  0x44   :  { %12218 = vst [vmem:[#allocation11_spill] sm:$0xff] %v5906_v15 }
  0x45   :  { %v217_v47 = vrot.slane %v216_v37, 2  ;;  %v275_v35 = vadd.f32 %v274_v41, %v273_v28 }
  0x47   :  { %v218_v61 = vadd.f32 %v217_v47, %v216_v37  ;;  %v276_v47 = vsel %vm151_vm0, %v5906_v15, 0.0 }
  0x48   :  { %v277_v5 = vadd.f32 %v276_v47, %v275_v35  ;;  %v280_v35 = vsel %vm151_vm0, %v5922_v8, 0.0 }
  0x49   :  { %v219_v11 = vrot.slane %v218_v61, 1 }
  0x4a   :  { %v279_v41 = vadd.f32 %v278_v14, %v277_v5 }
  0x4b   :  { %v220_v37 = vadd.f32 %v219_v11, %v218_v61 }
  0x4c   :  { %v281_v5 = vadd.f32 %v280_v35, %v279_v41 }
  0x4d   :  { %v5915_v54 = vmul.f32 0.00390625, %v220_v37 }
  0x4f   :  { %v5926_v61 = vsub.f32 %v5486_v0, %v5915_v54  ;;  %v5930_v11 = vsub.f32 %v5491_v1, %v5915_v54  ;;  %v5934_v28 = vsub.f32 %v5496_v2, %v5915_v54  ;;  %v5938_v37 = vsub.f32 %v5501_v3, %v5915_v54  ;;  %v5945_v0 = vld [vmem:[%s11715_s0 + $0x1f8] sm:$0xff] }
  0x50   :  { %12225 = vst [vmem:[#allocation18_spill] sm:$0xff] %v5945_v0  ;;  %v5949_v1 = vsub.f32 %v5512_v7, %v5915_v54  ;;  %v5959_v14 = vsub.f32 %v5519_v10, %v5915_v54  ;;  %v282_v7 = vsel %vm151_vm0, %v5945_v0, 0.0 }
  0x51   :  { %12221 = vst [vmem:[#allocation14_spill] sm:$0xff] %v5926_v61  ;;  %12222 = vst [vmem:[#allocation15_spill] sm:$0xff] %v5930_v11  ;;  %v357_v2 = vmul.f32 %v5926_v61, %v5926_v61  ;;  %v358_v47 = vmul.f32 %v5930_v11, %v5930_v11  ;;  %v359_v3 = vmul.f32 %v5934_v28, %v5934_v28 }
  0x52   :  { %12223 = vst [vmem:[#allocation16_spill] sm:$0xff] %v5934_v28  ;;  %12224 = vst [vmem:[#allocation17_spill] sm:$0xff] %v5938_v37  ;;  %v360_v8 = vmul.f32 %v5938_v37, %v5938_v37  ;;  %v5967_v61 = vsub.f32 %v5526_v13, %v5915_v54  ;;  %v361_v11 = vmul.f32 %v5949_v1, %v5949_v1 }
  0x53   :  { %12226 = vst [vmem:[#allocation19_spill] sm:$0xff] %v5949_v1  ;;  %v421_v28 = vsel %vm151_vm0, %v357_v2, 0.0  ;;  %v422_v41 = vsel %vm151_vm0, %v358_v47, 0.0  ;;  %v424_v10 = vsel %vm151_vm0, %v359_v3, 0.0  ;;  %v283_v53 = vadd.f32 %v282_v7, %v281_v5 }
  0x54   :  { %v423_v35 = vadd.f32 %v422_v41, %v421_v28  ;;  %v5976_v37 = vsub.f32 %v5533_v16, %v5915_v54  ;;  %v362_v0 = vmul.f32 %v5959_v14, %v5959_v14  ;;  %v426_v13 = vsel %vm151_vm0, %v360_v8, 0.0 }
  0x55   :  { %v5983_v1 = vsub.f32 %v5540_v19, %v5915_v54  ;;  %v363_v2 = vmul.f32 %v5967_v61, %v5967_v61  ;;  %v428_v28 = vsel %vm151_vm0, %v361_v11, 0.0  ;;  %v284_v3 = vrot.slane %v283_v53, 4 }
  0x56   :  { %v425_v15 = vadd.f32 %v424_v10, %v423_v35  ;;  %v5990_v16 = vsub.f32 %v5545_v21, %v5915_v54  ;;  %v364_v5 = vmul.f32 %v5976_v37, %v5976_v37  ;;  %v430_v8 = vsel %vm151_vm0, %v362_v0, 0.0 }
  0x57   :  { %v5997_v19 = vsub.f32 %v5580_v32, %v5915_v54  ;;  %v365_v41 = vmul.f32 %v5983_v1, %v5983_v1  ;;  %v285_v10 = vadd.f32 %v284_v3, %v283_v53  ;;  %v6004_v21 = vsub.f32 %v5594_v38, %v5915_v54 }
  0x58   :  { %v427_v47 = vadd.f32 %v426_v13, %v425_v15  ;;  %v432_v15 = vsel %vm151_vm0, %v363_v2, 0.0  ;;  %v366_v35 = vmul.f32 %v5990_v16, %v5990_v16  ;;  %v434_v0 = vsel %vm151_vm0, %v364_v5, 0.0 }
  0x59   :  { %v6011_v32 = vsub.f32 %v5608_v44, %v5915_v54  ;;  %v367_v2 = vmul.f32 %v5997_v19, %v5997_v19  ;;  %v436_v53 = vsel %vm151_vm0, %v365_v41, 0.0  ;;  %v6018_v38 = vsub.f32 %v5622_v50, %v5915_v54 }
  0x5a   :  { %v429_v7 = vadd.f32 %v428_v28, %v427_v47  ;;  %v286_v28 = vrot.slane %v285_v10, 2  ;;  %v368_v3 = vmul.f32 %v6004_v21, %v6004_v21  ;;  %v438_v5 = vsel %vm151_vm0, %v366_v35, 0.0 }
  0x5b   :  { %v6025_v44 = vsub.f32 %v5636_v56, %v5915_v54  ;;  %v440_v41 = vsel %vm151_vm0, %v367_v2, 0.0  ;;  %v6032_v50 = vsub.f32 %v5650_v62, %v5915_v54  ;;  %v6039_v56 = vsub.f32 %v5664_v9, %v5915_v54 }
  0x5c   :  { %v431_v11 = vadd.f32 %v430_v8, %v429_v7  ;;  %v287_v7 = vadd.f32 %v286_v28, %v285_v10  ;;  %v442_v35 = vsel %vm151_vm0, %v368_v3, 0.0  ;;  %v6046_v62 = vsub.f32 %v5678_v18, %v5915_v54 }
  0x5d   :  { %v371_v28 = vmul.f32 %v6025_v44, %v6025_v44  ;;  %v6053_v9 = vsub.f32 %v5692_v30, %v5915_v54  ;;  %v6060_v18 = vsub.f32 %v5706_v39, %v5915_v54  ;;  %v6069_v30 = vsub.f32 %v5720_v48, %v5915_v54 }
  0x5e   :  { %v433_v13 = vadd.f32 %v432_v15, %v431_v11  ;;  %v369_v15 = vmul.f32 %v6011_v32, %v6011_v32  ;;  %v6076_v39 = vsub.f32 %v5734_v57, %v5915_v54 }
  0x5f   :  { %v377_v57 = vmul.f32 %v6069_v30, %v6069_v30 }
  0x60   :  { %v435_v47 = vadd.f32 %v434_v0, %v433_v13  ;;  %v370_v0 = vmul.f32 %v6018_v38, %v6018_v38  ;;  %v288_v13 = vrot.slane %v287_v7, 1  ;;  %v444_v2 = vsel %vm151_vm0, %v369_v15, 0.0 }
  0x61   :  { %v448_v15 = vsel %vm151_vm0, %v371_v28, 0.0 }
  0x62   :  { %v437_v8 = vadd.f32 %v436_v53, %v435_v47  ;;  %v372_v47 = vmul.f32 %v6032_v50, %v6032_v50  ;;  %v446_v3 = vsel %vm151_vm0, %v370_v0, 0.0 }
  0x64   :  { %v439_v11 = vadd.f32 %v438_v5, %v437_v8  ;;  %v289_v8 = vadd.f32 %v288_v13, %v287_v7  ;;  %v450_v0 = vsel %vm151_vm0, %v372_v47, 0.0  ;;  %v375_v13 = vmul.f32 %v6053_v9, %v6053_v9 }
  0x66   :  { %v441_v10 = vadd.f32 %v440_v41, %v439_v11  ;;  %v373_v41 = vmul.f32 %v6039_v56, %v6039_v56 }
  0x68   :  { %v443_v53 = vadd.f32 %v442_v35, %v441_v10  ;;  %v374_v35 = vmul.f32 %v6046_v62, %v6046_v62  ;;  %v6065_v10 = vmul.f32 0.00390625, %v289_v8  ;;  %v452_v28 = vsel %vm151_vm0, %v373_v41, 0.0 }
  0x69   :  { %v6091_v8 = vsub.f32 %v5748_v6, %v5915_v54  ;;  %v456_v41 = vsel %vm151_vm0, %v375_v13, 0.0  ;;  %v378_v6 = vmul.f32 %v6076_v39, %v6076_v39 }
  0x6a   :  { %v445_v5 = vadd.f32 %v444_v2, %v443_v53  ;;  %v376_v53 = vmul.f32 %v6060_v18, %v6060_v18  ;;  %v454_v47 = vsel %vm151_vm0, %v374_v35, 0.0  ;;  %v6083_v48 = vsub.f32 %v5552_v23, %v6065_v10 }
  0x6b   :  { %v6102_v23 = vsub.f32 %v5567_v27, %v6065_v10  ;;  %v379_v13 = vmul.f32 %v6091_v8, %v6091_v8 }
  0x6c   :  { %v447_v11 = vadd.f32 %v446_v3, %v445_v5  ;;  %12227 = vst [vmem:[#allocation20_spill] sm:$0xff] %v6083_v48  ;;  %v6087_v5 = vsub.f32 %v5557_v25, %v6065_v10  ;;  %v6106_v25 = vsub.f32 %v5762_v20, %v5915_v54  ;;  %v458_v35 = vsel %vm151_vm0, %v376_v53, 0.0 }
  0x6d   :  { %12229 = vst [vmem:[#allocation22_spill] sm:$0xff] %v6102_v23  ;;  %v6121_v20 = vsub.f32 %v5776_v36, %v5915_v54  ;;  %v392_v36 = vmul.f32 %v6102_v23, %v6102_v23 }
  0x6e   :  { %v449_v7 = vadd.f32 %v448_v15, %v447_v11  ;;  %12228 = vst [vmem:[#allocation21_spill] sm:$0xff] %v6087_v5  ;;  %v6098_v15 = vsub.f32 %v5562_v26, %v6065_v10  ;;  %v389_v26 = vmul.f32 %v6083_v48, %v6083_v48  ;;  %v390_v27 = vmul.f32 %v6087_v5, %v6087_v5 }
  0x6f   :  { %v464_v5 = vsel %vm151_vm0, %v379_v13, 0.0 }
  0x70   :  { %v451_v2 = vadd.f32 %v450_v0, %v449_v7  ;;  %v6113_v7 = vsub.f32 %v5585_v34, %v6065_v10  ;;  %v6130_v34 = vsub.f32 %v5790_v49, %v5915_v54  ;;  %v6147_v49 = vsub.f32 %v5613_v46, %v6065_v10 }
  0x71   :  { %v6159_v46 = vsub.f32 %v5627_v52, %v6065_v10  ;;  %v6173_v52 = vsub.f32 %v5641_v58, %v6065_v10  ;;  %v6187_v58 = vsub.f32 %v5655_v4, %v6065_v10  ;;  %v6201_v4 = vsub.f32 %v5669_v12, %v6065_v10 }
  0x72   :  { %v453_v3 = vadd.f32 %v452_v28, %v451_v2  ;;  %v460_v28 = vsel %vm151_vm0, %v377_v57, 0.0  ;;  %v391_v2 = vmul.f32 %v6098_v15, %v6098_v15  ;;  %v380_v57 = vmul.f32 %v6106_v25, %v6106_v25  ;;  %12231 = vst [vmem:[#allocation24_spill] sm:$0xff] %v6147_v49 }
  0x73   :  { %12232 = vst [vmem:[#allocation25_spill] sm:$0xff] %v6159_v46  ;;  %v382_v13 = vmul.f32 %v6130_v34, %v6130_v34  ;;  %12233 = vst [vmem:[#allocation26_spill] sm:$0xff] %v6173_v52  ;;  %v6215_v12 = vsub.f32 %v5683_v22, %v6065_v10  ;;  %v6229_v22 = vsub.f32 %v5697_v33, %v6065_v10 }
  0x74   :  { %v455_v11 = vadd.f32 %v454_v47, %v453_v3  ;;  %v6134_v47 = vsub.f32 %v5599_v40, %v6065_v10  ;;  %v6140_v3 = vsub.f32 %v5804_v63, %v5915_v54  ;;  %v393_v40 = vmul.f32 %v6113_v7, %v6113_v7  ;;  %12234 = vst [vmem:[#allocation27_spill] sm:$0xff] %v6187_v58 }
  0x75   :  { %v381_v63 = vmul.f32 %v6121_v20, %v6121_v20  ;;  %12235 = vst [vmem:[#allocation28_spill] sm:$0xff] %v6201_v4  ;;  %12237 = vst [vmem:[#allocation30_spill] sm:$0xff] %v6215_v12  ;;  %v400_v33 = vmul.f32 %v6215_v12, %v6215_v12 }
  0x76   :  { %v457_v0 = vadd.f32 %v456_v41, %v455_v11  ;;  %12230 = vst [vmem:[#allocation23_spill] sm:$0xff] %v6134_v47  ;;  %v462_v41 = vsel %vm151_vm0, %v378_v6, 0.0  ;;  %v493_v6 = vsel %vm151_vm0, %v391_v2, 0.0  ;;  %12239 = vst [vmem:[#allocation32_spill] sm:$0xff] %v6229_v22 }
  0x78   :  { %v459_v53 = vadd.f32 %v458_v35, %v457_v0  ;;  %v490_v35 = vsel %vm151_vm0, %v389_v26, 0.0  ;;  %v491_v0 = vsel %vm151_vm0, %v390_v27, 0.0  ;;  %v495_v26 = vsel %vm151_vm0, %v392_v36, 0.0 }
  0x79   :  { %v492_v48 = vadd.f32 %v491_v0, %v490_v35  ;;  %v6166_v27 = vsub.f32 %v5818_v24, %v5915_v54  ;;  %v497_v36 = vsel %vm151_vm0, %v393_v40, 0.0  ;;  %v6180_v24 = vsub.f32 %v5832_v45, %v5915_v54 }
  0x7a   :  { %v461_v11 = vadd.f32 %v460_v28, %v459_v53  ;;  %v394_v28 = vmul.f32 %v6134_v47, %v6134_v47  ;;  %v466_v53 = vsel %vm151_vm0, %v380_v57, 0.0  ;;  %v383_v35 = vmul.f32 %v6140_v3, %v6140_v3 }
  0x7b   :  { %v494_v2 = vadd.f32 %v493_v6, %v492_v48  ;;  %v468_v57 = vsel %vm151_vm0, %v381_v63, 0.0  ;;  %v6194_v45 = vsub.f32 %v5839_v59, %v5915_v54  ;;  %v384_v0 = vmul.f32 %v6166_v27, %v6166_v27 }
  0x7c   :  { %v463_v23 = vadd.f32 %v462_v41, %v461_v11  ;;  %v395_v11 = vmul.f32 %v6147_v49, %v6147_v49  ;;  %v499_v40 = vsel %vm151_vm0, %v394_v28, 0.0  ;;  %v470_v63 = vsel %vm151_vm0, %v382_v13, 0.0 }
  0x7d   :  { %v496_v48 = vadd.f32 %v495_v26, %v494_v2  ;;  %v6208_v59 = vsub.f32 %v5853_v17, %v5915_v54  ;;  %v385_v2 = vmul.f32 %v6180_v24, %v6180_v24  ;;  %v472_v13 = vsel %vm151_vm0, %v383_v35, 0.0 }
  0x7e   :  { %v465_v41 = vadd.f32 %v464_v5, %v463_v23  ;;  %v396_v23 = vmul.f32 %v6159_v46, %v6159_v46  ;;  %v501_v28 = vsel %vm151_vm0, %v395_v11, 0.0  ;;  %v6222_v17 = vsub.f32 %v5860_v43, %v5915_v54 }
  0x7f   :  { %v498_v6 = vadd.f32 %v497_v36, %v496_v48  ;;  %12236 = vst [vmem:[#allocation29_spill] sm:$0xff] %v6208_v59  ;;  %v386_v48 = vmul.f32 %v6194_v45, %v6194_v45  ;;  %v474_v35 = vsel %vm151_vm0, %v384_v0, 0.0  ;;  %v387_v43 = vmul.f32 %v6208_v59, %v6208_v59 }
  0x80   :  { %v467_v5 = vadd.f32 %v466_v53, %v465_v41  ;;  %v397_v53 = vmul.f32 %v6173_v52, %v6173_v52  ;;  %v503_v11 = vsel %vm151_vm0, %v396_v23, 0.0  ;;  %12238 = vst [vmem:[#allocation31_spill] sm:$0xff] %v6222_v17  ;;  %v476_v54 = vsel %vm151_vm0, %v385_v2, 0.0 }
  0x81   :  { %v500_v41 = vadd.f32 %v499_v40, %v498_v6  ;;  %v6239_v0 = vsub.f32 %v5711_v42, %v6065_v10  ;;  %v6249_v2 = vsub.f32 %v5725_v51, %v6065_v10  ;;  %v401_v42 = vmul.f32 %v6229_v22, %v6229_v22 }
  0x82   :  { %v469_v26 = vadd.f32 %v468_v57, %v467_v5  ;;  %v398_v57 = vmul.f32 %v6187_v58, %v6187_v58  ;;  %v505_v23 = vsel %vm151_vm0, %v397_v53, 0.0  ;;  %v478_v53 = vsel %vm151_vm0, %v386_v48, 0.0 }
  0x83   :  { %v502_v5 = vadd.f32 %v501_v28, %v500_v41  ;;  %12240 = vst [vmem:[#allocation33_spill] sm:$0xff] %v6239_v0  ;;  %12241 = vst [vmem:[#allocation34_spill] sm:$0xff] %v6249_v2  ;;  %v402_v48 = vmul.f32 %v6239_v0, %v6239_v0 }
  0x84   :  { %v471_v36 = vadd.f32 %v470_v63, %v469_v26  ;;  %v399_v63 = vmul.f32 %v6201_v4, %v6201_v4  ;;  %v507_v28 = vsel %vm151_vm0, %v398_v57, 0.0 }
  0x85   :  { %v504_v6 = vadd.f32 %v503_v11, %v502_v5 }
  0x86   :  { %v473_v40 = vadd.f32 %v472_v13, %v471_v36  ;;  %v388_v13 = vmul.f32 %v6222_v17, %v6222_v17  ;;  %v509_v11 = vsel %vm151_vm0, %v399_v63, 0.0 }
  0x87   :  { %v506_v41 = vadd.f32 %v505_v23, %v504_v6  ;;  %v511_v23 = vsel %vm151_vm0, %v400_v33, 0.0 }
  0x88   :  { %v475_v26 = vadd.f32 %v474_v35, %v473_v40  ;;  %v480_v35 = vsel %vm151_vm0, %v387_v43, 0.0  ;;  %v6257_v40 = vsub.f32 %v5739_v60, %v6065_v10  ;;  %v482_v51 = vsel %vm151_vm0, %v388_v13, 0.0 }
  0x89   :  { %v508_v5 = vadd.f32 %v507_v28, %v506_v41  ;;  %v403_v43 = vmul.f32 %v6249_v2, %v6249_v2  ;;  %v513_v28 = vsel %vm151_vm0, %v401_v42, 0.0  ;;  %v12245_v41 = vld [vmem:[#allocation3_spill] sm:$0xff]  ;;  %v515_v13 = vsel %vm151_vm0, %v402_v48, 0.0 }
  0x8a   :  { %v477_v36 = vadd.f32 %v476_v54, %v475_v26  ;;  %12242 = vst [vmem:[#allocation35_spill] sm:$0xff] %v6257_v40  ;;  %v12243_v26 = vld [vmem:[#allocation2_spill] sm:$0xff]  ;;  %v404_v33 = vmul.f32 %v6257_v40, %v6257_v40 }
  0x8b   :  { %v510_v54 = vadd.f32 %v509_v11, %v508_v5  ;;  %v6265_v63 = vsub.f32 %v12243_v26, %v6065_v10  ;;  %v12247_v5 = vld [vmem:[#allocation4_spill] sm:$0xff] }
  0x8c   :  { %v479_v57 = vadd.f32 %v478_v53, %v477_v36  ;;  %v6272_v36 = vsub.f32 %v12245_v41, %v6065_v10 }
  0x8d   :  { %12244 = vst [vmem:[#allocation2_spill] sm:$0xff] %v6265_v63  ;;  %v512_v60 = vadd.f32 %v511_v23, %v510_v54  ;;  %v405_v42 = vmul.f32 %v6265_v63, %v6265_v63  ;;  %v517_v23 = vsel %vm151_vm0, %v403_v43, 0.0 }
  0x8e   :  { %v481_v6 = vadd.f32 %v480_v35, %v479_v57  ;;  %12246 = vst [vmem:[#allocation3_spill] sm:$0xff] %v6272_v36  ;;  %v6279_v57 = vsub.f32 %v12247_v5, %v6065_v10  ;;  %v406_v48 = vmul.f32 %v6272_v36, %v6272_v36  ;;  %v12251_v5 = vld [vmem:[#allocation6_spill] sm:$0xff] }
  0x8f   :  { %v514_v11 = vadd.f32 %v513_v28, %v512_v60  ;;  %v519_v28 = vsel %vm151_vm0, %v404_v33, 0.0  ;;  %v6293_v17 = vsub.f32 %v12251_v5, %v6065_v10  ;;  %v12255_v5 = vld [vmem:[#allocation8_spill] sm:$0xff] }
  0x90   :  { %v483_v53 = vadd.f32 %v482_v51, %v481_v6  ;;  %12248 = vst [vmem:[#allocation4_spill] sm:$0xff] %v6279_v57  ;;  %v12249_v6 = vld [vmem:[#allocation5_spill] sm:$0xff]  ;;  %v407_v43 = vmul.f32 %v6279_v57, %v6279_v57  ;;  %v6307_v36 = vsub.f32 %v12255_v5, %v6065_v10  ;;  %v6321_v5 = vsub.f32 %v5878_v29, %v6065_v10 }
  0x91   :  { %v516_v51 = vadd.f32 %v515_v13, %v514_v11  ;;  %v6286_v26 = vsub.f32 %v12249_v6, %v6065_v10  ;;  %12252 = vst [vmem:[#allocation6_spill] sm:$0xff] %v6293_v17  ;;  %v12260_v29 = vld [vmem:[#allocation9_spill] sm:$0xff] }
  0x92   :  { %v484_v35 = vrot.slane %v483_v53, 4  ;;  %12256 = vst [vmem:[#allocation8_spill] sm:$0xff] %v6307_v36  ;;  %12258 = vst [vmem:[#allocation37_spill] sm:$0xff] %v6321_v5 }
  0x93   :  { %12250 = vst [vmem:[#allocation5_spill] sm:$0xff] %v6286_v26  ;;  %v518_v60 = vadd.f32 %v517_v23, %v516_v51  ;;  %v408_v33 = vmul.f32 %v6286_v26, %v6286_v26  ;;  %v523_v23 = vsel %vm151_vm0, %v406_v48, 0.0 }
  0x94   :  { %v485_v54 = vadd.f32 %v484_v35, %v483_v53  ;;  %v521_v53 = vsel %vm151_vm0, %v405_v42, 0.0  ;;  %v12253_v35 = vld [vmem:[#allocation7_spill] sm:$0xff]  ;;  %v409_v42 = vmul.f32 %v6293_v17, %v6293_v17 }
  0x95   :  { %v520_v13 = vadd.f32 %v519_v28, %v518_v60  ;;  %v6300_v6 = vsub.f32 %v12253_v35, %v6065_v10 }
  0x96   :  { %v486_v41 = vrot.slane %v485_v54, 2 }
  0x97   :  { %12254 = vst [vmem:[#allocation7_spill] sm:$0xff] %v6300_v6  ;;  %v522_v51 = vadd.f32 %v521_v53, %v520_v13  ;;  %v410_v48 = vmul.f32 %v6300_v6, %v6300_v6  ;;  %v527_v53 = vsel %vm151_vm0, %v408_v33, 0.0 }
  0x98   :  { %v487_v11 = vadd.f32 %v486_v41, %v485_v54  ;;  %v525_v54 = vsel %vm151_vm0, %v407_v43, 0.0  ;;  %v6314_v41 = vsub.f32 %v5869_v55, %v6065_v10  ;;  %v411_v43 = vmul.f32 %v6307_v36, %v6307_v36  ;;  %v82_v36 = vld [vmem:[%s11717_s1 + $0x8] sm:$0xff] }
  0x99   :  { %v524_v28 = vadd.f32 %v523_v23, %v522_v51  ;;  %v6328_v55 = vsub.f32 %v5885_v31, %v6065_v10  ;;  %v531_v51 = vsel %vm151_vm0, %v410_v48, 0.0  ;;  %v12262_v48 = vld [vmem:[#allocation10_spill] sm:$0xff] }
  0x9a   :  { %v488_v59 = vrot.slane %v487_v11, 1  ;;  %12257 = vst [vmem:[#allocation36_spill] sm:$0xff] %v6314_v41  ;;  %v412_v33 = vmul.f32 %v6314_v41, %v6314_v41 }
  0x9b   :  { %v526_v13 = vadd.f32 %v525_v54, %v524_v28  ;;  %12259 = vst [vmem:[#allocation38_spill] sm:$0xff] %v6328_v55  ;;  %v6335_v28 = vsub.f32 %v12260_v29, %v6065_v10  ;;  %v414_v31 = vmul.f32 %v6328_v55, %v6328_v55 }
  0x9c   :  { %v489_v60 = vadd.f32 %v488_v59, %v487_v11  ;;  %v529_v59 = vsel %vm151_vm0, %v409_v42, 0.0  ;;  %v413_v42 = vmul.f32 %v6321_v5, %v6321_v5 }
  0x9d   :  { %v528_v11 = vadd.f32 %v527_v53, %v526_v13  ;;  %12261 = vst [vmem:[#allocation9_spill] sm:$0xff] %v6335_v28  ;;  %v567_v53 = vlaneseq }
  0x9e   :  { %v559_v35 = vmul.f32 0.00390625, %v489_v60  ;;  %v533_v60 = vsel %vm151_vm0, %v411_v43, 0.0  ;;  %v537_v29 = vsel %vm151_vm0, %v413_v42, 0.0 }
  0x9f   :  { %v530_v54 = vadd.f32 %v529_v59, %v528_v11  ;;  %v6345_v59 = vsub.f32 %v12262_v48, %v6065_v10  ;;  %v6350_v5 = vshrl.u32 %v567_v53, 7  ;;  %v12265_v53 = vld [vmem:[#allocation11_spill] sm:$0xff] }
  0xa0   :  { %v561_v23 = vadd.f32 1e-05, %v559_v35  ;;  %v535_v35 = vsel %vm151_vm0, %v412_v33, 0.0  ;;  %v6358_v33 = vld [vmem:[%s11716_s2] sm:$0xf] }
  0xa1   :  { %v532_v13 = vadd.f32 %v531_v51, %v530_v54  ;;  %12263 = vst [vmem:[#allocation10_spill] sm:$0xff] %v6345_v59  ;;  %12264 = vst [vmem:[#allocation39_spill] sm:$0xff] %v6350_v5  ;;  %v539_v51 = vsel %vm151_vm0, %v414_v31, 0.0  ;;  %v416_v54 = vmul.f32 %v6345_v59, %v6345_v59  ;;  %v641_v42 = vsub.s32 1, %v6350_v5 }
  0xa2   :  { %5441 = vrsqrt.f32 %v561_v23  ;;  %v415_v23 = vmul.f32 %v6335_v28, %v6335_v28 }
  0xa3   :  { %v534_v11 = vadd.f32 %v533_v60, %v532_v13 }
  0xa4   :  { %v541_v60 = vsel %vm151_vm0, %v415_v23, 0.0  ;;  %v12271_v23 = vld [vmem:[#allocation18_spill] sm:$0xff] }
  0xa5   :  { %v536_v43 = vadd.f32 %v535_v35, %v534_v11  ;;  %v6365_v35 = vsub.f32 %v12265_v53, %v6065_v10  ;;  %v12267_v11 = vld [vmem:[#allocation12_spill] sm:$0xff]  ;;  %v6377_v28 = vsub.f32 %v12271_v23, %v6065_v10  ;;  %v543_v53 = vsel %vm151_vm0, %v416_v54, 0.0 }
  0xa7   :  { %v538_v55 = vadd.f32 %v537_v29, %v536_v43  ;;  %12266 = vst [vmem:[#allocation11_spill] sm:$0xff] %v6365_v35  ;;  %v6369_v29 = vsub.f32 %v12267_v11, %v6065_v10  ;;  %v12269_v43 = vld [vmem:[#allocation13_spill] sm:$0xff]  ;;  %12272 = vst [vmem:[#allocation18_spill] sm:$0xff] %v6377_v28  ;;  %v6386_v11 = vrot.slane %v6358_v33, %v641_v42  ;;  %v83_v42 = vld [vmem:[%s11717_s1 + $0x10] sm:$0xff] }
  0xa8   :  { %v6373_v59 = vsub.f32 %v12269_v43, %v6065_v10  ;;  %v6390_v43 = vmul.f32 %v6365_v35, %v6365_v35  ;;  %v6402_v54 = vmul.f32 %v6377_v28, %v6377_v28  ;;  %v81_v35 = vld [vmem:[%s11717_s1] sm:$0xff] }
  0xa9   :  { %v540_v31 = vadd.f32 %v539_v51, %v538_v55  ;;  %12268 = vst [vmem:[#allocation12_spill] sm:$0xff] %v6369_v29  ;;  %v12273_v55 = vsub.s32 0, %v6350_v5  ;;  %v6394_v10 = vmul.f32 %v6369_v29, %v6369_v29  ;;  %v12277_v29 = vld [vmem:[#allocation14_spill] sm:$0xff] }
  0xaa   :  { %12270 = vst [vmem:[#allocation13_spill] sm:$0xff] %v6373_v59 }
  0xab   :  { %v542_v41 = vadd.f32 %v541_v60, %v540_v31  ;;  %v6398_v60 = vmul.f32 %v6373_v59, %v6373_v59  ;;  %v84_v31 = vld [vmem:[%s11717_s1 + $0x18] sm:$0xff] }
  0xac   :  { %v5442_v48 = vpop.eup %5441 }
  0xad   :  { %v565_v13 = vmul.f32 %v5442_v48, %v6358_v33  ;;  %v12275_v48 = vld [vmem:[#allocation16_spill] sm:$0xff] }
  0xaf   :  { %v6383_v51 = vrot.slane %v565_v13, %v12273_v55  ;;  %v6404_v13 = vadd.f32 %v543_v53, %v542_v41  ;;  %v12276_v55 = vld [vmem:[#allocation17_spill] sm:$0xff]  ;;  %v12278_v41 = vld [vmem:[#allocation15_spill] sm:$0xff] }
  0xb1   :  { %12274 = vst [vmem:[#allocation40_spill] sm:$0xff] %v6383_v51  ;;  %v577_v23 = vmul.f32 %v6383_v51, %v12275_v48  ;;  %v578_v59 = vmul.f32 %v6383_v51, %v12276_v55  ;;  %v575_v28 = vmul.f32 %v6383_v51, %v12277_v29  ;;  %v576_v53 = vmul.f32 %v6383_v51, %v12278_v41  ;;  %v85_v48 = vld [vmem:[%s11717_s1 + $0x20] sm:$0xff]  ;;  %v12279_v55 = vld [vmem:[#allocation19_spill] sm:$0xff] }
  0xb2   :  { %v579_v6 = vmul.f32 %v6383_v51, %v12279_v55  ;;  %v580_v29 = vmul.f32 %v6383_v51, %v5959_v14  ;;  %v581_v41 = vmul.f32 %v6383_v51, %v5967_v61  ;;  %v582_v17 = vmul.f32 %v6383_v51, %v5976_v37  ;;  %v86_v55 = vld [vmem:[%s11717_s1 + $0x28] sm:$0xff]  ;;  %v87_v14 = vld [vmem:[%s11717_s1 + $0x30] sm:$0xff]  ;;  %v88_v61 = vld [vmem:[%s11717_s1 + $0x38] sm:$0xff] }
  0xb3   :  { %v645_v26 = vadd.f32 %v6386_v11, %v577_v23  ;;  %v646_v57 = vadd.f32 %v6386_v11, %v578_v59  ;;  %v643_v63 = vadd.f32 %v6386_v11, %v575_v28  ;;  %v644_v40 = vadd.f32 %v6386_v11, %v576_v53 }
  0xb4   :  { %v647_v37 = vadd.f32 %v6386_v11, %v579_v6  ;;  %v648_v59 = vadd.f32 %v6386_v11, %v580_v29  ;;  %v649_v28 = vadd.f32 %v6386_v11, %v581_v41  ;;  %v650_v23 = vadd.f32 %v6386_v11, %v582_v17 }
  0xb5   :  { %v709_v53 = vadd.f32 %v645_v26, %v83_v42  ;;  %v710_v2 = vadd.f32 %v646_v57, %v84_v31  ;;  %v707_v0 = vadd.f32 %v643_v63, %v81_v35  ;;  %v708_v22 = vadd.f32 %v644_v40, %v82_v36 }
  0xb6   :  { %v711_v12 = vadd.f32 %v647_v37, %v85_v48  ;;  %v712_v4 = vadd.f32 %v648_v59, %v86_v55  ;;  %v713_v58 = vadd.f32 %v649_v28, %v87_v14  ;;  %v714_v52 = vadd.f32 %v650_v23, %v88_v61 }
  0xb7   :  { %vm773_vm3 = vcmp.ge.f32.partialorder %v709_v53, 0.0  ;;  %vm774_vm4 = vcmp.ge.f32.partialorder %v710_v2, 0.0  ;;  %v837_v46 = vmul.f32 0.01, %v709_v53  ;;  %v838_v49 = vmul.f32 0.01, %v710_v2 }
  0xb8   :  { %vm771_vm5 = vcmp.ge.f32.partialorder %v707_v0, 0.0  ;;  %vm772_vm6 = vcmp.ge.f32.partialorder %v708_v22, 0.0  ;;  %v835_v6 = vmul.f32 0.01, %v707_v0  ;;  %v836_v29 = vmul.f32 0.01, %v708_v22 }
  0xb9   :  { %v901_v47 = vsel %vm773_vm3, %v709_v53, %v837_v46  ;;  %v902_v41 = vsel %vm774_vm4, %v710_v2, %v838_v49  ;;  %vm775_vm7 = vcmp.ge.f32.partialorder %v711_v12, 0.0  ;;  %vm776_vm8 = vcmp.ge.f32.partialorder %v712_v4, 0.0 }
  0xba   :  { %v995_v17 = vrot.slane %v901_v47, 1  ;;  %v1092_v57 = vrot.slane %v901_v47, 7  ;;  %v1093_v63 = vrot.slane %v902_v41, 7  ;;  %v899_v40 = vsel %vm771_vm5, %v707_v0, %v835_v6 }
  0xbb   :  { %v900_v36 = vsel %vm772_vm6, %v708_v22, %v836_v29  ;;  %v996_v26 = vrot.slane %v899_v40, 1  ;;  %v1095_v35 = vrot.slane %v899_v40, 7  ;;  %v1282_v42 = vrot.slane %v902_v41, 5 }
  0xbc   :  { %v6455_v31 = vsel %vm1091_vm1, %v1092_v57, %v1093_v63  ;;  %v6458_v48 = vsel %vm1091_vm1, %v995_v17, %v1092_v57  ;;  %v1096_v55 = vrot.slane %v900_v36, 7  ;;  %v1283_v14 = vrot.slane %v900_v36, 5 }
  0xbd   :  { %v1471_v49 = vrot.slane %v6458_v48, 1  ;;  %v1472_v46 = vrot.slane %v6455_v31, 1  ;;  %v6463_v47 = vsel %vm1091_vm1, %v996_v26, %v1095_v35  ;;  %v6466_v22 = vsel %vm1091_vm1, %v1093_v63, %v1282_v42 }
  0xbe   :  { %12280 = vst [vmem:[#allocation16_spill] sm:$0xff] %v6463_v47  ;;  %v6469_v0 = vsel %vm1091_vm1, %v1095_v35, %v1096_v55  ;;  %v1476_v2 = vrot.slane %v6463_v47, 1  ;;  %v1474_v61 = vrot.slane %v6466_v22, 1  ;;  %v6474_v37 = vsel %vm1091_vm1, %v1096_v55, %v1283_v14 }
  0xbf   :  { %12281 = vst [vmem:[#allocation17_spill] sm:$0xff] %v6469_v0  ;;  %v6477_v59 = vsel %vm1470_vm2, %v1471_v49, %v1472_v46  ;;  %v1477_v28 = vrot.slane %v6469_v0, 1  ;;  %v1479_v23 = vrot.slane %v6474_v37, 1  ;;  %v839_v53 = vmul.f32 0.01, %v711_v12 }
  0xc0   :  { %12282 = vst [vmem:[#allocation14_spill] sm:$0xff] %v6477_v59  ;;  %1621 = vrot.lane.b32.xlu0 %v6477_v59, %s5450_s30  ;;  %v6484_v6 = vsel %vm1470_vm2, %v1472_v46, %v1474_v61  ;;  %v840_v29 = vmul.f32 0.01, %v712_v4  ;;  %vm777_vm9 = vcmp.ge.f32.partialorder %v713_v58, 0.0  ;;  %vm778_vm10 = vcmp.ge.f32.partialorder %v714_v52, 0.0 }
  0xc1   :  { %12283 = vst [vmem:[#allocation15_spill] sm:$0xff] %v6484_v6  ;;  %v6487_v41 = vsel %vm1470_vm2, %v1476_v2, %v1477_v28  ;;  %v6490_v17 = vsel %vm1470_vm2, %v1477_v28, %v1479_v23  ;;  %v903_v57 = vsel %vm775_vm7, %v711_v12, %v839_v53  ;;  %v841_v63 = vmul.f32 0.01, %v713_v58 }
  0xc2   :  { %12284 = vst [vmem:[#allocation19_spill] sm:$0xff] %v6487_v41  ;;  %12285 = vst [vmem:[#allocation41_spill] sm:$0xff] %v6490_v17  ;;  %1625 = vrot.lane.b32.xlu1 %v6487_v41, %s5450_s30  ;;  %v904_v40 = vsel %vm776_vm8, %v712_v4, %v840_v29  ;;  %v997_v36 = vrot.slane %v903_v57, 1  ;;  %v1098_v26 = vrot.slane %v903_v57, 7  ;;  %v842_v35 = vmul.f32 0.01, %v714_v52 }
  0xc3   :  { %v1099_v42 = vrot.slane %v904_v40, 7  ;;  %v1284_v55 = vrot.slane %v904_v40, 5  ;;  %v905_v14 = vsel %vm777_vm9, %v713_v58, %v841_v63  ;;  %v583_v49 = vmul.f32 %v6383_v51, %v5983_v1  ;;  %v89_v57 = vld [vmem:[%s11717_s1 + $0x40] sm:$0xff] }
  0xc4   :  { %1623 = vrot.lane.b32.xlu0 %v6484_v6, %s5450_s30  ;;  %v6501_v12 = vsel %vm1091_vm1, %v997_v36, %v1098_v26  ;;  %v906_v46 = vsel %vm778_vm10, %v714_v52, %v842_v35  ;;  %v998_v2 = vrot.slane %v905_v14, 1  ;;  %v1101_v61 = vrot.slane %v905_v14, 7 }
  0xc5   :  { %v6505_v4 = vsel %vm1091_vm1, %v1098_v26, %v1099_v42  ;;  %v1481_v28 = vrot.slane %v6501_v12, 1  ;;  %v6509_v58 = vsel %vm1091_vm1, %v1099_v42, %v1284_v55  ;;  %v1102_v23 = vrot.slane %v906_v46, 7 }
  0xc6   :  { %1627 = vrot.lane.b32.xlu1 %v6490_v17, %s5450_s30  ;;  %v1482_v1 = vrot.slane %v6505_v4, 1  ;;  %v1484_v53 = vrot.slane %v6509_v58, 1  ;;  %v6516_v52 = vsel %vm1091_vm1, %v998_v2, %v1101_v61  ;;  %v1285_v29 = vrot.slane %v906_v46, 5  ;;  %v90_v46 = vld [vmem:[%s11717_s1 + $0x48] sm:$0xff] }
  0xc7   :  { %v6522_v63 = vsel %vm1091_vm1, %v1101_v61, %v1102_v23  ;;  %v1486_v40 = vrot.slane %v6516_v52, 1  ;;  %v584_v36 = vmul.f32 %v6383_v51, %v5990_v16  ;;  %v651_v26 = vadd.f32 %v6386_v11, %v583_v49 }
  0xc8   :  { %v6529_v35 = vsel %vm1470_vm2, %v1481_v28, %v1482_v1  ;;  %v6532_v42 = vsel %vm1470_vm2, %v1482_v1, %v1484_v53  ;;  %v1487_v55 = vrot.slane %v6522_v63, 1  ;;  %v6536_v14 = vsel %vm1091_vm1, %v1102_v23, %v1285_v29 }
  0xc9   :  { %12286 = vst [vmem:[#allocation42_spill] sm:$0xff] %v6529_v35  ;;  %12287 = vst [vmem:[#allocation43_spill] sm:$0xff] %v6532_v42  ;;  %1629 = vrot.lane.b32.xlu0 %v6529_v35, %s5450_s30  ;;  %v1489_v16 = vrot.slane %v6536_v14, 1  ;;  %v652_v49 = vadd.f32 %v6386_v11, %v584_v36  ;;  %v715_v2 = vadd.f32 %v651_v26, %v89_v57  ;;  %v94_v26 = vld [vmem:[%s11717_s1 + $0x68] sm:$0xff] }
  0xca   :  { %v585_v61 = vmul.f32 %v6383_v51, %v5997_v19  ;;  %1631 = vrot.lane.b32.xlu1 %v6532_v42, %s5450_s30  ;;  %v6550_v28 = vsel %vm1470_vm2, %v1486_v40, %v1487_v55  ;;  %v586_v23 = vmul.f32 %v6383_v51, %v6004_v21  ;;  %v587_v1 = vmul.f32 %v6383_v51, %v6011_v32  ;;  %v91_v40 = vld [vmem:[%s11717_s1 + $0x50] sm:$0xff]  ;;  %v92_v21 = vld [vmem:[%s11717_s1 + $0x58] sm:$0xff] }
  0xcb   :  { %12288 = vst [vmem:[#allocation44_spill] sm:$0xff] %v6550_v28  ;;  %v588_v53 = vmul.f32 %v6383_v51, %v6018_v38  ;;  %v6559_v29 = vsel %vm1470_vm2, %v1487_v55, %v1489_v16  ;;  %v716_v57 = vadd.f32 %v652_v49, %v90_v46  ;;  %vm779_vm11 = vcmp.ge.f32.partialorder %v715_v2, 0.0  ;;  %v93_v38 = vld [vmem:[%s11717_s1 + $0x60] sm:$0xff] }
  0xcc   :  { %12289 = vst [vmem:[#allocation45_spill] sm:$0xff] %v6559_v29  ;;  %v843_v19 = vmul.f32 0.01, %v715_v2  ;;  %v653_v36 = vadd.f32 %v6386_v11, %v585_v61  ;;  %v654_v32 = vadd.f32 %v6386_v11, %v586_v23  ;;  %v655_v55 = vadd.f32 %v6386_v11, %v587_v1 }
  0xcd   :  { %v656_v46 = vadd.f32 %v6386_v11, %v588_v53  ;;  %1633 = vrot.lane.b32.xlu0 %v6550_v28, %s5450_s30  ;;  %vm780_vm12 = vcmp.ge.f32.partialorder %v716_v57, 0.0  ;;  %v844_v16 = vmul.f32 0.01, %v716_v57  ;;  %v589_v61 = vmul.f32 %v6383_v51, %v6025_v44 }
  0xce   :  { %v907_v49 = vsel %vm779_vm11, %v715_v2, %v843_v19  ;;  %1635 = vrot.lane.b32.xlu1 %v6559_v29, %s5450_s30  ;;  %v717_v35 = vadd.f32 %v653_v36, %v91_v40  ;;  %v718_v6 = vadd.f32 %v654_v32, %v92_v21  ;;  %v719_v1 = vadd.f32 %v655_v55, %v93_v38 }
  0xcf   :  { %v999_v23 = vrot.slane %v907_v49, 1  ;;  %v1104_v42 = vrot.slane %v907_v49, 7  ;;  %v908_v59 = vsel %vm780_vm12, %v716_v57, %v844_v16  ;;  %v720_v17 = vadd.f32 %v656_v46, %v94_v26 }
  0xd0   :  { %v590_v53 = vmul.f32 %v6383_v51, %v6032_v50  ;;  %v1105_v28 = vrot.slane %v908_v59, 7  ;;  %v1286_v2 = vrot.slane %v908_v59, 5  ;;  %vm781_vm13 = vcmp.ge.f32.partialorder %v717_v35, 0.0 }
  0xd1   :  { %v6586_v41 = vsel %vm1091_vm1, %v999_v23, %v1104_v42  ;;  %vm782_vm14 = vcmp.ge.f32.partialorder %v718_v6, 0.0  ;;  %v845_v19 = vmul.f32 0.01, %v717_v35  ;;  %v846_v29 = vmul.f32 0.01, %v718_v6 }
  0xd2   :  { %v1491_v44 = vrot.slane %v6586_v41, 1  ;;  %v6590_v40 = vsel %vm1091_vm1, %v1104_v42, %v1105_v28  ;;  %v6593_v57 = vsel %vm1091_vm1, %v1105_v28, %v1286_v2  ;;  %vm783_vm15 = vcmp.ge.f32.partialorder %v719_v1, 0.0 }
  0xd3   :  { %vm784_vm3 = vcmp.ge.f32.partialorder %v720_v17, 0.0  ;;  %v1492_v50 = vrot.slane %v6590_v40, 1  ;;  %v1494_v21 = vrot.slane %v6593_v57, 1  ;;  %v909_v36 = vsel %vm781_vm13, %v717_v35, %v845_v19  ;;  %v95_v19 = vld [vmem:[%s11717_s1 + $0x70] sm:$0xff] }
  0xd4   :  { %v910_v59 = vsel %vm782_vm14, %v718_v6, %v846_v29  ;;  %v1000_v32 = vrot.slane %v909_v36, 1  ;;  %v1107_v38 = vrot.slane %v909_v36, 7  ;;  %v847_v28 = vmul.f32 0.01, %v719_v1 }
  0xd5   :  { %v1108_v26 = vrot.slane %v910_v59, 7  ;;  %v1287_v55 = vrot.slane %v910_v59, 5  ;;  %v6598_v46 = vsel %vm1470_vm2, %v1491_v44, %v1492_v50  ;;  %v6601_v42 = vsel %vm1470_vm2, %v1492_v50, %v1494_v21 }
  0xd6   :  { %12290 = vst [vmem:[#allocation46_spill] sm:$0xff] %v6598_v46  ;;  %12291 = vst [vmem:[#allocation47_spill] sm:$0xff] %v6601_v42  ;;  %v848_v16 = vmul.f32 0.01, %v720_v17  ;;  %1637 = vrot.lane.b32.xlu0 %v6598_v46, %s5450_s30  ;;  %1639 = vrot.lane.b32.xlu1 %v6601_v42, %s5450_s30  ;;  %v6611_v35 = vsel %vm1091_vm1, %v1000_v32, %v1107_v38  ;;  %v911_v44 = vsel %vm783_vm15, %v719_v1, %v847_v28  ;;  %v96_v1 = vld [vmem:[%s11717_s1 + $0x78] sm:$0xff] }
  0xd7   :  { %v6608_v6 = vsel %vm1091_vm1, %v1107_v38, %v1108_v26  ;;  %v6614_v29 = vsel %vm1091_vm1, %v1108_v26, %v1287_v55  ;;  %v1496_v49 = vrot.slane %v6611_v35, 1  ;;  %v1001_v21 = vrot.slane %v911_v44, 1 }
  0xd8   :  { %12292 = vst [vmem:[#allocation48_spill] sm:$0xff] %v6608_v6  ;;  %v1497_v23 = vrot.slane %v6608_v6, 1  ;;  %v1499_v2 = vrot.slane %v6614_v29, 1  ;;  %v912_v50 = vsel %vm784_vm3, %v720_v17, %v848_v16  ;;  %v1110_v36 = vrot.slane %v911_v44, 7 }
  0xd9   :  { %v657_v59 = vadd.f32 %v6386_v11, %v589_v61  ;;  %v1111_v26 = vrot.slane %v912_v50, 7  ;;  %v1288_v55 = vrot.slane %v912_v50, 5  ;;  %v658_v61 = vadd.f32 %v6386_v11, %v590_v53  ;;  %v97_v53 = vld [vmem:[%s11717_s1 + $0x80] sm:$0xff] }
  0xda   :  { %v6626_v32 = vsel %vm1470_vm2, %v1496_v49, %v1497_v23  ;;  %v6629_v38 = vsel %vm1470_vm2, %v1497_v23, %v1499_v2  ;;  %v6639_v17 = vsel %vm1091_vm1, %v1001_v21, %v1110_v36  ;;  %v591_v2 = vmul.f32 %v6383_v51, %v6039_v56 }
  0xdb   :  { %12293 = vst [vmem:[#allocation49_spill] sm:$0xff] %v6626_v32  ;;  %12294 = vst [vmem:[#allocation50_spill] sm:$0xff] %v6629_v38  ;;  %1641 = vrot.lane.b32.xlu0 %v6626_v32, %s5450_s30  ;;  %1643 = vrot.lane.b32.xlu1 %v6629_v38, %s5450_s30  ;;  %v721_v28 = vadd.f32 %v657_v59, %v95_v19  ;;  %v6643_v16 = vsel %vm1091_vm1, %v1110_v36, %v1111_v26  ;;  %v1501_v49 = vrot.slane %v6639_v17, 1 }
  0xdc   :  { %12295 = vst [vmem:[#allocation51_spill] sm:$0xff] %v6639_v17  ;;  %12296 = vst [vmem:[#allocation52_spill] sm:$0xff] %v6643_v16  ;;  %v6647_v23 = vsel %vm1091_vm1, %v1111_v26, %v1288_v55  ;;  %v1502_v44 = vrot.slane %v6643_v16, 1  ;;  %v722_v21 = vadd.f32 %v658_v61, %v96_v1  ;;  %v592_v36 = vmul.f32 %v6383_v51, %v6046_v62  ;;  %v98_v61 = vld [vmem:[%s11717_s1 + $0x88] sm:$0xff] }
  0xdd   :  { %12297 = vst [vmem:[#allocation53_spill] sm:$0xff] %v6647_v23  ;;  %v1504_v50 = vrot.slane %v6647_v23, 1  ;;  %vm785_vm4 = vcmp.ge.f32.partialorder %v721_v28, 0.0  ;;  %v849_v19 = vmul.f32 0.01, %v721_v28  ;;  %v659_v59 = vadd.f32 %v6386_v11, %v591_v2 }
  0xde   :  { %v593_v26 = vmul.f32 %v6383_v51, %v6053_v9  ;;  %v6662_v56 = vsel %vm1470_vm2, %v1501_v49, %v1502_v44  ;;  %vm786_vm5 = vcmp.ge.f32.partialorder %v722_v21, 0.0  ;;  %v850_v1 = vmul.f32 0.01, %v722_v21 }
  0xdf   :  { %12298 = vst [vmem:[#allocation54_spill] sm:$0xff] %v6662_v56  ;;  %v6665_v55 = vsel %vm1470_vm2, %v1502_v44, %v1504_v50  ;;  %1645 = vrot.lane.b32.xlu0 %v6662_v56, %s5450_s30  ;;  %v913_v62 = vsel %vm785_vm4, %v721_v28, %v849_v19  ;;  %v660_v9 = vadd.f32 %v6386_v11, %v592_v36  ;;  %v99_v28 = vld [vmem:[%s11717_s1 + $0x90] sm:$0xff] }
  0xe0   :  { %12299 = vst [vmem:[#allocation55_spill] sm:$0xff] %v6665_v55  ;;  %1647 = vrot.lane.b32.xlu1 %v6665_v55, %s5450_s30  ;;  %v723_v49 = vadd.f32 %v659_v59, %v97_v53  ;;  %v914_v2 = vsel %vm786_vm5, %v722_v21, %v850_v1  ;;  %v1002_v38 = vrot.slane %v913_v62, 1  ;;  %v1113_v44 = vrot.slane %v913_v62, 7  ;;  %v100_v21 = vld [vmem:[%s11717_s1 + $0x98] sm:$0xff] }
  0xe1   :  { %v594_v50 = vmul.f32 %v6383_v51, %v6060_v18  ;;  %v1114_v32 = vrot.slane %v914_v2, 7  ;;  %v1289_v42 = vrot.slane %v914_v2, 5  ;;  %v724_v46 = vadd.f32 %v660_v9, %v98_v61 }
  0xe2   :  { %vm787_vm6 = vcmp.ge.f32.partialorder %v723_v49, 0.0  ;;  %v6678_v23 = vsel %vm1091_vm1, %v1002_v38, %v1113_v44  ;;  %v851_v56 = vmul.f32 0.01, %v723_v49  ;;  %v661_v53 = vadd.f32 %v6386_v11, %v593_v26 }
  0xe3   :  { %12300 = vst [vmem:[#allocation56_spill] sm:$0xff] %v6678_v23  ;;  %v662_v18 = vadd.f32 %v6386_v11, %v594_v50  ;;  %v6689_v19 = vsel %vm1091_vm1, %v1113_v44, %v1114_v32  ;;  %v1506_v36 = vrot.slane %v6678_v23, 1  ;;  %v6693_v38 = vsel %vm1091_vm1, %v1114_v32, %v1289_v42 }
  0xe4   :  { %12301 = vst [vmem:[#allocation57_spill] sm:$0xff] %v6689_v19  ;;  %vm788_vm7 = vcmp.ge.f32.partialorder %v724_v46, 0.0  ;;  %v1507_v59 = vrot.slane %v6689_v19, 1  ;;  %v1509_v1 = vrot.slane %v6693_v38, 1  ;;  %v852_v61 = vmul.f32 0.01, %v724_v46 }
  0xe5   :  { %v915_v62 = vsel %vm787_vm6, %v723_v49, %v851_v56  ;;  %v725_v26 = vadd.f32 %v661_v53, %v99_v28  ;;  %v726_v55 = vadd.f32 %v662_v18, %v100_v21  ;;  %v595_v42 = vmul.f32 %v6383_v51, %v6069_v30  ;;  %v101_v18 = vld [vmem:[%s11717_s1 + $0xa0] sm:$0xff] }
  0xe6   :  { %v1003_v9 = vrot.slane %v915_v62, 1  ;;  %v1116_v2 = vrot.slane %v915_v62, 7  ;;  %v6698_v50 = vsel %vm1470_vm2, %v1506_v36, %v1507_v59  ;;  %v6701_v44 = vsel %vm1470_vm2, %v1507_v59, %v1509_v1 }
  0xe7   :  { %12302 = vst [vmem:[#allocation58_spill] sm:$0xff] %v6698_v50  ;;  %12303 = vst [vmem:[#allocation59_spill] sm:$0xff] %v6701_v44  ;;  %v916_v23 = vsel %vm788_vm7, %v724_v46, %v852_v61  ;;  %1649 = vrot.lane.b32.xlu0 %v6698_v50, %s5450_s30  ;;  %1651 = vrot.lane.b32.xlu1 %v6701_v44, %s5450_s30  ;;  %vm789_vm8 = vcmp.ge.f32.partialorder %v725_v26, 0.0  ;;  %vm790_vm9 = vcmp.ge.f32.partialorder %v726_v55, 0.0  ;;  %v853_v21 = vmul.f32 0.01, %v725_v26 }
  0xe8   :  { %v1117_v32 = vrot.slane %v916_v23, 7  ;;  %v6710_v56 = vsel %vm1091_vm1, %v1003_v9, %v1116_v2  ;;  %v1290_v49 = vrot.slane %v916_v23, 5  ;;  %v854_v46 = vmul.f32 0.01, %v726_v55 }
  0xe9   :  { %12304 = vst [vmem:[#allocation60_spill] sm:$0xff] %v6710_v56  ;;  %v1511_v28 = vrot.slane %v6710_v56, 1  ;;  %v596_v36 = vmul.f32 %v6383_v51, %v6076_v39  ;;  %v663_v23 = vadd.f32 %v6386_v11, %v595_v42  ;;  %v917_v61 = vsel %vm789_vm8, %v725_v26, %v853_v21 }
  0xea   :  { %v6714_v53 = vsel %vm1091_vm1, %v1116_v2, %v1117_v32  ;;  %v6717_v30 = vsel %vm1091_vm1, %v1117_v32, %v1290_v49  ;;  %v918_v62 = vsel %vm790_vm9, %v726_v55, %v854_v46  ;;  %v1004_v9 = vrot.slane %v917_v61, 1  ;;  %v102_v49 = vld [vmem:[%s11717_s1 + $0xa8] sm:$0xff] }
  0xeb   :  { %12305 = vst [vmem:[#allocation61_spill] sm:$0xff] %v6714_v53  ;;  %v1512_v59 = vrot.slane %v6714_v53, 1  ;;  %v1514_v1 = vrot.slane %v6717_v30, 1  ;;  %v1119_v2 = vrot.slane %v917_v61, 7  ;;  %v1120_v44 = vrot.slane %v918_v62, 7 }
  0xec   :  { %v1291_v32 = vrot.slane %v918_v62, 5  ;;  %v664_v42 = vadd.f32 %v6386_v11, %v596_v36  ;;  %v727_v53 = vadd.f32 %v663_v23, %v101_v18 }
  0xed   :  { %v6731_v50 = vsel %vm1470_vm2, %v1511_v28, %v1512_v59  ;;  %v6734_v39 = vsel %vm1470_vm2, %v1512_v59, %v1514_v1  ;;  %v6742_v55 = vsel %vm1091_vm1, %v1119_v2, %v1120_v44  ;;  %v6745_v26 = vsel %vm1091_vm1, %v1004_v9, %v1119_v2  ;;  %v103_v9 = vld [vmem:[%s11717_s1 + $0xb0] sm:$0xff]  ;;  %v104_v2 = vld [vmem:[%s11717_s1 + $0xb8] sm:$0xff] }
  0xee   :  { %12306 = vst [vmem:[#allocation62_spill] sm:$0xff] %v6731_v50  ;;  %12307 = vst [vmem:[#allocation63_spill] sm:$0xff] %v6734_v39  ;;  %1653 = vrot.lane.b32.xlu0 %v6731_v50, %s5450_s30  ;;  %1655 = vrot.lane.b32.xlu1 %v6734_v39, %s5450_s30  ;;  %v6748_v28 = vsel %vm1091_vm1, %v1120_v44, %v1291_v32  ;;  %v1516_v21 = vrot.slane %v6745_v26, 1  ;;  %v1517_v46 = vrot.slane %v6742_v55, 1  ;;  %vm791_vm10 = vcmp.ge.f32.partialorder %v727_v53, 0.0 }
  0xef   :  { %12308 = vst [vmem:[#allocation64_spill] sm:$0xff] %v6742_v55  ;;  %12309 = vst [vmem:[#allocation65_spill] sm:$0xff] %v6745_v26  ;;  %v1519_v18 = vrot.slane %v6748_v28, 1  ;;  %v728_v36 = vadd.f32 %v664_v42, %v102_v49  ;;  %v855_v23 = vmul.f32 0.01, %v727_v53  ;;  %v597_v59 = vmul.f32 %v6383_v51, %v6091_v8 }
  0xf0   :  { %12310 = vst [vmem:[#allocation66_spill] sm:$0xff] %v6748_v28  ;;  %v598_v1 = vmul.f32 %v6383_v51, %v6106_v25  ;;  %v6758_v61 = vsel %vm1470_vm2, %v1516_v21, %v1517_v46  ;;  %v6777_v49 = vsel %vm151_vm0, %v6390_v43, 0.0  ;;  %v600_v43 = vmul.f32 %v6383_v51, %v6130_v34 }
  0xf1   :  { %12311 = vst [vmem:[#allocation67_spill] sm:$0xff] %v6758_v61  ;;  %v6761_v44 = vsel %vm1470_vm2, %v1517_v46, %v1519_v18  ;;  %vm792_vm11 = vcmp.ge.f32.partialorder %v728_v36, 0.0  ;;  %v856_v62 = vmul.f32 0.01, %v728_v36  ;;  %v919_v8 = vsel %vm791_vm10, %v727_v53, %v855_v23  ;;  %v105_v23 = vld [vmem:[%s11717_s1 + $0xc0] sm:$0xff] }
  0xf2   :  { %12312 = vst [vmem:[#allocation68_spill] sm:$0xff] %v6761_v44  ;;  %1657 = vrot.lane.b32.xlu0 %v6758_v61, %s5450_s30  ;;  %1659 = vrot.lane.b32.xlu1 %v6761_v44, %s5450_s30  ;;  %v665_v25 = vadd.f32 %v6386_v11, %v597_v59  ;;  %v666_v32 = vadd.f32 %v6386_v11, %v598_v1  ;;  %v1005_v21 = vrot.slane %v919_v8, 1  ;;  %v1122_v46 = vrot.slane %v919_v8, 7  ;;  %v106_v8 = vld [vmem:[%s11717_s1 + $0xc8] sm:$0xff] }
  0xf3   :  { %v920_v42 = vsel %vm792_vm11, %v728_v36, %v856_v62  ;;  %v599_v18 = vmul.f32 %v6383_v51, %v6121_v20  ;;  %v601_v59 = vmul.f32 %v6383_v51, %v6140_v3 }
  0xf4   :  { %v1123_v39 = vrot.slane %v920_v42, 7  ;;  %v1292_v61 = vrot.slane %v920_v42, 5  ;;  %v729_v50 = vadd.f32 %v665_v25, %v103_v9  ;;  %v730_v28 = vadd.f32 %v666_v32, %v104_v2 }
  0xf5   :  { %v6782_v53 = vsel %vm1091_vm1, %v1005_v21, %v1122_v46  ;;  %v667_v36 = vadd.f32 %v6386_v11, %v599_v18  ;;  %v668_v25 = vadd.f32 %v6386_v11, %v600_v43  ;;  %v602_v42 = vmul.f32 %v6383_v51, %v6166_v27 }
  0xf6   :  { %12313 = vst [vmem:[#allocation69_spill] sm:$0xff] %v6782_v53  ;;  %v6793_v20 = vsel %vm1091_vm1, %v1122_v46, %v1123_v39  ;;  %v1521_v1 = vrot.slane %v6782_v53, 1  ;;  %v6797_v62 = vsel %vm1091_vm1, %v1123_v39, %v1292_v61  ;;  %vm793_vm12 = vcmp.ge.f32.partialorder %v729_v50, 0.0 }
  0xf7   :  { %12314 = vst [vmem:[#allocation70_spill] sm:$0xff] %v6793_v20  ;;  %12315 = vst [vmem:[#allocation71_spill] sm:$0xff] %v6797_v62  ;;  %v1522_v9 = vrot.slane %v6793_v20, 1  ;;  %v1524_v2 = vrot.slane %v6797_v62, 1  ;;  %vm794_vm13 = vcmp.ge.f32.partialorder %v730_v28, 0.0  ;;  %v731_v32 = vadd.f32 %v667_v36, %v105_v23 }
  0xf8   :  { %v857_v34 = vmul.f32 0.01, %v729_v50  ;;  %v858_v3 = vmul.f32 0.01, %v730_v28  ;;  %v669_v46 = vadd.f32 %v6386_v11, %v601_v59  ;;  %v732_v36 = vadd.f32 %v668_v25, %v106_v8  ;;  %v107_v59 = vld [vmem:[%s11717_s1 + $0xd0] sm:$0xff]  ;;  %v108_v25 = vld [vmem:[%s11717_s1 + $0xd8] sm:$0xff] }
  0xf9   :  { %v6808_v39 = vsel %vm1470_vm2, %v1521_v1, %v1522_v9  ;;  %v6811_v61 = vsel %vm1470_vm2, %v1522_v9, %v1524_v2  ;;  %vm795_vm14 = vcmp.ge.f32.partialorder %v731_v32, 0.0  ;;  %v859_v1 = vmul.f32 0.01, %v731_v32 }
  0xfa   :  { %12316 = vst [vmem:[#allocation72_spill] sm:$0xff] %v6808_v39  ;;  %12317 = vst [vmem:[#allocation73_spill] sm:$0xff] %v6811_v61  ;;  %v921_v21 = vsel %vm793_vm12, %v729_v50, %v857_v34  ;;  %1661 = vrot.lane.b32.xlu0 %v6808_v39, %s5450_s30  ;;  %1663 = vrot.lane.b32.xlu1 %v6811_v61, %s5450_s30  ;;  %v922_v18 = vsel %vm794_vm13, %v730_v28, %v858_v3  ;;  %vm796_vm15 = vcmp.ge.f32.partialorder %v732_v36, 0.0 }
  0xfb   :  { %v1006_v23 = vrot.slane %v921_v21, 1  ;;  %v1125_v43 = vrot.slane %v921_v21, 7  ;;  %v1126_v27 = vrot.slane %v922_v18, 7  ;;  %v1293_v44 = vrot.slane %v922_v18, 5 }
  0xfc   :  { %v860_v50 = vmul.f32 0.01, %v732_v36  ;;  %v670_v2 = vadd.f32 %v6386_v11, %v602_v42  ;;  %v923_v3 = vsel %vm795_vm14, %v731_v32, %v859_v1  ;;  %v733_v62 = vadd.f32 %v669_v46, %v107_v59 }
  0xfd   :  { %v6819_v9 = vsel %vm1091_vm1, %v1006_v23, %v1125_v43  ;;  %v6826_v28 = vsel %vm1091_vm1, %v1125_v43, %v1126_v27  ;;  %v6830_v8 = vsel %vm1091_vm1, %v1126_v27, %v1293_v44  ;;  %v1007_v61 = vrot.slane %v923_v3, 1 }
  0xfe   :  { %12318 = vst [vmem:[#allocation74_spill] sm:$0xff] %v6819_v9  ;;  %12319 = vst [vmem:[#allocation75_spill] sm:$0xff] %v6826_v28  ;;  %v1526_v34 = vrot.slane %v6819_v9, 1  ;;  %v1527_v21 = vrot.slane %v6826_v28, 1  ;;  %v1529_v18 = vrot.slane %v6830_v8, 1  ;;  %v924_v23 = vsel %vm796_vm15, %v732_v36, %v860_v50 }
  0xff   :  { %v1128_v42 = vrot.slane %v923_v3, 7  ;;  %v1129_v39 = vrot.slane %v924_v23, 7  ;;  %v1294_v43 = vrot.slane %v924_v23, 5  ;;  %v734_v32 = vadd.f32 %v670_v2, %v108_v25 }
 0x100   :  { %v6838_v9 = vsel %vm1470_vm2, %v1526_v34, %v1527_v21  ;;  %v6841_v44 = vsel %vm1470_vm2, %v1527_v21, %v1529_v18  ;;  %v603_v27 = vmul.f32 %v6383_v51, %v6180_v24  ;;  %vm797_vm3 = vcmp.ge.f32.partialorder %v733_v62, 0.0  ;;  %v109_v21 = vld [vmem:[%s11717_s1 + $0xe0] sm:$0xff]  ;;  %v110_v18 = vld [vmem:[%s11717_s1 + $0xe8] sm:$0xff] }
 0x101   :  { %12320 = vst [vmem:[#allocation76_spill] sm:$0xff] %v6838_v9  ;;  %12321 = vst [vmem:[#allocation77_spill] sm:$0xff] %v6841_v44  ;;  %1665 = vrot.lane.b32.xlu0 %v6838_v9, %s5450_s30  ;;  %1667 = vrot.lane.b32.xlu1 %v6841_v44, %s5450_s30  ;;  %v6850_v36 = vsel %vm1091_vm1, %v1128_v42, %v1129_v39  ;;  %v6853_v46 = vsel %vm1091_vm1, %v1007_v61, %v1128_v42  ;;  %vm798_vm4 = vcmp.ge.f32.partialorder %v734_v32, 0.0 }
 0x102   :  { %12322 = vst [vmem:[#allocation78_spill] sm:$0xff] %v6850_v36  ;;  %12323 = vst [vmem:[#allocation79_spill] sm:$0xff] %v6853_v46  ;;  %v6856_v1 = vsel %vm1091_vm1, %v1129_v39, %v1294_v43  ;;  %v1531_v50 = vrot.slane %v6853_v46, 1  ;;  %v1532_v24 = vrot.slane %v6850_v36, 1  ;;  %v861_v2 = vmul.f32 0.01, %v733_v62 }
 0x103   :  { %12324 = vst [vmem:[#allocation80_spill] sm:$0xff] %v6856_v1  ;;  %v1534_v59 = vrot.slane %v6856_v1, 1  ;;  %v862_v34 = vmul.f32 0.01, %v734_v32  ;;  %v604_v3 = vmul.f32 %v6383_v51, %v6194_v45  ;;  %v671_v25 = vadd.f32 %v6386_v11, %v603_v27 }
 0x104   :  { %v6865_v61 = vsel %vm1470_vm2, %v1531_v50, %v1532_v24  ;;  %v546_v23 = vadd.f32 %v6777_v49, %v6404_v13  ;;  %v547_v45 = vsel %vm151_vm0, %v6394_v10, 0.0  ;;  %v925_v42 = vsel %vm797_vm3, %v733_v62, %v861_v2 }
 0x105   :  { %12325 = vst [vmem:[#allocation81_spill] sm:$0xff] %v6865_v61  ;;  %v6868_v39 = vsel %vm1470_vm2, %v1532_v24, %v1534_v59  ;;  %1669 = vrot.lane.b32.xlu0 %v6865_v61, %s5450_s30  ;;  %v926_v43 = vsel %vm798_vm4, %v734_v32, %v862_v34  ;;  %v672_v27 = vadd.f32 %v6386_v11, %v604_v3  ;;  %v1008_v50 = vrot.slane %v925_v42, 1 }
 0x106   :  { %12326 = vst [vmem:[#allocation82_spill] sm:$0xff] %v6868_v39  ;;  %1671 = vrot.lane.b32.xlu1 %v6868_v39, %s5450_s30  ;;  %v1131_v24 = vrot.slane %v925_v42, 7  ;;  %v1132_v59 = vrot.slane %v926_v43, 7  ;;  %v1295_v44 = vrot.slane %v926_v43, 5  ;;  %v735_v9 = vadd.f32 %v671_v25, %v109_v21 }
 0x107   :  { %v736_v13 = vadd.f32 %v672_v27, %v110_v18  ;;  %v548_v49 = vadd.f32 %v547_v45, %v546_v23  ;;  %v549_v10 = vsel %vm151_vm0, %v6398_v60, 0.0  ;;  %v551_v32 = vsel %vm151_vm0, %v6402_v54, 0.0 }
 0x108   :  { %v6889_v61 = vsel %vm1091_vm1, %v1131_v24, %v1132_v59  ;;  %v6892_v39 = vsel %vm1091_vm1, %v1008_v50, %v1131_v24  ;;  %v6895_v62 = vsel %vm1091_vm1, %v1132_v59, %v1295_v44  ;;  %vm799_vm5 = vcmp.ge.f32.partialorder %v735_v9, 0.0 }
 0x109   :  { %12327 = vst [vmem:[#allocation83_spill] sm:$0xff] %v6889_v61  ;;  %12328 = vst [vmem:[#allocation84_spill] sm:$0xff] %v6892_v39  ;;  %v1536_v2 = vrot.slane %v6892_v39, 1  ;;  %v1537_v34 = vrot.slane %v6889_v61, 1  ;;  %v1539_v3 = vrot.slane %v6895_v62, 1  ;;  %vm800_vm6 = vcmp.ge.f32.partialorder %v736_v13, 0.0 }
 0x10a   :  { %12329 = vst [vmem:[#allocation85_spill] sm:$0xff] %v6895_v62  ;;  %v863_v60 = vmul.f32 0.01, %v735_v9  ;;  %v864_v25 = vmul.f32 0.01, %v736_v13  ;;  %v550_v21 = vadd.f32 %v549_v10, %v548_v49 }
 0x10b   :  { %v6903_v18 = vsel %vm1470_vm2, %v1536_v2, %v1537_v34  ;;  %v6906_v44 = vsel %vm1470_vm2, %v1537_v34, %v1539_v3 }
 0x10c   :  { %12330 = vst [vmem:[#allocation86_spill] sm:$0xff] %v6903_v18  ;;  %12331 = vst [vmem:[#allocation87_spill] sm:$0xff] %v6906_v44  ;;  %1673 = vrot.lane.b32.xlu0 %v6903_v18, %s5450_s30  ;;  %1675 = vrot.lane.b32.xlu1 %v6906_v44, %s5450_s30  ;;  %v927_v54 = vsel %vm799_vm5, %v735_v9, %v863_v60  ;;  %v928_v23 = vsel %vm800_vm6, %v736_v13, %v864_v25 }
 0x10d   :  { %v552_v45 = vadd.f32 %v551_v32, %v550_v21  ;;  %v1009_v42 = vrot.slane %v927_v54, 1  ;;  %v1134_v43 = vrot.slane %v927_v54, 7  ;;  %v1135_v27 = vrot.slane %v928_v23, 7 }
 0x10e   :  { %v1296_v50 = vrot.slane %v928_v23, 5 }
 0x10f   :  { %v553_v24 = vrot.slane %v552_v45, 4  ;;  %v6913_v59 = vsel %vm1091_vm1, %v1134_v43, %v1135_v27  ;;  %v6916_v49 = vsel %vm1091_vm1, %v1009_v42, %v1134_v43 }
 0x110   :  { %12332 = vst [vmem:[#allocation88_spill] sm:$0xff] %v6913_v59  ;;  %12333 = vst [vmem:[#allocation89_spill] sm:$0xff] %v6916_v49  ;;  %v6919_v10 = vsel %vm1091_vm1, %v1135_v27, %v1296_v50  ;;  %v1541_v2 = vrot.slane %v6916_v49, 1  ;;  %v1542_v9 = vrot.slane %v6913_v59, 1  ;;  %v12337_v27 = vsub.s32 0, %v6350_v5 }
 0x111   :  { %12334 = vst [vmem:[#allocation90_spill] sm:$0xff] %v6919_v10  ;;  %v1544_v13 = vrot.slane %v6919_v10, 1  ;;  %v554_v32 = vadd.f32 %v553_v24, %v552_v45  ;;  %v115_v24 = vld [vmem:[%s11717_s1 + $0x110] sm:$0xff] }
 0x112   :  { %v6925_v34 = vsel %vm1470_vm2, %v1541_v2, %v1542_v9  ;;  %v116_v2 = vld [vmem:[%s11717_s1 + $0x118] sm:$0xff] }
 0x113   :  { %12335 = vst [vmem:[#allocation91_spill] sm:$0xff] %v6925_v34  ;;  %v6928_v3 = vsel %vm1470_vm2, %v1542_v9, %v1544_v13  ;;  %v555_v60 = vrot.slane %v554_v32, 2  ;;  %1677 = vrot.lane.b32.xlu0 %v6925_v34, %s5450_s30  ;;  %v12339_v13 = vld [vmem:[#allocation22_spill] sm:$0xff] }
 0x114   :  { %12336 = vst [vmem:[#allocation92_spill] sm:$0xff] %v6928_v3  ;;  %1679 = vrot.lane.b32.xlu1 %v6928_v3, %s5450_s30 }
 0x115   :  { %v556_v25 = vadd.f32 %v555_v60, %v554_v32  ;;  %v12340_v60 = vld [vmem:[#allocation20_spill] sm:$0xff] }
 0x117   :  { %v557_v21 = vrot.slane %v556_v25, 1 }
 0x119   :  { %v558_v54 = vadd.f32 %v557_v21, %v556_v25  ;;  %v12341_v25 = vld [vmem:[#allocation21_spill] sm:$0xff] }
 0x11b   :  { %v560_v23 = vmul.f32 0.00390625, %v558_v54  ;;  %v113_v54 = vld [vmem:[%s11717_s1 + $0x100] sm:$0xff] }
 0x11d   :  { %v562_v42 = vadd.f32 1e-05, %v560_v23  ;;  %v114_v23 = vld [vmem:[%s11717_s1 + $0x108] sm:$0xff] }
 0x11f   :  { %5443 = vrsqrt.f32 %v562_v42 }
 0x129   :  { %v5444_v45 = vpop.eup %5443 }
 0x12a   :  { %v566_v43 = vmul.f32 %v5444_v45, %v6358_v33  ;;  %v12342_v45 = vld [vmem:[#allocation23_spill] sm:$0xff] }
 0x12c   :  { %v6937_v50 = vrot.slane %v566_v43, %v12337_v27  ;;  %v12343_v27 = vld [vmem:[#allocation24_spill] sm:$0xff] }
 0x12e   :  { %12338 = vst [vmem:[#allocation93_spill] sm:$0xff] %v6937_v50  ;;  %v609_v9 = vmul.f32 %v6937_v50, %v6098_v15  ;;  %v610_v32 = vmul.f32 %v6937_v50, %v12339_v13  ;;  %v607_v33 = vmul.f32 %v6937_v50, %v12340_v60  ;;  %v608_v21 = vmul.f32 %v6937_v50, %v12341_v25  ;;  %v117_v15 = vld [vmem:[%s11717_s1 + $0x120] sm:$0xff]  ;;  %v12344_v60 = vld [vmem:[#allocation25_spill] sm:$0xff] }
 0x12f   :  { %v611_v42 = vmul.f32 %v6937_v50, %v6113_v7  ;;  %v612_v43 = vmul.f32 %v6937_v50, %v12342_v45  ;;  %v613_v13 = vmul.f32 %v6937_v50, %v12343_v27  ;;  %v614_v25 = vmul.f32 %v6937_v50, %v12344_v60  ;;  %v118_v7 = vld [vmem:[%s11717_s1 + $0x128] sm:$0xff]  ;;  %v119_v45 = vld [vmem:[%s11717_s1 + $0x130] sm:$0xff]  ;;  %v120_v27 = vld [vmem:[%s11717_s1 + $0x138] sm:$0xff] }
 0x130   :  { %v677_v5 = vadd.f32 %v6386_v11, %v609_v9  ;;  %v678_v3 = vadd.f32 %v6386_v11, %v610_v32  ;;  %v675_v34 = vadd.f32 %v6386_v11, %v607_v33  ;;  %v676_v44 = vadd.f32 %v6386_v11, %v608_v21 }
 0x131   :  { %v679_v9 = vadd.f32 %v6386_v11, %v611_v42  ;;  %v680_v32 = vadd.f32 %v6386_v11, %v612_v43  ;;  %v681_v33 = vadd.f32 %v6386_v11, %v613_v13  ;;  %v682_v21 = vadd.f32 %v6386_v11, %v614_v25 }
 0x132   :  { %v741_v60 = vadd.f32 %v677_v5, %v115_v24  ;;  %v742_v18 = vadd.f32 %v678_v3, %v116_v2  ;;  %v739_v51 = vadd.f32 %v675_v34, %v113_v54  ;;  %v740_v10 = vadd.f32 %v676_v44, %v114_v23 }
 0x133   :  { %v743_v59 = vadd.f32 %v679_v9, %v117_v15  ;;  %v744_v49 = vadd.f32 %v680_v32, %v118_v7  ;;  %v745_v62 = vadd.f32 %v681_v33, %v119_v45  ;;  %v6987_v61 = vadd.f32 %v682_v21, %v120_v27 }
 0x134   :  { %vm805_vm7 = vcmp.ge.f32.partialorder %v741_v60, 0.0  ;;  %vm806_vm8 = vcmp.ge.f32.partialorder %v742_v18, 0.0  ;;  %v869_v39 = vmul.f32 0.01, %v741_v60  ;;  %v870_v1 = vmul.f32 0.01, %v742_v18 }
 0x135   :  { %vm803_vm9 = vcmp.ge.f32.partialorder %v739_v51, 0.0  ;;  %vm804_vm10 = vcmp.ge.f32.partialorder %v740_v10, 0.0  ;;  %v867_v42 = vmul.f32 0.01, %v739_v51  ;;  %v868_v43 = vmul.f32 0.01, %v740_v10 }
 0x136   :  { %v933_v13 = vsel %vm805_vm7, %v741_v60, %v869_v39  ;;  %v934_v36 = vsel %vm806_vm8, %v742_v18, %v870_v1  ;;  %vm807_vm11 = vcmp.ge.f32.partialorder %v743_v59, 0.0  ;;  %vm808_vm12 = vcmp.ge.f32.partialorder %v744_v49, 0.0 }
 0x137   :  { %v1011_v5 = vrot.slane %v933_v13, 1  ;;  %v1140_v34 = vrot.slane %v933_v13, 7  ;;  %v1141_v44 = vrot.slane %v934_v36, 7  ;;  %v1298_v3 = vrot.slane %v934_v36, 5 }
 0x138   :  { %v931_v24 = vsel %vm803_vm9, %v739_v51, %v867_v42  ;;  %v932_v2 = vsel %vm804_vm10, %v740_v10, %v868_v43  ;;  %v871_v54 = vmul.f32 0.01, %v743_v59  ;;  %v872_v23 = vmul.f32 0.01, %v744_v49 }
 0x139   :  { %v6990_v15 = vsel %vm1091_vm1, %v1140_v34, %v1141_v44  ;;  %v6993_v25 = vsel %vm1091_vm1, %v1011_v5, %v1140_v34  ;;  %v6996_v7 = vsel %vm1091_vm1, %v1141_v44, %v1298_v3  ;;  %v1012_v1 = vrot.slane %v931_v24, 1 }
 0x13a   :  { %v1546_v39 = vrot.slane %v6993_v25, 1  ;;  %v1547_v18 = vrot.slane %v6990_v15, 1  ;;  %v1549_v36 = vrot.slane %v6996_v7, 1  ;;  %v1143_v51 = vrot.slane %v931_v24, 7 }
 0x13b   :  { %v1144_v10 = vrot.slane %v932_v2, 7  ;;  %v1299_v45 = vrot.slane %v932_v2, 5  ;;  %v935_v27 = vsel %vm807_vm11, %v743_v59, %v871_v54  ;;  %v936_v9 = vsel %vm808_vm12, %v744_v49, %v872_v23 }
 0x13c   :  { %v7004_v32 = vsel %vm1470_vm2, %v1546_v39, %v1547_v18  ;;  %v7007_v33 = vsel %vm1470_vm2, %v1547_v18, %v1549_v36  ;;  %v7010_v21 = vsel %vm1091_vm1, %v1012_v1, %v1143_v51  ;;  %v1013_v60 = vrot.slane %v935_v27, 1 }
 0x13d   :  { %12345 = vst [vmem:[#allocation22_spill] sm:$0xff] %v7004_v32  ;;  %12346 = vst [vmem:[#allocation20_spill] sm:$0xff] %v7007_v33  ;;  %1681 = vrot.lane.b32.xlu0 %v7004_v32, %s5450_s30  ;;  %1683 = vrot.lane.b32.xlu1 %v7007_v33, %s5450_s30  ;;  %v7017_v59 = vsel %vm1091_vm1, %v1143_v51, %v1144_v10  ;;  %v1551_v49 = vrot.slane %v7010_v21, 1  ;;  %v7021_v42 = vsel %vm1091_vm1, %v1144_v10, %v1299_v45  ;;  %v12364_v33 = vld [vmem:[#allocation32_spill] sm:$0xff] }
 0x13e   :  { %12347 = vst [vmem:[#allocation21_spill] sm:$0xff] %v7010_v21  ;;  %12348 = vst [vmem:[#allocation23_spill] sm:$0xff] %v7017_v59  ;;  %v1146_v43 = vrot.slane %v935_v27, 7  ;;  %v1552_v13 = vrot.slane %v7017_v59, 1  ;;  %v1554_v5 = vrot.slane %v7021_v42, 1  ;;  %v1147_v34 = vrot.slane %v936_v9, 7 }
 0x13f   :  { %12349 = vst [vmem:[#allocation24_spill] sm:$0xff] %v7021_v42  ;;  %v1300_v44 = vrot.slane %v936_v9, 5  ;;  %vm809_vm13 = vcmp.ge.f32.partialorder %v745_v62, 0.0  ;;  %vm810_vm14 = vcmp.ge.f32.partialorder %v6987_v61, 0.0  ;;  %v873_v24 = vmul.f32 0.01, %v745_v62 }
 0x140   :  { %v7026_v3 = vsel %vm1091_vm1, %v1013_v60, %v1146_v43  ;;  %v7030_v2 = vsel %vm1470_vm2, %v1551_v49, %v1552_v13  ;;  %v7033_v54 = vsel %vm1470_vm2, %v1552_v13, %v1554_v5  ;;  %v7036_v23 = vsel %vm1091_vm1, %v1146_v43, %v1147_v34  ;;  %v12355_v9 = vld [vmem:[#allocation26_spill] sm:$0xff]  ;;  %v12357_v13 = vld [vmem:[#allocation27_spill] sm:$0xff] }
 0x141   :  { %12350 = vst [vmem:[#allocation25_spill] sm:$0xff] %v7026_v3  ;;  %12351 = vst [vmem:[#allocation94_spill] sm:$0xff] %v7030_v2  ;;  %v1556_v1 = vrot.slane %v7026_v3, 1  ;;  %1685 = vrot.lane.b32.xlu0 %v7030_v2, %s5450_s30  ;;  %1687 = vrot.lane.b32.xlu1 %v7033_v54, %s5450_s30  ;;  %v1557_v39 = vrot.slane %v7036_v23, 1  ;;  %v7045_v18 = vsel %vm1091_vm1, %v1147_v34, %v1300_v44  ;;  %v874_v36 = vmul.f32 0.01, %v6987_v61 }
 0x142   :  { %12352 = vst [vmem:[#allocation95_spill] sm:$0xff] %v7033_v54  ;;  %12353 = vst [vmem:[#allocation96_spill] sm:$0xff] %v7036_v23  ;;  %v937_v51 = vsel %vm809_vm13, %v745_v62, %v873_v24  ;;  %v1559_v10 = vrot.slane %v7045_v18, 1  ;;  %v615_v60 = vmul.f32 %v6937_v50, %v12355_v9  ;;  %v616_v5 = vmul.f32 %v6937_v50, %v12357_v13  ;;  %v12358_v34 = vld [vmem:[#allocation28_spill] sm:$0xff] }
 0x143   :  { %12354 = vst [vmem:[#allocation97_spill] sm:$0xff] %v7045_v18  ;;  %v1014_v45 = vrot.slane %v937_v51, 1  ;;  %v1149_v27 = vrot.slane %v937_v51, 7  ;;  %v7052_v49 = vsel %vm1470_vm2, %v1556_v1, %v1557_v39  ;;  %v938_v43 = vsel %vm810_vm14, %v6987_v61, %v874_v36  ;;  %v121_v1 = vld [vmem:[%s11717_s1 + $0x140] sm:$0xff]  ;;  %v122_v61 = vld [vmem:[%s11717_s1 + $0x148] sm:$0xff] }
 0x144   :  { %12356 = vst [vmem:[#allocation26_spill] sm:$0xff] %v7052_v49  ;;  %v617_v62 = vmul.f32 %v6937_v50, %v12358_v34  ;;  %v7062_v44 = vsel %vm1470_vm2, %v1557_v39, %v1559_v10  ;;  %v1150_v24 = vrot.slane %v938_v43, 7  ;;  %v1301_v9 = vrot.slane %v938_v43, 5  ;;  %v12361_v43 = vld [vmem:[#allocation30_spill] sm:$0xff] }
 0x145   :  { %12359 = vst [vmem:[#allocation27_spill] sm:$0xff] %v7062_v44  ;;  %v7065_v51 = vsel %vm1091_vm1, %v1014_v45, %v1149_v27  ;;  %1689 = vrot.lane.b32.xlu0 %v7052_v49, %s5450_s30  ;;  %1691 = vrot.lane.b32.xlu1 %v7062_v44, %s5450_s30  ;;  %v683_v36 = vadd.f32 %v6386_v11, %v615_v60  ;;  %v123_v45 = vld [vmem:[%s11717_s1 + $0x150] sm:$0xff] }
 0x146   :  { %12360 = vst [vmem:[#allocation28_spill] sm:$0xff] %v7065_v51  ;;  %v1561_v39 = vrot.slane %v7065_v51, 1  ;;  %v684_v10 = vadd.f32 %v6386_v11, %v616_v5  ;;  %v618_v13 = vmul.f32 %v6937_v50, %v12361_v43  ;;  %v7086_v34 = vsel %vm1091_vm1, %v1149_v27, %v1150_v24  ;;  %v124_v43 = vld [vmem:[%s11717_s1 + $0x158] sm:$0xff] }
 0x147   :  { %12362 = vst [vmem:[#allocation30_spill] sm:$0xff] %v7086_v34  ;;  %v7089_v49 = vsel %vm1091_vm1, %v1150_v24, %v1301_v9  ;;  %v685_v44 = vadd.f32 %v6386_v11, %v617_v62  ;;  %v619_v60 = vmul.f32 %v6937_v50, %v12364_v33  ;;  %v1562_v5 = vrot.slane %v7086_v34, 1  ;;  %v125_v62 = vld [vmem:[%s11717_s1 + $0x160] sm:$0xff]  ;;  %v12365_v24 = vld [vmem:[#allocation33_spill] sm:$0xff] }
 0x148   :  { %12363 = vst [vmem:[#allocation98_spill] sm:$0xff] %v7089_v49  ;;  %v1564_v32 = vrot.slane %v7089_v49, 1  ;;  %v747_v54 = vadd.f32 %v683_v36, %v121_v1  ;;  %v748_v2 = vadd.f32 %v684_v10, %v122_v61  ;;  %v686_v27 = vadd.f32 %v6386_v11, %v618_v13  ;;  %v12368_v13 = vld [vmem:[#allocation34_spill] sm:$0xff] }
 0x149   :  { %v749_v51 = vadd.f32 %v685_v44, %v123_v45  ;;  %v620_v33 = vmul.f32 %v6937_v50, %v12365_v24  ;;  %v687_v9 = vadd.f32 %v6386_v11, %v619_v60  ;;  %v7107_v49 = vsel %vm1470_vm2, %v1561_v39, %v1562_v5  ;;  %v126_v39 = vld [vmem:[%s11717_s1 + $0x168] sm:$0xff] }
 0x14a   :  { %12366 = vst [vmem:[#allocation32_spill] sm:$0xff] %v7107_v49  ;;  %v7110_v1 = vsel %vm1470_vm2, %v1562_v5, %v1564_v32  ;;  %vm811_vm15 = vcmp.ge.f32.partialorder %v747_v54, 0.0  ;;  %vm812_vm3 = vcmp.ge.f32.partialorder %v748_v2, 0.0  ;;  %1693 = vrot.lane.b32.xlu0 %v7107_v49, %s5450_s30  ;;  %v875_v44 = vmul.f32 0.01, %v747_v54 }
 0x14b   :  { %12367 = vst [vmem:[#allocation33_spill] sm:$0xff] %v7110_v1  ;;  %1695 = vrot.lane.b32.xlu1 %v7110_v1, %s5450_s30  ;;  %v876_v61 = vmul.f32 0.01, %v748_v2  ;;  %v750_v36 = vadd.f32 %v686_v27, %v124_v43  ;;  %vm813_vm4 = vcmp.ge.f32.partialorder %v749_v51, 0.0  ;;  %v877_v10 = vmul.f32 0.01, %v749_v51 }
 0x14c   :  { %v688_v32 = vadd.f32 %v6386_v11, %v620_v33  ;;  %v751_v45 = vadd.f32 %v687_v9, %v125_v62  ;;  %v621_v60 = vmul.f32 %v6937_v50, %v12368_v13  ;;  %v939_v5 = vsel %vm811_vm15, %v747_v54, %v875_v44 }
 0x14d   :  { %v940_v24 = vsel %vm812_vm3, %v748_v2, %v876_v61  ;;  %vm814_vm5 = vcmp.ge.f32.partialorder %v750_v36, 0.0  ;;  %v878_v49 = vmul.f32 0.01, %v750_v36  ;;  %v1015_v1 = vrot.slane %v939_v5, 1 }
 0x14e   :  { %v1152_v34 = vrot.slane %v939_v5, 7  ;;  %v1153_v18 = vrot.slane %v940_v24, 7  ;;  %v1302_v43 = vrot.slane %v940_v24, 5  ;;  %v941_v27 = vsel %vm813_vm4, %v749_v51, %v877_v10 }
 0x14f   :  { %v942_v23 = vsel %vm814_vm5, %v750_v36, %v878_v49  ;;  %v752_v3 = vadd.f32 %v688_v32, %v126_v39  ;;  %vm815_vm6 = vcmp.ge.f32.partialorder %v751_v45, 0.0  ;;  %v1016_v2 = vrot.slane %v941_v27, 1 }
 0x150   :  { %v7123_v42 = vsel %vm1091_vm1, %v1152_v34, %v1153_v18  ;;  %v7126_v62 = vsel %vm1091_vm1, %v1015_v1, %v1152_v34  ;;  %v7129_v33 = vsel %vm1091_vm1, %v1153_v18, %v1302_v43  ;;  %v1155_v51 = vrot.slane %v941_v27, 7 }
 0x151   :  { %12369 = vst [vmem:[#allocation34_spill] sm:$0xff] %v7123_v42  ;;  %12370 = vst [vmem:[#allocation99_spill] sm:$0xff] %v7126_v62  ;;  %v1566_v54 = vrot.slane %v7126_v62, 1  ;;  %v1567_v9 = vrot.slane %v7123_v42, 1  ;;  %v1569_v44 = vrot.slane %v7129_v33, 1  ;;  %v1156_v49 = vrot.slane %v942_v23, 7 }
 0x152   :  { %12371 = vst [vmem:[#allocation100_spill] sm:$0xff] %v7129_v33  ;;  %v1303_v61 = vrot.slane %v942_v23, 5  ;;  %vm816_vm7 = vcmp.ge.f32.partialorder %v752_v3, 0.0  ;;  %v879_v36 = vmul.f32 0.01, %v751_v45  ;;  %v7141_v18 = vsel %vm1091_vm1, %v1016_v2, %v1155_v51 }
 0x153   :  { %v7135_v10 = vsel %vm1470_vm2, %v1566_v54, %v1567_v9  ;;  %v7138_v34 = vsel %vm1470_vm2, %v1567_v9, %v1569_v44  ;;  %12374 = vst [vmem:[#allocation103_spill] sm:$0xff] %v7141_v18  ;;  %v880_v1 = vmul.f32 0.01, %v752_v3  ;;  %v7148_v23 = vsel %vm1091_vm1, %v1155_v51, %v1156_v49  ;;  %v12377_v44 = vld [vmem:[#allocation35_spill] sm:$0xff] }
 0x154   :  { %12372 = vst [vmem:[#allocation101_spill] sm:$0xff] %v7135_v10  ;;  %12373 = vst [vmem:[#allocation102_spill] sm:$0xff] %v7138_v34  ;;  %1697 = vrot.lane.b32.xlu0 %v7135_v10, %s5450_s30  ;;  %1699 = vrot.lane.b32.xlu1 %v7138_v34, %s5450_s30  ;;  %v1571_v39 = vrot.slane %v7141_v18, 1  ;;  %v7152_v32 = vsel %vm1091_vm1, %v1156_v49, %v1303_v61  ;;  %v943_v13 = vsel %vm815_vm6, %v751_v45, %v879_v36  ;;  %v7159_v34 = vpop.permute.xlu0 %1621  ;;  %v7161_v10 = vpop.permute.xlu1 %1625  ;;  %v12382_v36 = vld [vmem:[#allocation2_spill] sm:$0xff] }
 0x155   :  { %12375 = vst [vmem:[#allocation104_spill] sm:$0xff] %v7148_v23  ;;  %12376 = vst [vmem:[#allocation105_spill] sm:$0xff] %v7152_v32  ;;  %v1572_v5 = vrot.slane %v7148_v23, 1  ;;  %v1574_v24 = vrot.slane %v7152_v32, 1  ;;  %v944_v43 = vsel %vm816_vm7, %v752_v3, %v880_v1  ;;  %v1017_v27 = vrot.slane %v943_v13, 1  ;;  %v127_v3 = vld [vmem:[%s11717_s1 + $0x170] sm:$0xff] }
 0x156   :  { %v1158_v2 = vrot.slane %v943_v13, 7  ;;  %v1159_v54 = vrot.slane %v944_v43, 7  ;;  %v1304_v9 = vrot.slane %v944_v43, 5  ;;  %v622_v51 = vmul.f32 %v6937_v50, %v12377_v44  ;;  %12378 = vst [vmem:[#allocation35_spill] sm:$0xff] %v7159_v34  ;;  %12379 = vst [vmem:[#allocation106_spill] sm:$0xff] %v7161_v10  ;;  %v12386_v10 = vld [vmem:[#allocation3_spill] sm:$0xff] }
 0x157   :  { %v7164_v49 = vsel %vm1470_vm2, %v1571_v39, %v1572_v5  ;;  %v7167_v45 = vsel %vm1470_vm2, %v1572_v5, %v1574_v24  ;;  %v689_v61 = vadd.f32 %v6386_v11, %v621_v60  ;;  %v623_v1 = vmul.f32 %v6937_v50, %v12382_v36  ;;  %v128_v60 = vld [vmem:[%s11717_s1 + $0x178] sm:$0xff]  ;;  %v12387_v34 = vld [vmem:[#allocation4_spill] sm:$0xff] }
 0x158   :  { %12380 = vst [vmem:[#allocation107_spill] sm:$0xff] %v7164_v49  ;;  %12381 = vst [vmem:[#allocation108_spill] sm:$0xff] %v7167_v45  ;;  %1701 = vrot.lane.b32.xlu0 %v7164_v49, %s5450_s30  ;;  %1703 = vrot.lane.b32.xlu1 %v7167_v45, %s5450_s30  ;;  %v7180_v39 = vsel %vm1091_vm1, %v1158_v2, %v1159_v54  ;;  %v7183_v13 = vsel %vm1091_vm1, %v1017_v27, %v1158_v2  ;;  %v129_v27 = vld [vmem:[%s11717_s1 + $0x180] sm:$0xff] }
 0x159   :  { %12383 = vst [vmem:[#allocation2_spill] sm:$0xff] %v7180_v39  ;;  %12384 = vst [vmem:[#allocation109_spill] sm:$0xff] %v7183_v13  ;;  %v7186_v5 = vsel %vm1091_vm1, %v1159_v54, %v1304_v9  ;;  %v1576_v24 = vrot.slane %v7183_v13, 1  ;;  %v1577_v43 = vrot.slane %v7180_v39, 1  ;;  %v690_v36 = vadd.f32 %v6386_v11, %v622_v51  ;;  %v130_v39 = vld [vmem:[%s11717_s1 + $0x188] sm:$0xff] }
 0x15a   :  { %12385 = vst [vmem:[#allocation110_spill] sm:$0xff] %v7186_v5  ;;  %v1579_v44 = vrot.slane %v7186_v5, 1  ;;  %v753_v2 = vadd.f32 %v689_v61, %v127_v3  ;;  %v624_v54 = vmul.f32 %v6937_v50, %v12386_v10  ;;  %v691_v9 = vadd.f32 %v6386_v11, %v623_v1  ;;  %v12390_v3 = vld [vmem:[#allocation5_spill] sm:$0xff] }
 0x15b   :  { %v625_v45 = vmul.f32 %v6937_v50, %v12387_v34  ;;  %v7204_v49 = vsel %vm1470_vm2, %v1576_v24, %v1577_v43  ;;  %v754_v51 = vadd.f32 %v690_v36, %v128_v60  ;;  %v626_v61 = vmul.f32 %v6937_v50, %v12390_v3  ;;  %v131_v60 = vld [vmem:[%s11717_s1 + $0x190] sm:$0xff]  ;;  %v7222_v24 = vpop.permute.xlu0 %1623 }
 0x15c   :  { %12388 = vst [vmem:[#allocation3_spill] sm:$0xff] %v7204_v49  ;;  %v7207_v5 = vsel %vm1470_vm2, %v1577_v43, %v1579_v44  ;;  %1705 = vrot.lane.b32.xlu0 %v7204_v49, %s5450_s30  ;;  %vm817_vm8 = vcmp.ge.f32.partialorder %v753_v2, 0.0  ;;  %v881_v10 = vmul.f32 0.01, %v753_v2  ;;  %v692_v34 = vadd.f32 %v6386_v11, %v624_v54  ;;  %12391 = vst [vmem:[#allocation5_spill] sm:$0xff] %v7222_v24  ;;  %v7224_v43 = vpop.permute.xlu1 %1627 }
 0x15d   :  { %12389 = vst [vmem:[#allocation4_spill] sm:$0xff] %v7207_v5  ;;  %1707 = vrot.lane.b32.xlu1 %v7207_v5, %s5450_s30  ;;  %v755_v1 = vadd.f32 %v691_v9, %v129_v27  ;;  %12392 = vst [vmem:[#allocation111_spill] sm:$0xff] %v7224_v43  ;;  %vm818_vm9 = vcmp.ge.f32.partialorder %v754_v51, 0.0  ;;  %v882_v44 = vmul.f32 0.01, %v754_v51  ;;  %v693_v36 = vadd.f32 %v6386_v11, %v625_v45  ;;  %v132_v27 = vld [vmem:[%s11717_s1 + $0x198] sm:$0xff] }
 0x15e   :  { %v694_v3 = vadd.f32 %v6386_v11, %v626_v61  ;;  %v945_v5 = vsel %vm817_vm8, %v753_v2, %v881_v10  ;;  %v756_v49 = vadd.f32 %v692_v34, %v130_v39 }
 0x15f   :  { %vm819_vm10 = vcmp.ge.f32.partialorder %v755_v1, 0.0  ;;  %v883_v13 = vmul.f32 0.01, %v755_v1  ;;  %v946_v54 = vsel %vm818_vm9, %v754_v51, %v882_v44  ;;  %v1018_v9 = vrot.slane %v945_v5, 1  ;;  %v7241_v34 = vpop.permute.xlu0 %1629 }
 0x160   :  { %v1161_v32 = vrot.slane %v945_v5, 7  ;;  %v757_v24 = vadd.f32 %v693_v36, %v131_v60  ;;  %v1162_v23 = vrot.slane %v946_v54, 7  ;;  %v1305_v43 = vrot.slane %v946_v54, 5  ;;  %12396 = vst [vmem:[#allocation115_spill] sm:$0xff] %v7241_v34  ;;  %v7243_v60 = vpop.permute.xlu1 %1631 }
 0x161   :  { %vm820_vm11 = vcmp.ge.f32.partialorder %v756_v49, 0.0  ;;  %v884_v18 = vmul.f32 0.01, %v756_v49  ;;  %v947_v61 = vsel %vm819_vm10, %v755_v1, %v883_v13  ;;  %v758_v2 = vadd.f32 %v694_v3, %v132_v27  ;;  %12397 = vst [vmem:[#allocation116_spill] sm:$0xff] %v7243_v60 }
 0x162   :  { %v7232_v45 = vsel %vm1091_vm1, %v1018_v9, %v1161_v32  ;;  %vm821_vm12 = vcmp.ge.f32.partialorder %v757_v24, 0.0  ;;  %v7235_v39 = vsel %vm1091_vm1, %v1161_v32, %v1162_v23  ;;  %v7239_v51 = vsel %vm1091_vm1, %v1162_v23, %v1305_v43 }
 0x163   :  { %12393 = vst [vmem:[#allocation112_spill] sm:$0xff] %v7232_v45  ;;  %12394 = vst [vmem:[#allocation113_spill] sm:$0xff] %v7235_v39  ;;  %v1581_v10 = vrot.slane %v7232_v45, 1  ;;  %v948_v5 = vsel %vm820_vm11, %v756_v49, %v884_v18  ;;  %v1582_v44 = vrot.slane %v7235_v39, 1  ;;  %v1584_v36 = vrot.slane %v7239_v51, 1 }
 0x164   :  { %12395 = vst [vmem:[#allocation114_spill] sm:$0xff] %v7239_v51  ;;  %v1019_v13 = vrot.slane %v947_v61, 1  ;;  %v1164_v1 = vrot.slane %v947_v61, 7  ;;  %v1165_v3 = vrot.slane %v948_v5, 7  ;;  %v1306_v27 = vrot.slane %v948_v5, 5  ;;  %v7272_v51 = vpop.permute.xlu0 %1633 }
 0x165   :  { %vm822_vm13 = vcmp.ge.f32.partialorder %v758_v2, 0.0  ;;  %v885_v32 = vmul.f32 0.01, %v757_v24  ;;  %v7248_v54 = vsel %vm1470_vm2, %v1581_v10, %v1582_v44  ;;  %v7251_v23 = vsel %vm1470_vm2, %v1582_v44, %v1584_v36 }
 0x166   :  { %12398 = vst [vmem:[#allocation117_spill] sm:$0xff] %v7248_v54  ;;  %12399 = vst [vmem:[#allocation118_spill] sm:$0xff] %v7251_v23  ;;  %v7254_v18 = vsel %vm1091_vm1, %v1019_v13, %v1164_v1  ;;  %v886_v49 = vmul.f32 0.01, %v758_v2  ;;  %1709 = vrot.lane.b32.xlu0 %v7248_v54, %s5450_s30  ;;  %1711 = vrot.lane.b32.xlu1 %v7251_v23, %s5450_s30  ;;  %v7261_v43 = vsel %vm1091_vm1, %v1164_v1, %v1165_v3  ;;  %v12403_v23 = vld [vmem:[#allocation6_spill] sm:$0xff]  ;;  %vm1801_vm11 = vcmask 1045504  }
 0x167   :  { %12400 = vst [vmem:[#allocation119_spill] sm:$0xff] %v7254_v18  ;;  %12401 = vst [vmem:[#allocation120_spill] sm:$0xff] %v7261_v43  ;;  %v1586_v9 = vrot.slane %v7254_v18, 1  ;;  %v7265_v61 = vsel %vm1091_vm1, %v1165_v3, %v1306_v27  ;;  %v949_v10 = vsel %vm821_vm12, %v757_v24, %v885_v32  ;;  %v1587_v5 = vrot.slane %v7261_v43, 1  ;;  %v7274_v18 = vpop.permute.xlu1 %1635  ;;  %v12408_v27 = vld [vmem:[#allocation7_spill] sm:$0xff]  ;;  %v12409_v32 = vld [vmem:[#allocation8_spill] sm:$0xff] }
 0x168   :  { %12402 = vst [vmem:[#allocation121_spill] sm:$0xff] %v7265_v61  ;;  %v1589_v44 = vrot.slane %v7265_v61, 1  ;;  %v950_v36 = vsel %vm822_vm13, %v758_v2, %v886_v49  ;;  %v1020_v13 = vrot.slane %v949_v10, 1  ;;  %v1167_v60 = vrot.slane %v949_v10, 7  ;;  %12404 = vst [vmem:[#allocation6_spill] sm:$0xff] %v7272_v51 }
 0x169   :  { %v1168_v34 = vrot.slane %v950_v36, 7  ;;  %v1307_v54 = vrot.slane %v950_v36, 5  ;;  %v627_v1 = vmul.f32 %v6937_v50, %v12403_v23  ;;  %12405 = vst [vmem:[#allocation122_spill] sm:$0xff] %v7274_v18  ;;  %v7277_v3 = vsel %vm1470_vm2, %v1586_v9, %v1587_v5 }
 0x16a   :  { %12406 = vst [vmem:[#allocation123_spill] sm:$0xff] %v7277_v3  ;;  %v7280_v24 = vsel %vm1470_vm2, %v1587_v5, %v1589_v44  ;;  %v628_v2 = vmul.f32 %v6937_v50, %v12408_v27  ;;  %v629_v49 = vmul.f32 %v6937_v50, %v12409_v32  ;;  %1713 = vrot.lane.b32.xlu0 %v7277_v3, %s5450_s30  ;;  %v133_v5 = vld [vmem:[%s11717_s1 + $0x1a0] sm:$0xff]  ;;  %v134_v32 = vld [vmem:[%s11717_s1 + $0x1a8] sm:$0xff] }
 0x16b   :  { %12407 = vst [vmem:[#allocation124_spill] sm:$0xff] %v7280_v24  ;;  %1715 = vrot.lane.b32.xlu1 %v7280_v24, %s5450_s30  ;;  %v7291_v23 = vsel %vm1091_vm1, %v1167_v60, %v1168_v34  ;;  %v7294_v9 = vsel %vm1091_vm1, %v1020_v13, %v1167_v60  ;;  %v7297_v10 = vsel %vm1091_vm1, %v1168_v34, %v1307_v54  ;;  %v135_v34 = vld [vmem:[%s11717_s1 + $0x1b0] sm:$0xff]  ;;  %v12414_v24 = vld [vmem:[#allocation37_spill] sm:$0xff] }
 0x16c   :  { %12410 = vst [vmem:[#allocation7_spill] sm:$0xff] %v7291_v23  ;;  %12411 = vst [vmem:[#allocation8_spill] sm:$0xff] %v7294_v9  ;;  %v1591_v44 = vrot.slane %v7294_v9, 1  ;;  %v1592_v36 = vrot.slane %v7291_v23, 1  ;;  %v1594_v27 = vrot.slane %v7297_v10, 1  ;;  %v695_v60 = vadd.f32 %v6386_v11, %v627_v1  ;;  %v12413_v13 = vld [vmem:[#allocation36_spill] sm:$0xff] }
 0x16d   :  { %12412 = vst [vmem:[#allocation125_spill] sm:$0xff] %v7297_v10  ;;  %v696_v54 = vadd.f32 %v6386_v11, %v628_v2  ;;  %v630_v18 = vmul.f32 %v6937_v50, %v12413_v13  ;;  %v697_v51 = vadd.f32 %v6386_v11, %v629_v49  ;;  %v631_v3 = vmul.f32 %v6937_v50, %v12414_v24  ;;  %v136_v9 = vld [vmem:[%s11717_s1 + $0x1b8] sm:$0xff]  ;;  %v12417_v2 = vld [vmem:[#allocation38_spill] sm:$0xff] }
 0x16e   :  { %v7319_v10 = vsel %vm1470_vm2, %v1591_v44, %v1592_v36  ;;  %v7322_v23 = vsel %vm1470_vm2, %v1592_v36, %v1594_v27  ;;  %v759_v1 = vadd.f32 %v695_v60, %v133_v5  ;;  %v632_v61 = vmul.f32 %v6937_v50, %v12417_v2  ;;  %v137_v5 = vld [vmem:[%s11717_s1 + $0x1c0] sm:$0xff]  ;;  %v138_v36 = vld [vmem:[%s11717_s1 + $0x1c8] sm:$0xff]  ;;  %v7340_v27 = vpop.permute.xlu0 %1637  ;;  %v7342_v60 = vpop.permute.xlu1 %1639 }
 0x16f   :  { %12415 = vst [vmem:[#allocation36_spill] sm:$0xff] %v7319_v10  ;;  %12416 = vst [vmem:[#allocation37_spill] sm:$0xff] %v7322_v23  ;;  %1717 = vrot.lane.b32.xlu0 %v7319_v10, %s5450_s30  ;;  %1719 = vrot.lane.b32.xlu1 %v7322_v23, %s5450_s30  ;;  %v760_v24 = vadd.f32 %v696_v54, %v134_v32  ;;  %v698_v49 = vadd.f32 %v6386_v11, %v630_v18 }
 0x170   :  { %v761_v44 = vadd.f32 %v697_v51, %v135_v34  ;;  %12418 = vst [vmem:[#allocation38_spill] sm:$0xff] %v7340_v27  ;;  %12419 = vst [vmem:[#allocation126_spill] sm:$0xff] %v7342_v60  ;;  %vm823_vm14 = vcmp.ge.f32.partialorder %v759_v1, 0.0  ;;  %v887_v13 = vmul.f32 0.01, %v759_v1  ;;  %v699_v2 = vadd.f32 %v6386_v11, %v631_v3 }
 0x171   :  { %v700_v32 = vadd.f32 %v6386_v11, %v632_v61  ;;  %vm824_vm15 = vcmp.ge.f32.partialorder %v760_v24, 0.0  ;;  %v888_v51 = vmul.f32 0.01, %v760_v24  ;;  %v762_v18 = vadd.f32 %v698_v49, %v136_v9 }
 0x172   :  { %vm825_vm3 = vcmp.ge.f32.partialorder %v761_v44, 0.0  ;;  %v951_v34 = vsel %vm823_vm14, %v759_v1, %v887_v13  ;;  %v889_v54 = vmul.f32 0.01, %v761_v44  ;;  %v763_v23 = vadd.f32 %v699_v2, %v137_v5  ;;  %v7349_v9 = vpop.permute.xlu0 %1641  ;;  %v7351_v1 = vpop.permute.xlu1 %1643 }
 0x173   :  { %v764_v10 = vadd.f32 %v700_v32, %v138_v36  ;;  %v952_v43 = vsel %vm824_vm15, %v760_v24, %v888_v51  ;;  %v1021_v39 = vrot.slane %v951_v34, 1  ;;  %v1170_v45 = vrot.slane %v951_v34, 7  ;;  %12421 = vst [vmem:[#allocation128_spill] sm:$0xff] %v7349_v9  ;;  %12422 = vst [vmem:[#allocation129_spill] sm:$0xff] %v7351_v1 }
 0x174   :  { %vm826_vm4 = vcmp.ge.f32.partialorder %v762_v18, 0.0  ;;  %v1171_v27 = vrot.slane %v952_v43, 7  ;;  %v1308_v60 = vrot.slane %v952_v43, 5  ;;  %v890_v33 = vmul.f32 0.01, %v762_v18 }
 0x175   :  { %v953_v42 = vsel %vm825_vm3, %v761_v44, %v889_v54  ;;  %v7347_v3 = vsel %vm1091_vm1, %v1021_v39, %v1170_v45  ;;  %vm827_vm5 = vcmp.ge.f32.partialorder %v763_v23, 0.0  ;;  %vm828_vm6 = vcmp.ge.f32.partialorder %v764_v10, 0.0  ;;  %v12428_v54 = vld [vmem:[#allocation9_spill] sm:$0xff] }
 0x176   :  { %12420 = vst [vmem:[#allocation127_spill] sm:$0xff] %v7347_v3  ;;  %v1022_v61 = vrot.slane %v953_v42, 1  ;;  %v1173_v62 = vrot.slane %v953_v42, 7  ;;  %v7354_v49 = vsel %vm1091_vm1, %v1170_v45, %v1171_v27  ;;  %v1596_v24 = vrot.slane %v7347_v3, 1  ;;  %v7389_v1 = vpop.permute.xlu1 %1647 }
 0x177   :  { %12423 = vst [vmem:[#allocation130_spill] sm:$0xff] %v7354_v49  ;;  %v7358_v5 = vsel %vm1091_vm1, %v1171_v27, %v1308_v60  ;;  %v954_v43 = vsel %vm826_vm4, %v762_v18, %v890_v33  ;;  %v1597_v44 = vrot.slane %v7354_v49, 1  ;;  %v891_v45 = vmul.f32 0.01, %v763_v23  ;;  %12430 = vst [vmem:[#allocation135_spill] sm:$0xff] %v7389_v1 }
 0x178   :  { %v1599_v39 = vrot.slane %v7358_v5, 1  ;;  %v1174_v36 = vrot.slane %v954_v43, 7  ;;  %v7363_v42 = vsel %vm1091_vm1, %v1022_v61, %v1173_v62  ;;  %v1309_v2 = vrot.slane %v954_v43, 5 }
 0x179   :  { %12424 = vst [vmem:[#allocation131_spill] sm:$0xff] %v7363_v42  ;;  %v1601_v13 = vrot.slane %v7363_v42, 1  ;;  %v7367_v32 = vsel %vm1470_vm2, %v1596_v24, %v1597_v44  ;;  %v892_v60 = vmul.f32 0.01, %v764_v10  ;;  %v955_v34 = vsel %vm827_vm5, %v763_v23, %v891_v45  ;;  %v139_v23 = vld [vmem:[%s11717_s1 + $0x1d0] sm:$0xff] }
 0x17a   :  { %12425 = vst [vmem:[#allocation132_spill] sm:$0xff] %v7367_v32  ;;  %v7370_v27 = vsel %vm1470_vm2, %v1597_v44, %v1599_v39  ;;  %v7373_v33 = vsel %vm1091_vm1, %v1173_v62, %v1174_v36  ;;  %1721 = vrot.lane.b32.xlu0 %v7367_v32, %s5450_s30  ;;  %v7381_v18 = vsel %vm1091_vm1, %v1174_v36, %v1309_v2  ;;  %v1023_v43 = vrot.slane %v955_v34, 1  ;;  %v7387_v39 = vpop.permute.xlu0 %1645  ;;  %v12432_v2 = vld [vmem:[#allocation10_spill] sm:$0xff] }
 0x17b   :  { %12426 = vst [vmem:[#allocation133_spill] sm:$0xff] %v7370_v27  ;;  %12427 = vst [vmem:[#allocation134_spill] sm:$0xff] %v7373_v33  ;;  %1723 = vrot.lane.b32.xlu1 %v7370_v27, %s5450_s30  ;;  %v1602_v51 = vrot.slane %v7373_v33, 1  ;;  %v633_v61 = vmul.f32 %v6937_v50, %v12428_v54  ;;  %v1604_v62 = vrot.slane %v7381_v18, 1  ;;  %v956_v24 = vsel %vm828_vm6, %v764_v10, %v892_v60 }
 0x17c   :  { %v1176_v44 = vrot.slane %v955_v34, 7  ;;  %12429 = vst [vmem:[#allocation9_spill] sm:$0xff] %v7387_v39  ;;  %v1177_v27 = vrot.slane %v956_v24, 7  ;;  %v1310_v36 = vrot.slane %v956_v24, 5  ;;  %v634_v45 = vmul.f32 %v6937_v50, %v12432_v2  ;;  %v12437_v39 = vld [vmem:[#allocation11_spill] sm:$0xff] }
 0x17d   :  { %v7392_v9 = vsel %vm1470_vm2, %v1601_v13, %v1602_v51  ;;  %v7400_v10 = vsel %vm1470_vm2, %v1602_v51, %v1604_v62  ;;  %v140_v13 = vld [vmem:[%s11717_s1 + $0x1d8] sm:$0xff]  ;;  %v701_v34 = vadd.f32 %v6386_v11, %v633_v61  ;;  %vm3393_vm3 = vcmask 97280  }
 0x17e   :  { %12431 = vst [vmem:[#allocation136_spill] sm:$0xff] %v7392_v9  ;;  %12433 = vst [vmem:[#allocation10_spill] sm:$0xff] %v7400_v10  ;;  %v7403_v60 = vsel %vm1091_vm1, %v1023_v43, %v1176_v44  ;;  %1725 = vrot.lane.b32.xlu0 %v7392_v9, %s5450_s30  ;;  %v7414_v54 = vsel %vm1091_vm1, %v1176_v44, %v1177_v27  ;;  %v7418_v62 = vsel %vm1091_vm1, %v1177_v27, %v1310_v36  ;;  %vm3458_vm4 = vcmask 130048  }
 0x17f   :  { %12434 = vst [vmem:[#allocation137_spill] sm:$0xff] %v7403_v60  ;;  %1727 = vrot.lane.b32.xlu1 %v7400_v10, %s5450_s30  ;;  %12435 = vst [vmem:[#allocation138_spill] sm:$0xff] %v7414_v54  ;;  %v1606_v51 = vrot.slane %v7403_v60, 1  ;;  %v702_v24 = vadd.f32 %v6386_v11, %v634_v45  ;;  %v1607_v43 = vrot.slane %v7414_v54, 1  ;;  %v1609_v61 = vrot.slane %v7418_v62, 1  ;;  %v12438_v10 = vld [vmem:[#allocation12_spill] sm:$0xff] }
 0x180   :  { %12436 = vst [vmem:[#allocation139_spill] sm:$0xff] %v7418_v62  ;;  %v765_v2 = vadd.f32 %v701_v34, %v139_v23  ;;  %v635_v9 = vmul.f32 %v6937_v50, %v12437_v39  ;;  %v636_v44 = vmul.f32 %v6937_v50, %v12438_v10  ;;  %v141_v45 = vld [vmem:[%s11717_s1 + $0x1e0] sm:$0xff]  ;;  %v7436_v23 = vpop.permute.xlu0 %1649  ;;  %v142_v10 = vld [vmem:[%s11717_s1 + $0x1e8] sm:$0xff]  ;;  %vm3523_vm5 = vcmask 162816  }
 0x181   :  { %v766_v1 = vadd.f32 %v702_v24, %v140_v13  ;;  %v7428_v32 = vsel %vm1470_vm2, %v1606_v51, %v1607_v43  ;;  %v7431_v27 = vsel %vm1470_vm2, %v1607_v43, %v1609_v61  ;;  %12441 = vst [vmem:[#allocation140_spill] sm:$0xff] %v7436_v23  ;;  %v7438_v13 = vpop.permute.xlu1 %1651  ;;  %vm3588_vm6 = vcmask 195584  }
 0x182   :  { %12439 = vst [vmem:[#allocation11_spill] sm:$0xff] %v7428_v32  ;;  %12440 = vst [vmem:[#allocation12_spill] sm:$0xff] %v7431_v27  ;;  %vm829_vm7 = vcmp.ge.f32.partialorder %v765_v2, 0.0  ;;  %v893_v36 = vmul.f32 0.01, %v765_v2  ;;  %1729 = vrot.lane.b32.xlu0 %v7428_v32, %s5450_s30  ;;  %v703_v34 = vadd.f32 %v6386_v11, %v635_v9  ;;  %v704_v51 = vadd.f32 %v6386_v11, %v636_v44 }
 0x183   :  { %12442 = vst [vmem:[#allocation141_spill] sm:$0xff] %v7438_v13  ;;  %1731 = vrot.lane.b32.xlu1 %v7431_v27, %s5450_s30  ;;  %vm830_vm8 = vcmp.ge.f32.partialorder %v766_v1, 0.0  ;;  %v894_v39 = vmul.f32 0.01, %v766_v1 }
 0x184   :  { %v957_v24 = vsel %vm829_vm7, %v765_v2, %v893_v36  ;;  %v767_v23 = vadd.f32 %v703_v34, %v141_v45  ;;  %v768_v62 = vadd.f32 %v704_v51, %v142_v10  ;;  %vm3653_vm7 = vcmask 228352  }
 0x185   :  { %v958_v43 = vsel %vm830_vm8, %v766_v1, %v894_v39  ;;  %v1024_v61 = vrot.slane %v957_v24, 1  ;;  %v1179_v13 = vrot.slane %v957_v24, 7  ;;  %v7459_v1 = vpop.permute.xlu0 %1653  ;;  %v7461_v2 = vpop.permute.xlu1 %1655  ;;  %vm3718_vm8 = vcmask 261120  }
 0x186   :  { %v1180_v50 = vrot.slane %v958_v43, 7  ;;  %v1311_v32 = vrot.slane %v958_v43, 5  ;;  %vm831_vm9 = vcmp.ge.f32.partialorder %v767_v23, 0.0  ;;  %v895_v54 = vmul.f32 0.01, %v767_v23  ;;  %12445 = vst [vmem:[#allocation144_spill] sm:$0xff] %v7459_v1 }
 0x187   :  { %v7450_v27 = vsel %vm1091_vm1, %v1024_v61, %v1179_v13  ;;  %vm832_vm10 = vcmp.ge.f32.partialorder %v768_v62, 0.0  ;;  %12446 = vst [vmem:[#allocation145_spill] sm:$0xff] %v7461_v2  ;;  %v896_v39 = vmul.f32 0.01, %v768_v62 }
 0x188   :  { %12443 = vst [vmem:[#allocation142_spill] sm:$0xff] %v7450_v27  ;;  %v7453_v60 = vsel %vm1091_vm1, %v1179_v13, %v1180_v50  ;;  %v1611_v9 = vrot.slane %v7450_v27, 1  ;;  %v7457_v44 = vsel %vm1091_vm1, %v1180_v50, %v1311_v32  ;;  %v959_v10 = vsel %vm831_vm9, %v767_v23, %v895_v54 }
 0x189   :  { %12444 = vst [vmem:[#allocation143_spill] sm:$0xff] %v7453_v60  ;;  %v1612_v36 = vrot.slane %v7453_v60, 1  ;;  %v1614_v45 = vrot.slane %v7457_v44, 1  ;;  %v1025_v34 = vrot.slane %v959_v10, 1  ;;  %v1182_v51 = vrot.slane %v959_v10, 7 }
 0x18a   :  { %v960_v50 = vsel %vm832_vm10, %v768_v62, %v896_v39  ;;  %v1802_v62 = vrot.slane %v6458_v48, 2  ;;  %v7489_v39 = vpop.permute.xlu1 %1659  ;;  %vm3783_vm9 = vcmask 293888  }
 0x18b   :  { %v7466_v13 = vsel %vm1470_vm2, %v1611_v9, %v1612_v36  ;;  %v7469_v24 = vsel %vm1470_vm2, %v1612_v36, %v1614_v45  ;;  %v1183_v32 = vrot.slane %v960_v50, 7  ;;  %v7476_v43 = vsel %vm1091_vm1, %v1025_v34, %v1182_v51  ;;  %v7487_v45 = vpop.permute.xlu0 %1657  ;;  %12452 = vst [vmem:[#allocation151_spill] sm:$0xff] %v7489_v39 }
 0x18c   :  { %12447 = vst [vmem:[#allocation146_spill] sm:$0xff] %v7466_v13  ;;  %12448 = vst [vmem:[#allocation147_spill] sm:$0xff] %v7469_v24  ;;  %1733 = vrot.lane.b32.xlu0 %v7466_v13, %s5450_s30  ;;  %1735 = vrot.lane.b32.xlu1 %v7469_v24, %s5450_s30  ;;  %v1312_v54 = vrot.slane %v960_v50, 5  ;;  %v1616_v23 = vrot.slane %v7476_v43, 1  ;;  %v1803_v36 = vrot.slane %v6455_v31, 2  ;;  %v1805_v50 = vrot.slane %v6466_v22, 2 }
 0x18d   :  { %12449 = vst [vmem:[#allocation148_spill] sm:$0xff] %v7476_v43  ;;  %v7480_v61 = vsel %vm1091_vm1, %v1182_v51, %v1183_v32  ;;  %12451 = vst [vmem:[#allocation150_spill] sm:$0xff] %v7487_v45  ;;  %v1807_v22 = vrot.slane %v6463_v47, 2  ;;  %v1810_v45 = vrot.slane %v6474_v37, 2  ;;  %v12535_v24 = vld [vmem:[#allocation98_spill] sm:$0xff]  ;;  %v12540_v13 = vld [vmem:[#allocation100_spill] sm:$0xff] }
 0x18e   :  { %12450 = vst [vmem:[#allocation149_spill] sm:$0xff] %v7480_v61  ;;  %v7483_v9 = vsel %vm1091_vm1, %v1183_v32, %v1312_v54  ;;  %v1617_v10 = vrot.slane %v7480_v61, 1  ;;  %v7505_v54 = vsel %vm1801_vm11, %v1802_v62, %v1803_v36  ;;  %v7508_v39 = vsel %vm1801_vm11, %v1803_v36, %v1805_v50 }
 0x18f   :  { %v1619_v34 = vrot.slane %v7483_v9, 1  ;;  %12455 = vst [vmem:[#allocation154_spill] sm:$0xff] %v7505_v54  ;;  %12456 = vst [vmem:[#allocation155_spill] sm:$0xff] %v7508_v39  ;;  %v1812_v62 = vrot.slane %v6501_v12, 2  ;;  %v1813_v36 = vrot.slane %v6505_v4, 2 }
 0x190   :  { %v7495_v51 = vsel %vm1470_vm2, %v1616_v23, %v1617_v10  ;;  %v1808_v23 = vrot.slane %v6469_v0, 2 }
 0x191   :  { %12453 = vst [vmem:[#allocation152_spill] sm:$0xff] %v7495_v51  ;;  %v7498_v32 = vsel %vm1470_vm2, %v1617_v10, %v1619_v34  ;;  %1737 = vrot.lane.b32.xlu0 %v7495_v51, %s5450_s30  ;;  %v7513_v10 = vpop.permute.xlu0 %1661  ;;  %v7515_v34 = vpop.permute.xlu1 %1663 }
 0x192   :  { %12454 = vst [vmem:[#allocation153_spill] sm:$0xff] %v7498_v32  ;;  %1739 = vrot.lane.b32.xlu1 %v7498_v32, %s5450_s30  ;;  %12457 = vst [vmem:[#allocation156_spill] sm:$0xff] %v7513_v10  ;;  %v7524_v50 = vsel %vm1801_vm11, %v1807_v22, %v1808_v23  ;;  %v7527_v37 = vsel %vm1801_vm11, %v1808_v23, %v1810_v45  ;;  %v1815_v10 = vrot.slane %v6509_v58, 2  ;;  %v1817_v45 = vrot.slane %v6516_v52, 2  ;;  %s5452_s30 = smov 12  }
 0x193   :  { %12458 = vst [vmem:[#allocation157_spill] sm:$0xff] %v7515_v34  ;;  %12459 = vst [vmem:[#allocation158_spill] sm:$0xff] %v7524_v50  ;;  %v7535_v34 = vsel %vm1801_vm11, %v1812_v62, %v1813_v36  ;;  %v1818_v58 = vrot.slane %v6522_v63, 2  ;;  %v1820_v23 = vrot.slane %v6536_v14, 2  ;;  %v1822_v62 = vrot.slane %v6586_v41, 2 }
 0x194   :  { %12460 = vst [vmem:[#allocation159_spill] sm:$0xff] %v7527_v37  ;;  %12461 = vst [vmem:[#allocation160_spill] sm:$0xff] %v7535_v34  ;;  %v7542_v22 = vsel %vm1801_vm11, %v1813_v36, %v1815_v10  ;;  %v1825_v36 = vrot.slane %v6593_v57, 2  ;;  %v1828_v57 = vrot.slane %v6608_v6, 2 }
 0x195   :  { %1952 = vrot.lane.b32.xlu0 %v7505_v54, %s5451_s5  ;;  %v7537_v2 = vpop.permute.xlu0 %1665  ;;  %v7539_v1 = vpop.permute.xlu1 %1667  ;;  %12464 = vst [vmem:[#allocation163_spill] sm:$0xff] %v7542_v22  ;;  %v7557_v10 = vsel %vm1801_vm11, %v1818_v58, %v1820_v23  ;;  %v1830_v23 = vrot.slane %v6614_v29, 2  ;;  %v12475_v29 = vld [vmem:[#allocation53_spill] sm:$0xff] }
 0x196   :  { %1954 = vrot.lane.b32.xlu1 %v7508_v39, %s5451_s5  ;;  %12462 = vst [vmem:[#allocation161_spill] sm:$0xff] %v7537_v2  ;;  %12463 = vst [vmem:[#allocation162_spill] sm:$0xff] %v7539_v1  ;;  %v1823_v2 = vrot.slane %v6590_v40, 2  ;;  %v7554_v1 = vsel %vm1801_vm11, %v1817_v45, %v1818_v58  ;;  %v1827_v58 = vrot.slane %v6611_v35, 2 }
 0x197   :  { %12465 = vst [vmem:[#allocation164_spill] sm:$0xff] %v7554_v1  ;;  %12466 = vst [vmem:[#allocation165_spill] sm:$0xff] %v7557_v10 }
 0x198   :  { %v7572_v45 = vsel %vm1801_vm11, %v1823_v2, %v1825_v36  ;;  %v7588_v36 = vsel %vm1801_vm11, %v1827_v58, %v1828_v57 }
 0x199   :  { %1956 = vrot.lane.b32.xlu0 %v7524_v50, %s5451_s5  ;;  %v7560_v39 = vpop.permute.xlu0 %1669  ;;  %v7562_v14 = vpop.permute.xlu1 %1671  ;;  %12470 = vst [vmem:[#allocation169_spill] sm:$0xff] %v7572_v45  ;;  %12473 = vst [vmem:[#allocation172_spill] sm:$0xff] %v7588_v36  ;;  %v12514_v50 = vld [vmem:[#allocation90_spill] sm:$0xff] }
 0x19a   :  { %1958 = vrot.lane.b32.xlu1 %v7527_v37, %s5451_s5  ;;  %12467 = vst [vmem:[#allocation166_spill] sm:$0xff] %v7560_v39  ;;  %12468 = vst [vmem:[#allocation167_spill] sm:$0xff] %v7562_v14  ;;  %v1832_v14 = vrot.slane %v6639_v17, 2 }
 0x19d   :  { %1960 = vrot.lane.b32.xlu0 %v7535_v34, %s5451_s5  ;;  %v7583_v39 = vpop.permute.xlu0 %1673  ;;  %v12507_v34 = vld [vmem:[#allocation85_spill] sm:$0xff] }
 0x19e   :  { %1962 = vrot.lane.b32.xlu1 %v7542_v22, %s5451_s5  ;;  %v7569_v22 = vsel %vm1801_vm11, %v1822_v62, %v1823_v2  ;;  %v1833_v62 = vrot.slane %v6643_v16, 2  ;;  %12471 = vst [vmem:[#allocation170_spill] sm:$0xff] %v7583_v39  ;;  %v7585_v2 = vpop.permute.xlu1 %1675  ;;  %v1870_v54 = vrot.slane %v12507_v34, 2 }
 0x19f   :  { %12469 = vst [vmem:[#allocation168_spill] sm:$0xff] %v7569_v22  ;;  %12472 = vst [vmem:[#allocation171_spill] sm:$0xff] %v7585_v2  ;;  %v12478_v2 = vld [vmem:[#allocation56_spill] sm:$0xff] }
 0x1a0   :  { %v1837_v58 = vrot.slane %v12478_v2, 2 }
 0x1a1   :  { %1964 = vrot.lane.b32.xlu0 %v7554_v1, %s5451_s5  ;;  %v1835_v1 = vrot.slane %v12475_v29, 2 }
 0x1a2   :  { %1966 = vrot.lane.b32.xlu1 %v7557_v10, %s5451_s5  ;;  %v7591_v10 = vsel %vm1801_vm11, %v1828_v57, %v1830_v23  ;;  %v1840_v57 = vrot.slane %v6693_v38, 2  ;;  %v7607_v23 = vpop.permute.xlu0 %1677  ;;  %v7609_v29 = vpop.permute.xlu1 %1679  ;;  %v1845_v38 = vrot.slane %v6717_v30, 2  ;;  %v1848_v30 = vrot.slane %v6742_v55, 2 }
 0x1a3   :  { %12474 = vst [vmem:[#allocation173_spill] sm:$0xff] %v7591_v10  ;;  %v7602_v39 = vsel %vm1801_vm11, %v1833_v62, %v1835_v1  ;;  %12479 = vst [vmem:[#allocation175_spill] sm:$0xff] %v7607_v23  ;;  %v12481_v1 = vld [vmem:[#allocation61_spill] sm:$0xff] }
 0x1a4   :  { %12477 = vst [vmem:[#allocation174_spill] sm:$0xff] %v7602_v39  ;;  %12480 = vst [vmem:[#allocation176_spill] sm:$0xff] %v7609_v29 }
 0x1a5   :  { %1968 = vrot.lane.b32.xlu0 %v7569_v22, %s5451_s5  ;;  %v1838_v22 = vrot.slane %v6689_v19, 2 }
 0x1a6   :  { %1970 = vrot.lane.b32.xlu1 %v7572_v45, %s5451_s5  ;;  %v7599_v45 = vsel %vm1801_vm11, %v1832_v14, %v1833_v62  ;;  %v1842_v14 = vrot.slane %v6710_v56, 2  ;;  %v1843_v62 = vrot.slane %v12481_v1, 2 }
 0x1a7   :  { %12476 = vst [vmem:[#allocation53_spill] sm:$0xff] %v7599_v45 }
 0x1a8   :  { %v7629_v29 = vsel %vm1801_vm11, %v1842_v14, %v1843_v62  ;;  %v1852_v14 = vrot.slane %v6782_v53, 2 }
 0x1a9   :  { %1972 = vrot.lane.b32.xlu0 %v7588_v36, %s5451_s5  ;;  %v7621_v36 = vsel %vm1801_vm11, %v1838_v22, %v1840_v57  ;;  %12484 = vst [vmem:[#allocation179_spill] sm:$0xff] %v7629_v29  ;;  %v12488_v57 = vld [vmem:[#allocation66_spill] sm:$0xff] }
 0x1aa   :  { %1974 = vrot.lane.b32.xlu1 %v7591_v10, %s5451_s5  ;;  %v7618_v10 = vsel %vm1801_vm11, %v1837_v58, %v1838_v22  ;;  %12483 = vst [vmem:[#allocation178_spill] sm:$0xff] %v7621_v36  ;;  %v7636_v58 = vsel %vm1801_vm11, %v1843_v62, %v1845_v38  ;;  %v1847_v22 = vrot.slane %v6745_v26, 2  ;;  %v12491_v38 = vld [vmem:[#allocation71_spill] sm:$0xff] }
 0x1ab   :  { %12482 = vst [vmem:[#allocation177_spill] sm:$0xff] %v7618_v10  ;;  %12487 = vst [vmem:[#allocation182_spill] sm:$0xff] %v7636_v58 }
 0x1ad   :  { %1976 = vrot.lane.b32.xlu0 %v7599_v45, %s5451_s5  ;;  %v1850_v45 = vrot.slane %v12488_v57, 2 }
 0x1ae   :  { %1978 = vrot.lane.b32.xlu1 %v7602_v39, %s5451_s5 }
 0x1af   :  { %v7631_v23 = vpop.permute.xlu0 %1681  ;;  %v7633_v39 = vpop.permute.xlu1 %1683  ;;  %v7651_v62 = vsel %vm1801_vm11, %v1848_v30, %v1850_v45  ;;  %v12496_v45 = vld [vmem:[#allocation74_spill] sm:$0xff] }
 0x1b0   :  { %12485 = vst [vmem:[#allocation180_spill] sm:$0xff] %v7631_v23  ;;  %12486 = vst [vmem:[#allocation181_spill] sm:$0xff] %v7633_v39  ;;  %v1855_v39 = vrot.slane %v12491_v38, 2  ;;  %v1858_v38 = vrot.slane %v6826_v28, 2 }
 0x1b1   :  { %1980 = vrot.lane.b32.xlu0 %v7618_v10, %s5451_s5  ;;  %v7648_v10 = vsel %vm1801_vm11, %v1847_v22, %v1848_v30  ;;  %12490 = vst [vmem:[#allocation183_spill] sm:$0xff] %v7651_v62  ;;  %v1857_v30 = vrot.slane %v12496_v45, 2 }
 0x1b2   :  { %1982 = vrot.lane.b32.xlu1 %v7621_v36, %s5451_s5  ;;  %v1853_v36 = vrot.slane %v6793_v20, 2  ;;  %12489 = vst [vmem:[#allocation66_spill] sm:$0xff] %v7648_v10 }
 0x1b3   :  { %v7654_v23 = vpop.permute.xlu0 %1685  ;;  %v7656_v57 = vpop.permute.xlu1 %1687 }
 0x1b4   :  { %12492 = vst [vmem:[#allocation71_spill] sm:$0xff] %v7654_v23  ;;  %12493 = vst [vmem:[#allocation184_spill] sm:$0xff] %v7656_v57  ;;  %v7666_v22 = vsel %vm1801_vm11, %v1853_v36, %v1855_v39  ;;  %v7681_v39 = vsel %vm1801_vm11, %v1857_v30, %v1858_v38 }
 0x1b5   :  { %1984 = vrot.lane.b32.xlu0 %v7629_v29, %s5451_s5  ;;  %12495 = vst [vmem:[#allocation186_spill] sm:$0xff] %v7666_v22  ;;  %v1860_v29 = vrot.slane %v6830_v8, 2  ;;  %12499 = vst [vmem:[#allocation189_spill] sm:$0xff] %v7681_v39 }
 0x1b6   :  { %1986 = vrot.lane.b32.xlu1 %v7636_v58, %s5451_s5  ;;  %v7663_v58 = vsel %vm1801_vm11, %v1852_v14, %v1853_v36  ;;  %v1862_v14 = vrot.slane %v6853_v46, 2 }
 0x1b7   :  { %12494 = vst [vmem:[#allocation185_spill] sm:$0xff] %v7663_v58  ;;  %v7671_v23 = vpop.permute.xlu0 %1689  ;;  %v7673_v57 = vpop.permute.xlu1 %1691  ;;  %v7684_v36 = vsel %vm1801_vm11, %v1858_v38, %v1860_v29  ;;  %v12506_v29 = vld [vmem:[#allocation83_spill] sm:$0xff] }
 0x1b8   :  { %12497 = vst [vmem:[#allocation187_spill] sm:$0xff] %v7671_v23  ;;  %12498 = vst [vmem:[#allocation188_spill] sm:$0xff] %v7673_v57  ;;  %v1868_v38 = vrot.slane %v12506_v29, 2 }
 0x1b9   :  { %1988 = vrot.lane.b32.xlu0 %v7648_v10, %s5451_s5  ;;  %12500 = vst [vmem:[#allocation190_spill] sm:$0xff] %v7684_v36  ;;  %v12502_v10 = vld [vmem:[#allocation80_spill] sm:$0xff] }
 0x1ba   :  { %1990 = vrot.lane.b32.xlu1 %v7651_v62, %s5451_s5  ;;  %v12501_v62 = vld [vmem:[#allocation78_spill] sm:$0xff]  ;;  %v1865_v23 = vrot.slane %v12502_v10, 2 }
 0x1bb   :  { %v1863_v8 = vrot.slane %v12501_v62, 2 }
 0x1bc   :  { %v7701_v37 = vpop.permute.xlu0 %1693 }
 0x1bd   :  { %1992 = vrot.lane.b32.xlu0 %v7663_v58, %s5451_s5  ;;  %v12503_v58 = vld [vmem:[#allocation84_spill] sm:$0xff]  ;;  %v7694_v57 = vsel %vm1801_vm11, %v1862_v14, %v1863_v8  ;;  %v7697_v30 = vsel %vm1801_vm11, %v1863_v8, %v1865_v23  ;;  %12508 = vst [vmem:[#allocation85_spill] sm:$0xff] %v7701_v37  ;;  %v7703_v10 = vpop.permute.xlu1 %1695  ;;  %v7714_v23 = vsel %vm1801_vm11, %v1868_v38, %v1870_v54  ;;  %v1875_v37 = vrot.slane %v12514_v50, 2 }
 0x1be   :  { %1994 = vrot.lane.b32.xlu1 %v7666_v22, %s5451_s5  ;;  %v1867_v22 = vrot.slane %v12503_v58, 2  ;;  %12504 = vst [vmem:[#allocation80_spill] sm:$0xff] %v7694_v57  ;;  %12505 = vst [vmem:[#allocation191_spill] sm:$0xff] %v7697_v30  ;;  %v12513_v8 = vld [vmem:[#allocation88_spill] sm:$0xff]  ;;  %v1878_v50 = vrot.slane %v6990_v15, 2 }
 0x1bf   :  { %12509 = vst [vmem:[#allocation192_spill] sm:$0xff] %v7703_v10  ;;  %12512 = vst [vmem:[#allocation194_spill] sm:$0xff] %v7714_v23  ;;  %v1873_v34 = vrot.slane %v12513_v8, 2 }
 0x1c1   :  { %1996 = vrot.lane.b32.xlu0 %v7681_v39, %s5451_s5  ;;  %v7711_v39 = vsel %vm1801_vm11, %v1867_v22, %v1868_v38  ;;  %v1877_v22 = vrot.slane %v6993_v25, 2  ;;  %v7731_v54 = vsel %vm1801_vm11, %v1873_v34, %v1875_v37  ;;  %v1880_v38 = vrot.slane %v6996_v7, 2 }
 0x1c2   :  { %1998 = vrot.lane.b32.xlu1 %v7684_v36, %s5451_s5  ;;  %v12510_v36 = vld [vmem:[#allocation89_spill] sm:$0xff]  ;;  %12511 = vst [vmem:[#allocation193_spill] sm:$0xff] %v7711_v39  ;;  %12518 = vst [vmem:[#allocation197_spill] sm:$0xff] %v7731_v54  ;;  %v1883_v37 = vrot.slane %v7017_v59, 2 }
 0x1c3   :  { %v1872_v14 = vrot.slane %v12510_v36, 2 }
 0x1c5   :  { %2000 = vrot.lane.b32.xlu0 %v7694_v57, %s5451_s5 }
 0x1c6   :  { %2002 = vrot.lane.b32.xlu1 %v7697_v30, %s5451_s5  ;;  %v7718_v32 = vpop.permute.xlu0 %1697  ;;  %v7720_v10 = vpop.permute.xlu1 %1699  ;;  %v7728_v30 = vsel %vm1801_vm11, %v1872_v14, %v1873_v34  ;;  %v7744_v14 = vsel %vm1801_vm11, %v1878_v50, %v1880_v38  ;;  %v12521_v34 = vld [vmem:[#allocation24_spill] sm:$0xff] }
 0x1c7   :  { %12515 = vst [vmem:[#allocation90_spill] sm:$0xff] %v7718_v32  ;;  %12516 = vst [vmem:[#allocation195_spill] sm:$0xff] %v7720_v10  ;;  %v1885_v57 = vrot.slane %v12521_v34, 2  ;;  %v12527_v38 = vld [vmem:[#allocation96_spill] sm:$0xff]  ;;  %v12528_v32 = vld [vmem:[#allocation97_spill] sm:$0xff] }
 0x1c8   :  { %12517 = vst [vmem:[#allocation196_spill] sm:$0xff] %v7728_v30  ;;  %12520 = vst [vmem:[#allocation199_spill] sm:$0xff] %v7744_v14  ;;  %v1888_v34 = vrot.slane %v12527_v38, 2 }
 0x1c9   :  { %2004 = vrot.lane.b32.xlu0 %v7711_v39, %s5451_s5  ;;  %v7741_v39 = vsel %vm1801_vm11, %v1877_v22, %v1878_v50  ;;  %v7761_v50 = vsel %vm1801_vm11, %v1883_v37, %v1885_v57 }
 0x1ca   :  { %2006 = vrot.lane.b32.xlu1 %v7714_v23, %s5451_s5  ;;  %v1882_v23 = vrot.slane %v7010_v21, 2  ;;  %12519 = vst [vmem:[#allocation198_spill] sm:$0xff] %v7741_v39  ;;  %v7748_v10 = vpop.permute.xlu0 %1701  ;;  %v7750_v7 = vpop.permute.xlu1 %1703  ;;  %12526 = vst [vmem:[#allocation201_spill] sm:$0xff] %v7761_v50 }
 0x1cb   :  { %12522 = vst [vmem:[#allocation24_spill] sm:$0xff] %v7748_v10  ;;  %12523 = vst [vmem:[#allocation200_spill] sm:$0xff] %v7750_v7  ;;  %v1890_v10 = vrot.slane %v12528_v32, 2 }
 0x1cd   :  { %2008 = vrot.lane.b32.xlu0 %v7728_v30, %s5451_s5  ;;  %v7758_v30 = vsel %vm1801_vm11, %v1882_v23, %v1883_v37  ;;  %v7778_v57 = vsel %vm1801_vm11, %v1888_v34, %v1890_v10  ;;  %v12534_v37 = vld [vmem:[#allocation30_spill] sm:$0xff] }
 0x1ce   :  { %2010 = vrot.lane.b32.xlu1 %v7731_v54, %s5451_s5  ;;  %v12524_v54 = vld [vmem:[#allocation25_spill] sm:$0xff]  ;;  %v7765_v51 = vpop.permute.xlu0 %1705  ;;  %12533 = vst [vmem:[#allocation203_spill] sm:$0xff] %v7778_v57  ;;  %v1893_v32 = vrot.slane %v12534_v37, 2  ;;  %v12539_v10 = vld [vmem:[#allocation34_spill] sm:$0xff]  ;;  %v1900_v37 = vrot.slane %v12540_v13, 2 }
 0x1cf   :  { %v1887_v22 = vrot.slane %v12524_v54, 2  ;;  %12525 = vst [vmem:[#allocation25_spill] sm:$0xff] %v7758_v30  ;;  %12529 = vst [vmem:[#allocation96_spill] sm:$0xff] %v7765_v51  ;;  %v7767_v7 = vpop.permute.xlu1 %1707  ;;  %v1895_v51 = vrot.slane %v12535_v24, 2 }
 0x1d0   :  { %12530 = vst [vmem:[#allocation97_spill] sm:$0xff] %v7767_v7  ;;  %v12536_v7 = vld [vmem:[#allocation99_spill] sm:$0xff] }
 0x1d1   :  { %2012 = vrot.lane.b32.xlu0 %v7741_v39, %s5451_s5  ;;  %v7775_v39 = vsel %vm1801_vm11, %v1887_v22, %v1888_v34  ;;  %v7791_v22 = vsel %vm1801_vm11, %v1893_v32, %v1895_v51  ;;  %v1898_v34 = vrot.slane %v12539_v10, 2  ;;  %v12547_v10 = vld [vmem:[#allocation105_spill] sm:$0xff] }
 0x1d2   :  { %2014 = vrot.lane.b32.xlu1 %v7744_v14, %s5451_s5  ;;  %v12531_v14 = vld [vmem:[#allocation28_spill] sm:$0xff]  ;;  %12532 = vst [vmem:[#allocation202_spill] sm:$0xff] %v7775_v39  ;;  %12538 = vst [vmem:[#allocation204_spill] sm:$0xff] %v7791_v22 }
 0x1d3   :  { %v1892_v23 = vrot.slane %v12531_v14, 2  ;;  %v7808_v51 = vsel %vm1801_vm11, %v1898_v34, %v1900_v37 }
 0x1d4   :  { %12545 = vst [vmem:[#allocation207_spill] sm:$0xff] %v7808_v51 }
 0x1d5   :  { %2016 = vrot.lane.b32.xlu0 %v7758_v30, %s5451_s5  ;;  %v7788_v30 = vsel %vm1801_vm11, %v1892_v23, %v1893_v32  ;;  %v12546_v32 = vld [vmem:[#allocation104_spill] sm:$0xff] }
 0x1d6   :  { %2018 = vrot.lane.b32.xlu1 %v7761_v50, %s5451_s5  ;;  %v1897_v50 = vrot.slane %v12536_v7, 2  ;;  %12537 = vst [vmem:[#allocation98_spill] sm:$0xff] %v7788_v30  ;;  %v1903_v13 = vrot.slane %v12546_v32, 2  ;;  %v12554_v32 = vld [vmem:[#allocation110_spill] sm:$0xff] }
 0x1d8   :  { %v7795_v14 = vpop.permute.xlu0 %1709  ;;  %v7797_v24 = vpop.permute.xlu1 %1711 }
 0x1d9   :  { %2020 = vrot.lane.b32.xlu0 %v7775_v39, %s5451_s5  ;;  %12541 = vst [vmem:[#allocation100_spill] sm:$0xff] %v7795_v14  ;;  %12542 = vst [vmem:[#allocation205_spill] sm:$0xff] %v7797_v24  ;;  %v7805_v39 = vsel %vm1801_vm11, %v1897_v50, %v1898_v34  ;;  %v1905_v14 = vrot.slane %v12547_v10, 2  ;;  %v12553_v34 = vld [vmem:[#allocation2_spill] sm:$0xff] }
 0x1da   :  { %2022 = vrot.lane.b32.xlu1 %v7778_v57, %s5451_s5  ;;  %v12543_v57 = vld [vmem:[#allocation103_spill] sm:$0xff]  ;;  %12544 = vst [vmem:[#allocation206_spill] sm:$0xff] %v7805_v39  ;;  %v1908_v10 = vrot.slane %v12553_v34, 2 }
 0x1db   :  { %v1902_v23 = vrot.slane %v12543_v57, 2  ;;  %v7825_v37 = vsel %vm1801_vm11, %v1903_v13, %v1905_v14  ;;  %v12558_v14 = vld [vmem:[#allocation113_spill] sm:$0xff] }
 0x1dc   :  { %v7812_v7 = vpop.permute.xlu0 %1713  ;;  %12552 = vst [vmem:[#allocation210_spill] sm:$0xff] %v7825_v37 }
 0x1dd   :  { %2024 = vrot.lane.b32.xlu0 %v7788_v30, %s5451_s5  ;;  %12548 = vst [vmem:[#allocation105_spill] sm:$0xff] %v7812_v7  ;;  %v7814_v24 = vpop.permute.xlu1 %1715  ;;  %v7822_v30 = vsel %vm1801_vm11, %v1902_v23, %v1903_v13  ;;  %v1910_v7 = vrot.slane %v12554_v32, 2  ;;  %v1913_v13 = vrot.slane %v12558_v14, 2  ;;  %v12566_v14 = vld [vmem:[#allocation121_spill] sm:$0xff] }
 0x1de   :  { %2026 = vrot.lane.b32.xlu1 %v7791_v22, %s5451_s5  ;;  %12549 = vst [vmem:[#allocation208_spill] sm:$0xff] %v7814_v24  ;;  %v12550_v22 = vld [vmem:[#allocation109_spill] sm:$0xff]  ;;  %12551 = vst [vmem:[#allocation209_spill] sm:$0xff] %v7822_v30  ;;  %v12555_v24 = vld [vmem:[#allocation112_spill] sm:$0xff] }
 0x1df   :  { %v1907_v50 = vrot.slane %v12550_v22, 2  ;;  %v7838_v23 = vsel %vm1801_vm11, %v1908_v10, %v1910_v7  ;;  %v12559_v22 = vld [vmem:[#allocation114_spill] sm:$0xff] }
 0x1e0   :  { %12557 = vst [vmem:[#allocation211_spill] sm:$0xff] %v7838_v23  ;;  %v1915_v34 = vrot.slane %v12559_v22, 2 }
 0x1e1   :  { %2028 = vrot.lane.b32.xlu0 %v7805_v39, %s5451_s5  ;;  %v7835_v39 = vsel %vm1801_vm11, %v1907_v50, %v1908_v10  ;;  %v7842_v57 = vpop.permute.xlu0 %1717  ;;  %v7844_v32 = vpop.permute.xlu1 %1719  ;;  %v12565_v10 = vld [vmem:[#allocation120_spill] sm:$0xff] }
 0x1e2   :  { %2030 = vrot.lane.b32.xlu1 %v7808_v51, %s5451_s5  ;;  %v1912_v51 = vrot.slane %v12555_v24, 2  ;;  %12556 = vst [vmem:[#allocation110_spill] sm:$0xff] %v7835_v39  ;;  %12560 = vst [vmem:[#allocation114_spill] sm:$0xff] %v7842_v57  ;;  %v7855_v7 = vsel %vm1801_vm11, %v1913_v13, %v1915_v34  ;;  %v1918_v22 = vrot.slane %v12565_v10, 2  ;;  %v1920_v57 = vrot.slane %v12566_v14, 2  ;;  %v12573_v10 = vld [vmem:[#allocation125_spill] sm:$0xff] }
 0x1e3   :  { %12561 = vst [vmem:[#allocation212_spill] sm:$0xff] %v7844_v32  ;;  %12564 = vst [vmem:[#allocation214_spill] sm:$0xff] %v7855_v7 }
 0x1e4   :  { %v7872_v34 = vsel %vm1801_vm11, %v1918_v22, %v1920_v57 }
 0x1e5   :  { %2032 = vrot.lane.b32.xlu0 %v7822_v30, %s5451_s5  ;;  %v7852_v30 = vsel %vm1801_vm11, %v1912_v51, %v1913_v13  ;;  %12571 = vst [vmem:[#allocation217_spill] sm:$0xff] %v7872_v34  ;;  %v12572_v13 = vld [vmem:[#allocation7_spill] sm:$0xff] }
 0x1e6   :  { %2034 = vrot.lane.b32.xlu1 %v7825_v37, %s5451_s5  ;;  %v12562_v37 = vld [vmem:[#allocation119_spill] sm:$0xff]  ;;  %12563 = vst [vmem:[#allocation213_spill] sm:$0xff] %v7852_v30  ;;  %v1923_v14 = vrot.slane %v12572_v13, 2 }
 0x1e7   :  { %v1917_v50 = vrot.slane %v12562_v37, 2 }
 0x1e9   :  { %2036 = vrot.lane.b32.xlu0 %v7835_v39, %s5451_s5  ;;  %v7869_v39 = vsel %vm1801_vm11, %v1917_v50, %v1918_v22  ;;  %v1927_v50 = vrot.slane %v7347_v3, 2  ;;  %v1930_v22 = vrot.slane %v7358_v5, 2 }
 0x1ea   :  { %2038 = vrot.lane.b32.xlu1 %v7838_v23, %s5451_s5  ;;  %v12569_v23 = vld [vmem:[#allocation8_spill] sm:$0xff]  ;;  %12570 = vst [vmem:[#allocation216_spill] sm:$0xff] %v7869_v39 }
 0x1eb   :  { %v1922_v51 = vrot.slane %v12569_v23, 2 }
 0x1ec   :  { %v7859_v24 = vpop.permute.xlu0 %1721 }
 0x1ed   :  { %12567 = vst [vmem:[#allocation121_spill] sm:$0xff] %v7859_v24  ;;  %v7861_v32 = vpop.permute.xlu1 %1723  ;;  %2040 = vrot.lane.b32.xlu0 %v7852_v30, %s5451_s5  ;;  %v1925_v24 = vrot.slane %v12573_v10, 2  ;;  %v7886_v30 = vsel %vm1801_vm11, %v1922_v51, %v1923_v14  ;;  %v1928_v10 = vrot.slane %v7354_v49, 2 }
 0x1ee   :  { %12568 = vst [vmem:[#allocation215_spill] sm:$0xff] %v7861_v32  ;;  %2042 = vrot.lane.b32.xlu1 %v7855_v7, %s5451_s5  ;;  %12576 = vst [vmem:[#allocation219_spill] sm:$0xff] %v7886_v30 }
 0x1ef   :  { %v7889_v57 = vsel %vm1801_vm11, %v1923_v14, %v1925_v24  ;;  %v7902_v51 = vsel %vm1801_vm11, %v1928_v10, %v1930_v22  ;;  %v1933_v24 = vrot.slane %v7373_v33, 2  ;;  %v1935_v14 = vrot.slane %v7381_v18, 2  ;;  %v12585_v22 = vld [vmem:[#allocation138_spill] sm:$0xff] }
 0x1f0   :  { %v7880_v32 = vpop.permute.xlu0 %1725  ;;  %12577 = vst [vmem:[#allocation220_spill] sm:$0xff] %v7889_v57  ;;  %12579 = vst [vmem:[#allocation222_spill] sm:$0xff] %v7902_v51  ;;  %v1938_v18 = vrot.slane %v12585_v22, 2 }
 0x1f1   :  { %2044 = vrot.lane.b32.xlu0 %v7869_v39, %s5451_s5  ;;  %12574 = vst [vmem:[#allocation125_spill] sm:$0xff] %v7880_v32  ;;  %v7882_v7 = vpop.permute.xlu1 %1727  ;;  %v7899_v32 = vsel %vm1801_vm11, %v1927_v50, %v1928_v10  ;;  %v7919_v10 = vsel %vm1801_vm11, %v1933_v24, %v1935_v14  ;;  %v12586_v39 = vld [vmem:[#allocation139_spill] sm:$0xff]  ;;  %v1945_v14 = vrot.slane %v7457_v44, 2 }
 0x1f2   :  { %2046 = vrot.lane.b32.xlu1 %v7872_v34, %s5451_s5  ;;  %12575 = vst [vmem:[#allocation218_spill] sm:$0xff] %v7882_v7  ;;  %v1932_v7 = vrot.slane %v7363_v42, 2  ;;  %12578 = vst [vmem:[#allocation221_spill] sm:$0xff] %v7899_v32 }
 0x1f3   :  { %12584 = vst [vmem:[#allocation226_spill] sm:$0xff] %v7919_v10 }
 0x1f4   :  { %v7906_v34 = vpop.permute.xlu0 %1729 }
 0x1f5   :  { %2048 = vrot.lane.b32.xlu0 %v7886_v30, %s5451_s5  ;;  %12580 = vst [vmem:[#allocation223_spill] sm:$0xff] %v7906_v34  ;;  %v7908_v5 = vpop.permute.xlu1 %1731  ;;  %v7916_v30 = vsel %vm1801_vm11, %v1932_v7, %v1933_v24  ;;  %v1940_v34 = vrot.slane %v12586_v39, 2  ;;  %v1942_v7 = vrot.slane %v7450_v27, 2  ;;  %v1943_v39 = vrot.slane %v7453_v60, 2 }
 0x1f6   :  { %2050 = vrot.lane.b32.xlu1 %v7889_v57, %s5451_s5  ;;  %12581 = vst [vmem:[#allocation224_spill] sm:$0xff] %v7908_v5  ;;  %v12582_v57 = vld [vmem:[#allocation137_spill] sm:$0xff]  ;;  %12583 = vst [vmem:[#allocation225_spill] sm:$0xff] %v7916_v30 }
 0x1f7   :  { %v1937_v50 = vrot.slane %v12582_v57, 2  ;;  %v7936_v24 = vsel %vm1801_vm11, %v1938_v18, %v1940_v34  ;;  %v1948_v34 = vrot.slane %v7480_v61, 2 }
 0x1f8   :  { %12590 = vst [vmem:[#allocation229_spill] sm:$0xff] %v7936_v24 }
 0x1f9   :  { %2052 = vrot.lane.b32.xlu0 %v7899_v32, %s5451_s5  ;;  %v7933_v32 = vsel %vm1801_vm11, %v1937_v50, %v1938_v18  ;;  %v7949_v50 = vsel %vm1801_vm11, %v1943_v39, %v1945_v14  ;;  %v1950_v18 = vrot.slane %v7483_v9, 2 }
 0x1fa   :  { %2054 = vrot.lane.b32.xlu1 %v7902_v51, %s5451_s5  ;;  %12589 = vst [vmem:[#allocation228_spill] sm:$0xff] %v7933_v32  ;;  %12592 = vst [vmem:[#allocation231_spill] sm:$0xff] %v7949_v50 }
 0x1fd   :  { %2056 = vrot.lane.b32.xlu0 %v7916_v30, %s5451_s5 }
 0x1fe   :  { %2058 = vrot.lane.b32.xlu1 %v7919_v10, %s5451_s5  ;;  %v7927_v5 = vpop.permute.xlu0 %1733  ;;  %v7929_v51 = vpop.permute.xlu1 %1735 }
 0x1ff   :  { %12587 = vst [vmem:[#allocation139_spill] sm:$0xff] %v7927_v5  ;;  %12588 = vst [vmem:[#allocation227_spill] sm:$0xff] %v7929_v51  ;;  %v1947_v51 = vrot.slane %v7476_v43, 2  ;;  %v7946_v5 = vsel %vm1801_vm11, %v1942_v7, %v1943_v39  ;;  %v7965_v39 = vsel %vm1801_vm11, %v1948_v34, %v1950_v18 }
 0x200   :  { %12591 = vst [vmem:[#allocation230_spill] sm:$0xff] %v7946_v5  ;;  %12596 = vst [vmem:[#allocation235_spill] sm:$0xff] %v7965_v39 }
 0x201   :  { %2060 = vrot.lane.b32.xlu0 %v7933_v32, %s5451_s5  ;;  %v7962_v7 = vsel %vm1801_vm11, %v1947_v51, %v1948_v34 }
 0x202   :  { %2062 = vrot.lane.b32.xlu1 %v7936_v24, %s5451_s5  ;;  %12595 = vst [vmem:[#allocation234_spill] sm:$0xff] %v7962_v7 }
 0x203   :  { %v7953_v10 = vpop.permute.xlu0 %1737 }
 0x204   :  { %12593 = vst [vmem:[#allocation232_spill] sm:$0xff] %v7953_v10  ;;  %v7955_v44 = vpop.permute.xlu1 %1739 }
 0x205   :  { %12594 = vst [vmem:[#allocation233_spill] sm:$0xff] %v7955_v44  ;;  %2064 = vrot.lane.b32.xlu0 %v7946_v5, %s5451_s5 }
 0x206   :  { %2066 = vrot.lane.b32.xlu1 %v7949_v50, %s5451_s5 }
 0x207   :  { %v7967_v14 = vpop.permute.xlu0 %1952 }
 0x208   :  { %v7969_v24 = vpop.permute.xlu1 %1954 }
 0x209   :  { %2068 = vrot.lane.b32.xlu0 %v7962_v7, %s5451_s5 }
 0x20a   :  { %2070 = vrot.lane.b32.xlu1 %v7965_v39, %s5451_s5 }
 0x20b   :  { %v7975_v9 = vpop.permute.xlu0 %1956 }
 0x20c   :  { %12597 = vst [vmem:[#allocation236_spill] sm:$0xff] %v7975_v9  ;;  %v7977_v44 = vpop.permute.xlu1 %1958 }
 0x20d   :  { %12598 = vst [vmem:[#allocation237_spill] sm:$0xff] %v7977_v44  ;;  %2134 = vrot.lane.b32.xlu0 %v6463_v47, %s5452_s30  ;;  %v12735_v44 = vld [vmem:[#allocation86_spill] sm:$0xff] }
 0x20e   :  { %2136 = vrot.lane.b32.xlu1 %v6469_v0, %s5452_s30  ;;  %v12776_v47 = vld [vmem:[#allocation118_spill] sm:$0xff] }
 0x20f   :  { %v7983_v51 = vpop.permute.xlu0 %1960 }
 0x210   :  { %12599 = vst [vmem:[#allocation238_spill] sm:$0xff] %v7983_v51  ;;  %v7985_v34 = vpop.permute.xlu1 %1962 }
 0x211   :  { %12600 = vst [vmem:[#allocation239_spill] sm:$0xff] %v7985_v34  ;;  %2138 = vrot.lane.b32.xlu0 %v6458_v48, %s5452_s30 }
 0x212   :  { %2140 = vrot.lane.b32.xlu1 %v6455_v31, %s5452_s30 }
 0x213   :  { %v7991_v18 = vpop.permute.xlu0 %1964 }
 0x214   :  { %12601 = vst [vmem:[#allocation240_spill] sm:$0xff] %v7991_v18  ;;  %v7993_v10 = vpop.permute.xlu1 %1966  ;;  %v12619_v18 = vld [vmem:[#allocation31_spill] sm:$0xff] }
 0x215   :  { %12602 = vst [vmem:[#allocation241_spill] sm:$0xff] %v7993_v10  ;;  %2142 = vrot.lane.b32.xlu0 %v6501_v12, %s5452_s30 }
 0x216   :  { %2144 = vrot.lane.b32.xlu1 %v6505_v4, %s5452_s30 }
 0x217   :  { %v7999_v39 = vpop.permute.xlu0 %1968 }
 0x218   :  { %12603 = vst [vmem:[#allocation242_spill] sm:$0xff] %v7999_v39  ;;  %v8001_v7 = vpop.permute.xlu1 %1970  ;;  %v12618_v39 = vld [vmem:[#allocation40_spill] sm:$0xff] }
 0x219   :  { %12604 = vst [vmem:[#allocation243_spill] sm:$0xff] %v8001_v7  ;;  %2146 = vrot.lane.b32.xlu0 %v6516_v52, %s5452_s30  ;;  %v606_v34 = vmul.f32 %v12618_v39, %v12619_v18 }
 0x21a   :  { %2148 = vrot.lane.b32.xlu1 %v6522_v63, %s5452_s30 }
 0x21b   :  { %v8007_v50 = vpop.permute.xlu0 %1972 }
 0x21c   :  { %12605 = vst [vmem:[#allocation244_spill] sm:$0xff] %v8007_v50  ;;  %v8009_v5 = vpop.permute.xlu1 %1974 }
 0x21d   :  { %12606 = vst [vmem:[#allocation245_spill] sm:$0xff] %v8009_v5  ;;  %2150 = vrot.lane.b32.xlu0 %v6586_v41, %s5452_s30 }
 0x21e   :  { %2152 = vrot.lane.b32.xlu1 %v6590_v40, %s5452_s30 }
 0x21f   :  { %v8015_v32 = vpop.permute.xlu0 %1976 }
 0x220   :  { %12607 = vst [vmem:[#allocation246_spill] sm:$0xff] %v8015_v32  ;;  %v8017_v30 = vpop.permute.xlu1 %1978 }
 0x221   :  { %12608 = vst [vmem:[#allocation247_spill] sm:$0xff] %v8017_v30  ;;  %2154 = vrot.lane.b32.xlu0 %v6611_v35, %s5452_s30 }
 0x222   :  { %2156 = vrot.lane.b32.xlu1 %v6608_v6, %s5452_s30 }
 0x223   :  { %v8023_v7 = vpop.permute.xlu0 %1980 }
 0x224   :  { %12609 = vst [vmem:[#allocation248_spill] sm:$0xff] %v8023_v7  ;;  %v8025_v50 = vpop.permute.xlu1 %1982 }
 0x225   :  { %12610 = vst [vmem:[#allocation249_spill] sm:$0xff] %v8025_v50  ;;  %2158 = vrot.lane.b32.xlu0 %v6639_v17, %s5452_s30  ;;  %v12833_v17 = vld [vmem:[#allocation173_spill] sm:$0xff] }
 0x226   :  { %2160 = vrot.lane.b32.xlu1 %v6643_v16, %s5452_s30 }
 0x227   :  { %v8031_v5 = vpop.permute.xlu0 %1984 }
 0x228   :  { %12611 = vst [vmem:[#allocation250_spill] sm:$0xff] %v8031_v5  ;;  %v8033_v32 = vpop.permute.xlu1 %1986 }
 0x229   :  { %12612 = vst [vmem:[#allocation251_spill] sm:$0xff] %v8033_v32  ;;  %2162 = vrot.lane.b32.xlu0 %v12478_v2, %s5452_s30  ;;  %v12617_v32 = vld [vmem:[#allocation29_spill] sm:$0xff]  ;;  %v12711_v2 = vld [vmem:[#allocation59_spill] sm:$0xff] }
 0x22a   :  { %2164 = vrot.lane.b32.xlu1 %v6689_v19, %s5452_s30  ;;  %v605_v10 = vmul.f32 %v12618_v39, %v12617_v32  ;;  %v111_v32 = vld [vmem:[%s11717_s1 + $0xf0] sm:$0xff]  ;;  %v112_v39 = vld [vmem:[%s11717_s1 + $0xf8] sm:$0xff] }
 0x22b   :  { %v8039_v30 = vpop.permute.xlu0 %1988 }
 0x22c   :  { %12613 = vst [vmem:[#allocation252_spill] sm:$0xff] %v8039_v30  ;;  %v8041_v7 = vpop.permute.xlu1 %1990 }
 0x22d   :  { %12614 = vst [vmem:[#allocation253_spill] sm:$0xff] %v8041_v7  ;;  %2166 = vrot.lane.b32.xlu0 %v6710_v56, %s5452_s30  ;;  %v12665_v56 = vld [vmem:[#allocation93_spill] sm:$0xff] }
 0x22e   :  { %2168 = vrot.lane.b32.xlu1 %v12481_v1, %s5452_s30 }
 0x22f   :  { %v8047_v50 = vpop.permute.xlu0 %1992 }
 0x230   :  { %12615 = vst [vmem:[#allocation254_spill] sm:$0xff] %v8047_v50  ;;  %v8049_v5 = vpop.permute.xlu1 %1994  ;;  %v673_v50 = vadd.f32 %v6386_v11, %v605_v10 }
 0x231   :  { %12616 = vst [vmem:[#allocation255_spill] sm:$0xff] %v8049_v5  ;;  %2170 = vrot.lane.b32.xlu0 %v6745_v26, %s5452_s30  ;;  %v674_v5 = vadd.f32 %v6386_v11, %v606_v34 }
 0x232   :  { %2172 = vrot.lane.b32.xlu1 %v6742_v55, %s5452_s30  ;;  %v737_v10 = vadd.f32 %v673_v50, %v111_v32 }
 0x233   :  { %v8059_v7 = vpop.permute.xlu0 %1996  ;;  %v738_v34 = vadd.f32 %v674_v5, %v112_v39 }
 0x234   :  { %12620 = vst [vmem:[#allocation29_spill] sm:$0xff] %v8059_v7  ;;  %v8061_v30 = vpop.permute.xlu1 %1998  ;;  %vm801_vm12 = vcmp.ge.f32.partialorder %v737_v10, 0.0 }
 0x235   :  { %12621 = vst [vmem:[#allocation40_spill] sm:$0xff] %v8061_v30  ;;  %2174 = vrot.lane.b32.xlu0 %v6782_v53, %s5452_s30  ;;  %v865_v53 = vmul.f32 0.01, %v737_v10  ;;  %v866_v26 = vmul.f32 0.01, %v738_v34  ;;  %vm802_vm13 = vcmp.ge.f32.partialorder %v738_v34, 0.0 }
 0x236   :  { %2176 = vrot.lane.b32.xlu1 %v6793_v20, %s5452_s30 }
 0x237   :  { %v8075_v18 = vpop.permute.xlu0 %2000  ;;  %v929_v32 = vsel %vm801_vm12, %v737_v10, %v865_v53  ;;  %v8095_v39 = vsel %vm802_vm13, %v738_v34, %v866_v26 }
 0x238   :  { %12622 = vst [vmem:[#allocation31_spill] sm:$0xff] %v8075_v18  ;;  %v8077_v30 = vpop.permute.xlu1 %2002 }
 0x239   :  { %12623 = vst [vmem:[#allocation256_spill] sm:$0xff] %v8077_v30  ;;  %2178 = vrot.lane.b32.xlu0 %v12496_v45, %s5452_s30  ;;  %v12083_v30 = vrot.slane %v8095_v39, 7  ;;  %v12645_v45 = vld [vmem:[#allocation99_spill] sm:$0xff] }
 0x23a   :  { %2180 = vrot.lane.b32.xlu1 %v6826_v28, %s5452_s30 }
 0x23b   :  { %v8083_v7 = vpop.permute.xlu0 %2004 }
 0x23c   :  { %12624 = vst [vmem:[#allocation257_spill] sm:$0xff] %v8083_v7  ;;  %v8085_v55 = vpop.permute.xlu1 %2006  ;;  %v1137_v7 = vrot.slane %v929_v32, 7 }
 0x23d   :  { %12625 = vst [vmem:[#allocation258_spill] sm:$0xff] %v8085_v55  ;;  %2182 = vrot.lane.b32.xlu0 %v6853_v46, %s5452_s30  ;;  %v1010_v55 = vrot.slane %v929_v32, 1 }
 0x23e   :  { %2184 = vrot.lane.b32.xlu1 %v12501_v62, %s5452_s30  ;;  %v8116_v53 = vsel %vm1091_vm1, %v1137_v7, %v12083_v30 }
 0x23f   :  { %v8091_v5 = vpop.permute.xlu0 %2008  ;;  %v8111_v26 = vsel %vm1091_vm1, %v1010_v55, %v1137_v7  ;;  %12630 = vst [vmem:[#allocation263_spill] sm:$0xff] %v8116_v53 }
 0x240   :  { %12626 = vst [vmem:[#allocation259_spill] sm:$0xff] %v8091_v5  ;;  %v8093_v50 = vpop.permute.xlu1 %2010  ;;  %12629 = vst [vmem:[#allocation262_spill] sm:$0xff] %v8111_v26 }
 0x241   :  { %12627 = vst [vmem:[#allocation260_spill] sm:$0xff] %v8093_v50  ;;  %2186 = vrot.lane.b32.xlu0 %v12503_v58, %s5452_s30  ;;  %v12642_v58 = vld [vmem:[#allocation30_spill] sm:$0xff] }
 0x242   :  { %2188 = vrot.lane.b32.xlu1 %v12506_v29, %s5452_s30  ;;  %v12641_v29 = vld [vmem:[#allocation28_spill] sm:$0xff] }
 0x243   :  { %v8102_v18 = vpop.permute.xlu0 %2012 }
 0x244   :  { %v8104_v62 = vpop.permute.xlu1 %2014 }
 0x245   :  { %12628 = vst [vmem:[#allocation261_spill] sm:$0xff] %v8104_v62  ;;  %2190 = vrot.lane.b32.xlu0 %v12510_v36, %s5452_s30  ;;  %v12837_v62 = vld [vmem:[#allocation174_spill] sm:$0xff] }
 0x246   :  { %2192 = vrot.lane.b32.xlu1 %v12513_v8, %s5452_s30 }
 0x247   :  { %v8118_v10 = vpop.permute.xlu0 %2016 }
 0x248   :  { %12631 = vst [vmem:[#allocation264_spill] sm:$0xff] %v8118_v10  ;;  %v8120_v34 = vpop.permute.xlu1 %2018  ;;  %v12768_v10 = vld [vmem:[#allocation108_spill] sm:$0xff] }
 0x249   :  { %12632 = vst [vmem:[#allocation265_spill] sm:$0xff] %v8120_v34  ;;  %2194 = vrot.lane.b32.xlu0 %v8111_v26, %s5452_s30 }
 0x24a   :  { %2196 = vrot.lane.b32.xlu1 %v8116_v53, %s5452_s30 }
 0x24b   :  { %v8126_v32 = vpop.permute.xlu0 %2020 }
 0x24c   :  { %12633 = vst [vmem:[#allocation266_spill] sm:$0xff] %v8126_v32  ;;  %v8128_v50 = vpop.permute.xlu1 %2022  ;;  %v12658_v32 = vld [vmem:[#allocation113_spill] sm:$0xff] }
 0x24d   :  { %12634 = vst [vmem:[#allocation267_spill] sm:$0xff] %v8128_v50  ;;  %2198 = vrot.lane.b32.xlu0 %v7010_v21, %s5452_s30 }
 0x24e   :  { %2200 = vrot.lane.b32.xlu1 %v7017_v59, %s5452_s30  ;;  %v12715_v59 = vld [vmem:[#allocation63_spill] sm:$0xff] }
 0x24f   :  { %v8134_v55 = vpop.permute.xlu0 %2024 }
 0x250   :  { %12635 = vst [vmem:[#allocation268_spill] sm:$0xff] %v8134_v55  ;;  %v8136_v7 = vpop.permute.xlu1 %2026  ;;  %v12654_v55 = vld [vmem:[#allocation2_spill] sm:$0xff] }
 0x251   :  { %12636 = vst [vmem:[#allocation269_spill] sm:$0xff] %v8136_v7  ;;  %2202 = vrot.lane.b32.xlu0 %v6993_v25, %s5452_s30 }
 0x252   :  { %2204 = vrot.lane.b32.xlu1 %v6990_v15, %s5452_s30 }
 0x253   :  { %v8142_v30 = vpop.permute.xlu0 %2028 }
 0x254   :  { %12637 = vst [vmem:[#allocation270_spill] sm:$0xff] %v8142_v30  ;;  %v8144_v5 = vpop.permute.xlu1 %2030  ;;  %v12650_v30 = vld [vmem:[#allocation104_spill] sm:$0xff] }
 0x255   :  { %12638 = vst [vmem:[#allocation271_spill] sm:$0xff] %v8144_v5  ;;  %2206 = vrot.lane.b32.xlu0 %v12524_v54, %s5452_s30  ;;  %v12646_v5 = vld [vmem:[#allocation34_spill] sm:$0xff] }
 0x256   :  { %2208 = vrot.lane.b32.xlu1 %v12527_v38, %s5452_s30 }
 0x257   :  { %v8150_v8 = vpop.permute.xlu0 %2032 }
 0x258   :  { %12639 = vst [vmem:[#allocation272_spill] sm:$0xff] %v8150_v8  ;;  %v8152_v36 = vpop.permute.xlu1 %2034 }
 0x259   :  { %12640 = vst [vmem:[#allocation273_spill] sm:$0xff] %v8152_v36  ;;  %2210 = vrot.lane.b32.xlu0 %v12641_v29, %s5452_s30  ;;  %v12649_v36 = vld [vmem:[#allocation103_spill] sm:$0xff] }
 0x25a   :  { %2212 = vrot.lane.b32.xlu1 %v12642_v58, %s5452_s30 }
 0x25b   :  { %v8158_v46 = vpop.permute.xlu0 %2036 }
 0x25c   :  { %12643 = vst [vmem:[#allocation28_spill] sm:$0xff] %v8158_v46  ;;  %v8160_v28 = vpop.permute.xlu1 %2038 }
 0x25d   :  { %12644 = vst [vmem:[#allocation30_spill] sm:$0xff] %v8160_v28  ;;  %2214 = vrot.lane.b32.xlu0 %v12645_v45, %s5452_s30  ;;  %v12653_v28 = vld [vmem:[#allocation109_spill] sm:$0xff] }
 0x25e   :  { %2216 = vrot.lane.b32.xlu1 %v12646_v5, %s5452_s30 }
 0x25f   :  { %v8166_v20 = vpop.permute.xlu0 %2040 }
 0x260   :  { %12647 = vst [vmem:[#allocation99_spill] sm:$0xff] %v8166_v20  ;;  %v8168_v8 = vpop.permute.xlu1 %2042 }
 0x261   :  { %12648 = vst [vmem:[#allocation34_spill] sm:$0xff] %v8168_v8  ;;  %2218 = vrot.lane.b32.xlu0 %v12649_v36, %s5452_s30  ;;  %v12657_v8 = vld [vmem:[#allocation112_spill] sm:$0xff] }
 0x262   :  { %2220 = vrot.lane.b32.xlu1 %v12650_v30, %s5452_s30 }
 0x263   :  { %v8174_v7 = vpop.permute.xlu0 %2044 }
 0x264   :  { %12651 = vst [vmem:[#allocation274_spill] sm:$0xff] %v8174_v7  ;;  %v8176_v46 = vpop.permute.xlu1 %2046 }
 0x265   :  { %12652 = vst [vmem:[#allocation275_spill] sm:$0xff] %v8176_v46  ;;  %2222 = vrot.lane.b32.xlu0 %v12653_v28, %s5452_s30  ;;  %v12661_v46 = vld [vmem:[#allocation120_spill] sm:$0xff] }
 0x266   :  { %2224 = vrot.lane.b32.xlu1 %v12654_v55, %s5452_s30  ;;  %v12800_v55 = vld [vmem:[#allocation146_spill] sm:$0xff] }
 0x267   :  { %v8182_v50 = vpop.permute.xlu0 %2048 }
 0x268   :  { %12655 = vst [vmem:[#allocation276_spill] sm:$0xff] %v8182_v50  ;;  %v8184_v20 = vpop.permute.xlu1 %2050 }
 0x269   :  { %12656 = vst [vmem:[#allocation277_spill] sm:$0xff] %v8184_v20  ;;  %2226 = vrot.lane.b32.xlu0 %v12657_v8, %s5452_s30  ;;  %v12664_v20 = vld [vmem:[#allocation13_spill] sm:$0xff]  ;;  %v12666_v8 = vld [vmem:[#allocation18_spill] sm:$0xff] }
 0x26a   :  { %2228 = vrot.lane.b32.xlu1 %v12658_v32, %s5452_s30  ;;  %v637_v19 = vmul.f32 %v12665_v56, %v12664_v20  ;;  %v638_v32 = vmul.f32 %v12665_v56, %v12666_v8  ;;  %v143_v20 = vld [vmem:[%s11717_s1 + $0x1f0] sm:$0xff]  ;;  %v144_v56 = vld [vmem:[%s11717_s1 + $0x1f8] sm:$0xff]  ;;  %s5453_s1 = smov 16  }
 0x26b   :  { %v8190_v51 = vpop.permute.xlu0 %2052 }
 0x26c   :  { %12659 = vst [vmem:[#allocation278_spill] sm:$0xff] %v8190_v51  ;;  %v8192_v7 = vpop.permute.xlu1 %2054 }
 0x26d   :  { %12660 = vst [vmem:[#allocation279_spill] sm:$0xff] %v8192_v7  ;;  %2230 = vrot.lane.b32.xlu0 %v12562_v37, %s5452_s30 }
 0x26e   :  { %2232 = vrot.lane.b32.xlu1 %v12661_v46, %s5452_s30  ;;  %v12703_v46 = vld [vmem:[#allocation50_spill] sm:$0xff] }
 0x26f   :  { %v8198_v1 = vpop.permute.xlu0 %2056 }
 0x270   :  { %12662 = vst [vmem:[#allocation280_spill] sm:$0xff] %v8198_v1  ;;  %v8200_v50 = vpop.permute.xlu1 %2058  ;;  %v705_v1 = vadd.f32 %v6386_v11, %v637_v19 }
 0x271   :  { %12663 = vst [vmem:[#allocation281_spill] sm:$0xff] %v8200_v50  ;;  %2234 = vrot.lane.b32.xlu0 %v12569_v23, %s5452_s30  ;;  %v706_v50 = vadd.f32 %v6386_v11, %v638_v32 }
 0x272   :  { %2236 = vrot.lane.b32.xlu1 %v12572_v13, %s5452_s30  ;;  %v769_v19 = vadd.f32 %v705_v1, %v143_v20 }
 0x273   :  { %v8210_v7 = vpop.permute.xlu0 %2060  ;;  %v770_v11 = vadd.f32 %v706_v50, %v144_v56 }
 0x274   :  { %12667 = vst [vmem:[#allocation13_spill] sm:$0xff] %v8210_v7  ;;  %v8212_v51 = vpop.permute.xlu1 %2062  ;;  %vm833_vm14 = vcmp.ge.f32.partialorder %v769_v19, 0.0 }
 0x275   :  { %12668 = vst [vmem:[#allocation93_spill] sm:$0xff] %v8212_v51  ;;  %2238 = vrot.lane.b32.xlu0 %v7347_v3, %s5452_s30  ;;  %v897_v3 = vmul.f32 0.01, %v769_v19  ;;  %v898_v13 = vmul.f32 0.01, %v770_v11  ;;  %vm834_vm15 = vcmp.ge.f32.partialorder %v770_v11, 0.0 }
 0x276   :  { %2240 = vrot.lane.b32.xlu1 %v7354_v49, %s5452_s30 }
 0x277   :  { %v8226_v8 = vpop.permute.xlu0 %2064  ;;  %v961_v20 = vsel %vm833_vm14, %v769_v19, %v897_v3  ;;  %v8246_v56 = vsel %vm834_vm15, %v770_v11, %v898_v13 }
 0x278   :  { %12669 = vst [vmem:[#allocation18_spill] sm:$0xff] %v8226_v8  ;;  %v8228_v51 = vpop.permute.xlu1 %2066 }
 0x279   :  { %12670 = vst [vmem:[#allocation282_spill] sm:$0xff] %v8228_v51  ;;  %2242 = vrot.lane.b32.xlu0 %v7363_v42, %s5452_s30  ;;  %v1185_v51 = vrot.slane %v961_v20, 7  ;;  %v12690_v42 = vld [vmem:[#allocation42_spill] sm:$0xff] }
 0x27a   :  { %2244 = vrot.lane.b32.xlu1 %v7373_v33, %s5452_s30 }
 0x27b   :  { %v8234_v32 = vpop.permute.xlu0 %2068 }
 0x27c   :  { %12671 = vst [vmem:[#allocation283_spill] sm:$0xff] %v8234_v32  ;;  %v8236_v7 = vpop.permute.xlu1 %2070  ;;  %v12106_v32 = vrot.slane %v8246_v56, 7 }
 0x27d   :  { %12672 = vst [vmem:[#allocation284_spill] sm:$0xff] %v8236_v7  ;;  %2246 = vrot.lane.b32.xlu0 %v12582_v57, %s5452_s30  ;;  %v1026_v7 = vrot.slane %v961_v20, 1 }
 0x27e   :  { %2248 = vrot.lane.b32.xlu1 %v12585_v22, %s5452_s30  ;;  %v8267_v13 = vsel %vm1091_vm1, %v1185_v51, %v12106_v32 }
 0x27f   :  { %v8242_v1 = vpop.permute.xlu0 %2134  ;;  %v8262_v3 = vsel %vm1091_vm1, %v1026_v7, %v1185_v51  ;;  %12677 = vst [vmem:[#allocation289_spill] sm:$0xff] %v8267_v13  ;;  %v12682_v7 = vld [vmem:[#allocation19_spill] sm:$0xff]  ;;  %v12683_v51 = vld [vmem:[#allocation41_spill] sm:$0xff] }
 0x280   :  { %v8244_v50 = vpop.permute.xlu1 %2136  ;;  %12676 = vst [vmem:[#allocation288_spill] sm:$0xff] %v8262_v3 }
 0x281   :  { %12673 = vst [vmem:[#allocation285_spill] sm:$0xff] %v8244_v50  ;;  %2250 = vrot.lane.b32.xlu0 %v7450_v27, %s5452_s30  ;;  %v12687_v27 = vld [vmem:[#allocation15_spill] sm:$0xff]  ;;  %v149_v50 = vld [vmem:[%s11718_s3 + $0x18] sm:$0xff] }
 0x282   :  { %2252 = vrot.lane.b32.xlu1 %v7453_v60, %s5452_s30  ;;  %v12686_v60 = vld [vmem:[#allocation14_spill] sm:$0xff] }
 0x283   :  { %v8253_v8 = vpop.permute.xlu0 %2138 }
 0x284   :  { %12674 = vst [vmem:[#allocation286_spill] sm:$0xff] %v8253_v8  ;;  %v8255_v22 = vpop.permute.xlu1 %2140 }
 0x285   :  { %12675 = vst [vmem:[#allocation287_spill] sm:$0xff] %v8255_v22  ;;  %2254 = vrot.lane.b32.xlu0 %v7476_v43, %s5452_s30 }
 0x286   :  { %2256 = vrot.lane.b32.xlu1 %v7480_v61, %s5452_s30 }
 0x287   :  { %v8269_v19 = vpop.permute.xlu0 %2142 }
 0x288   :  { %12678 = vst [vmem:[#allocation290_spill] sm:$0xff] %v8269_v19  ;;  %v8271_v11 = vpop.permute.xlu1 %2144 }
 0x289   :  { %12679 = vst [vmem:[#allocation291_spill] sm:$0xff] %v8271_v11  ;;  %2258 = vrot.lane.b32.xlu0 %v8262_v3, %s5452_s30  ;;  %v12707_v11 = vld [vmem:[#allocation55_spill] sm:$0xff] }
 0x28a   :  { %2260 = vrot.lane.b32.xlu1 %v8267_v13, %s5452_s30 }
 0x28b   :  { %v8277_v20 = vpop.permute.xlu0 %2146 }
 0x28c   :  { %12680 = vst [vmem:[#allocation292_spill] sm:$0xff] %v8277_v20  ;;  %v8279_v61 = vpop.permute.xlu1 %2148 }
 0x28d   :  { %12681 = vst [vmem:[#allocation293_spill] sm:$0xff] %v8279_v61  ;;  %2338 = vrot.lane.b32.xlu0 %v12682_v7, %s5453_s1  ;;  %v12691_v7 = vld [vmem:[#allocation43_spill] sm:$0xff] }
 0x28e   :  { %2340 = vrot.lane.b32.xlu1 %v12683_v51, %s5453_s1  ;;  %v12699_v61 = vld [vmem:[#allocation47_spill] sm:$0xff] }
 0x28f   :  { %v8285_v32 = vpop.permute.xlu0 %2150 }
 0x290   :  { %12684 = vst [vmem:[#allocation19_spill] sm:$0xff] %v8285_v32  ;;  %v8287_v43 = vpop.permute.xlu1 %2152  ;;  %v12695_v32 = vld [vmem:[#allocation45_spill] sm:$0xff] }
 0x291   :  { %12685 = vst [vmem:[#allocation41_spill] sm:$0xff] %v8287_v43  ;;  %2342 = vrot.lane.b32.xlu0 %v12686_v60, %s5453_s1  ;;  %v12694_v43 = vld [vmem:[#allocation44_spill] sm:$0xff] }
 0x292   :  { %2344 = vrot.lane.b32.xlu1 %v12687_v27, %s5453_s1 }
 0x293   :  { %v8293_v57 = vpop.permute.xlu0 %2154 }
 0x294   :  { %12688 = vst [vmem:[#allocation14_spill] sm:$0xff] %v8293_v57  ;;  %v8295_v33 = vpop.permute.xlu1 %2156 }
 0x295   :  { %12689 = vst [vmem:[#allocation15_spill] sm:$0xff] %v8295_v33  ;;  %2346 = vrot.lane.b32.xlu0 %v12690_v42, %s5453_s1  ;;  %v12698_v33 = vld [vmem:[#allocation46_spill] sm:$0xff] }
 0x296   :  { %2348 = vrot.lane.b32.xlu1 %v12691_v7, %s5453_s1 }
 0x297   :  { %v8301_v51 = vpop.permute.xlu0 %2158 }
 0x298   :  { %12692 = vst [vmem:[#allocation42_spill] sm:$0xff] %v8301_v51  ;;  %v8303_v49 = vpop.permute.xlu1 %2160 }
 0x299   :  { %12693 = vst [vmem:[#allocation43_spill] sm:$0xff] %v8303_v49  ;;  %2350 = vrot.lane.b32.xlu0 %v12694_v43, %s5453_s1  ;;  %v12702_v49 = vld [vmem:[#allocation49_spill] sm:$0xff] }
 0x29a   :  { %2352 = vrot.lane.b32.xlu1 %v12695_v32, %s5453_s1 }
 0x29b   :  { %v8309_v23 = vpop.permute.xlu0 %2162 }
 0x29c   :  { %12696 = vst [vmem:[#allocation44_spill] sm:$0xff] %v8309_v23  ;;  %v8311_v57 = vpop.permute.xlu1 %2164 }
 0x29d   :  { %12697 = vst [vmem:[#allocation45_spill] sm:$0xff] %v8311_v57  ;;  %2354 = vrot.lane.b32.xlu0 %v12698_v33, %s5453_s1  ;;  %v12706_v57 = vld [vmem:[#allocation54_spill] sm:$0xff] }
 0x29e   :  { %2356 = vrot.lane.b32.xlu1 %v12699_v61, %s5453_s1 }
 0x29f   :  { %v8317_v20 = vpop.permute.xlu0 %2166 }
 0x2a0   :  { %12700 = vst [vmem:[#allocation46_spill] sm:$0xff] %v8317_v20  ;;  %v8319_v51 = vpop.permute.xlu1 %2168 }
 0x2a1   :  { %12701 = vst [vmem:[#allocation47_spill] sm:$0xff] %v8319_v51  ;;  %2358 = vrot.lane.b32.xlu0 %v12702_v49, %s5453_s1  ;;  %v12710_v51 = vld [vmem:[#allocation58_spill] sm:$0xff] }
 0x2a2   :  { %2360 = vrot.lane.b32.xlu1 %v12703_v46, %s5453_s1 }
 0x2a3   :  { %v8325_v37 = vpop.permute.xlu0 %2170 }
 0x2a4   :  { %12704 = vst [vmem:[#allocation49_spill] sm:$0xff] %v8325_v37  ;;  %v8327_v23 = vpop.permute.xlu1 %2172 }
 0x2a5   :  { %12705 = vst [vmem:[#allocation50_spill] sm:$0xff] %v8327_v23  ;;  %2362 = vrot.lane.b32.xlu0 %v12706_v57, %s5453_s1  ;;  %v12714_v23 = vld [vmem:[#allocation62_spill] sm:$0xff] }
 0x2a6   :  { %2364 = vrot.lane.b32.xlu1 %v12707_v11, %s5453_s1  ;;  %v12772_v11 = vld [vmem:[#allocation4_spill] sm:$0xff] }
 0x2a7   :  { %v8333_v19 = vpop.permute.xlu0 %2174 }
 0x2a8   :  { %12708 = vst [vmem:[#allocation294_spill] sm:$0xff] %v8333_v19  ;;  %v8335_v20 = vpop.permute.xlu1 %2176 }
 0x2a9   :  { %12709 = vst [vmem:[#allocation295_spill] sm:$0xff] %v8335_v20  ;;  %2366 = vrot.lane.b32.xlu0 %v12710_v51, %s5453_s1  ;;  %v12718_v20 = vld [vmem:[#allocation67_spill] sm:$0xff]  ;;  %v12719_v51 = vld [vmem:[#allocation68_spill] sm:$0xff] }
 0x2aa   :  { %2368 = vrot.lane.b32.xlu1 %v12711_v2, %s5453_s1 }
 0x2ab   :  { %v8341_v34 = vpop.permute.xlu0 %2178 }
 0x2ac   :  { %12712 = vst [vmem:[#allocation296_spill] sm:$0xff] %v8341_v34  ;;  %v8343_v37 = vpop.permute.xlu1 %2180 }
 0x2ad   :  { %12713 = vst [vmem:[#allocation297_spill] sm:$0xff] %v8343_v37  ;;  %2370 = vrot.lane.b32.xlu0 %v12714_v23, %s5453_s1  ;;  %v12722_v37 = vld [vmem:[#allocation72_spill] sm:$0xff]  ;;  %v12723_v23 = vld [vmem:[#allocation73_spill] sm:$0xff] }
 0x2ae   :  { %2372 = vrot.lane.b32.xlu1 %v12715_v59, %s5453_s1 }
 0x2af   :  { %v8349_v22 = vpop.permute.xlu0 %2182 }
 0x2b0   :  { %12716 = vst [vmem:[#allocation298_spill] sm:$0xff] %v8349_v22  ;;  %v8351_v19 = vpop.permute.xlu1 %2184 }
 0x2b1   :  { %12717 = vst [vmem:[#allocation299_spill] sm:$0xff] %v8351_v19  ;;  %2374 = vrot.lane.b32.xlu0 %v12718_v20, %s5453_s1  ;;  %v12726_v19 = vld [vmem:[#allocation76_spill] sm:$0xff]  ;;  %v12727_v20 = vld [vmem:[#allocation77_spill] sm:$0xff] }
 0x2b2   :  { %2376 = vrot.lane.b32.xlu1 %v12719_v51, %s5453_s1 }
 0x2b3   :  { %v8357_v2 = vpop.permute.xlu0 %2186 }
 0x2b4   :  { %12720 = vst [vmem:[#allocation300_spill] sm:$0xff] %v8357_v2  ;;  %v8359_v34 = vpop.permute.xlu1 %2188  ;;  %v1297_v2 = vrot.slane %v8095_v39, 5 }
 0x2b5   :  { %12721 = vst [vmem:[#allocation301_spill] sm:$0xff] %v8359_v34  ;;  %2378 = vrot.lane.b32.xlu0 %v12722_v37, %s5453_s1  ;;  %v12730_v37 = vld [vmem:[#allocation81_spill] sm:$0xff] }
 0x2b6   :  { %2380 = vrot.lane.b32.xlu1 %v12723_v23, %s5453_s1  ;;  %v12731_v23 = vld [vmem:[#allocation82_spill] sm:$0xff] }
 0x2b7   :  { %v8365_v59 = vpop.permute.xlu0 %2190 }
 0x2b8   :  { %12724 = vst [vmem:[#allocation302_spill] sm:$0xff] %v8365_v59  ;;  %v8367_v22 = vpop.permute.xlu1 %2192 }
 0x2b9   :  { %12725 = vst [vmem:[#allocation303_spill] sm:$0xff] %v8367_v22  ;;  %2382 = vrot.lane.b32.xlu0 %v12726_v19, %s5453_s1  ;;  %v12733_v19 = vrot.slane %v8095_v39, 7  ;;  %v12739_v39 = vld [vmem:[#allocation91_spill] sm:$0xff] }
 0x2ba   :  { %2384 = vrot.lane.b32.xlu1 %v12727_v20, %s5453_s1 }
 0x2bb   :  { %v8374_v51 = vpop.permute.xlu0 %2194  ;;  %v8389_v20 = vsel %vm1091_vm1, %v12733_v19, %v1297_v2  ;;  %v12740_v2 = vld [vmem:[#allocation92_spill] sm:$0xff] }
 0x2bc   :  { %12728 = vst [vmem:[#allocation304_spill] sm:$0xff] %v8374_v51  ;;  %v8376_v34 = vpop.permute.xlu1 %2196  ;;  %12734 = vst [vmem:[#allocation307_spill] sm:$0xff] %v8389_v20  ;;  %v2328_v51 = vrot.slane %v8111_v26, 1 }
 0x2bd   :  { %12729 = vst [vmem:[#allocation305_spill] sm:$0xff] %v8376_v34  ;;  %2386 = vrot.lane.b32.xlu0 %v12730_v37, %s5453_s1  ;;  %v12736_v34 = vld [vmem:[#allocation87_spill] sm:$0xff]  ;;  %v2329_v37 = vrot.slane %v8116_v53, 1 }
 0x2be   :  { %2388 = vrot.lane.b32.xlu1 %v12731_v23, %s5453_s1  ;;  %v2331_v23 = vrot.slane %v8389_v20, 1 }
 0x2bf   :  { %v8382_v59 = vpop.permute.xlu0 %2198  ;;  %v8407_v19 = vsel %vm1470_vm2, %v2328_v51, %v2329_v37  ;;  %v12747_v51 = vld [vmem:[#allocation94_spill] sm:$0xff] }
 0x2c0   :  { %v8384_v22 = vpop.permute.xlu1 %2200  ;;  %12741 = vst [vmem:[#allocation310_spill] sm:$0xff] %v8407_v19 }
 0x2c1   :  { %12732 = vst [vmem:[#allocation306_spill] sm:$0xff] %v8384_v22  ;;  %2390 = vrot.lane.b32.xlu0 %v12735_v44, %s5453_s1  ;;  %v12751_v44 = vld [vmem:[#allocation22_spill] sm:$0xff] }
 0x2c2   :  { %2392 = vrot.lane.b32.xlu1 %v12736_v34, %s5453_s1  ;;  %v8410_v34 = vsel %vm1470_vm2, %v2329_v37, %v2331_v23  ;;  %v12748_v37 = vld [vmem:[#allocation95_spill] sm:$0xff] }
 0x2c3   :  { %v8398_v0 = vpop.permute.xlu0 %2202  ;;  %12742 = vst [vmem:[#allocation311_spill] sm:$0xff] %v8410_v34 }
 0x2c4   :  { %12737 = vst [vmem:[#allocation308_spill] sm:$0xff] %v8398_v0  ;;  %v8400_v8 = vpop.permute.xlu1 %2204 }
 0x2c5   :  { %12738 = vst [vmem:[#allocation309_spill] sm:$0xff] %v8400_v8  ;;  %2394 = vrot.lane.b32.xlu0 %v12739_v39, %s5453_s1  ;;  %v12764_v8 = vld [vmem:[#allocation102_spill] sm:$0xff] }
 0x2c6   :  { %2396 = vrot.lane.b32.xlu1 %v12740_v2, %s5453_s1 }
 0x2c7   :  { %v8412_v26 = vpop.permute.xlu0 %2206 }
 0x2c8   :  { %12743 = vst [vmem:[#allocation312_spill] sm:$0xff] %v8412_v26  ;;  %v8414_v53 = vpop.permute.xlu1 %2208 }
 0x2c9   :  { %12744 = vst [vmem:[#allocation313_spill] sm:$0xff] %v8414_v53  ;;  %2398 = vrot.lane.b32.xlu0 %v8407_v19, %s5453_s1  ;;  %v12752_v19 = vld [vmem:[#allocation20_spill] sm:$0xff]  ;;  %v12760_v53 = vld [vmem:[#allocation33_spill] sm:$0xff] }
 0x2ca   :  { %2400 = vrot.lane.b32.xlu1 %v8410_v34, %s5453_s1 }
 0x2cb   :  { %v8420_v20 = vpop.permute.xlu0 %2210 }
 0x2cc   :  { %12745 = vst [vmem:[#allocation314_spill] sm:$0xff] %v8420_v20  ;;  %v8422_v39 = vpop.permute.xlu1 %2212 }
 0x2cd   :  { %12746 = vst [vmem:[#allocation315_spill] sm:$0xff] %v8422_v39  ;;  %2402 = vrot.lane.b32.xlu0 %v12747_v51, %s5453_s1  ;;  %v12755_v39 = vld [vmem:[#allocation26_spill] sm:$0xff]  ;;  %v12756_v51 = vld [vmem:[#allocation27_spill] sm:$0xff] }
 0x2ce   :  { %2404 = vrot.lane.b32.xlu1 %v12748_v37, %s5453_s1 }
 0x2cf   :  { %v8428_v23 = vpop.permute.xlu0 %2214 }
 0x2d0   :  { %12749 = vst [vmem:[#allocation94_spill] sm:$0xff] %v8428_v23  ;;  %v8430_v2 = vpop.permute.xlu1 %2216 }
 0x2d1   :  { %12750 = vst [vmem:[#allocation95_spill] sm:$0xff] %v8430_v2  ;;  %2406 = vrot.lane.b32.xlu0 %v12751_v44, %s5453_s1  ;;  %v12759_v2 = vld [vmem:[#allocation32_spill] sm:$0xff] }
 0x2d2   :  { %2408 = vrot.lane.b32.xlu1 %v12752_v19, %s5453_s1 }
 0x2d3   :  { %v8436_v34 = vpop.permute.xlu0 %2218 }
 0x2d4   :  { %12753 = vst [vmem:[#allocation22_spill] sm:$0xff] %v8436_v34  ;;  %v8438_v20 = vpop.permute.xlu1 %2220 }
 0x2d5   :  { %12754 = vst [vmem:[#allocation20_spill] sm:$0xff] %v8438_v20  ;;  %2410 = vrot.lane.b32.xlu0 %v12755_v39, %s5453_s1  ;;  %v12763_v20 = vld [vmem:[#allocation101_spill] sm:$0xff] }
 0x2d6   :  { %2412 = vrot.lane.b32.xlu1 %v12756_v51, %s5453_s1 }
 0x2d7   :  { %v8444_v37 = vpop.permute.xlu0 %2222 }
 0x2d8   :  { %12757 = vst [vmem:[#allocation26_spill] sm:$0xff] %v8444_v37  ;;  %v8446_v23 = vpop.permute.xlu1 %2224 }
 0x2d9   :  { %12758 = vst [vmem:[#allocation27_spill] sm:$0xff] %v8446_v23  ;;  %2414 = vrot.lane.b32.xlu0 %v12759_v2, %s5453_s1  ;;  %v12767_v23 = vld [vmem:[#allocation107_spill] sm:$0xff] }
 0x2da   :  { %2416 = vrot.lane.b32.xlu1 %v12760_v53, %s5453_s1 }
 0x2db   :  { %v8452_v26 = vpop.permute.xlu0 %2226 }
 0x2dc   :  { %12761 = vst [vmem:[#allocation32_spill] sm:$0xff] %v8452_v26  ;;  %v8454_v34 = vpop.permute.xlu1 %2228 }
 0x2dd   :  { %12762 = vst [vmem:[#allocation33_spill] sm:$0xff] %v8454_v34  ;;  %2418 = vrot.lane.b32.xlu0 %v12763_v20, %s5453_s1  ;;  %v12771_v34 = vld [vmem:[#allocation3_spill] sm:$0xff] }
 0x2de   :  { %2420 = vrot.lane.b32.xlu1 %v12764_v8, %s5453_s1 }
 0x2df   :  { %v8460_v0 = vpop.permute.xlu0 %2230 }
 0x2e0   :  { %12765 = vst [vmem:[#allocation101_spill] sm:$0xff] %v8460_v0  ;;  %v8462_v37 = vpop.permute.xlu1 %2232 }
 0x2e1   :  { %12766 = vst [vmem:[#allocation102_spill] sm:$0xff] %v8462_v37  ;;  %2422 = vrot.lane.b32.xlu0 %v12767_v23, %s5453_s1  ;;  %v12775_v37 = vld [vmem:[#allocation117_spill] sm:$0xff] }
 0x2e2   :  { %2424 = vrot.lane.b32.xlu1 %v12768_v10, %s5453_s1 }
 0x2e3   :  { %v8468_v9 = vpop.permute.xlu0 %2234 }
 0x2e4   :  { %12769 = vst [vmem:[#allocation107_spill] sm:$0xff] %v8468_v9  ;;  %v8470_v26 = vpop.permute.xlu1 %2236 }
 0x2e5   :  { %12770 = vst [vmem:[#allocation108_spill] sm:$0xff] %v8470_v26  ;;  %2426 = vrot.lane.b32.xlu0 %v12771_v34, %s5453_s1  ;;  %v12779_v26 = vld [vmem:[#allocation123_spill] sm:$0xff]  ;;  %v12780_v34 = vld [vmem:[#allocation124_spill] sm:$0xff] }
 0x2e6   :  { %2428 = vrot.lane.b32.xlu1 %v12772_v11, %s5453_s1 }
 0x2e7   :  { %v8476_v21 = vpop.permute.xlu0 %2238 }
 0x2e8   :  { %12773 = vst [vmem:[#allocation316_spill] sm:$0xff] %v8476_v21  ;;  %v8478_v0 = vpop.permute.xlu1 %2240 }
 0x2e9   :  { %12774 = vst [vmem:[#allocation317_spill] sm:$0xff] %v8478_v0  ;;  %2430 = vrot.lane.b32.xlu0 %v12775_v37, %s5453_s1  ;;  %v12783_v0 = vld [vmem:[#allocation36_spill] sm:$0xff]  ;;  %v12784_v37 = vld [vmem:[#allocation37_spill] sm:$0xff] }
 0x2ea   :  { %2432 = vrot.lane.b32.xlu1 %v12776_v47, %s5453_s1 }
 0x2eb   :  { %v8484_v57 = vpop.permute.xlu0 %2242 }
 0x2ec   :  { %12777 = vst [vmem:[#allocation318_spill] sm:$0xff] %v8484_v57  ;;  %v8486_v9 = vpop.permute.xlu1 %2244 }
 0x2ed   :  { %12778 = vst [vmem:[#allocation319_spill] sm:$0xff] %v8486_v9  ;;  %2434 = vrot.lane.b32.xlu0 %v12779_v26, %s5453_s1  ;;  %v12787_v9 = vld [vmem:[#allocation132_spill] sm:$0xff]  ;;  %v12788_v26 = vld [vmem:[#allocation133_spill] sm:$0xff] }
 0x2ee   :  { %2436 = vrot.lane.b32.xlu1 %v12780_v34, %s5453_s1 }
 0x2ef   :  { %v8492_v11 = vpop.permute.xlu0 %2246 }
 0x2f0   :  { %12781 = vst [vmem:[#allocation320_spill] sm:$0xff] %v8492_v11  ;;  %v8494_v21 = vpop.permute.xlu1 %2248 }
 0x2f1   :  { %12782 = vst [vmem:[#allocation321_spill] sm:$0xff] %v8494_v21  ;;  %2438 = vrot.lane.b32.xlu0 %v12783_v0, %s5453_s1  ;;  %v12791_v21 = vld [vmem:[#allocation136_spill] sm:$0xff]  ;;  %v12792_v0 = vld [vmem:[#allocation10_spill] sm:$0xff] }
 0x2f2   :  { %2440 = vrot.lane.b32.xlu1 %v12784_v37, %s5453_s1 }
 0x2f3   :  { %v8500_v47 = vpop.permute.xlu0 %2250 }
 0x2f4   :  { %12785 = vst [vmem:[#allocation322_spill] sm:$0xff] %v8500_v47  ;;  %v8502_v57 = vpop.permute.xlu1 %2252  ;;  %v1313_v47 = vrot.slane %v8246_v56, 5 }
 0x2f5   :  { %12786 = vst [vmem:[#allocation323_spill] sm:$0xff] %v8502_v57  ;;  %2442 = vrot.lane.b32.xlu0 %v12787_v9, %s5453_s1  ;;  %v12795_v9 = vld [vmem:[#allocation11_spill] sm:$0xff] }
 0x2f6   :  { %2444 = vrot.lane.b32.xlu1 %v12788_v26, %s5453_s1  ;;  %v12796_v26 = vld [vmem:[#allocation12_spill] sm:$0xff] }
 0x2f7   :  { %v8508_v34 = vpop.permute.xlu0 %2254 }
 0x2f8   :  { %12789 = vst [vmem:[#allocation324_spill] sm:$0xff] %v8508_v34  ;;  %v8510_v11 = vpop.permute.xlu1 %2256 }
 0x2f9   :  { %12790 = vst [vmem:[#allocation325_spill] sm:$0xff] %v8510_v11  ;;  %2446 = vrot.lane.b32.xlu0 %v12791_v21, %s5453_s1  ;;  %v12798_v21 = vrot.slane %v8246_v56, 7  ;;  %v12804_v56 = vld [vmem:[#allocation152_spill] sm:$0xff] }
 0x2fa   :  { %2448 = vrot.lane.b32.xlu1 %v12792_v0, %s5453_s1 }
 0x2fb   :  { %v8517_v37 = vpop.permute.xlu0 %2258  ;;  %v8532_v0 = vsel %vm1091_vm1, %v12798_v21, %v1313_v47  ;;  %v12805_v47 = vld [vmem:[#allocation153_spill] sm:$0xff]  ;;  %vm3976_vm1 = vcmask 1043456  }
 0x2fc   :  { %12793 = vst [vmem:[#allocation326_spill] sm:$0xff] %v8517_v37  ;;  %v8519_v57 = vpop.permute.xlu1 %2260  ;;  %12799 = vst [vmem:[#allocation329_spill] sm:$0xff] %v8532_v0  ;;  %v2333_v37 = vrot.slane %v8262_v3, 1 }
 0x2fd   :  { %12794 = vst [vmem:[#allocation327_spill] sm:$0xff] %v8519_v57  ;;  %2450 = vrot.lane.b32.xlu0 %v12795_v9, %s5453_s1  ;;  %v12801_v57 = vld [vmem:[#allocation147_spill] sm:$0xff]  ;;  %v2334_v9 = vrot.slane %v8267_v13, 1 }
 0x2fe   :  { %2452 = vrot.lane.b32.xlu1 %v12796_v26, %s5453_s1  ;;  %v2336_v26 = vrot.slane %v8532_v0, 1 }
 0x2ff   :  { %v8525_v34 = vpop.permute.xlu0 %2338  ;;  %v8550_v21 = vsel %vm1470_vm2, %v2333_v37, %v2334_v9  ;;  %v12812_v37 = vld [vmem:[#allocation158_spill] sm:$0xff] }
 0x300   :  { %v8527_v11 = vpop.permute.xlu1 %2340  ;;  %12806 = vst [vmem:[#allocation332_spill] sm:$0xff] %v8550_v21 }
 0x301   :  { %12797 = vst [vmem:[#allocation328_spill] sm:$0xff] %v8527_v11  ;;  %2454 = vrot.lane.b32.xlu0 %v12800_v55, %s5453_s1 }
 0x302   :  { %2456 = vrot.lane.b32.xlu1 %v12801_v57, %s5453_s1  ;;  %v8553_v57 = vsel %vm1470_vm2, %v2334_v9, %v2336_v26  ;;  %v12813_v9 = vld [vmem:[#allocation159_spill] sm:$0xff]  ;;  %vm3332_vm2 = vcmask 64512  }
 0x303   :  { %v8541_v16 = vpop.permute.xlu0 %2342  ;;  %12807 = vst [vmem:[#allocation333_spill] sm:$0xff] %v8553_v57 }
 0x304   :  { %12802 = vst [vmem:[#allocation330_spill] sm:$0xff] %v8541_v16  ;;  %v8543_v28 = vpop.permute.xlu1 %2344 }
 0x305   :  { %12803 = vst [vmem:[#allocation331_spill] sm:$0xff] %v8543_v28  ;;  %2458 = vrot.lane.b32.xlu0 %v12804_v56, %s5453_s1  ;;  %v12829_v28 = vld [vmem:[#allocation169_spill] sm:$0xff] }
 0x306   :  { %2460 = vrot.lane.b32.xlu1 %v12805_v47, %s5453_s1 }
 0x307   :  { %v8555_v3 = vpop.permute.xlu0 %2346 }
 0x308   :  { %12808 = vst [vmem:[#allocation334_spill] sm:$0xff] %v8555_v3  ;;  %v8557_v13 = vpop.permute.xlu1 %2348 }
 0x309   :  { %12809 = vst [vmem:[#allocation335_spill] sm:$0xff] %v8557_v13  ;;  %2462 = vrot.lane.b32.xlu0 %v8550_v21, %s5453_s1  ;;  %v12816_v21 = vld [vmem:[#allocation154_spill] sm:$0xff]  ;;  %v12825_v13 = vld [vmem:[#allocation165_spill] sm:$0xff] }
 0x30a   :  { %2464 = vrot.lane.b32.xlu1 %v8553_v57, %s5453_s1  ;;  %v12817_v57 = vld [vmem:[#allocation155_spill] sm:$0xff] }
 0x30b   :  { %v8563_v0 = vpop.permute.xlu0 %2350 }
 0x30c   :  { %12810 = vst [vmem:[#allocation336_spill] sm:$0xff] %v8563_v0  ;;  %v8565_v56 = vpop.permute.xlu1 %2352  ;;  %v12820_v0 = vld [vmem:[#allocation160_spill] sm:$0xff] }
 0x30d   :  { %12811 = vst [vmem:[#allocation337_spill] sm:$0xff] %v8565_v56  ;;  %2540 = vrot.lane.b32.xlu0 %v12812_v37, %s5454_s13  ;;  %v12821_v37 = vld [vmem:[#allocation163_spill] sm:$0xff] }
 0x30e   :  { %2542 = vrot.lane.b32.xlu1 %v12813_v9, %s5454_s13 }
 0x30f   :  { %v8571_v26 = vpop.permute.xlu0 %2354 }
 0x310   :  { %12814 = vst [vmem:[#allocation158_spill] sm:$0xff] %v8571_v26  ;;  %v8573_v47 = vpop.permute.xlu1 %2356 }
 0x311   :  { %12815 = vst [vmem:[#allocation159_spill] sm:$0xff] %v8573_v47  ;;  %2544 = vrot.lane.b32.xlu0 %v12816_v21, %s5454_s13  ;;  %v12824_v47 = vld [vmem:[#allocation164_spill] sm:$0xff] }
 0x312   :  { %2546 = vrot.lane.b32.xlu1 %v12817_v57, %s5454_s13 }
 0x313   :  { %v8579_v55 = vpop.permute.xlu0 %2358 }
 0x314   :  { %12818 = vst [vmem:[#allocation154_spill] sm:$0xff] %v8579_v55  ;;  %v8581_v56 = vpop.permute.xlu1 %2360 }
 0x315   :  { %12819 = vst [vmem:[#allocation155_spill] sm:$0xff] %v8581_v56  ;;  %2548 = vrot.lane.b32.xlu0 %v12820_v0, %s5454_s13  ;;  %v12828_v56 = vld [vmem:[#allocation168_spill] sm:$0xff] }
 0x316   :  { %2550 = vrot.lane.b32.xlu1 %v12821_v37, %s5454_s13 }
 0x317   :  { %v8587_v9 = vpop.permute.xlu0 %2362 }
 0x318   :  { %12822 = vst [vmem:[#allocation160_spill] sm:$0xff] %v8587_v9  ;;  %v8589_v26 = vpop.permute.xlu1 %2364 }
 0x319   :  { %12823 = vst [vmem:[#allocation163_spill] sm:$0xff] %v8589_v26  ;;  %2552 = vrot.lane.b32.xlu0 %v12824_v47, %s5454_s13  ;;  %v12832_v26 = vld [vmem:[#allocation172_spill] sm:$0xff] }
 0x31a   :  { %2554 = vrot.lane.b32.xlu1 %v12825_v13, %s5454_s13 }
 0x31b   :  { %v8595_v3 = vpop.permute.xlu0 %2366 }
 0x31c   :  { %12826 = vst [vmem:[#allocation164_spill] sm:$0xff] %v8595_v3  ;;  %v8597_v55 = vpop.permute.xlu1 %2368 }
 0x31d   :  { %12827 = vst [vmem:[#allocation165_spill] sm:$0xff] %v8597_v55  ;;  %2556 = vrot.lane.b32.xlu0 %v12828_v56, %s5454_s13  ;;  %v12836_v55 = vld [vmem:[#allocation53_spill] sm:$0xff] }
 0x31e   :  { %2558 = vrot.lane.b32.xlu1 %v12829_v28, %s5454_s13 }
 0x31f   :  { %v8603_v16 = vpop.permute.xlu0 %2370 }
 0x320   :  { %12830 = vst [vmem:[#allocation168_spill] sm:$0xff] %v8603_v16  ;;  %v8605_v9 = vpop.permute.xlu1 %2372 }
 0x321   :  { %12831 = vst [vmem:[#allocation169_spill] sm:$0xff] %v8605_v9  ;;  %2560 = vrot.lane.b32.xlu0 %v12832_v26, %s5454_s13  ;;  %v146_v9 = vld [vmem:[%s11718_s3] sm:$0xff] }
 0x322   :  { %2562 = vrot.lane.b32.xlu1 %v12833_v17, %s5454_s13 }
 0x323   :  { %v8611_v22 = vpop.permute.xlu0 %2374 }
 0x324   :  { %12834 = vst [vmem:[#allocation172_spill] sm:$0xff] %v8611_v22  ;;  %v8613_v3 = vpop.permute.xlu1 %2376  ;;  %v147_v22 = vld [vmem:[%s11718_s3 + $0x8] sm:$0xff] }
 0x325   :  { %12835 = vst [vmem:[#allocation338_spill] sm:$0xff] %v8613_v3  ;;  %2564 = vrot.lane.b32.xlu0 %v12836_v55, %s5454_s13  ;;  %v12840_v3 = vld [vmem:[#allocation25_spill] sm:$0xff]  ;;  %v5419_v17 = vpack.c.bf16 %v147_v22, %v146_v9 }
 0x326   :  { %2566 = vrot.lane.b32.xlu1 %v12837_v62, %s5454_s13  ;;  %v12841_v55 = vld [vmem:[#allocation201_spill] sm:$0xff] }
 0x327   :  { %v8619_v11 = vpop.permute.xlu0 %2378  ;;  %5420 = vmatprep.subr.bf16.mxu0 %v5419_v17  ;;  %5427 = vmatprep.subr.bf16.mxu1 %v5419_v17 }
 0x328   :  { %12838 = vst [vmem:[#allocation339_spill] sm:$0xff] %v8619_v11  ;;  %v8621_v16 = vpop.permute.xlu1 %2380  ;;  %5422 = vmatpush3.bf16.msra.mxu0 %v5419_v17  ;;  %5430 = vmatpush3.bf16.msra.mxu1 %v5419_v17  ;;  %v150_v17 = vld [vmem:[%s11718_s3 + $0x20] sm:$0xf] }
 0x329   :  { %12839 = vst [vmem:[#allocation340_spill] sm:$0xff] %v8621_v16  ;;  %2604 = vrot.lane.b32.xlu0 %v12840_v3, %s5454_s13  ;;  %v148_v16 = vld [vmem:[%s11718_s3 + $0x10] sm:$0xff]  ;;  %s5457_s3 = smov 32  }
 0x32a   :  { %2606 = vrot.lane.b32.xlu1 %v12841_v55, %s5454_s13  ;;  %v5423_v22 = vpack.c.bf16 %v149_v50, %v148_v16 }
 0x32b   :  { %v8633_v62 = vpop.permute.xlu0 %2382 }
 0x32c   :  { %12842 = vst [vmem:[#allocation25_spill] sm:$0xff] %v8633_v62  ;;  %v8635_v11 = vpop.permute.xlu1 %2384  ;;  %5424 = vmatprep.subr.bf16.mxu0 %v5423_v22  ;;  %5428 = vmatprep.subr.bf16.mxu1 %v5423_v22 }
 0x32d   :  { %12843 = vst [vmem:[#allocation201_spill] sm:$0xff] %v8635_v11  ;;  %2732 = vrot.lane.b32.xlu0 %v6458_v48, %s5455_s22  ;;  %5426 = vmatpush3.bf16.msra.mxu0 %v5423_v22 }
 0x32e   :  { %2792 = vrot.lane.b32.xlu1 %v6993_v25, %s5455_s22  ;;  %5431 = vmatpush3.bf16.msra.mxu1 %v5423_v22 }
 0x32f   :  { %v8647_v55 = vpop.permute.xlu0 %2386  ;;  %5321 = vmatprep.subr.msk.mxu0 %vm3976_vm1, %v150_v17  ;;  %5429 = vmatprep.subr.msk.mxu1 %vm3976_vm1, %v150_v17 }
 0x330   :  { %12844 = vst [vmem:[#allocation341_spill] sm:$0xff] %v8647_v55  ;;  %v8649_v3 = vpop.permute.xlu1 %2388 }
 0x331   :  { %12845 = vst [vmem:[#allocation342_spill] sm:$0xff] %v8649_v3  ;;  %2734 = vrot.lane.b32.xlu0 %v6455_v31, %s5455_s22  ;;  %5322 = vmatpush3.msk.msra.mxu0 %vm3976_vm1, %v150_v17 }
 0x332   :  { %2794 = vrot.lane.b32.xlu1 %v6990_v15, %s5455_s22  ;;  %5432 = vmatpush3.msk.msra.mxu1 %vm3976_vm1, %v150_v17 }
 0x333   :  { %v8658_v16 = vpop.permute.xlu0 %2390 }
 0x334   :  { %12846 = vst [vmem:[#allocation343_spill] sm:$0xff] %v8658_v16  ;;  %v8660_v50 = vpop.permute.xlu1 %2392 }
 0x335   :  { %12847 = vst [vmem:[#allocation344_spill] sm:$0xff] %v8660_v50  ;;  %2912 = vrot.lane.b32.xlu0 %v12686_v60, %s5456_s25  ;;  %v12852_v60 = vld [vmem:[#allocation198_spill] sm:$0xff] }
 0x336   :  { %2972 = vrot.lane.b32.xlu1 %v12751_v44, %s5456_s25 }
 0x337   :  { %v8666_v9 = vpop.permute.xlu0 %2394 }
 0x338   :  { %12848 = vst [vmem:[#allocation345_spill] sm:$0xff] %v8666_v9  ;;  %v8668_v22 = vpop.permute.xlu1 %2396 }
 0x339   :  { %12849 = vst [vmem:[#allocation346_spill] sm:$0xff] %v8668_v22  ;;  %2914 = vrot.lane.b32.xlu0 %v12687_v27, %s5456_s25 }
 0x33a   :  { %2974 = vrot.lane.b32.xlu1 %v12752_v19, %s5456_s25 }
 0x33b   :  { %v8674_v50 = vpop.permute.xlu0 %2398 }
 0x33c   :  { %12850 = vst [vmem:[#allocation347_spill] sm:$0xff] %v8674_v50  ;;  %v8676_v17 = vpop.permute.xlu1 %2400 }
 0x33d   :  { %12851 = vst [vmem:[#allocation348_spill] sm:$0xff] %v8676_v17  ;;  %3092 = vrot.lane.b32.xlu0 %v12816_v21, %s5457_s3  ;;  %v12853_v17 = vld [vmem:[#allocation199_spill] sm:$0xff] }
 0x33e   :  { %3152 = vrot.lane.b32.xlu1 %v12852_v60, %s5457_s3 }
 0x33f   :  { %v8682_v44 = vpop.permute.xlu0 %2402 }
 0x340   :  { %v8684_v22 = vpop.permute.xlu1 %2404 }
 0x341   :  { %2608 = vrot.lane.b32.xlu0 %v12852_v60, %s5454_s13 }
 0x342   :  { %3094 = vrot.lane.b32.xlu1 %v12817_v57, %s5457_s3 }
 0x343   :  { %v8690_v27 = vpop.permute.xlu0 %2406 }
 0x344   :  { %v8692_v19 = vpop.permute.xlu1 %2408 }
 0x345   :  { %3154 = vrot.lane.b32.xlu0 %v12853_v17, %s5457_s3 }
 0x346   :  { %2610 = vrot.lane.b32.xlu1 %v12853_v17, %s5454_s13 }
 0x347   :  { %v8698_v21 = vpop.permute.xlu0 %2410 }
 0x348   :  { %v8700_v50 = vpop.permute.xlu1 %2412 }
 0x349   :  { %2736 = vrot.lane.b32.xlu0 %v6501_v12, %s5455_s22 }
 0x34a   :  { %2796 = vrot.lane.b32.xlu1 %v12524_v54, %s5455_s22 }
 0x34b   :  { %v8706_v57 = vpop.permute.xlu0 %2414 }
 0x34c   :  { %v8708_v60 = vpop.permute.xlu1 %2416 }
 0x34d   :  { %2738 = vrot.lane.b32.xlu0 %v6505_v4, %s5455_s22 }
 0x34e   :  { %2798 = vrot.lane.b32.xlu1 %v12527_v38, %s5455_s22 }
 0x34f   :  { %v8714_v17 = vpop.permute.xlu0 %2418 }
 0x350   :  { %v8716_v9 = vpop.permute.xlu1 %2420 }
 0x351   :  { %2916 = vrot.lane.b32.xlu0 %v12690_v42, %s5456_s25  ;;  %v12856_v42 = vld [vmem:[#allocation202_spill] sm:$0xff] }
 0x352   :  { %2976 = vrot.lane.b32.xlu1 %v12755_v39, %s5456_s25 }
 0x353   :  { %v8722_v16 = vpop.permute.xlu0 %2422 }
 0x354   :  { %v8724_v3 = vpop.permute.xlu1 %2424 }
 0x355   :  { %2918 = vrot.lane.b32.xlu0 %v12691_v7, %s5456_s25 }
 0x356   :  { %2978 = vrot.lane.b32.xlu1 %v12756_v51, %s5456_s25 }
 0x357   :  { %v8730_v55 = vpop.permute.xlu0 %2426 }
 0x358   :  { %12854 = vst [vmem:[#allocation198_spill] sm:$0xff] %v8730_v55  ;;  %v8732_v11 = vpop.permute.xlu1 %2428  ;;  %v12882_v55 = vld [vmem:[#allocation35_spill] sm:$0xff] }
 0x359   :  { %12855 = vst [vmem:[#allocation199_spill] sm:$0xff] %v8732_v11  ;;  %3096 = vrot.lane.b32.xlu0 %v12820_v0, %s5457_s3  ;;  %v12861_v11 = vld [vmem:[#allocation203_spill] sm:$0xff] }
 0x35a   :  { %3156 = vrot.lane.b32.xlu1 %v12856_v42, %s5457_s3 }
 0x35b   :  { %v8738_v39 = vpop.permute.xlu0 %2430 }
 0x35c   :  { %12857 = vst [vmem:[#allocation202_spill] sm:$0xff] %v8738_v39  ;;  %v8740_v62 = vpop.permute.xlu1 %2432 }
 0x35d   :  { %12858 = vst [vmem:[#allocation349_spill] sm:$0xff] %v8740_v62  ;;  %2612 = vrot.lane.b32.xlu0 %v12856_v42, %s5454_s13 }
 0x35e   :  { %3098 = vrot.lane.b32.xlu1 %v12821_v37, %s5457_s3 }
 0x35f   :  { %v8746_v7 = vpop.permute.xlu0 %2434 }
 0x360   :  { %12859 = vst [vmem:[#allocation350_spill] sm:$0xff] %v8746_v7  ;;  %v8748_v51 = vpop.permute.xlu1 %2436 }
 0x361   :  { %12860 = vst [vmem:[#allocation351_spill] sm:$0xff] %v8748_v51  ;;  %3158 = vrot.lane.b32.xlu0 %v12861_v11, %s5457_s3  ;;  %v12881_v51 = vld [vmem:[#allocation207_spill] sm:$0xff] }
 0x362   :  { %2614 = vrot.lane.b32.xlu1 %v12861_v11, %s5454_s13 }
 0x363   :  { %v8754_v0 = vpop.permute.xlu0 %2438 }
 0x364   :  { %12862 = vst [vmem:[#allocation203_spill] sm:$0xff] %v8754_v0  ;;  %v8756_v39 = vpop.permute.xlu1 %2440 }
 0x365   :  { %12863 = vst [vmem:[#allocation352_spill] sm:$0xff] %v8756_v39  ;;  %2740 = vrot.lane.b32.xlu0 %v6516_v52, %s5455_s22 }
 0x366   :  { %2800 = vrot.lane.b32.xlu1 %v12641_v29, %s5455_s22 }
 0x367   :  { %v8762_v37 = vpop.permute.xlu0 %2442 }
 0x368   :  { %12864 = vst [vmem:[#allocation353_spill] sm:$0xff] %v8762_v37  ;;  %v8764_v42 = vpop.permute.xlu1 %2444 }
 0x369   :  { %12865 = vst [vmem:[#allocation354_spill] sm:$0xff] %v8764_v42  ;;  %2742 = vrot.lane.b32.xlu0 %v6522_v63, %s5455_s22 }
 0x36a   :  { %2802 = vrot.lane.b32.xlu1 %v12642_v58, %s5455_s22 }
 0x36b   :  { %v8770_v11 = vpop.permute.xlu0 %2446 }
 0x36c   :  { %12866 = vst [vmem:[#allocation355_spill] sm:$0xff] %v8770_v11  ;;  %v8772_v0 = vpop.permute.xlu1 %2448 }
 0x36d   :  { %12867 = vst [vmem:[#allocation356_spill] sm:$0xff] %v8772_v0  ;;  %2920 = vrot.lane.b32.xlu0 %v12694_v43, %s5456_s25  ;;  %v12872_v43 = vld [vmem:[#allocation98_spill] sm:$0xff] }
 0x36e   :  { %2980 = vrot.lane.b32.xlu1 %v12759_v2, %s5456_s25 }
 0x36f   :  { %v8778_v39 = vpop.permute.xlu0 %2450 }
 0x370   :  { %12868 = vst [vmem:[#allocation357_spill] sm:$0xff] %v8778_v39  ;;  %v8780_v37 = vpop.permute.xlu1 %2452 }
 0x371   :  { %12869 = vst [vmem:[#allocation358_spill] sm:$0xff] %v8780_v37  ;;  %2922 = vrot.lane.b32.xlu0 %v12695_v32, %s5456_s25 }
 0x372   :  { %2982 = vrot.lane.b32.xlu1 %v12760_v53, %s5456_s25 }
 0x373   :  { %v8786_v42 = vpop.permute.xlu0 %2454 }
 0x374   :  { %12870 = vst [vmem:[#allocation359_spill] sm:$0xff] %v8786_v42  ;;  %v8788_v11 = vpop.permute.xlu1 %2456 }
 0x375   :  { %12871 = vst [vmem:[#allocation360_spill] sm:$0xff] %v8788_v11  ;;  %3100 = vrot.lane.b32.xlu0 %v12824_v47, %s5457_s3  ;;  %v12877_v11 = vld [vmem:[#allocation204_spill] sm:$0xff] }
 0x376   :  { %3160 = vrot.lane.b32.xlu1 %v12872_v43, %s5457_s3 }
 0x377   :  { %v8794_v2 = vpop.permute.xlu0 %2458 }
 0x378   :  { %12873 = vst [vmem:[#allocation98_spill] sm:$0xff] %v8794_v2  ;;  %v8796_v39 = vpop.permute.xlu1 %2460 }
 0x379   :  { %12874 = vst [vmem:[#allocation361_spill] sm:$0xff] %v8796_v39  ;;  %2616 = vrot.lane.b32.xlu0 %v12872_v43, %s5454_s13 }
 0x37a   :  { %3102 = vrot.lane.b32.xlu1 %v12825_v13, %s5457_s3 }
 0x37b   :  { %v8802_v53 = vpop.permute.xlu0 %2462 }
 0x37c   :  { %12875 = vst [vmem:[#allocation362_spill] sm:$0xff] %v8802_v53  ;;  %v8804_v32 = vpop.permute.xlu1 %2464 }
 0x37d   :  { %12876 = vst [vmem:[#allocation363_spill] sm:$0xff] %v8804_v32  ;;  %3162 = vrot.lane.b32.xlu0 %v12877_v11, %s5457_s3 }
 0x37e   :  { %2618 = vrot.lane.b32.xlu1 %v12877_v11, %s5454_s13 }
 0x37f   :  { %v2541_v47 = vpop.permute.xlu0 %2540 }
 0x380   :  { %v8810_v2 = vpop.permute.xlu1 %2542 }
 0x381   :  { %2744 = vrot.lane.b32.xlu0 %v6586_v41, %s5455_s22 }
 0x382   :  { %2804 = vrot.lane.b32.xlu1 %v12645_v45, %s5455_s22 }
 0x383   :  { %v8816_v13 = vpop.permute.xlu0 %2544 }
 0x384   :  { %v8818_v43 = vpop.permute.xlu1 %2546 }
 0x385   :  { %2746 = vrot.lane.b32.xlu0 %v6590_v40, %s5455_s22 }
 0x386   :  { %2806 = vrot.lane.b32.xlu1 %v12646_v5, %s5455_s22 }
 0x387   :  { %v8824_v11 = vpop.permute.xlu0 %2548 }
 0x388   :  { %v8826_v32 = vpop.permute.xlu1 %2550 }
 0x389   :  { %2924 = vrot.lane.b32.xlu0 %v12698_v33, %s5456_s25  ;;  %v12878_v33 = vld [vmem:[#allocation206_spill] sm:$0xff] }
 0x38a   :  { %2984 = vrot.lane.b32.xlu1 %v12763_v20, %s5456_s25 }
 0x38b   :  { %v8832_v39 = vpop.permute.xlu0 %2552 }
 0x38c   :  { %v8834_v53 = vpop.permute.xlu1 %2554 }
 0x38d   :  { %2926 = vrot.lane.b32.xlu0 %v12699_v61, %s5456_s25 }
 0x38e   :  { %2986 = vrot.lane.b32.xlu1 %v12764_v8, %s5456_s25 }
 0x38f   :  { %v8840_v42 = vpop.permute.xlu0 %2556 }
 0x390   :  { %v8842_v37 = vpop.permute.xlu1 %2558 }
 0x391   :  { %3104 = vrot.lane.b32.xlu0 %v12828_v56, %s5457_s3 }
 0x392   :  { %3164 = vrot.lane.b32.xlu1 %v12878_v33, %s5457_s3 }
 0x393   :  { %v8848_v20 = vpop.permute.xlu0 %2560 }
 0x394   :  { %v8850_v0 = vpop.permute.xlu1 %2562 }
 0x395   :  { %2620 = vrot.lane.b32.xlu0 %v12878_v33, %s5454_s13 }
 0x396   :  { %3106 = vrot.lane.b32.xlu1 %v12829_v28, %s5457_s3 }
 0x397   :  { %v8856_v61 = vpop.permute.xlu0 %2564 }
 0x398   :  { %12879 = vst [vmem:[#allocation204_spill] sm:$0xff] %v8856_v61  ;;  %v8858_v8 = vpop.permute.xlu1 %2566 }
 0x399   :  { %12880 = vst [vmem:[#allocation206_spill] sm:$0xff] %v8858_v8  ;;  %3166 = vrot.lane.b32.xlu0 %v12881_v51, %s5457_s3 }
 0x39a   :  { %2622 = vrot.lane.b32.xlu1 %v12881_v51, %s5454_s13 }
 0x39b   :  { %v2605_v56 = vpop.permute.xlu0 %2604 }
 0x39c   :  { %v8864_v7 = vpop.permute.xlu1 %2606 }
 0x39d   :  { %2748 = vrot.lane.b32.xlu0 %v6611_v35, %s5455_s22 }
 0x39e   :  { %2808 = vrot.lane.b32.xlu1 %v12649_v36, %s5455_s22  ;;  %v3272_v36 = vsel %vm151_vm0, %v6458_v48, %v12882_v55 }
 0x39f   :  { %v2733_v28 = vpop.permute.xlu0 %2732 }
 0x3a0   :  { %v2793_v33 = vpop.permute.xlu1 %2792 }
 0x3a1   :  { %2750 = vrot.lane.b32.xlu0 %v6608_v6, %s5455_s22  ;;  %v12883_v6 = vld [vmem:[#allocation180_spill] sm:$0xff] }
 0x3a2   :  { %2810 = vrot.lane.b32.xlu1 %v12650_v30, %s5455_s22  ;;  %v3302_v30 = vsel %vm151_vm0, %v6993_v25, %v12883_v6 }
 0x3a3   :  { %v2735_v62 = vpop.permute.xlu0 %2734 }
 0x3a4   :  { %v2795_v8 = vpop.permute.xlu1 %2794 }
 0x3a5   :  { %2928 = vrot.lane.b32.xlu0 %v12702_v49, %s5456_s25  ;;  %v8890_v49 = vsel %vm3332_vm2, %v3272_v36, %v7967_v14 }
 0x3a6   :  { %2988 = vrot.lane.b32.xlu1 %v12767_v23, %s5456_s25  ;;  %v8894_v23 = vsel %vm3332_vm2, %v3302_v30, %v8102_v18  ;;  %v3394_v48 = vsel %vm3393_vm3, %v8890_v49, %v8242_v1  ;;  %v12884_v30 = vld [vmem:[#allocation5_spill] sm:$0xff] }
 0x3a7   :  { %v2913_v51 = vpop.permute.xlu0 %2912  ;;  %v3426_v6 = vsel %vm3393_vm3, %v8894_v23, %v8382_v59  ;;  %v3459_v36 = vsel %vm3458_vm4, %v3394_v48, %v8525_v34  ;;  %v3273_v18 = vsel %vm151_vm0, %v6455_v31, %v12884_v30  ;;  %v12885_v59 = vld [vmem:[#allocation209_spill] sm:$0xff] }
 0x3a8   :  { %v2973_v61 = vpop.permute.xlu1 %2972  ;;  %v3491_v14 = vsel %vm3458_vm4, %v3426_v6, %v8682_v44  ;;  %v8917_v34 = vsel %vm3332_vm2, %v3273_v18, %v7969_v24  ;;  %v12886_v31 = vld [vmem:[#allocation285_spill] sm:$0xff] }
 0x3a9   :  { %2930 = vrot.lane.b32.xlu0 %v12703_v46, %s5456_s25  ;;  %v3556_v1 = vsel %vm3523_vm5, %v3491_v14, %v2605_v56  ;;  %v12888_v30 = vld [vmem:[#allocation181_spill] sm:$0xff] }
 0x3aa   :  { %2990 = vrot.lane.b32.xlu1 %v12768_v10, %s5456_s25  ;;  %v3524_v10 = vsel %vm3523_vm5, %v3459_v36, %v2541_v47  ;;  %v3621_v44 = vsel %vm3588_vm6, %v3556_v1, %v2793_v33  ;;  %v3395_v47 = vsel %vm3393_vm3, %v8917_v34, %v12886_v31  ;;  %v12887_v36 = vld [vmem:[#allocation328_spill] sm:$0xff]  ;;  %v3303_v33 = vsel %vm151_vm0, %v6990_v15, %v12888_v30  ;;  %v12890_v1 = vld [vmem:[#allocation173_spill] sm:$0xff]  ;;  %v12891_v15 = vld [vmem:[#allocation306_spill] sm:$0xff] }
 0x3ab   :  { %v2915_v46 = vpop.permute.xlu0 %2914  ;;  %v3589_v55 = vsel %vm3588_vm6, %v3524_v10, %v2733_v28  ;;  %v3460_v14 = vsel %vm3458_vm4, %v3395_v47, %v12887_v36  ;;  %v12893_v36 = vld [vmem:[#allocation51_spill] sm:$0xff] }
 0x3ac   :  { %v2975_v25 = vpop.permute.xlu1 %2974  ;;  %v3654_v56 = vsel %vm3653_vm7, %v3589_v55, %v2913_v51  ;;  %v3525_v18 = vsel %vm3523_vm5, %v3460_v14, %v8810_v2 }
 0x3ad   :  { %3108 = vrot.lane.b32.xlu0 %v12832_v26, %s5457_s3  ;;  %v3686_v26 = vsel %vm3653_vm7, %v3621_v44, %v2973_v61  ;;  %v12889_v61 = vld [vmem:[#allocation261_spill] sm:$0xff]  ;;  %v3590_v10 = vsel %vm3588_vm6, %v3525_v18, %v2735_v62  ;;  %v12898_v18 = vld [vmem:[#allocation3_spill] sm:$0xff] }
 0x3ae   :  { %3168 = vrot.lane.b32.xlu1 %v12885_v59, %s5457_s3  ;;  %v8940_v51 = vsel %vm3332_vm2, %v3303_v33, %v12889_v61  ;;  %v3655_v55 = vsel %vm3653_vm7, %v3590_v10, %v2915_v46  ;;  %v12897_v33 = vld [vmem:[#allocation54_spill] sm:$0xff] }
 0x3af   :  { %v3093_v48 = vpop.permute.xlu0 %3092  ;;  %v3427_v2 = vsel %vm3393_vm3, %v8940_v51, %v12891_v15  ;;  %v12900_v15 = vld [vmem:[#allocation16_spill] sm:$0xff] }
 0x3b0   :  { %v3153_v6 = vpop.permute.xlu1 %3152  ;;  %v3719_v24 = vsel %vm3718_vm8, %v3654_v56, %v3093_v48  ;;  %v3492_v31 = vsel %vm3458_vm4, %v3427_v2, %v8684_v22  ;;  %v12892_v56 = vld [vmem:[#allocation210_spill] sm:$0xff] }
 0x3b1   :  { %v3751_v28 = vsel %vm3718_vm8, %v3686_v26, %v3153_v6  ;;  %2624 = vrot.lane.b32.xlu0 %v12885_v59, %s5454_s13  ;;  %5323 = vmatprep.mubr.msk.f32.mxu0 %vm3783_vm9, %v3719_v24  ;;  %v3557_v62 = vsel %vm3523_vm5, %v3492_v31, %v8864_v7  ;;  %v12894_v7 = vld [vmem:[#allocation109_spill] sm:$0xff] }
 0x3b2   :  { %3110 = vrot.lane.b32.xlu1 %v12890_v1, %s5457_s3  ;;  %5371 = vmatprep.mubr.msk.f32.mxu1 %vm3783_vm9, %v3751_v28  ;;  %v3622_v26 = vsel %vm3588_vm6, %v3557_v62, %v2795_v8  ;;  %v12895_v8 = vld [vmem:[#allocation52_spill] sm:$0xff]  ;;  %v12896_v28 = vld [vmem:[#allocation2_spill] sm:$0xff] }
 0x3b3   :  { %v2609_v59 = vpop.permute.xlu0 %2608  ;;  %v3687_v46 = vsel %vm3653_vm7, %v3622_v26, %v2975_v25  ;;  %v12899_v1 = vld [vmem:[#allocation106_spill] sm:$0xff]  ;;  %v12904_v62 = vld [vmem:[#allocation236_spill] sm:$0xff] }
 0x3b4   :  { %v3095_v44 = vpop.permute.xlu1 %3094  ;;  %v3274_v2 = vsel %vm151_vm0, %v12900_v15, %v12899_v1  ;;  %v12905_v26 = vld [vmem:[#allocation264_spill] sm:$0xff] }
 0x3b5   :  { %v3720_v47 = vsel %vm3718_vm8, %v3655_v55, %v3095_v44  ;;  %3170 = vrot.lane.b32.xlu0 %v12892_v56, %s5457_s3  ;;  %v12901_v55 = vld [vmem:[#allocation71_spill] sm:$0xff]  ;;  %v12902_v44 = vld [vmem:[#allocation21_spill] sm:$0xff] }
 0x3b6   :  { %5324 = vmatmul.mubr.msk.f32.vlgmr.msra.gmra.mrb[0].mxu0 %vm3783_vm9, %v3720_v47  ;;  %2626 = vrot.lane.b32.xlu1 %v12892_v56, %s5454_s13  ;;  %v3304_v31 = vsel %vm151_vm0, %v12902_v44, %v12901_v55  ;;  %v12903_v47 = vld [vmem:[#allocation55_spill] sm:$0xff]  ;;  %v3335_v56 = vsel %vm3332_vm2, %v3274_v2, %v12904_v62  ;;  %v12909_v44 = vld [vmem:[#allocation330_spill] sm:$0xff] }
 0x3b7   :  { %v3155_v48 = vpop.permute.xlu0 %3154  ;;  %v12910_v62 = vld [vmem:[#allocation111_spill] sm:$0xff] }
 0x3b8   :  { %v2611_v6 = vpop.permute.xlu1 %2610  ;;  %v3752_v22 = vsel %vm3718_vm8, %v3687_v46, %v3155_v48  ;;  %v3365_v46 = vsel %vm3332_vm2, %v3304_v31, %v12905_v26  ;;  %v12906_v48 = vld [vmem:[#allocation4_spill] sm:$0xff] }
 0x3b9   :  { %2752 = vrot.lane.b32.xlu0 %v12893_v36, %s5455_s22  ;;  %5372 = vmatmul.mubr.msk.f32.vlgmr.msra.gmra.mrb[0].mxu1 %vm3783_vm9, %v3752_v22  ;;  %v12907_v22 = vld [vmem:[#allocation286_spill] sm:$0xff] }
 0x3ba   :  { %2812 = vrot.lane.b32.xlu1 %v12894_v7, %s5455_s22 }
 0x3bb   :  { %v2737_v14 = vpop.permute.xlu0 %2736 }
 0x3bc   :  { %v2797_v24 = vpop.permute.xlu1 %2796 }
 0x3bd   :  { %2754 = vrot.lane.b32.xlu0 %v12895_v8, %s5455_s22 }
 0x3be   :  { %2814 = vrot.lane.b32.xlu1 %v12896_v28, %s5455_s22  ;;  %v12911_v28 = vld [vmem:[#allocation17_spill] sm:$0xff] }
 0x3bf   :  { %v2739_v25 = vpop.permute.xlu0 %2738  ;;  %v3275_v31 = vsel %vm151_vm0, %v12911_v28, %v12910_v62 }
 0x3c0   :  { %v2799_v30 = vpop.permute.xlu1 %2798 }
 0x3c1   :  { %2932 = vrot.lane.b32.xlu0 %v12897_v33, %s5456_s25  ;;  %v3396_v33 = vsel %vm3393_vm3, %v3335_v56, %v12907_v22 }
 0x3c2   :  { %2992 = vrot.lane.b32.xlu1 %v12898_v18, %s5456_s25  ;;  %v12908_v18 = vld [vmem:[#allocation308_spill] sm:$0xff] }
 0x3c3   :  { %v2917_v61 = vpop.permute.xlu0 %2916  ;;  %v3428_v1 = vsel %vm3393_vm3, %v3365_v46, %v12908_v18  ;;  %v12913_v46 = vld [vmem:[#allocation237_spill] sm:$0xff] }
 0x3c4   :  { %v2977_v10 = vpop.permute.xlu1 %2976  ;;  %v3493_v2 = vsel %vm3458_vm4, %v3428_v1, %v8690_v27  ;;  %v3336_v22 = vsel %vm3332_vm2, %v3275_v31, %v12913_v46  ;;  %v12914_v27 = vld [vmem:[#allocation110_spill] sm:$0xff]  ;;  %v12915_v1 = vld [vmem:[#allocation287_spill] sm:$0xff] }
 0x3c5   :  { %2934 = vrot.lane.b32.xlu0 %v12903_v47, %s5456_s25  ;;  %v3461_v47 = vsel %vm3458_vm4, %v3396_v33, %v12909_v44  ;;  %v3558_v56 = vsel %vm3523_vm5, %v3493_v2, %v2609_v59  ;;  %v3397_v28 = vsel %vm3393_vm3, %v3336_v22, %v12915_v1  ;;  %v12916_v2 = vld [vmem:[#allocation331_spill] sm:$0xff]  ;;  %v12920_v22 = vld [vmem:[#allocation174_spill] sm:$0xff] }
 0x3c6   :  { %2994 = vrot.lane.b32.xlu1 %v12906_v48, %s5456_s25  ;;  %v3526_v26 = vsel %vm3523_vm5, %v3461_v47, %v8816_v13  ;;  %v12912_v48 = vld [vmem:[#allocation53_spill] sm:$0xff]  ;;  %v3623_v18 = vsel %vm3588_vm6, %v3558_v56, %v2797_v24  ;;  %v3462_v62 = vsel %vm3458_vm4, %v3397_v28, %v12916_v2  ;;  %v12917_v24 = vld [vmem:[#allocation184_spill] sm:$0xff] }
 0x3c7   :  { %v2919_v15 = vpop.permute.xlu0 %2918  ;;  %v3591_v33 = vsel %vm3588_vm6, %v3526_v26, %v2737_v14  ;;  %v3688_v59 = vsel %vm3653_vm7, %v3623_v18, %v2977_v10  ;;  %v12918_v26 = vld [vmem:[#allocation23_spill] sm:$0xff] }
 0x3c8   :  { %v2979_v55 = vpop.permute.xlu1 %2978  ;;  %v3656_v13 = vsel %vm3653_vm7, %v3591_v33, %v2917_v61  ;;  %v3305_v56 = vsel %vm151_vm0, %v12918_v26, %v12917_v24  ;;  %v12919_v61 = vld [vmem:[#allocation265_spill] sm:$0xff] }
 0x3c9   :  { %3112 = vrot.lane.b32.xlu0 %v12912_v48, %s5457_s3  ;;  %v3527_v48 = vsel %vm3523_vm5, %v3462_v62, %v8818_v43  ;;  %v3366_v10 = vsel %vm3332_vm2, %v3305_v56, %v12919_v61  ;;  %v12921_v33 = vld [vmem:[#allocation309_spill] sm:$0xff]  ;;  %v12923_v62 = vld [vmem:[#allocation56_spill] sm:$0xff]  ;;  %v12927_v56 = vld [vmem:[#allocation58_spill] sm:$0xff] }
 0x3ca   :  { %3172 = vrot.lane.b32.xlu1 %v12914_v27, %s5457_s3  ;;  %v3592_v46 = vsel %vm3588_vm6, %v3527_v48, %v2739_v25  ;;  %v3429_v18 = vsel %vm3393_vm3, %v3366_v10, %v12921_v33  ;;  %v12922_v25 = vld [vmem:[#allocation211_spill] sm:$0xff]  ;;  %v12926_v24 = vld [vmem:[#allocation113_spill] sm:$0xff]  ;;  %v12931_v33 = vld [vmem:[#allocation290_spill] sm:$0xff] }
 0x3cb   :  { %v3097_v44 = vpop.permute.xlu0 %3096  ;;  %v3657_v43 = vsel %vm3653_vm7, %v3592_v46, %v2919_v15  ;;  %v12928_v48 = vld [vmem:[#allocation117_spill] sm:$0xff]  ;;  %v12929_v46 = vld [vmem:[#allocation59_spill] sm:$0xff] }
 0x3cc   :  { %v3157_v47 = vpop.permute.xlu1 %3156  ;;  %v3721_v31 = vsel %vm3718_vm8, %v3656_v13, %v3097_v44 }
 0x3cd   :  { %v3753_v14 = vsel %vm3718_vm8, %v3688_v59, %v3157_v47  ;;  %2628 = vrot.lane.b32.xlu0 %v12914_v27, %s5454_s13  ;;  %5326 = vmatprep.mubr.msk.f32.mxu0 %vm3783_vm9, %v3721_v31  ;;  %v3494_v27 = vsel %vm3458_vm4, %v3429_v18, %v8692_v19  ;;  %v3398_v18 = vsel %vm3393_vm3, %v8890_v49, %v12931_v33  ;;  %v12937_v33 = vld [vmem:[#allocation335_spill] sm:$0xff] }
 0x3ce   :  { %3114 = vrot.lane.b32.xlu1 %v12920_v22, %s5457_s3  ;;  %5374 = vmatprep.mubr.msk.f32.mxu1 %vm3783_vm9, %v3753_v14  ;;  %v3559_v59 = vsel %vm3523_vm5, %v3494_v27, %v2611_v6  ;;  %v12924_v6 = vld [vmem:[#allocation112_spill] sm:$0xff]  ;;  %v12930_v22 = vld [vmem:[#allocation118_spill] sm:$0xff] }
 0x3cf   :  { %v2613_v1 = vpop.permute.xlu0 %2612  ;;  %v3624_v44 = vsel %vm3588_vm6, %v3559_v59, %v2799_v30  ;;  %v12925_v30 = vld [vmem:[#allocation57_spill] sm:$0xff]  ;;  %v12933_v59 = vld [vmem:[#allocation334_spill] sm:$0xff] }
 0x3d0   :  { %v3099_v28 = vpop.permute.xlu1 %3098  ;;  %v3689_v15 = vsel %vm3653_vm7, %v3624_v44, %v2979_v55 }
 0x3d1   :  { %v3722_v13 = vsel %vm3718_vm8, %v3657_v43, %v3099_v28  ;;  %3174 = vrot.lane.b32.xlu0 %v12922_v25, %s5457_s3  ;;  %v12932_v43 = vld [vmem:[#allocation312_spill] sm:$0xff] }
 0x3d2   :  { %5327 = vmatmul.mubr.msk.f32.gmra.mrb[2].mxu0 %vm3783_vm9, %v3722_v13  ;;  %2630 = vrot.lane.b32.xlu1 %v12922_v25, %s5454_s13  ;;  %v3430_v28 = vsel %vm3393_vm3, %v8894_v23, %v12932_v43  ;;  %v3463_v25 = vsel %vm3458_vm4, %v3398_v18, %v12933_v59 }
 0x3d3   :  { %v3159_v47 = vpop.permute.xlu0 %3158  ;;  %v3495_v44 = vsel %vm3458_vm4, %v3430_v28, %v8698_v21 }
 0x3d4   :  { %v2615_v2 = vpop.permute.xlu1 %2614  ;;  %v3754_v19 = vsel %vm3718_vm8, %v3689_v15, %v3159_v47  ;;  %v3528_v15 = vsel %vm3523_vm5, %v3463_v25, %v8824_v11  ;;  %v3560_v47 = vsel %vm3523_vm5, %v3495_v44, %v2613_v1 }
 0x3d5   :  { %2756 = vrot.lane.b32.xlu0 %v12923_v62, %s5455_s22  ;;  %5375 = vmatmul.mubr.msk.f32.gmra.mrb[2].mxu1 %vm3783_vm9, %v3754_v19  ;;  %v12934_v19 = vld [vmem:[#allocation177_spill] sm:$0xff] }
 0x3d6   :  { %2816 = vrot.lane.b32.xlu1 %v12924_v6, %s5455_s22 }
 0x3d7   :  { %v2741_v31 = vpop.permute.xlu0 %2740 }
 0x3d8   :  { %v2801_v14 = vpop.permute.xlu1 %2800  ;;  %v3593_v49 = vsel %vm3588_vm6, %v3528_v15, %v2741_v31  ;;  %v12939_v15 = vld [vmem:[#allocation178_spill] sm:$0xff] }
 0x3d9   :  { %2758 = vrot.lane.b32.xlu0 %v12925_v30, %s5455_s22  ;;  %v3625_v23 = vsel %vm3588_vm6, %v3560_v47, %v2801_v14 }
 0x3da   :  { %2818 = vrot.lane.b32.xlu1 %v12926_v24, %s5455_s22 }
 0x3db   :  { %v2743_v55 = vpop.permute.xlu0 %2742 }
 0x3dc   :  { %v2803_v26 = vpop.permute.xlu1 %2802 }
 0x3dd   :  { %2936 = vrot.lane.b32.xlu0 %v12927_v56, %s5456_s25  ;;  %v12935_v56 = vld [vmem:[#allocation213_spill] sm:$0xff] }
 0x3de   :  { %2996 = vrot.lane.b32.xlu1 %v12928_v48, %s5456_s25  ;;  %v12936_v48 = vld [vmem:[#allocation291_spill] sm:$0xff] }
 0x3df   :  { %v2921_v61 = vpop.permute.xlu0 %2920 }
 0x3e0   :  { %v2981_v10 = vpop.permute.xlu1 %2980  ;;  %v3658_v21 = vsel %vm3653_vm7, %v3593_v49, %v2921_v61  ;;  %v12938_v61 = vld [vmem:[#allocation313_spill] sm:$0xff] }
 0x3e1   :  { %2938 = vrot.lane.b32.xlu0 %v12929_v46, %s5456_s25  ;;  %v3399_v46 = vsel %vm3393_vm3, %v8917_v34, %v12936_v48  ;;  %v3690_v11 = vsel %vm3653_vm7, %v3625_v23, %v2981_v10  ;;  %v3431_v10 = vsel %vm3393_vm3, %v8940_v51, %v12938_v61  ;;  %v12940_v51 = vld [vmem:[#allocation214_spill] sm:$0xff] }
 0x3e2   :  { %2998 = vrot.lane.b32.xlu1 %v12930_v22, %s5456_s25  ;;  %v3464_v18 = vsel %vm3458_vm4, %v3399_v46, %v12937_v33  ;;  %v3496_v25 = vsel %vm3458_vm4, %v3431_v10, %v8700_v50  ;;  %v12943_v46 = vld [vmem:[#allocation61_spill] sm:$0xff]  ;;  %v12949_v61 = vld [vmem:[#allocation266_spill] sm:$0xff] }
 0x3e3   :  { %v2923_v27 = vpop.permute.xlu0 %2922  ;;  %v3529_v43 = vsel %vm3523_vm5, %v3464_v18, %v8826_v32  ;;  %v12946_v18 = vld [vmem:[#allocation187_spill] sm:$0xff] }
 0x3e4   :  { %v2983_v13 = vpop.permute.xlu1 %2982  ;;  %v3594_v34 = vsel %vm3588_vm6, %v3529_v43, %v2743_v55  ;;  %v3561_v55 = vsel %vm3523_vm5, %v3496_v25, %v2615_v2  ;;  %v12948_v43 = vld [vmem:[#allocation238_spill] sm:$0xff] }
 0x3e5   :  { %3116 = vrot.lane.b32.xlu0 %v12934_v19, %s5457_s3  ;;  %v3659_v28 = vsel %vm3653_vm7, %v3594_v34, %v2923_v27  ;;  %v3626_v47 = vsel %vm3588_vm6, %v3561_v55, %v2803_v26  ;;  %v12941_v26 = vld [vmem:[#allocation60_spill] sm:$0xff] }
 0x3e6   :  { %3176 = vrot.lane.b32.xlu1 %v12935_v56, %s5457_s3  ;;  %v3691_v27 = vsel %vm3653_vm7, %v3626_v47, %v2983_v13 }
 0x3e7   :  { %v3101_v22 = vpop.permute.xlu0 %3100 }
 0x3e8   :  { %v3161_v1 = vpop.permute.xlu1 %3160  ;;  %v3723_v31 = vsel %vm3718_vm8, %v3658_v21, %v3101_v22  ;;  %v12944_v21 = vld [vmem:[#allocation120_spill] sm:$0xff] }
 0x3e9   :  { %v3755_v14 = vsel %vm3718_vm8, %v3690_v11, %v3161_v1  ;;  %2568 = vrot.lane.b32.xlu0 %v12934_v19, %s5454_s13  ;;  %5329 = vmatprep.mubr.msk.f32.mxu0 %vm3783_vm9, %v3723_v31  ;;  %v12945_v1 = vld [vmem:[#allocation115_spill] sm:$0xff]  ;;  %v3306_v31 = vsel %vm151_vm0, %v12524_v54, %v12946_v18 }
 0x3ea   :  { %2632 = vrot.lane.b32.xlu1 %v12935_v56, %s5454_s13  ;;  %5377 = vmatprep.mubr.msk.f32.mxu1 %vm3783_vm9, %v3755_v14  ;;  %v12942_v56 = vld [vmem:[#allocation119_spill] sm:$0xff]  ;;  %v3276_v33 = vsel %vm151_vm0, %v6501_v12, %v12945_v1  ;;  %v12947_v14 = vld [vmem:[#allocation62_spill] sm:$0xff]  ;;  %v3367_v10 = vsel %vm3332_vm2, %v3306_v31, %v12949_v61 }
 0x3eb   :  { %v2617_v59 = vpop.permute.xlu0 %2616  ;;  %v3337_v34 = vsel %vm3332_vm2, %v3276_v33, %v12948_v43  ;;  %v12952_v12 = vld [vmem:[#allocation314_spill] sm:$0xff]  ;;  %v12955_v33 = vld [vmem:[#allocation63_spill] sm:$0xff] }
 0x3ec   :  { %v3103_v32 = vpop.permute.xlu1 %3102  ;;  %v12956_v18 = vld [vmem:[#allocation239_spill] sm:$0xff] }
 0x3ed   :  { %v3724_v44 = vsel %vm3718_vm8, %v3659_v28, %v3103_v32  ;;  %3118 = vrot.lane.b32.xlu0 %v12939_v15, %s5457_s3  ;;  %v12950_v28 = vld [vmem:[#allocation123_spill] sm:$0xff]  ;;  %v12951_v32 = vld [vmem:[#allocation292_spill] sm:$0xff] }
 0x3ee   :  { %5330 = vmatmul.mubr.msk.f32.gmra.mrb[4].mxu0 %vm3783_vm9, %v3724_v44  ;;  %3178 = vrot.lane.b32.xlu1 %v12940_v51, %s5457_s3  ;;  %v3400_v25 = vsel %vm3393_vm3, %v3337_v34, %v12951_v32  ;;  %v3432_v44 = vsel %vm3393_vm3, %v3367_v10, %v12952_v12  ;;  %v12958_v34 = vld [vmem:[#allocation293_spill] sm:$0xff] }
 0x3ef   :  { %v3163_v19 = vpop.permute.xlu0 %3162 }
 0x3f0   :  { %v2619_v49 = vpop.permute.xlu1 %2618  ;;  %v3756_v50 = vsel %vm3718_vm8, %v3691_v27, %v3163_v19  ;;  %v12954_v27 = vld [vmem:[#allocation116_spill] sm:$0xff] }
 0x3f1   :  { %2570 = vrot.lane.b32.xlu0 %v12939_v15, %s5454_s13  ;;  %5378 = vmatmul.mubr.msk.f32.gmra.mrb[4].mxu1 %vm3783_vm9, %v3756_v50  ;;  %v12953_v15 = vld [vmem:[#allocation336_spill] sm:$0xff]  ;;  %v3277_v19 = vsel %vm151_vm0, %v6505_v4, %v12954_v27  ;;  %v12964_v27 = vld [vmem:[#allocation315_spill] sm:$0xff] }
 0x3f2   :  { %2634 = vrot.lane.b32.xlu1 %v12940_v51, %s5454_s13  ;;  %v3465_v47 = vsel %vm3458_vm4, %v3400_v25, %v12953_v15  ;;  %v3497_v51 = vsel %vm3458_vm4, %v3432_v44, %v8706_v57  ;;  %v3338_v31 = vsel %vm3332_vm2, %v3277_v19, %v12956_v18  ;;  %v12957_v57 = vld [vmem:[#allocation124_spill] sm:$0xff] }
 0x3f3   :  { %v2745_v2 = vpop.permute.xlu0 %2744  ;;  %v3530_v50 = vsel %vm3523_vm5, %v3465_v47, %v8832_v39  ;;  %v3562_v1 = vsel %vm3523_vm5, %v3497_v51, %v2617_v59  ;;  %v3401_v4 = vsel %vm3393_vm3, %v3338_v31, %v12958_v34  ;;  %v12963_v51 = vld [vmem:[#allocation216_spill] sm:$0xff] }
 0x3f4   :  { %v2805_v23 = vpop.permute.xlu1 %2804 }
 0x3f5   :  { %2760 = vrot.lane.b32.xlu0 %v12941_v26, %s5455_s22  ;;  %v3627_v43 = vsel %vm3588_vm6, %v3562_v1, %v2805_v23  ;;  %v12960_v23 = vld [vmem:[#allocation188_spill] sm:$0xff] }
 0x3f6   :  { %2820 = vrot.lane.b32.xlu1 %v12942_v56, %s5455_s22  ;;  %v3307_v12 = vsel %vm151_vm0, %v12527_v38, %v12960_v23  ;;  %v12972_v23 = vld [vmem:[#allocation240_spill] sm:$0xff] }
 0x3f7   :  { %v2747_v13 = vpop.permute.xlu0 %2746 }
 0x3f8   :  { %v2807_v48 = vpop.permute.xlu1 %2806 }
 0x3f9   :  { %2762 = vrot.lane.b32.xlu0 %v12943_v46, %s5455_s22 }
 0x3fa   :  { %2822 = vrot.lane.b32.xlu1 %v12944_v21, %s5455_s22 }
 0x3fb   :  { %v2925_v11 = vpop.permute.xlu0 %2924 }
 0x3fc   :  { %v2985_v22 = vpop.permute.xlu1 %2984 }
 0x3fd   :  { %2940 = vrot.lane.b32.xlu0 %v12947_v14, %s5456_s25  ;;  %v3595_v14 = vsel %vm3588_vm6, %v3530_v50, %v2745_v2  ;;  %v3692_v59 = vsel %vm3653_vm7, %v3627_v43, %v2985_v22  ;;  %v12962_v22 = vld [vmem:[#allocation267_spill] sm:$0xff]  ;;  %v12965_v43 = vld [vmem:[#allocation182_spill] sm:$0xff] }
 0x3fe   :  { %3000 = vrot.lane.b32.xlu1 %v12950_v28, %s5456_s25  ;;  %v3660_v39 = vsel %vm3653_vm7, %v3595_v14, %v2925_v11  ;;  %v12959_v28 = vld [vmem:[#allocation337_spill] sm:$0xff]  ;;  %v12961_v11 = vld [vmem:[#allocation179_spill] sm:$0xff]  ;;  %v3368_v15 = vsel %vm3332_vm2, %v3307_v12, %v12962_v22 }
 0x3ff   :  { %v2927_v55 = vpop.permute.xlu0 %2926  ;;  %v3466_v32 = vsel %vm3458_vm4, %v3401_v4, %v12959_v28  ;;  %v3433_v38 = vsel %vm3393_vm3, %v3368_v15, %v12964_v27  ;;  %v12967_v4 = vld [vmem:[#allocation65_spill] sm:$0xff]  ;;  %v12974_v22 = vld [vmem:[#allocation7_spill] sm:$0xff] }
 0x400   :  { %v2987_v54 = vpop.permute.xlu1 %2986  ;;  %v3531_v44 = vsel %vm3523_vm5, %v3466_v32, %v8834_v53  ;;  %v3498_v1 = vsel %vm3458_vm4, %v3433_v38, %v8708_v60  ;;  %v12970_v32 = vld [vmem:[#allocation85_spill] sm:$0xff]  ;;  %v12975_v15 = vld [vmem:[#allocation19_spill] sm:$0xff]  ;;  %v12977_v38 = vld [vmem:[#allocation158_spill] sm:$0xff] }
 0x401   :  { %2942 = vrot.lane.b32.xlu0 %v12955_v33, %s5456_s25  ;;  %v3596_v47 = vsel %vm3588_vm6, %v3531_v44, %v2747_v13  ;;  %v3563_v18 = vsel %vm3523_vm5, %v3498_v1, %v2619_v49  ;;  %v12966_v49 = vld [vmem:[#allocation217_spill] sm:$0xff]  ;;  %v12973_v44 = vld [vmem:[#allocation268_spill] sm:$0xff] }
 0x402   :  { %3002 = vrot.lane.b32.xlu1 %v12957_v57, %s5456_s25  ;;  %v3661_v53 = vsel %vm3653_vm7, %v3596_v47, %v2927_v55  ;;  %v3628_v13 = vsel %vm3588_vm6, %v3563_v18, %v2807_v48  ;;  %v12978_v18 = vld [vmem:[#allocation67_spill] sm:$0xff] }
 0x403   :  { %v3105_v61 = vpop.permute.xlu0 %3104  ;;  %v3693_v55 = vsel %vm3653_vm7, %v3628_v13, %v2987_v54  ;;  %v12979_v13 = vld [vmem:[#allocation122_spill] sm:$0xff] }
 0x404   :  { %v3165_v10 = vpop.permute.xlu1 %3164  ;;  %v3725_v25 = vsel %vm3718_vm8, %v3660_v39, %v3105_v61  ;;  %v12968_v39 = vld [vmem:[#allocation8_spill] sm:$0xff] }
 0x405   :  { %v3757_v2 = vsel %vm3718_vm8, %v3692_v59, %v3165_v10  ;;  %3120 = vrot.lane.b32.xlu0 %v12961_v11, %s5457_s3  ;;  %5332 = vmatprep.mubr.msk.f32.mxu0 %vm3783_vm9, %v3725_v25  ;;  %v12969_v10 = vld [vmem:[#allocation6_spill] sm:$0xff]  ;;  %v3308_v25 = vsel %vm151_vm0, %v12641_v29, %v12970_v32  ;;  %v12982_v32 = vld [vmem:[#allocation41_spill] sm:$0xff] }
 0x406   :  { %3180 = vrot.lane.b32.xlu1 %v12963_v51, %s5457_s3  ;;  %5380 = vmatprep.mubr.msk.f32.mxu1 %vm3783_vm9, %v3757_v2  ;;  %v3278_v28 = vsel %vm151_vm0, %v6516_v52, %v12969_v10  ;;  %v12971_v2 = vld [vmem:[#allocation64_spill] sm:$0xff]  ;;  %v12976_v52 = vld [vmem:[#allocation94_spill] sm:$0xff] }
 0x407   :  { %v2621_v19 = vpop.permute.xlu0 %2620  ;;  %v3339_v12 = vsel %vm3332_vm2, %v3278_v28, %v12972_v23 }
 0x408   :  { %v3107_v50 = vpop.permute.xlu1 %3106  ;;  %v3402_v47 = vsel %vm3393_vm3, %v3339_v12, %v12975_v15  ;;  %v12984_v12 = vld [vmem:[#allocation159_spill] sm:$0xff] }
 0x409   :  { %v3726_v33 = vsel %vm3718_vm8, %v3661_v53, %v3107_v50  ;;  %2572 = vrot.lane.b32.xlu0 %v12961_v11, %s5454_s13  ;;  %v3369_v11 = vsel %vm3332_vm2, %v3308_v25, %v12973_v44  ;;  %v3467_v53 = vsel %vm3458_vm4, %v3402_v47, %v12977_v38  ;;  %v12987_v47 = vld [vmem:[#allocation37_spill] sm:$0xff] }
 0x40a   :  { %5333 = vmatmul.mubr.msk.f32.gmra.mrb[6].mxu0 %vm3783_vm9, %v3726_v33  ;;  %2636 = vrot.lane.b32.xlu1 %v12963_v51, %s5454_s13  ;;  %v3434_v51 = vsel %vm3393_vm3, %v3369_v11, %v12976_v52  ;;  %v3532_v1 = vsel %vm3523_vm5, %v3467_v53, %v8840_v42 }
 0x40b   :  { %v3167_v31 = vpop.permute.xlu0 %3166  ;;  %v3499_v50 = vsel %vm3458_vm4, %v3434_v51, %v8714_v17  ;;  %v12981_v17 = vld [vmem:[#allocation241_spill] sm:$0xff] }
 0x40c   :  { %v2623_v14 = vpop.permute.xlu1 %2622  ;;  %v3758_v60 = vsel %vm3718_vm8, %v3693_v55, %v3167_v31  ;;  %v3564_v33 = vsel %vm3523_vm5, %v3499_v50, %v2621_v19  ;;  %v3279_v55 = vsel %vm151_vm0, %v6522_v63, %v12979_v13 }
 0x40d   :  { %3122 = vrot.lane.b32.xlu0 %v12965_v43, %s5457_s3  ;;  %5381 = vmatmul.mubr.msk.f32.gmra.mrb[6].mxu1 %vm3783_vm9, %v3758_v60 }
 0x40e   :  { %3182 = vrot.lane.b32.xlu1 %v12966_v49, %s5457_s3 }
 0x40f   :  { %v2749_v57 = vpop.permute.xlu0 %2748 }
 0x410   :  { %v2809_v34 = vpop.permute.xlu1 %2808  ;;  %v3597_v31 = vsel %vm3588_vm6, %v3532_v1, %v2749_v57 }
 0x411   :  { %2574 = vrot.lane.b32.xlu0 %v12965_v43, %s5454_s13  ;;  %v3629_v60 = vsel %vm3588_vm6, %v3564_v33, %v2809_v34  ;;  %v12980_v43 = vld [vmem:[#allocation36_spill] sm:$0xff] }
 0x412   :  { %2638 = vrot.lane.b32.xlu1 %v12966_v49, %s5454_s13  ;;  %v3340_v49 = vsel %vm3332_vm2, %v3279_v55, %v12981_v17  ;;  %v12983_v34 = vld [vmem:[#allocation192_spill] sm:$0xff]  ;;  %v12990_v55 = vld [vmem:[#allocation219_spill] sm:$0xff] }
 0x413   :  { %v2751_v48 = vpop.permute.xlu0 %2750  ;;  %v3403_v25 = vsel %vm3393_vm3, %v3340_v49, %v12982_v32  ;;  %v3309_v23 = vsel %vm151_vm0, %v12642_v58, %v12983_v34  ;;  %v12988_v58 = vld [vmem:[#allocation95_spill] sm:$0xff]  ;;  %v12995_v32 = vld [vmem:[#allocation90_spill] sm:$0xff] }
 0x414   :  { %v2811_v54 = vpop.permute.xlu1 %2810  ;;  %v3468_v44 = vsel %vm3458_vm4, %v3403_v25, %v12984_v12  ;;  %v3310_v25 = vsel %vm151_vm0, %v12645_v45, %v12995_v32  ;;  %v12997_v34 = vld [vmem:[#allocation127_spill] sm:$0xff] }
 0x415   :  { %2764 = vrot.lane.b32.xlu0 %v12967_v4, %s5455_s22  ;;  %v3533_v15 = vsel %vm3523_vm5, %v3468_v44, %v8842_v37  ;;  %v12999_v44 = vld [vmem:[#allocation14_spill] sm:$0xff] }
 0x416   :  { %2824 = vrot.lane.b32.xlu1 %v12968_v39, %s5455_s22  ;;  %v3598_v51 = vsel %vm3588_vm6, %v3533_v15, %v2751_v48  ;;  %v13001_v15 = vld [vmem:[#allocation154_spill] sm:$0xff] }
 0x417   :  { %v2929_v59 = vpop.permute.xlu0 %2928 }
 0x418   :  { %v2989_v61 = vpop.permute.xlu1 %2988  ;;  %v3662_v42 = vsel %vm3653_vm7, %v3597_v31, %v2929_v59  ;;  %v12985_v59 = vld [vmem:[#allocation68_spill] sm:$0xff] }
 0x419   :  { %2766 = vrot.lane.b32.xlu0 %v12971_v2, %s5455_s22  ;;  %v3694_v19 = vsel %vm3653_vm7, %v3629_v60, %v2989_v61  ;;  %v12986_v61 = vld [vmem:[#allocation269_spill] sm:$0xff]  ;;  %v12991_v60 = vld [vmem:[#allocation183_spill] sm:$0xff] }
 0x41a   :  { %2826 = vrot.lane.b32.xlu1 %v12974_v22, %s5455_s22  ;;  %v3370_v11 = vsel %vm3332_vm2, %v3309_v23, %v12986_v61  ;;  %v12998_v23 = vld [vmem:[#allocation270_spill] sm:$0xff] }
 0x41b   :  { %v2931_v27 = vpop.permute.xlu0 %2930  ;;  %v3435_v52 = vsel %vm3393_vm3, %v3370_v11, %v12988_v58  ;;  %v3371_v12 = vsel %vm3332_vm2, %v3310_v25, %v12998_v23  ;;  %v13000_v61 = vld [vmem:[#allocation22_spill] sm:$0xff]  ;;  %v13011_v25 = vld [vmem:[#allocation132_spill] sm:$0xff] }
 0x41c   :  { %v2991_v29 = vpop.permute.xlu1 %2990  ;;  %v3500_v53 = vsel %vm3458_vm4, %v3435_v52, %v8716_v9  ;;  %v3663_v50 = vsel %vm3653_vm7, %v3598_v51, %v2931_v27  ;;  %v3436_v11 = vsel %vm3393_vm3, %v3371_v12, %v13000_v61  ;;  %v13002_v51 = vld [vmem:[#allocation70_spill] sm:$0xff] }
 0x41d   :  { %2944 = vrot.lane.b32.xlu0 %v12978_v18, %s5456_s25  ;;  %v3565_v33 = vsel %vm3523_vm5, %v3500_v53, %v2623_v14  ;;  %v12989_v18 = vld [vmem:[#allocation66_spill] sm:$0xff]  ;;  %v3501_v58 = vsel %vm3458_vm4, %v3436_v11, %v8722_v16  ;;  %v13013_v11 = vld [vmem:[#allocation73_spill] sm:$0xff] }
 0x41e   :  { %3004 = vrot.lane.b32.xlu1 %v12980_v43, %s5456_s25  ;;  %v3630_v13 = vsel %vm3588_vm6, %v3565_v33, %v2811_v54  ;;  %v12992_v43 = vld [vmem:[#allocation220_spill] sm:$0xff]  ;;  %v13003_v53 = vld [vmem:[#allocation126_spill] sm:$0xff] }
 0x41f   :  { %v3109_v10 = vpop.permute.xlu0 %3108  ;;  %v3695_v48 = vsel %vm3653_vm7, %v3630_v13, %v2991_v29 }
 0x420   :  { %v3169_v28 = vpop.permute.xlu1 %3168  ;;  %v3727_v63 = vsel %vm3718_vm8, %v3662_v42, %v3109_v10 }
 0x421   :  { %v3759_v57 = vsel %vm3718_vm8, %v3694_v19, %v3169_v28  ;;  %2946 = vrot.lane.b32.xlu0 %v12985_v59, %s5456_s25  ;;  %5335 = vmatprep.mubr.msk.f32.mxu0 %vm3783_vm9, %v3727_v63  ;;  %v12993_v19 = vld [vmem:[#allocation38_spill] sm:$0xff]  ;;  %v12994_v28 = vld [vmem:[#allocation69_spill] sm:$0xff] }
 0x422   :  { %3006 = vrot.lane.b32.xlu1 %v12987_v47, %s5456_s25  ;;  %5383 = vmatprep.mubr.msk.f32.mxu1 %vm3783_vm9, %v3759_v57  ;;  %v3280_v10 = vsel %vm151_vm0, %v6586_v41, %v12993_v19  ;;  %v12996_v63 = vld [vmem:[#allocation242_spill] sm:$0xff] }
 0x423   :  { %v2625_v38 = vpop.permute.xlu0 %2624  ;;  %v3341_v57 = vsel %vm3332_vm2, %v3280_v10, %v12996_v63  ;;  %v13010_v10 = vld [vmem:[#allocation271_spill] sm:$0xff] }
 0x424   :  { %v3111_v1 = vpop.permute.xlu1 %3110  ;;  %v3404_v59 = vsel %vm3393_vm3, %v3341_v57, %v12999_v44 }
 0x425   :  { %v3728_v37 = vsel %vm3718_vm8, %v3663_v50, %v3111_v1  ;;  %3124 = vrot.lane.b32.xlu0 %v12989_v18, %s5457_s3  ;;  %v3469_v47 = vsel %vm3458_vm4, %v3404_v59, %v13001_v15  ;;  %v3281_v50 = vsel %vm151_vm0, %v6590_v40, %v13003_v53  ;;  %v3566_v1 = vsel %vm3523_vm5, %v3501_v58, %v2625_v38 }
 0x426   :  { %3184 = vrot.lane.b32.xlu1 %v12990_v55, %s5457_s3  ;;  %5336 = vmatmul.mubr.msk.f32.gmra.mrb[8].mxu0 %vm3783_vm9, %v3728_v37  ;;  %v3534_v52 = vsel %vm3523_vm5, %v3469_v47, %v8848_v20  ;;  %v13004_v37 = vld [vmem:[#allocation130_spill] sm:$0xff]  ;;  %v13014_v47 = vld [vmem:[#allocation133_spill] sm:$0xff] }
 0x427   :  { %v3171_v9 = vpop.permute.xlu0 %3170 }
 0x428   :  { %v3760_v27 = vsel %vm3718_vm8, %v3695_v48, %v3171_v9  ;;  %v2627_v31 = vpop.permute.xlu1 %2626  ;;  %v13006_v48 = vld [vmem:[#allocation15_spill] sm:$0xff] }
 0x429   :  { %2576 = vrot.lane.b32.xlu0 %v12989_v18, %s5454_s13  ;;  %5384 = vmatmul.mubr.msk.f32.gmra.mrb[8].mxu1 %vm3783_vm9, %v3760_v27  ;;  %v13005_v18 = vld [vmem:[#allocation243_spill] sm:$0xff] }
 0x42a   :  { %2640 = vrot.lane.b32.xlu1 %v12990_v55, %s5454_s13  ;;  %v3342_v16 = vsel %vm3332_vm2, %v3281_v50, %v13005_v18 }
 0x42b   :  { %v2753_v14 = vpop.permute.xlu0 %2752  ;;  %v3405_v9 = vsel %vm3393_vm3, %v3342_v16, %v13006_v48  ;;  %v13021_v48 = vld [vmem:[#allocation103_spill] sm:$0xff] }
 0x42c   :  { %v2813_v54 = vpop.permute.xlu1 %2812  ;;  %v3599_v33 = vsel %vm3588_vm6, %v3534_v52, %v2753_v14  ;;  %v13007_v14 = vld [vmem:[#allocation195_spill] sm:$0xff]  ;;  %v13016_v52 = vld [vmem:[#allocation221_spill] sm:$0xff] }
 0x42d   :  { %3126 = vrot.lane.b32.xlu0 %v12991_v60, %s5457_s3  ;;  %v3631_v13 = vsel %vm3588_vm6, %v3566_v1, %v2813_v54  ;;  %v13017_v1 = vld [vmem:[#allocation186_spill] sm:$0xff] }
 0x42e   :  { %3186 = vrot.lane.b32.xlu1 %v12992_v43, %s5457_s3 }
 0x42f   :  { %v2755_v29 = vpop.permute.xlu0 %2754 }
 0x430   :  { %v2815_v17 = vpop.permute.xlu1 %2814 }
 0x431   :  { %2578 = vrot.lane.b32.xlu0 %v12991_v60, %s5454_s13  ;;  %v3311_v60 = vsel %vm151_vm0, %v12646_v5, %v13007_v14  ;;  %v13012_v5 = vld [vmem:[#allocation20_spill] sm:$0xff] }
 0x432   :  { %2642 = vrot.lane.b32.xlu1 %v12992_v43, %s5454_s13  ;;  %v13008_v43 = vld [vmem:[#allocation155_spill] sm:$0xff] }
 0x433   :  { %v2933_v49 = vpop.permute.xlu0 %2932  ;;  %v3470_v19 = vsel %vm3458_vm4, %v3405_v9, %v13008_v43 }
 0x434   :  { %v2993_v42 = vpop.permute.xlu1 %2992  ;;  %v3664_v20 = vsel %vm3653_vm7, %v3599_v33, %v2933_v49  ;;  %v13009_v49 = vld [vmem:[#allocation72_spill] sm:$0xff]  ;;  %v3535_v32 = vsel %vm3523_vm5, %v3470_v19, %v8850_v0  ;;  %v13018_v33 = vld [vmem:[#allocation222_spill] sm:$0xff] }
 0x435   :  { %2768 = vrot.lane.b32.xlu0 %v12994_v28, %s5455_s22  ;;  %v3696_v40 = vsel %vm3653_vm7, %v3631_v13, %v2993_v42  ;;  %v3372_v42 = vsel %vm3332_vm2, %v3311_v60, %v13010_v10  ;;  %v3600_v57 = vsel %vm3588_vm6, %v3535_v32, %v2755_v29  ;;  %v13019_v13 = vld [vmem:[#allocation128_spill] sm:$0xff]  ;;  %v13024_v60 = vld [vmem:[#allocation42_spill] sm:$0xff] }
 0x436   :  { %2828 = vrot.lane.b32.xlu1 %v12997_v34, %s5455_s22  ;;  %v3437_v63 = vsel %vm3393_vm3, %v3372_v42, %v13012_v5  ;;  %v13025_v19 = vld [vmem:[#allocation26_spill] sm:$0xff]  ;;  %v13028_v5 = vld [vmem:[#allocation204_spill] sm:$0xff] }
 0x437   :  { %v2935_v41 = vpop.permute.xlu0 %2934  ;;  %v3502_v12 = vsel %vm3458_vm4, %v3437_v63, %v8724_v3  ;;  %v13027_v32 = vld [vmem:[#allocation198_spill] sm:$0xff] }
 0x438   :  { %v2995_v45 = vpop.permute.xlu1 %2994  ;;  %v3665_v44 = vsel %vm3653_vm7, %v3600_v57, %v2935_v41  ;;  %v3567_v61 = vsel %vm3523_vm5, %v3502_v12, %v2627_v31  ;;  %v13015_v31 = vld [vmem:[#allocation185_spill] sm:$0xff]  ;;  %v13029_v57 = vld [vmem:[#allocation74_spill] sm:$0xff] }
 0x439   :  { %2770 = vrot.lane.b32.xlu0 %v13002_v51, %s5455_s22  ;;  %v3632_v15 = vsel %vm3588_vm6, %v3567_v61, %v2815_v17 }
 0x43a   :  { %2830 = vrot.lane.b32.xlu1 %v13004_v37, %s5455_s22  ;;  %v3697_v29 = vsel %vm3653_vm7, %v3632_v15, %v2995_v45 }
 0x43b   :  { %v3113_v55 = vpop.permute.xlu0 %3112 }
 0x43c   :  { %v3729_v38 = vsel %vm3718_vm8, %v3664_v20, %v3113_v55  ;;  %v3173_v27 = vpop.permute.xlu1 %3172  ;;  %v3282_v20 = vsel %vm151_vm0, %v6611_v35, %v13019_v13  ;;  %v13020_v55 = vld [vmem:[#allocation24_spill] sm:$0xff]  ;;  %v13038_v13 = vld [vmem:[#allocation273_spill] sm:$0xff] }
 0x43d   :  { %v3761_v54 = vsel %vm3718_vm8, %v3696_v40, %v3173_v27  ;;  %2948 = vrot.lane.b32.xlu0 %v13009_v49, %s5456_s25  ;;  %5338 = vmatprep.mubr.msk.f32.mxu0 %vm3783_vm9, %v3729_v38  ;;  %v3312_v9 = vsel %vm151_vm0, %v13021_v48, %v13020_v55  ;;  %v13022_v40 = vld [vmem:[#allocation244_spill] sm:$0xff]  ;;  %v13039_v55 = vld [vmem:[#allocation43_spill] sm:$0xff] }
 0x43e   :  { %3008 = vrot.lane.b32.xlu1 %v13011_v25, %s5456_s25  ;;  %5386 = vmatprep.mubr.msk.f32.mxu1 %vm3783_vm9, %v3761_v54  ;;  %v3343_v38 = vsel %vm3332_vm2, %v3282_v20, %v13022_v40  ;;  %v13023_v27 = vld [vmem:[#allocation272_spill] sm:$0xff]  ;;  %v13040_v40 = vld [vmem:[#allocation27_spill] sm:$0xff] }
 0x43f   :  { %v2629_v23 = vpop.permute.xlu0 %2628  ;;  %v3373_v14 = vsel %vm3332_vm2, %v3312_v9, %v13023_v27  ;;  %v3406_v43 = vsel %vm3393_vm3, %v3343_v38, %v13024_v60  ;;  %v13026_v49 = vld [vmem:[#allocation160_spill] sm:$0xff]  ;;  %v13041_v27 = vld [vmem:[#allocation163_spill] sm:$0xff] }
 0x440   :  { %v3115_v59 = vpop.permute.xlu1 %3114  ;;  %v3438_v54 = vsel %vm3393_vm3, %v3373_v14, %v13025_v19  ;;  %v3471_v10 = vsel %vm3458_vm4, %v3406_v43, %v13026_v49  ;;  %v13042_v43 = vld [vmem:[#allocation199_spill] sm:$0xff] }
 0x441   :  { %v3730_v0 = vsel %vm3718_vm8, %v3665_v44, %v3115_v59  ;;  %2950 = vrot.lane.b32.xlu0 %v13013_v11, %s5456_s25  ;;  %v3503_v25 = vsel %vm3458_vm4, %v3438_v54, %v13027_v32  ;;  %v3536_v63 = vsel %vm3523_vm5, %v3471_v10, %v13028_v5  ;;  %v13030_v59 = vld [vmem:[#allocation131_spill] sm:$0xff]  ;;  %v13043_v54 = vld [vmem:[#allocation206_spill] sm:$0xff]  ;;  %v13044_v10 = vld [vmem:[#allocation76_spill] sm:$0xff] }
 0x442   :  { %3010 = vrot.lane.b32.xlu1 %v13014_v47, %s5456_s25  ;;  %5339 = vmatmul.mubr.msk.f32.gmra.mrb[10].mxu0 %vm3783_vm9, %v3730_v0  ;;  %v3568_v12 = vsel %vm3523_vm5, %v3503_v25, %v2629_v23  ;;  %v13045_v5 = vld [vmem:[#allocation136_spill] sm:$0xff] }
 0x443   :  { %v3175_v3 = vpop.permute.xlu0 %3174 }
 0x444   :  { %v3762_v41 = vsel %vm3718_vm8, %v3697_v29, %v3175_v3  ;;  %v2631_v58 = vpop.permute.xlu1 %2630  ;;  %v13031_v3 = vld [vmem:[#allocation129_spill] sm:$0xff] }
 0x445   :  { %3128 = vrot.lane.b32.xlu0 %v13015_v31, %s5457_s3  ;;  %5387 = vmatmul.mubr.msk.f32.gmra.mrb[10].mxu1 %vm3783_vm9, %v3762_v41  ;;  %v13032_v41 = vld [vmem:[#allocation48_spill] sm:$0xff] }
 0x446   :  { %3188 = vrot.lane.b32.xlu1 %v13016_v52, %s5457_s3 }
 0x447   :  { %v2757_v17 = vpop.permute.xlu0 %2756 }
 0x448   :  { %v2817_v53 = vpop.permute.xlu1 %2816  ;;  %v3601_v44 = vsel %vm3588_vm6, %v3536_v63, %v2757_v17  ;;  %v13034_v17 = vld [vmem:[#allocation200_spill] sm:$0xff] }
 0x449   :  { %2580 = vrot.lane.b32.xlu0 %v13015_v31, %s5454_s13  ;;  %v3633_v61 = vsel %vm3588_vm6, %v3568_v12, %v2817_v53  ;;  %v3283_v31 = vsel %vm151_vm0, %v13032_v41, %v13031_v3  ;;  %v13035_v53 = vld [vmem:[#allocation104_spill] sm:$0xff] }
 0x44a   :  { %2644 = vrot.lane.b32.xlu1 %v13016_v52, %s5454_s13  ;;  %v13033_v52 = vld [vmem:[#allocation75_spill] sm:$0xff] }
 0x44b   :  { %v2759_v45 = vpop.permute.xlu0 %2758 }
 0x44c   :  { %v2819_v50 = vpop.permute.xlu1 %2818 }
 0x44d   :  { %3130 = vrot.lane.b32.xlu0 %v13017_v1, %s5457_s3 }
 0x44e   :  { %3190 = vrot.lane.b32.xlu1 %v13018_v33, %s5457_s3 }
 0x44f   :  { %v2937_v18 = vpop.permute.xlu0 %2936 }
 0x450   :  { %v2997_v16 = vpop.permute.xlu1 %2996  ;;  %v3666_v0 = vsel %vm3653_vm7, %v3601_v44, %v2937_v18 }
 0x451   :  { %2582 = vrot.lane.b32.xlu0 %v13017_v1, %s5454_s13  ;;  %v3698_v15 = vsel %vm3653_vm7, %v3633_v61, %v2997_v16  ;;  %v3313_v1 = vsel %vm151_vm0, %v13035_v53, %v13034_v17  ;;  %v13037_v16 = vld [vmem:[#allocation134_spill] sm:$0xff] }
 0x452   :  { %2646 = vrot.lane.b32.xlu1 %v13018_v33, %s5454_s13  ;;  %v13036_v33 = vld [vmem:[#allocation245_spill] sm:$0xff]  ;;  %v3374_v20 = vsel %vm3332_vm2, %v3313_v1, %v13038_v13  ;;  %v13051_v17 = vld [vmem:[#allocation226_spill] sm:$0xff]  ;;  %v13053_v13 = vld [vmem:[#allocation96_spill] sm:$0xff] }
 0x453   :  { %v2939_v35 = vpop.permute.xlu0 %2938  ;;  %v3344_v18 = vsel %vm3332_vm2, %v3283_v31, %v13036_v33  ;;  %v3439_v38 = vsel %vm3393_vm3, %v3374_v20, %v13040_v40  ;;  %v13052_v33 = vld [vmem:[#allocation9_spill] sm:$0xff]  ;;  %v3314_v20 = vsel %vm151_vm0, %v12894_v7, %v13053_v13  ;;  %v13055_v40 = vld [vmem:[#allocation28_spill] sm:$0xff] }
 0x454   :  { %v2999_v42 = vpop.permute.xlu1 %2998  ;;  %v3407_v48 = vsel %vm3393_vm3, %v3344_v18, %v13039_v55  ;;  %v3504_v19 = vsel %vm3458_vm4, %v3439_v38, %v13042_v43  ;;  %v3284_v18 = vsel %vm151_vm0, %v12893_v36, %v13052_v33  ;;  %v13054_v55 = vld [vmem:[#allocation246_spill] sm:$0xff]  ;;  %v3375_v38 = vsel %vm3332_vm2, %v3314_v20, %v13055_v40  ;;  %v13057_v43 = vld [vmem:[#allocation32_spill] sm:$0xff]  ;;  %v13071_v40 = vld [vmem:[#allocation165_spill] sm:$0xff] }
 0x455   :  { %2772 = vrot.lane.b32.xlu0 %v13029_v57, %s5455_s22  ;;  %v3472_v14 = vsel %vm3458_vm4, %v3407_v48, %v13041_v27  ;;  %v3569_v32 = vsel %vm3523_vm5, %v3504_v19, %v2631_v58  ;;  %v13047_v58 = vld [vmem:[#allocation10_spill] sm:$0xff]  ;;  %v3345_v48 = vsel %vm3332_vm2, %v3284_v18, %v13054_v55  ;;  %v13056_v27 = vld [vmem:[#allocation44_spill] sm:$0xff]  ;;  %v3440_v19 = vsel %vm3393_vm3, %v3375_v38, %v13057_v43  ;;  %v13069_v18 = vld [vmem:[#allocation45_spill] sm:$0xff] }
 0x456   :  { %2832 = vrot.lane.b32.xlu1 %v13030_v59, %s5455_s22  ;;  %v3537_v49 = vsel %vm3523_vm5, %v3472_v14, %v13043_v54  ;;  %v3634_v63 = vsel %vm3588_vm6, %v3569_v32, %v2819_v50  ;;  %v3408_v14 = vsel %vm3393_vm3, %v3345_v48, %v13056_v27  ;;  %v13058_v54 = vld [vmem:[#allocation164_spill] sm:$0xff]  ;;  %v13070_v55 = vld [vmem:[#allocation33_spill] sm:$0xff] }
 0x457   :  { %v3117_v11 = vpop.permute.xlu0 %3116  ;;  %v3602_v25 = vsel %vm3588_vm6, %v3537_v49, %v2759_v45  ;;  %v3699_v61 = vsel %vm3653_vm7, %v3634_v63, %v2999_v42  ;;  %v13049_v42 = vld [vmem:[#allocation225_spill] sm:$0xff]  ;;  %v3473_v49 = vsel %vm3458_vm4, %v3408_v14, %v13058_v54 }
 0x458   :  { %v3731_v47 = vsel %vm3718_vm8, %v3666_v0, %v3117_v11  ;;  %v3177_v29 = vpop.permute.xlu1 %3176  ;;  %v3667_v12 = vsel %vm3653_vm7, %v3602_v25, %v2939_v35  ;;  %v13048_v35 = vld [vmem:[#allocation189_spill] sm:$0xff] }
 0x459   :  { %v3763_v23 = vsel %vm3718_vm8, %v3698_v15, %v3177_v29  ;;  %2774 = vrot.lane.b32.xlu0 %v13033_v52, %s5455_s22  ;;  %5341 = vmatprep.mubr.msk.f32.mxu0 %vm3783_vm9, %v3731_v47  ;;  %v13046_v47 = vld [vmem:[#allocation77_spill] sm:$0xff] }
 0x45a   :  { %2834 = vrot.lane.b32.xlu1 %v13037_v16, %s5455_s22  ;;  %5389 = vmatprep.mubr.msk.f32.mxu1 %vm3783_vm9, %v3763_v23  ;;  %v13050_v23 = vld [vmem:[#allocation190_spill] sm:$0xff]  ;;  %v13072_v14 = vld [vmem:[#allocation349_spill] sm:$0xff] }
 0x45b   :  { %v2569_v9 = vpop.permute.xlu0 %2568  ;;  %v13073_v54 = vld [vmem:[#allocation81_spill] sm:$0xff] }
 0x45c   :  { %v2633_v60 = vpop.permute.xlu1 %2632  ;;  %v3538_v25 = vsel %vm3523_vm5, %v3473_v49, %v2569_v9 }
 0x45d   :  { %2952 = vrot.lane.b32.xlu0 %v13044_v10, %s5456_s25  ;;  %v13059_v10 = vld [vmem:[#allocation202_spill] sm:$0xff] }
 0x45e   :  { %3012 = vrot.lane.b32.xlu1 %v13045_v5, %s5456_s25  ;;  %v3505_v32 = vsel %vm3458_vm4, %v3440_v19, %v13059_v10  ;;  %v13060_v5 = vld [vmem:[#allocation79_spill] sm:$0xff] }
 0x45f   :  { %v3119_v44 = vpop.permute.xlu0 %3118  ;;  %v3570_v63 = vsel %vm3523_vm5, %v3505_v32, %v2633_v60  ;;  %v13074_v32 = vld [vmem:[#allocation11_spill] sm:$0xff] }
 0x460   :  { %v3732_v0 = vsel %vm3718_vm8, %v3667_v12, %v3119_v44  ;;  %v3179_v11 = vpop.permute.xlu1 %3178  ;;  %v13061_v44 = vld [vmem:[#allocation137_spill] sm:$0xff] }
 0x461   :  { %v3764_v15 = vsel %vm3718_vm8, %v3699_v61, %v3179_v11  ;;  %2954 = vrot.lane.b32.xlu0 %v13046_v47, %s5456_s25  ;;  %5342 = vmatmul.mubr.msk.f32.gmra.mrb[12].mxu0 %vm3783_vm9, %v3732_v0 }
 0x462   :  { %3014 = vrot.lane.b32.xlu1 %v13047_v58, %s5456_s25  ;;  %5390 = vmatmul.mubr.msk.f32.gmra.mrb[12].mxu1 %vm3783_vm9, %v3764_v15  ;;  %v13062_v58 = vld [vmem:[#allocation135_spill] sm:$0xff] }
 0x463   :  { %v2571_v45 = vpop.permute.xlu0 %2570 }
 0x464   :  { %v2635_v50 = vpop.permute.xlu1 %2634 }
 0x465   :  { %3132 = vrot.lane.b32.xlu0 %v13048_v35, %s5457_s3 }
 0x466   :  { %3192 = vrot.lane.b32.xlu1 %v13049_v42, %s5457_s3 }
 0x467   :  { %v2761_v29 = vpop.permute.xlu0 %2760 }
 0x468   :  { %v2821_v3 = vpop.permute.xlu1 %2820  ;;  %v3603_v12 = vsel %vm3588_vm6, %v3538_v25, %v2761_v29  ;;  %v13064_v29 = vld [vmem:[#allocation97_spill] sm:$0xff] }
 0x469   :  { %2584 = vrot.lane.b32.xlu0 %v13048_v35, %s5454_s13  ;;  %v3635_v61 = vsel %vm3588_vm6, %v3570_v63, %v2821_v3  ;;  %v3285_v35 = vsel %vm151_vm0, %v12895_v8, %v13062_v58  ;;  %v13065_v3 = vld [vmem:[#allocation2_spill] sm:$0xff] }
 0x46a   :  { %2648 = vrot.lane.b32.xlu1 %v13049_v42, %s5454_s13  ;;  %v13063_v42 = vld [vmem:[#allocation78_spill] sm:$0xff] }
 0x46b   :  { %v2763_v41 = vpop.permute.xlu0 %2762  ;;  %v13068_v8 = vld [vmem:[#allocation30_spill] sm:$0xff] }
 0x46c   :  { %v2823_v31 = vpop.permute.xlu1 %2822 }
 0x46d   :  { %3134 = vrot.lane.b32.xlu0 %v13050_v23, %s5457_s3 }
 0x46e   :  { %3194 = vrot.lane.b32.xlu1 %v13051_v17, %s5457_s3 }
 0x46f   :  { %v2941_v53 = vpop.permute.xlu0 %2940 }
 0x470   :  { %v3001_v1 = vpop.permute.xlu1 %3000  ;;  %v3668_v0 = vsel %vm3653_vm7, %v3603_v12, %v2941_v53 }
 0x471   :  { %2586 = vrot.lane.b32.xlu0 %v13050_v23, %s5454_s13  ;;  %v3700_v15 = vsel %vm3653_vm7, %v3635_v61, %v3001_v1  ;;  %v3315_v23 = vsel %vm151_vm0, %v13065_v3, %v13064_v29  ;;  %v13067_v1 = vld [vmem:[#allocation138_spill] sm:$0xff] }
 0x472   :  { %2650 = vrot.lane.b32.xlu1 %v13051_v17, %s5454_s13  ;;  %v13066_v17 = vld [vmem:[#allocation247_spill] sm:$0xff]  ;;  %v3376_v33 = vsel %vm3332_vm2, %v3315_v23, %v13068_v8 }
 0x473   :  { %v2943_v36 = vpop.permute.xlu0 %2942  ;;  %v3346_v53 = vsel %vm3332_vm2, %v3285_v35, %v13066_v17  ;;  %v3441_v48 = vsel %vm3393_vm3, %v3376_v33, %v13070_v55  ;;  %v13079_v33 = vld [vmem:[#allocation191_spill] sm:$0xff]  ;;  %v13080_v55 = vld [vmem:[#allocation229_spill] sm:$0xff] }
 0x474   :  { %v3003_v7 = vpop.permute.xlu1 %3002  ;;  %v3409_v13 = vsel %vm3393_vm3, %v3346_v53, %v13069_v18  ;;  %v3506_v43 = vsel %vm3458_vm4, %v3441_v48, %v13072_v14  ;;  %v13081_v14 = vld [vmem:[#allocation140_spill] sm:$0xff] }
 0x475   :  { %2776 = vrot.lane.b32.xlu0 %v13060_v5, %s5455_s22  ;;  %v3474_v38 = vsel %vm3458_vm4, %v3409_v13, %v13071_v40  ;;  %v3571_v49 = vsel %vm3523_vm5, %v3506_v43, %v2635_v50  ;;  %v13076_v50 = vld [vmem:[#allocation12_spill] sm:$0xff]  ;;  %v3286_v43 = vsel %vm151_vm0, %v12923_v62, %v13081_v14 }
 0x476   :  { %2836 = vrot.lane.b32.xlu1 %v13061_v44, %s5455_s22  ;;  %v3539_v19 = vsel %vm3523_vm5, %v3474_v38, %v2571_v45  ;;  %v3636_v25 = vsel %vm3588_vm6, %v3571_v49, %v2823_v31  ;;  %v13083_v49 = vld [vmem:[#allocation248_spill] sm:$0xff] }
 0x477   :  { %v3121_v11 = vpop.permute.xlu0 %3120  ;;  %v3604_v10 = vsel %vm3588_vm6, %v3539_v19, %v2763_v41  ;;  %v3701_v61 = vsel %vm3653_vm7, %v3636_v25, %v3003_v7  ;;  %v13078_v7 = vld [vmem:[#allocation228_spill] sm:$0xff] }
 0x478   :  { %v3733_v47 = vsel %vm3718_vm8, %v3668_v0, %v3121_v11  ;;  %v3181_v9 = vpop.permute.xlu1 %3180  ;;  %v3669_v63 = vsel %vm3653_vm7, %v3604_v10, %v2943_v36  ;;  %v13077_v36 = vld [vmem:[#allocation80_spill] sm:$0xff]  ;;  %v3347_v10 = vsel %vm3332_vm2, %v3286_v43, %v13083_v49  ;;  %v13094_v49 = vld [vmem:[#allocation249_spill] sm:$0xff] }
 0x479   :  { %v3765_v60 = vsel %vm3718_vm8, %v3700_v15, %v3181_v9  ;;  %2778 = vrot.lane.b32.xlu0 %v13063_v42, %s5455_s22  ;;  %5344 = vmatprep.mubr.msk.f32.mxu0 %vm3783_vm9, %v3733_v47  ;;  %v13075_v15 = vld [vmem:[#allocation82_spill] sm:$0xff]  ;;  %v13082_v19 = vld [vmem:[#allocation100_spill] sm:$0xff] }
 0x47a   :  { %2838 = vrot.lane.b32.xlu1 %v13067_v1, %s5455_s22  ;;  %5392 = vmatprep.mubr.msk.f32.mxu1 %vm3783_vm9, %v3765_v60 }
 0x47b   :  { %v2573_v20 = vpop.permute.xlu0 %2572 }
 0x47c   :  { %v2637_v27 = vpop.permute.xlu1 %2636 }
 0x47d   :  { %2956 = vrot.lane.b32.xlu0 %v13073_v54, %s5456_s25  ;;  %v3316_v54 = vsel %vm151_vm0, %v12924_v6, %v13082_v19  ;;  %v13091_v19 = vld [vmem:[#allocation141_spill] sm:$0xff] }
 0x47e   :  { %3016 = vrot.lane.b32.xlu1 %v13074_v32, %s5456_s25  ;;  %v13084_v32 = vld [vmem:[#allocation99_spill] sm:$0xff] }
 0x47f   :  { %v3123_v12 = vpop.permute.xlu0 %3122  ;;  %v3377_v25 = vsel %vm3332_vm2, %v3316_v54, %v13084_v32  ;;  %v3287_v54 = vsel %vm151_vm0, %v12925_v30, %v13091_v19  ;;  %v13096_v30 = vld [vmem:[#allocation34_spill] sm:$0xff] }
 0x480   :  { %v3734_v0 = vsel %vm3718_vm8, %v3669_v63, %v3123_v12  ;;  %v3183_v45 = vpop.permute.xlu1 %3182  ;;  %v13085_v63 = vld [vmem:[#allocation46_spill] sm:$0xff] }
 0x481   :  { %v3766_v11 = vsel %vm3718_vm8, %v3701_v61, %v3183_v45  ;;  %2958 = vrot.lane.b32.xlu0 %v13075_v15, %s5456_s25  ;;  %5345 = vmatmul.mubr.msk.f32.gmra.mrb[14].mxu0 %vm3783_vm9, %v3734_v0  ;;  %v3410_v12 = vsel %vm3393_vm3, %v3347_v10, %v13085_v63  ;;  %v13086_v61 = vld [vmem:[#allocation101_spill] sm:$0xff]  ;;  %v13087_v45 = vld [vmem:[#allocation168_spill] sm:$0xff]  ;;  %v13088_v15 = vld [vmem:[#allocation350_spill] sm:$0xff] }
 0x482   :  { %3018 = vrot.lane.b32.xlu1 %v13076_v50, %s5456_s25  ;;  %5393 = vmatmul.mubr.msk.f32.gmra.mrb[14].mxu1 %vm3783_vm9, %v3766_v11  ;;  %v3442_v0 = vsel %vm3393_vm3, %v3377_v25, %v13086_v61  ;;  %v3475_v11 = vsel %vm3458_vm4, %v3410_v12, %v13087_v45  ;;  %v13095_v10 = vld [vmem:[#allocation143_spill] sm:$0xff]  ;;  %v13098_v61 = vld [vmem:[#allocation102_spill] sm:$0xff]  ;;  %v13099_v45 = vld [vmem:[#allocation169_spill] sm:$0xff] }
 0x483   :  { %v9556_v41 = vpop.permute.xlu0 %2574  ;;  %v3507_v50 = vsel %vm3458_vm4, %v3442_v0, %v13088_v15  ;;  %v13097_v25 = vld [vmem:[#allocation47_spill] sm:$0xff] }
 0x484   :  { %v9558_v31 = vpop.permute.xlu1 %2638  ;;  %v13100_v15 = vld [vmem:[#allocation351_spill] sm:$0xff] }
 0x485   :  { %3136 = vrot.lane.b32.xlu0 %v13077_v36, %s5457_s3 }
 0x486   :  { %3196 = vrot.lane.b32.xlu1 %v13078_v7, %s5457_s3 }
 0x487   :  { %v2765_v47 = vpop.permute.xlu0 %2764 }
 0x488   :  { %v2825_v9 = vpop.permute.xlu1 %2824 }
 0x489   :  { %v9564_v58 = vpop.f32.mrb[0].mxu0  ;;  %2588 = vrot.lane.b32.xlu0 %v13077_v36, %s5454_s13  ;;  %v3540_v36 = vsel %vm3523_vm5, %v3475_v11, %v2573_v20 }
 0x48a   :  { %v4366_v35 = vsel %vm151_vm0, %v9564_v58, 0.0  ;;  %v9570_v60 = vpop.f32.mrb[1].mxu0  ;;  %2652 = vrot.lane.b32.xlu1 %v13078_v7, %s5454_s13  ;;  %v13089_v7 = vld [vmem:[#allocation84_spill] sm:$0xff] }
 0x48b   :  { %v4365_v29 = vsel %vm151_vm0, %v9570_v60, 0.0  ;;  %v2767_v23 = vpop.permute.xlu0 %2766 }
 0x48c   :  { %v9576_v3 = vadd.f32 %v4366_v35, %v4365_v29  ;;  %v2827_v17 = vpop.permute.xlu1 %2826  ;;  %v9578_v53 = vpop.f32.mrb[0].mxu1  ;;  %v3572_v35 = vsel %vm3523_vm5, %v3507_v50, %v2637_v27  ;;  %v3605_v29 = vsel %vm3588_vm6, %v3540_v36, %v2765_v47  ;;  %v13092_v47 = vld [vmem:[#allocation83_spill] sm:$0xff] }
 0x48d   :  { %v4435_v8 = vsel %vm151_vm0, %v9578_v53, 0.0  ;;  %3138 = vrot.lane.b32.xlu0 %v13079_v33, %s5457_s3  ;;  %v9584_v18 = vpop.f32.mrb[1].mxu1 }
 0x48e   :  { %v4434_v13 = vsel %vm151_vm0, %v9584_v18, 0.0  ;;  %3198 = vrot.lane.b32.xlu1 %v13080_v55, %s5457_s3 }
 0x48f   :  { %v9590_v48 = vadd.f32 %v4435_v8, %v4434_v13  ;;  %v2945_v40 = vpop.permute.xlu0 %2944  ;;  %v13090_v8 = vld [vmem:[#allocation142_spill] sm:$0xff] }
 0x490   :  { %v3005_v38 = vpop.permute.xlu1 %3004  ;;  %v3670_v13 = vsel %vm3653_vm7, %v3605_v29, %v2945_v40 }
 0x491   :  { %2590 = vrot.lane.b32.xlu0 %v13079_v33, %s5454_s13  ;;  %v3637_v33 = vsel %vm3588_vm6, %v3572_v35, %v2825_v9  ;;  %v13093_v9 = vld [vmem:[#allocation205_spill] sm:$0xff]  ;;  %v13101_v35 = vld [vmem:[#allocation86_spill] sm:$0xff] }
 0x492   :  { %2654 = vrot.lane.b32.xlu1 %v13080_v55, %s5454_s13  ;;  %v3702_v14 = vsel %vm3653_vm7, %v3637_v33, %v3005_v38  ;;  %v3317_v40 = vsel %vm151_vm0, %v12926_v24, %v13093_v9  ;;  %v3348_v38 = vsel %vm3332_vm2, %v3287_v54, %v13094_v49  ;;  %v13106_v49 = vld [vmem:[#allocation230_spill] sm:$0xff] }
 0x493   :  { %v2947_v62 = vpop.permute.xlu0 %2946  ;;  %v3378_v32 = vsel %vm3332_vm2, %v3317_v40, %v13096_v30  ;;  %v3411_v63 = vsel %vm3393_vm3, %v3348_v38, %v13097_v25 }
 0x494   :  { %v3007_v6 = vpop.permute.xlu1 %3006  ;;  %v3443_v0 = vsel %vm3393_vm3, %v3378_v32, %v13098_v61  ;;  %v3476_v24 = vsel %vm3458_vm4, %v3411_v63, %v13099_v45 }
 0x495   :  { %2780 = vrot.lane.b32.xlu0 %v13089_v7, %s5455_s22  ;;  %v3508_v50 = vsel %vm3458_vm4, %v3443_v0, %v13100_v15  ;;  %v3541_v36 = vsel %vm3523_vm5, %v3476_v24, %v9556_v41 }
 0x496   :  { %2840 = vrot.lane.b32.xlu1 %v13090_v8, %s5455_s22  ;;  %v3573_v29 = vsel %vm3523_vm5, %v3508_v50, %v9558_v31  ;;  %v3606_v33 = vsel %vm3588_vm6, %v3541_v36, %v2767_v23  ;;  %v13104_v31 = vld [vmem:[#allocation147_spill] sm:$0xff]  ;;  %v13109_v36 = vld [vmem:[#allocation194_spill] sm:$0xff] }
 0x497   :  { %v3125_v55 = vpop.permute.xlu0 %3124 }
 0x498   :  { %v3735_v43 = vsel %vm3718_vm8, %v3670_v13, %v3125_v55  ;;  %v3185_v20 = vpop.permute.xlu1 %3184  ;;  %v13102_v13 = vld [vmem:[#allocation146_spill] sm:$0xff]  ;;  %v3638_v55 = vsel %vm3588_vm6, %v3573_v29, %v2827_v17  ;;  %v13110_v29 = vld [vmem:[#allocation231_spill] sm:$0xff] }
 0x499   :  { %v3767_v27 = vsel %vm3718_vm8, %v3702_v14, %v3185_v20  ;;  %2782 = vrot.lane.b32.xlu0 %v13092_v47, %s5455_s22  ;;  %5347 = vmatprep.mubr.msk.f32.mxu0 %vm3783_vm9, %v3735_v43  ;;  %v3671_v14 = vsel %vm3653_vm7, %v3606_v33, %v2947_v62  ;;  %v3703_v20 = vsel %vm3653_vm7, %v3638_v55, %v3007_v6  ;;  %v13105_v6 = vld [vmem:[#allocation193_spill] sm:$0xff]  ;;  %v13111_v55 = vld [vmem:[#allocation144_spill] sm:$0xff] }
 0x49a   :  { %2842 = vrot.lane.b32.xlu1 %v13095_v10, %s5455_s22  ;;  %5395 = vmatprep.mubr.msk.f32.mxu1 %vm3783_vm9, %v3767_v27  ;;  %v13103_v27 = vld [vmem:[#allocation87_spill] sm:$0xff] }
 0x49b   :  { %v2577_v12 = vpop.permute.xlu0 %2576 }
 0x49c   :  { %v2641_v11 = vpop.permute.xlu1 %2640 }
 0x49d   :  { %2960 = vrot.lane.b32.xlu0 %v13101_v35, %s5456_s25 }
 0x49e   :  { %3020 = vrot.lane.b32.xlu1 %v13102_v13, %s5456_s25 }
 0x49f   :  { %v3127_v43 = vpop.permute.xlu0 %3126 }
 0x4a0   :  { %v3736_v41 = vsel %vm3718_vm8, %v3671_v14, %v3127_v43  ;;  %v3187_v19 = vpop.permute.xlu1 %3186  ;;  %v3288_v14 = vsel %vm151_vm0, %v12941_v26, %v13111_v55  ;;  %v13120_v55 = vld [vmem:[#allocation148_spill] sm:$0xff] }
 0x4a1   :  { %v3768_v54 = vsel %vm3718_vm8, %v3703_v20, %v3187_v19  ;;  %2962 = vrot.lane.b32.xlu0 %v13103_v27, %s5456_s25  ;;  %5348 = vmatmul.mubr.msk.f32.gmra.mrb[16].mxu0 %vm3783_vm9, %v3736_v41  ;;  %v13113_v20 = vld [vmem:[#allocation250_spill] sm:$0xff]  ;;  %v13115_v27 = vld [vmem:[#allocation49_spill] sm:$0xff] }
 0x4a2   :  { %3022 = vrot.lane.b32.xlu1 %v13104_v31, %s5456_s25  ;;  %5396 = vmatmul.mubr.msk.f32.gmra.mrb[16].mxu1 %vm3783_vm9, %v3768_v54  ;;  %v3349_v41 = vsel %vm3332_vm2, %v3288_v14, %v13113_v20  ;;  %v13114_v19 = vld [vmem:[#allocation274_spill] sm:$0xff] }
 0x4a3   :  { %v9670_v23 = vpop.permute.xlu0 %2578  ;;  %v3412_v31 = vsel %vm3393_vm3, %v3349_v41, %v13115_v27  ;;  %v13124_v27 = vld [vmem:[#allocation251_spill] sm:$0xff] }
 0x4a4   :  { %v9672_v17 = vpop.permute.xlu1 %2642 }
 0x4a5   :  { %v9674_v62 = vpop.f32.mrb[2].mxu0  ;;  %3140 = vrot.lane.b32.xlu0 %v13105_v6, %s5457_s3 }
 0x4a6   :  { %v9678_v9 = vpop.f32.mrb[3].mxu0  ;;  %3200 = vrot.lane.b32.xlu1 %v13106_v49, %s5457_s3  ;;  %v4370_v32 = vsel %vm151_vm0, %v9674_v62, 0.0 }
 0x4a7   :  { %v4368_v40 = vsel %vm151_vm0, %v9678_v9, 0.0  ;;  %v2769_v30 = vpop.permute.xlu0 %2768 }
 0x4a8   :  { %v4369_v38 = vadd.f32 %v4368_v40, %v9576_v3  ;;  %v2829_v25 = vpop.permute.xlu1 %2828  ;;  %v9687_v63 = vpop.f32.mrb[2].mxu1 }
 0x4a9   :  { %13107 = vst [vmem:[#allocation207_spill] sm:$0xff] %v9687_v63  ;;  %2592 = vrot.lane.b32.xlu0 %v13105_v6, %s5454_s13  ;;  %v9691_v61 = vpop.f32.mrb[3].mxu1  ;;  %v4439_v15 = vsel %vm151_vm0, %v9687_v63, 0.0  ;;  %v13116_v6 = vld [vmem:[#allocation107_spill] sm:$0xff] }
 0x4aa   :  { %13108 = vst [vmem:[#allocation35_spill] sm:$0xff] %v9691_v61  ;;  %v9693_v0 = vadd.f32 %v4370_v32, %v4369_v38  ;;  %v4437_v45 = vsel %vm151_vm0, %v9691_v61, 0.0  ;;  %2656 = vrot.lane.b32.xlu1 %v13106_v49, %s5454_s13  ;;  %v13117_v49 = vld [vmem:[#allocation172_spill] sm:$0xff]  ;;  %v13118_v32 = vld [vmem:[#allocation203_spill] sm:$0xff] }
 0x4ab   :  { %v4438_v3 = vadd.f32 %v4437_v45, %v9590_v48  ;;  %v2771_v24 = vpop.permute.xlu0 %2770  ;;  %v13112_v48 = vld [vmem:[#allocation105_spill] sm:$0xff]  ;;  %v3477_v38 = vsel %vm3458_vm4, %v3412_v31, %v13117_v49 }
 0x4ac   :  { %v2831_v50 = vpop.permute.xlu1 %2830  ;;  %v3318_v43 = vsel %vm151_vm0, %v12942_v56, %v13112_v48  ;;  %v13125_v31 = vld [vmem:[#allocation149_spill] sm:$0xff] }
 0x4ad   :  { %3142 = vrot.lane.b32.xlu0 %v13109_v36, %s5457_s3  ;;  %v9704_v35 = vadd.f32 %v4439_v15, %v4438_v3  ;;  %v3379_v54 = vsel %vm3332_vm2, %v3318_v43, %v13114_v19  ;;  %v3542_v3 = vsel %vm3523_vm5, %v3477_v38, %v2577_v12  ;;  %v13119_v15 = vld [vmem:[#allocation89_spill] sm:$0xff] }
 0x4ae   :  { %3202 = vrot.lane.b32.xlu1 %v13110_v29, %s5457_s3  ;;  %v3444_v40 = vsel %vm3393_vm3, %v3379_v54, %v13116_v6  ;;  %v13121_v19 = vld [vmem:[#allocation145_spill] sm:$0xff] }
 0x4af   :  { %v2949_v33 = vpop.permute.xlu0 %2948  ;;  %v3509_v45 = vsel %vm3458_vm4, %v3444_v40, %v13118_v32  ;;  %v3289_v54 = vsel %vm151_vm0, %v12943_v46, %v13121_v19  ;;  %v13126_v46 = vld [vmem:[#allocation275_spill] sm:$0xff]  ;;  %v13127_v40 = vld [vmem:[#allocation50_spill] sm:$0xff]  ;;  %v13128_v32 = vld [vmem:[#allocation108_spill] sm:$0xff] }
 0x4b0   :  { %v3009_v13 = vpop.permute.xlu1 %3008 }
 0x4b1   :  { %2594 = vrot.lane.b32.xlu0 %v13109_v36, %s5454_s13  ;;  %v3574_v36 = vsel %vm3523_vm5, %v3509_v45, %v2641_v11 }
 0x4b2   :  { %2658 = vrot.lane.b32.xlu1 %v13110_v29, %s5454_s13  ;;  %v3607_v29 = vsel %vm3588_vm6, %v3542_v3, %v2769_v30  ;;  %v3639_v14 = vsel %vm3588_vm6, %v3574_v36, %v2829_v25  ;;  %v13122_v30 = vld [vmem:[#allocation88_spill] sm:$0xff]  ;;  %v13129_v3 = vld [vmem:[#allocation338_spill] sm:$0xff] }
 0x4b3   :  { %v2951_v26 = vpop.permute.xlu0 %2950  ;;  %v3672_v48 = vsel %vm3653_vm7, %v3607_v29, %v2949_v33  ;;  %v3704_v20 = vsel %vm3653_vm7, %v3639_v14, %v3009_v13  ;;  %v13123_v25 = vld [vmem:[#allocation208_spill] sm:$0xff]  ;;  %v3350_v13 = vsel %vm3332_vm2, %v3289_v54, %v13124_v27 }
 0x4b4   :  { %v3011_v56 = vpop.permute.xlu1 %3010  ;;  %v3319_v33 = vsel %vm151_vm0, %v12944_v21, %v13123_v25  ;;  %v3413_v49 = vsel %vm3393_vm3, %v3350_v13, %v13127_v40  ;;  %v13130_v29 = vld [vmem:[#allocation352_spill] sm:$0xff] }
 0x4b5   :  { %2784 = vrot.lane.b32.xlu0 %v13119_v15, %s5455_s22  ;;  %v3380_v6 = vsel %vm3332_vm2, %v3319_v33, %v13126_v46  ;;  %v3478_v21 = vsel %vm3458_vm4, %v3413_v49, %v13129_v3 }
 0x4b6   :  { %2844 = vrot.lane.b32.xlu1 %v13120_v55, %s5455_s22  ;;  %v3445_v45 = vsel %vm3393_vm3, %v3380_v6, %v13128_v32  ;;  %v13136_v32 = vld [vmem:[#allocation196_spill] sm:$0xff] }
 0x4b7   :  { %v3129_v43 = vpop.permute.xlu0 %3128  ;;  %v3510_v14 = vsel %vm3458_vm4, %v3445_v45, %v13130_v29 }
 0x4b8   :  { %v3737_v41 = vsel %vm3718_vm8, %v3672_v48, %v3129_v43  ;;  %v3189_v12 = vpop.permute.xlu1 %3188  ;;  %v3543_v48 = vsel %vm3523_vm5, %v3478_v21, %v9670_v23  ;;  %v13131_v43 = vld [vmem:[#allocation91_spill] sm:$0xff] }
 0x4b9   :  { %v3769_v11 = vsel %vm3718_vm8, %v3704_v20, %v3189_v12  ;;  %2786 = vrot.lane.b32.xlu0 %v13122_v30, %s5455_s22  ;;  %5350 = vmatprep.mubr.msk.f32.mxu0 %vm3783_vm9, %v3737_v41  ;;  %v3575_v20 = vsel %vm3523_vm5, %v3510_v14, %v9672_v17  ;;  %v3608_v41 = vsel %vm3588_vm6, %v3543_v48, %v2771_v24  ;;  %v13132_v12 = vld [vmem:[#allocation152_spill] sm:$0xff] }
 0x4ba   :  { %2846 = vrot.lane.b32.xlu1 %v13125_v31, %s5455_s22  ;;  %5398 = vmatprep.mubr.msk.f32.mxu1 %vm3783_vm9, %v3769_v11  ;;  %v3640_v19 = vsel %vm3588_vm6, %v3575_v20, %v2831_v50  ;;  %v3673_v54 = vsel %vm3653_vm7, %v3608_v41, %v2951_v26  ;;  %v13133_v17 = vld [vmem:[#allocation92_spill] sm:$0xff]  ;;  %v13134_v26 = vld [vmem:[#allocation153_spill] sm:$0xff] }
 0x4bb   :  { %v2581_v38 = vpop.permute.xlu0 %2580  ;;  %v3705_v25 = vsel %vm3653_vm7, %v3640_v19, %v3011_v56  ;;  %v13139_v19 = vld [vmem:[#allocation197_spill] sm:$0xff] }
 0x4bc   :  { %v2645_v36 = vpop.permute.xlu1 %2644 }
 0x4bd   :  { %2964 = vrot.lane.b32.xlu0 %v13131_v43, %s5456_s25 }
 0x4be   :  { %3024 = vrot.lane.b32.xlu1 %v13132_v12, %s5456_s25 }
 0x4bf   :  { %v3131_v11 = vpop.permute.xlu0 %3130 }
 0x4c0   :  { %v3738_v23 = vsel %vm3718_vm8, %v3673_v54, %v3131_v11  ;;  %v3191_v33 = vpop.permute.xlu1 %3190 }
 0x4c1   :  { %v9779_v27 = vpop.f32.mrb[4].mxu0  ;;  %v3770_v13 = vsel %vm3718_vm8, %v3705_v25, %v3191_v33  ;;  %2966 = vrot.lane.b32.xlu0 %v13133_v17, %s5456_s25  ;;  %5351 = vmatmul.mubr.msk.f32.gmra.mrb[18].mxu0 %vm3783_vm9, %v3738_v23  ;;  %v13141_v25 = vld [vmem:[#allocation150_spill] sm:$0xff]  ;;  %v13143_v17 = vld [vmem:[#allocation252_spill] sm:$0xff] }
 0x4c2   :  { %v9784_v24 = vpop.f32.mrb[5].mxu0  ;;  %3026 = vrot.lane.b32.xlu1 %v13134_v26, %s5456_s25  ;;  %5399 = vmatmul.mubr.msk.f32.gmra.mrb[18].mxu1 %vm3783_vm9, %v3770_v13  ;;  %v4374_v6 = vsel %vm151_vm0, %v9779_v27, 0.0  ;;  %v3290_v23 = vsel %vm151_vm0, %v12967_v4, %v13141_v25  ;;  %v13142_v33 = vld [vmem:[#allocation114_spill] sm:$0xff]  ;;  %v13144_v26 = vld [vmem:[#allocation276_spill] sm:$0xff] }
 0x4c3   :  { %v4372_v50 = vsel %vm151_vm0, %v9784_v24, 0.0  ;;  %v9793_v46 = vpop.permute.xlu0 %2582  ;;  %v3320_v13 = vsel %vm151_vm0, %v12968_v39, %v13142_v33 }
 0x4c4   :  { %v4373_v56 = vadd.f32 %v4372_v50, %v9693_v0  ;;  %v9797_v40 = vpop.permute.xlu1 %2646  ;;  %v9799_v49 = vpop.f32.mrb[4].mxu1  ;;  %v13138_v0 = vld [vmem:[#allocation234_spill] sm:$0xff]  ;;  %v3351_v50 = vsel %vm3332_vm2, %v3290_v23, %v13143_v17  ;;  %v13150_v17 = vld [vmem:[#allocation288_spill] sm:$0xff] }
 0x4c5   :  { %13135 = vst [vmem:[#allocation180_spill] sm:$0xff] %v9799_v49  ;;  %3144 = vrot.lane.b32.xlu0 %v13136_v32, %s5457_s3  ;;  %v9803_v45 = vpop.f32.mrb[5].mxu1  ;;  %v4443_v48 = vsel %vm151_vm0, %v9799_v49, 0.0 }
 0x4c6   :  { %13137 = vst [vmem:[#allocation5_spill] sm:$0xff] %v9803_v45  ;;  %v9805_v3 = vadd.f32 %v4374_v6, %v4373_v56  ;;  %v4441_v21 = vsel %vm151_vm0, %v9803_v45, 0.0  ;;  %3204 = vrot.lane.b32.xlu1 %v13138_v0, %s5457_s3  ;;  %v3381_v56 = vsel %vm3332_vm2, %v3320_v13, %v13144_v26  ;;  %v13145_v6 = vld [vmem:[#allocation294_spill] sm:$0xff]  ;;  %v13229_v45 = vld [vmem:[#allocation324_spill] sm:$0xff] }
 0x4c7   :  { %v4442_v29 = vadd.f32 %v4441_v21, %v9704_v35  ;;  %v2773_v14 = vpop.permute.xlu0 %2772  ;;  %v13140_v35 = vld [vmem:[#allocation235_spill] sm:$0xff]  ;;  %v13146_v21 = vld [vmem:[#allocation316_spill] sm:$0xff] }
 0x4c8   :  { %v2833_v43 = vpop.permute.xlu1 %2832 }
 0x4c9   :  { %2596 = vrot.lane.b32.xlu0 %v13136_v32, %s5454_s13  ;;  %v9816_v20 = vadd.f32 %v4443_v48, %v4442_v29  ;;  %v3414_v32 = vsel %vm3393_vm3, %v3351_v50, %v13145_v6  ;;  %v13147_v29 = vld [vmem:[#allocation339_spill] sm:$0xff] }
 0x4ca   :  { %2660 = vrot.lane.b32.xlu1 %v13138_v0, %s5454_s13  ;;  %v3446_v0 = vsel %vm3393_vm3, %v3381_v56, %v13146_v21  ;;  %v3479_v48 = vsel %vm3458_vm4, %v3414_v32, %v13147_v29  ;;  %v13151_v21 = vld [vmem:[#allocation151_spill] sm:$0xff]  ;;  %v13154_v29 = vld [vmem:[#allocation253_spill] sm:$0xff] }
 0x4cb   :  { %v2775_v41 = vpop.permute.xlu0 %2774  ;;  %v3544_v23 = vsel %vm3523_vm5, %v3479_v48, %v2581_v38  ;;  %v13155_v48 = vld [vmem:[#allocation289_spill] sm:$0xff] }
 0x4cc   :  { %v2835_v12 = vpop.permute.xlu1 %2834  ;;  %v3609_v13 = vsel %vm3588_vm6, %v3544_v23, %v2773_v14  ;;  %v13152_v14 = vld [vmem:[#allocation263_spill] sm:$0xff] }
 0x4cd   :  { %3146 = vrot.lane.b32.xlu0 %v13139_v19, %s5457_s3 }
 0x4ce   :  { %3206 = vrot.lane.b32.xlu1 %v13140_v35, %s5457_s3 }
 0x4cf   :  { %v2953_v54 = vpop.permute.xlu0 %2952 }
 0x4d0   :  { %v3013_v11 = vpop.permute.xlu1 %3012  ;;  %v3674_v26 = vsel %vm3653_vm7, %v3609_v13, %v2953_v54  ;;  %v13158_v13 = vld [vmem:[#allocation317_spill] sm:$0xff] }
 0x4d1   :  { %2598 = vrot.lane.b32.xlu0 %v13139_v19, %s5454_s13  ;;  %v13148_v19 = vld [vmem:[#allocation353_spill] sm:$0xff] }
 0x4d2   :  { %2662 = vrot.lane.b32.xlu1 %v13140_v35, %s5454_s13  ;;  %v3511_v25 = vsel %vm3458_vm4, %v3446_v0, %v13148_v19  ;;  %v13149_v35 = vld [vmem:[#allocation262_spill] sm:$0xff]  ;;  %v3291_v0 = vsel %vm151_vm0, %v12971_v2, %v13151_v21  ;;  %v13156_v2 = vld [vmem:[#allocation277_spill] sm:$0xff] }
 0x4d3   :  { %v2955_v4 = vpop.permute.xlu0 %2954  ;;  %v3576_v33 = vsel %vm3523_vm5, %v3511_v25, %v2645_v36  ;;  %v13157_v25 = vld [vmem:[#allocation295_spill] sm:$0xff]  ;;  %v13160_v21 = vld [vmem:[#allocation354_spill] sm:$0xff] }
 0x4d4   :  { %v3015_v39 = vpop.permute.xlu1 %3014  ;;  %v3641_v50 = vsel %vm3588_vm6, %v3576_v33, %v2833_v43  ;;  %v13153_v43 = vld [vmem:[#allocation212_spill] sm:$0xff] }
 0x4d5   :  { %2788 = vrot.lane.b32.xlu0 %v13149_v35, %s5455_s22  ;;  %v3706_v6 = vsel %vm3653_vm7, %v3641_v50, %v3013_v11  ;;  %v3321_v54 = vsel %vm151_vm0, %v12974_v22, %v13153_v43  ;;  %v3352_v11 = vsel %vm3332_vm2, %v3291_v0, %v13154_v29  ;;  %v13159_v22 = vld [vmem:[#allocation340_spill] sm:$0xff]  ;;  %v13161_v43 = vld [vmem:[#allocation310_spill] sm:$0xff]  ;;  %v2535_v29 = vrot.slane %v13150_v17, 2 }
 0x4d6   :  { %2848 = vrot.lane.b32.xlu1 %v13150_v17, %s5455_s22  ;;  %v3382_v19 = vsel %vm3332_vm2, %v3321_v54, %v13156_v2  ;;  %v3415_v23 = vsel %vm3393_vm3, %v3352_v11, %v13157_v25  ;;  %v13162_v2 = vld [vmem:[#allocation332_spill] sm:$0xff] }
 0x4d7   :  { %v3133_v56 = vpop.permute.xlu0 %3132  ;;  %v3447_v50 = vsel %vm3393_vm3, %v3382_v19, %v13158_v13 }
 0x4d8   :  { %v3739_v32 = vsel %vm3718_vm8, %v3674_v26, %v3133_v56  ;;  %v3193_v38 = vpop.permute.xlu1 %3192  ;;  %v3480_v26 = vsel %vm3458_vm4, %v3415_v23, %v13159_v22  ;;  %v3512_v0 = vsel %vm3458_vm4, %v3447_v50, %v13160_v21 }
 0x4d9   :  { %v3771_v36 = vsel %vm3718_vm8, %v3706_v6, %v3193_v38  ;;  %2790 = vrot.lane.b32.xlu0 %v13152_v14, %s5455_s22  ;;  %5353 = vmatprep.mubr.msk.f32.mxu0 %vm3783_vm9, %v3739_v32  ;;  %v2530_v32 = vrot.slane %v13149_v35, 2  ;;  %v2531_v38 = vrot.slane %v13152_v14, 2  ;;  %v3577_v11 = vsel %vm3523_vm5, %v3512_v0, %v9797_v40 }
 0x4da   :  { %2850 = vrot.lane.b32.xlu1 %v13155_v48, %s5455_s22  ;;  %5401 = vmatprep.mubr.msk.f32.mxu1 %vm3783_vm9, %v3771_v36  ;;  %v3545_v36 = vsel %vm3523_vm5, %v3480_v26, %v9793_v46  ;;  %v2536_v46 = vrot.slane %v13155_v48, 2  ;;  %v3642_v19 = vsel %vm3588_vm6, %v3577_v11, %v2835_v12  ;;  %v13164_v48 = vld [vmem:[#allocation311_spill] sm:$0xff] }
 0x4db   :  { %v9876_v33 = vpop.permute.xlu0 %2584  ;;  %v3610_v35 = vsel %vm3588_vm6, %v3545_v36, %v2775_v41  ;;  %v3707_v13 = vsel %vm3653_vm7, %v3642_v19, %v3015_v39  ;;  %v13166_v39 = vld [vmem:[#allocation333_spill] sm:$0xff]  ;;  %v2532_v21 = vsel %vm1801_vm11, %v2530_v32, %v2531_v38 }
 0x4dc   :  { %v9882_v56 = vpop.permute.xlu1 %2648  ;;  %v3675_v25 = vsel %vm3653_vm7, %v3610_v35, %v2955_v4 }
 0x4dd   :  { %v9884_v6 = vpop.f32.mrb[6].mxu0  ;;  %2968 = vrot.lane.b32.xlu0 %v13161_v43, %s5456_s25  ;;  %v2537_v43 = vsel %vm1801_vm11, %v2535_v29, %v2536_v46 }
 0x4de   :  { %v9894_v54 = vpop.f32.mrb[7].mxu0  ;;  %3028 = vrot.lane.b32.xlu1 %v13162_v2, %s5456_s25  ;;  %v4378_v40 = vsel %vm151_vm0, %v9884_v6, 0.0  ;;  %v13167_v2 = vld [vmem:[#allocation307_spill] sm:$0xff] }
 0x4df   :  { %v4376_v14 = vsel %vm151_vm0, %v9894_v54, 0.0  ;;  %v3135_v17 = vpop.permute.xlu0 %3134  ;;  %v2533_v19 = vrot.slane %v13167_v2, 2 }
 0x4e0   :  { %v4377_v23 = vadd.f32 %v4376_v14, %v9805_v3  ;;  %v3740_v41 = vsel %vm3718_vm8, %v3675_v25, %v3135_v17  ;;  %v3195_v50 = vpop.permute.xlu1 %3194  ;;  %v9912_v22 = vpop.f32.mrb[6].mxu1 }
 0x4e1   :  { %13163 = vst [vmem:[#allocation209_spill] sm:$0xff] %v9912_v22  ;;  %v3772_v26 = vsel %vm3718_vm8, %v3707_v13, %v3195_v50  ;;  %2970 = vrot.lane.b32.xlu0 %v13164_v48, %s5456_s25  ;;  %5354 = vmatmul.mubr.msk.f32.gmra.mrb[20].mxu0 %vm3783_vm9, %v3740_v41  ;;  %v9918_v12 = vpop.f32.mrb[7].mxu1  ;;  %v4447_v11 = vsel %vm151_vm0, %v9912_v22, 0.0 }
 0x4e2   :  { %13165 = vst [vmem:[#allocation285_spill] sm:$0xff] %v9918_v12  ;;  %v9920_v3 = vadd.f32 %v4378_v40, %v4377_v23  ;;  %v4445_v4 = vsel %vm151_vm0, %v9918_v12, 0.0  ;;  %3030 = vrot.lane.b32.xlu1 %v13166_v39, %s5456_s25  ;;  %5402 = vmatmul.mubr.msk.f32.gmra.mrb[20].mxu1 %vm3783_vm9, %v3772_v26  ;;  %v13168_v23 = vld [vmem:[#allocation329_spill] sm:$0xff]  ;;  %v13169_v26 = vld [vmem:[#allocation156_spill] sm:$0xff]  ;;  %v13171_v39 = vld [vmem:[#allocation254_spill] sm:$0xff] }
 0x4e3   :  { %v4446_v0 = vadd.f32 %v4445_v4, %v9816_v20  ;;  %v2587_v36 = vpop.permute.xlu0 %2586  ;;  %v2538_v32 = vrot.slane %v13168_v23, 2  ;;  %v2534_v20 = vsel %vm1801_vm11, %v2531_v38, %v2533_v19  ;;  %v3292_v48 = vsel %vm151_vm0, %v12994_v28, %v13169_v26  ;;  %v13170_v4 = vld [vmem:[#allocation121_spill] sm:$0xff]  ;;  %v13174_v19 = vld [vmem:[#allocation318_spill] sm:$0xff]  ;;  %v13228_v12 = vld [vmem:[#allocation171_spill] sm:$0xff] }
 0x4e4   :  { %v2651_v35 = vpop.permute.xlu1 %2650  ;;  %v3322_v38 = vsel %vm151_vm0, %v12997_v34, %v13170_v4  ;;  %v13175_v23 = vld [vmem:[#allocation25_spill] sm:$0xff]  ;;  %v13176_v34 = vld [vmem:[#allocation355_spill] sm:$0xff]  ;;  %v3299_v49 = vsel %vm151_vm0, %v13092_v47, %v13228_v12 }
 0x4e5   :  { %3148 = vrot.lane.b32.xlu0 %v2532_v21, %s5457_s3  ;;  %v9933_v14 = vadd.f32 %v4447_v11, %v4446_v0  ;;  %v2539_v13 = vsel %vm1801_vm11, %v2536_v46, %v2538_v32  ;;  %v3353_v46 = vsel %vm3332_vm2, %v3292_v48, %v13171_v39 }
 0x4e6   :  { %3208 = vrot.lane.b32.xlu1 %v2537_v43, %s5457_s3 }
 0x4e7   :  { %v2777_v25 = vpop.permute.xlu0 %2776 }
 0x4e8   :  { %v2837_v17 = vpop.permute.xlu1 %2836 }
 0x4e9   :  { %2600 = vrot.lane.b32.xlu0 %v2532_v21, %s5454_s13  ;;  %v13172_v21 = vld [vmem:[#allocation278_spill] sm:$0xff] }
 0x4ea   :  { %2664 = vrot.lane.b32.xlu1 %v2537_v43, %s5454_s13  ;;  %v3383_v0 = vsel %vm3332_vm2, %v3322_v38, %v13172_v21  ;;  %v13173_v43 = vld [vmem:[#allocation296_spill] sm:$0xff] }
 0x4eb   :  { %v2779_v29 = vpop.permute.xlu0 %2778  ;;  %v3416_v11 = vsel %vm3393_vm3, %v3353_v46, %v13173_v43  ;;  %v3448_v28 = vsel %vm3393_vm3, %v3383_v0, %v13174_v19 }
 0x4ec   :  { %v2839_v40 = vpop.permute.xlu1 %2838  ;;  %v3481_v32 = vsel %vm3458_vm4, %v3416_v11, %v13175_v23  ;;  %v3513_v26 = vsel %vm3458_vm4, %v3448_v28, %v13176_v34  ;;  %v13177_v11 = vld [vmem:[#allocation157_spill] sm:$0xff]  ;;  %v13180_v23 = vld [vmem:[#allocation279_spill] sm:$0xff] }
 0x4ed   :  { %3150 = vrot.lane.b32.xlu0 %v2534_v20, %s5457_s3  ;;  %v3578_v48 = vsel %vm3523_vm5, %v3513_v26, %v9882_v56  ;;  %v3293_v19 = vsel %vm151_vm0, %v13002_v51, %v13177_v11  ;;  %v13178_v56 = vld [vmem:[#allocation215_spill] sm:$0xff] }
 0x4ee   :  { %3210 = vrot.lane.b32.xlu1 %v2539_v13, %s5457_s3  ;;  %v3643_v38 = vsel %vm3588_vm6, %v3578_v48, %v2837_v17  ;;  %v13179_v17 = vld [vmem:[#allocation255_spill] sm:$0xff] }
 0x4ef   :  { %v2957_v41 = vpop.permute.xlu0 %2956  ;;  %v13182_v48 = vld [vmem:[#allocation319_spill] sm:$0xff] }
 0x4f0   :  { %v3017_v50 = vpop.permute.xlu1 %3016 }
 0x4f1   :  { %2602 = vrot.lane.b32.xlu0 %v2534_v20, %s5454_s13  ;;  %v3708_v21 = vsel %vm3653_vm7, %v3643_v38, %v3017_v50 }
 0x4f2   :  { %2666 = vrot.lane.b32.xlu1 %v2539_v13, %s5454_s13  ;;  %v3546_v13 = vsel %vm3523_vm5, %v3481_v32, %v9876_v33  ;;  %v13181_v32 = vld [vmem:[#allocation297_spill] sm:$0xff] }
 0x4f3   :  { %v2959_v2 = vpop.permute.xlu0 %2958  ;;  %v3611_v4 = vsel %vm3588_vm6, %v3546_v13, %v2777_v25  ;;  %v3323_v25 = vsel %vm151_vm0, %v13004_v37, %v13178_v56 }
 0x4f4   :  { %v3019_v20 = vpop.permute.xlu1 %3018  ;;  %v3676_v39 = vsel %vm3653_vm7, %v3611_v4, %v2957_v41  ;;  %v3354_v41 = vsel %vm3332_vm2, %v3293_v19, %v13179_v17  ;;  %v3384_v51 = vsel %vm3332_vm2, %v3323_v25, %v13180_v23  ;;  %v13183_v4 = vld [vmem:[#allocation201_spill] sm:$0xff] }
 0x4f5   :  { %v3417_v34 = vsel %vm3393_vm3, %v3354_v41, %v13181_v32  ;;  %v3449_v37 = vsel %vm3393_vm3, %v3384_v51, %v13182_v48 }
 0x4f6   :  { %v3482_v38 = vsel %vm3458_vm4, %v3417_v34, %v13183_v4 }
 0x4f7   :  { %v3137_v46 = vpop.permute.xlu0 %3136  ;;  %v3547_v11 = vsel %vm3523_vm5, %v3482_v38, %v2587_v36 }
 0x4f8   :  { %v3741_v0 = vsel %vm3718_vm8, %v3676_v39, %v3137_v46  ;;  %v3197_v43 = vpop.permute.xlu1 %3196  ;;  %v3612_v25 = vsel %vm3588_vm6, %v3547_v11, %v2779_v29  ;;  %v13188_v11 = vld [vmem:[#allocation125_spill] sm:$0xff] }
 0x4f9   :  { %v3773_v33 = vsel %vm3718_vm8, %v3708_v21, %v3197_v43  ;;  %v9977_v28 = vpop.f32.mrb[8].mxu0  ;;  %5356 = vmatprep.mubr.msk.f32.mxu0 %vm3783_vm9, %v3741_v0  ;;  %v13185_v0 = vld [vmem:[#allocation356_spill] sm:$0xff]  ;;  %v3677_v23 = vsel %vm3653_vm7, %v3612_v25, %v2959_v2 }
 0x4fa   :  { %v9985_v50 = vpop.f32.mrb[9].mxu0  ;;  %5404 = vmatprep.mubr.msk.f32.mxu1 %vm3783_vm9, %v3773_v33  ;;  %v3514_v43 = vsel %vm3458_vm4, %v3449_v37, %v13185_v0  ;;  %v4382_v19 = vsel %vm151_vm0, %v9977_v28, 0.0  ;;  %v13187_v0 = vld [vmem:[#allocation161_spill] sm:$0xff] }
 0x4fb   :  { %v4380_v26 = vsel %vm151_vm0, %v9985_v50, 0.0  ;;  %v2589_v13 = vpop.permute.xlu0 %2588  ;;  %v3579_v56 = vsel %vm3523_vm5, %v3514_v43, %v2651_v35  ;;  %v3294_v43 = vsel %vm151_vm0, %v13029_v57, %v13187_v0 }
 0x4fc   :  { %v4381_v39 = vadd.f32 %v4380_v26, %v9920_v3  ;;  %v2653_v46 = vpop.permute.xlu1 %2652  ;;  %v9999_v21 = vpop.f32.mrb[8].mxu1  ;;  %v3644_v41 = vsel %vm3588_vm6, %v3579_v56, %v2839_v40  ;;  %v13189_v56 = vld [vmem:[#allocation29_spill] sm:$0xff] }
 0x4fd   :  { %13184 = vst [vmem:[#allocation328_spill] sm:$0xff] %v9999_v21  ;;  %v10006_v33 = vpop.f32.mrb[9].mxu1  ;;  %v3709_v32 = vsel %vm3653_vm7, %v3644_v41, %v3019_v20  ;;  %v4451_v34 = vsel %vm151_vm0, %v9999_v21, 0.0  ;;  %v3355_v25 = vsel %vm3332_vm2, %v3294_v43, %v13189_v56  ;;  %v13227_v21 = vld [vmem:[#allocation302_spill] sm:$0xff] }
 0x4fe   :  { %13186 = vst [vmem:[#allocation181_spill] sm:$0xff] %v10006_v33  ;;  %v4449_v3 = vsel %vm151_vm0, %v10006_v33, 0.0  ;;  %v4383_v17 = vadd.f32 %v4382_v19, %v4381_v39  ;;  %v3324_v19 = vsel %vm151_vm0, %v13030_v59, %v13188_v11 }
 0x4ff   :  { %v4450_v51 = vadd.f32 %v4449_v3, %v9933_v14  ;;  %v3139_v36 = vpop.permute.xlu0 %3138  ;;  %v13190_v3 = vld [vmem:[#allocation280_spill] sm:$0xff] }
 0x500   :  { %v3742_v35 = vsel %vm3718_vm8, %v3677_v23, %v3139_v36  ;;  %v3199_v26 = vpop.permute.xlu1 %3198  ;;  %v3385_v41 = vsel %vm3332_vm2, %v3324_v19, %v13190_v3  ;;  %v13191_v23 = vld [vmem:[#allocation298_spill] sm:$0xff] }
 0x501   :  { %v3774_v29 = vsel %vm3718_vm8, %v3709_v32, %v3199_v26  ;;  %5357 = vmatmul.mubr.msk.f32.gmra.mrb[22].mxu0 %vm3783_vm9, %v3742_v35  ;;  %v4452_v48 = vadd.f32 %v4451_v34, %v4450_v51  ;;  %v3418_v51 = vsel %vm3393_vm3, %v3355_v25, %v13191_v23  ;;  %v13192_v32 = vld [vmem:[#allocation320_spill] sm:$0xff]  ;;  %v13193_v35 = vld [vmem:[#allocation341_spill] sm:$0xff] }
 0x502   :  { %5405 = vmatmul.mubr.msk.f32.gmra.mrb[22].mxu1 %vm3783_vm9, %v3774_v29  ;;  %v3450_v34 = vsel %vm3393_vm3, %v3385_v41, %v13192_v32  ;;  %v3483_v57 = vsel %vm3458_vm4, %v3418_v51, %v13193_v35  ;;  %v13194_v29 = vld [vmem:[#allocation357_spill] sm:$0xff] }
 0x503   :  { %v2591_v40 = vpop.permute.xlu0 %2590  ;;  %v3515_v59 = vsel %vm3458_vm4, %v3450_v34, %v13194_v29  ;;  %v3548_v0 = vsel %vm3523_vm5, %v3483_v57, %v2589_v13  ;;  %v13199_v29 = vld [vmem:[#allocation40_spill] sm:$0xff] }
 0x504   :  { %v2655_v2 = vpop.permute.xlu1 %2654  ;;  %v3580_v11 = vsel %vm3523_vm5, %v3515_v59, %v2653_v46  ;;  %v13196_v46 = vld [vmem:[#allocation162_spill] sm:$0xff] }
 0x507   :  { %v2781_v37 = vpop.permute.xlu0 %2780 }
 0x508   :  { %v2841_v14 = vpop.permute.xlu1 %2840  ;;  %v3613_v19 = vsel %vm3588_vm6, %v3548_v0, %v2781_v37  ;;  %v3295_v37 = vsel %vm151_vm0, %v13033_v52, %v13196_v46 }
 0x509   :  { %v3645_v25 = vsel %vm3588_vm6, %v3580_v11, %v2841_v14  ;;  %v3356_v59 = vsel %vm3332_vm2, %v3295_v37, %v13199_v29  ;;  %v13200_v11 = vld [vmem:[#allocation281_spill] sm:$0xff] }
 0x50b   :  { %v2783_v4 = vpop.permute.xlu0 %2782 }
 0x50c   :  { %v2843_v38 = vpop.permute.xlu1 %2842 }
 0x50f   :  { %v2961_v20 = vpop.permute.xlu0 %2960 }
 0x510   :  { %v3021_v39 = vpop.permute.xlu1 %3020  ;;  %v3678_v3 = vsel %vm3653_vm7, %v3613_v19, %v2961_v20 }
 0x511   :  { %v3710_v51 = vsel %vm3653_vm7, %v3645_v25, %v3021_v39  ;;  %v13198_v39 = vld [vmem:[#allocation218_spill] sm:$0xff]  ;;  %v13201_v25 = vld [vmem:[#allocation299_spill] sm:$0xff] }
 0x513   :  { %v2963_v36 = vpop.permute.xlu0 %2962 }
 0x514   :  { %v3023_v26 = vpop.permute.xlu1 %3022 }
 0x515   :  { %v10041_v43 = vpop.f32.mrb[10].mxu0 }
 0x516   :  { %v10045_v56 = vpop.f32.mrb[11].mxu0  ;;  %v4386_v14 = vsel %vm151_vm0, %v10041_v43, 0.0 }
 0x517   :  { %v4384_v41 = vsel %vm151_vm0, %v10045_v56, 0.0  ;;  %v3141_v23 = vpop.permute.xlu0 %3140 }
 0x518   :  { %v4385_v32 = vadd.f32 %v4384_v41, %v4383_v17  ;;  %v3743_v13 = vsel %vm3718_vm8, %v3678_v3, %v3141_v23  ;;  %v3201_v34 = vpop.permute.xlu1 %3200  ;;  %v10053_v35 = vpop.f32.mrb[10].mxu1  ;;  %v3325_v17 = vsel %vm151_vm0, %v13037_v16, %v13198_v39  ;;  %v3419_v3 = vsel %vm3393_vm3, %v3356_v59, %v13201_v25 }
 0x519   :  { %13195 = vst [vmem:[#allocation261_spill] sm:$0xff] %v10053_v35  ;;  %v3775_v20 = vsel %vm3718_vm8, %v3710_v51, %v3201_v34  ;;  %5359 = vmatprep.mubr.msk.f32.mxu0 %vm3783_vm9, %v3743_v13  ;;  %v10062_v57 = vpop.f32.mrb[11].mxu1  ;;  %v3386_v19 = vsel %vm3332_vm2, %v3325_v17, %v13200_v11  ;;  %v13202_v51 = vld [vmem:[#allocation321_spill] sm:$0xff]  ;;  %v13203_v13 = vld [vmem:[#allocation342_spill] sm:$0xff]  ;;  %v4455_v46 = vsel %vm151_vm0, %v10053_v35, 0.0 }
 0x51a   :  { %13197 = vst [vmem:[#allocation173_spill] sm:$0xff] %v10062_v57  ;;  %v4453_v0 = vsel %vm151_vm0, %v10062_v57, 0.0  ;;  %5407 = vmatprep.mubr.msk.f32.mxu1 %vm3783_vm9, %v3775_v20  ;;  %v4387_v52 = vadd.f32 %v4386_v14, %v4385_v32  ;;  %v3451_v16 = vsel %vm3393_vm3, %v3386_v19, %v13202_v51  ;;  %v3484_v34 = vsel %vm3458_vm4, %v3419_v3, %v13203_v13  ;;  %v13204_v20 = vld [vmem:[#allocation358_spill] sm:$0xff]  ;;  %v13220_v57 = vld [vmem:[#allocation323_spill] sm:$0xff] }
 0x51b   :  { %v4454_v41 = vadd.f32 %v4453_v0, %v4452_v48  ;;  %v2593_v23 = vpop.permute.xlu0 %2592  ;;  %v3516_v32 = vsel %vm3458_vm4, %v3451_v16, %v13204_v20  ;;  %v3549_v14 = vsel %vm3523_vm5, %v3484_v34, %v2591_v40  ;;  %v13205_v16 = vld [vmem:[#allocation166_spill] sm:$0xff]  ;;  %v13206_v34 = vld [vmem:[#allocation223_spill] sm:$0xff] }
 0x51c   :  { %v2657_v37 = vpop.permute.xlu1 %2656  ;;  %v3581_v17 = vsel %vm3523_vm5, %v3516_v32, %v2655_v2  ;;  %v3614_v48 = vsel %vm3588_vm6, %v3549_v14, %v2783_v4  ;;  %v3296_v13 = vsel %vm151_vm0, %v13060_v5, %v13205_v16  ;;  %v13207_v20 = vld [vmem:[#allocation31_spill] sm:$0xff]  ;;  %v13208_v14 = vld [vmem:[#allocation13_spill] sm:$0xff] }
 0x51d   :  { %v4456_v39 = vadd.f32 %v4455_v46, %v4454_v41  ;;  %v3646_v29 = vsel %vm3588_vm6, %v3581_v17, %v2843_v38  ;;  %v3679_v59 = vsel %vm3653_vm7, %v3614_v48, %v2963_v36  ;;  %v3326_v46 = vsel %vm151_vm0, %v13061_v44, %v13206_v34  ;;  %v13209_v48 = vld [vmem:[#allocation300_spill] sm:$0xff] }
 0x51e   :  { %v3711_v11 = vsel %vm3653_vm7, %v3646_v29, %v3023_v26  ;;  %v3357_v32 = vsel %vm3332_vm2, %v3296_v13, %v13207_v20  ;;  %v3387_v17 = vsel %vm3332_vm2, %v3326_v46, %v13208_v14 }
 0x51f   :  { %v3143_v0 = vpop.permute.xlu0 %3142  ;;  %v3420_v29 = vsel %vm3393_vm3, %v3357_v32, %v13209_v48 }
 0x520   :  { %v3744_v19 = vsel %vm3718_vm8, %v3679_v59, %v3143_v0  ;;  %v3203_v25 = vpop.permute.xlu1 %3202  ;;  %v13210_v0 = vld [vmem:[#allocation322_spill] sm:$0xff] }
 0x521   :  { %v3776_v3 = vsel %vm3718_vm8, %v3711_v11, %v3203_v25  ;;  %5360 = vmatmul.mubr.msk.f32.gmra.mrb[24].mxu0 %vm3783_vm9, %v3744_v19  ;;  %v3452_v11 = vsel %vm3393_vm3, %v3387_v17, %v13210_v0  ;;  %v13211_v19 = vld [vmem:[#allocation343_spill] sm:$0xff] }
 0x522   :  { %5408 = vmatmul.mubr.msk.f32.gmra.mrb[24].mxu1 %vm3783_vm9, %v3776_v3  ;;  %v3485_v5 = vsel %vm3458_vm4, %v3420_v29, %v13211_v19  ;;  %v13212_v3 = vld [vmem:[#allocation359_spill] sm:$0xff] }
 0x523   :  { %v2595_v40 = vpop.permute.xlu0 %2594  ;;  %v3517_v16 = vsel %vm3458_vm4, %v3452_v11, %v13212_v3  ;;  %v3550_v13 = vsel %vm3523_vm5, %v3485_v5, %v2593_v23 }
 0x524   :  { %v2659_v2 = vpop.permute.xlu1 %2658  ;;  %v3582_v20 = vsel %vm3523_vm5, %v3517_v16, %v2657_v37 }
 0x527   :  { %v10094_v41 = vpop.permute.xlu0 %2784 }
 0x528   :  { %v10096_v4 = vpop.permute.xlu1 %2844  ;;  %v3615_v32 = vsel %vm3588_vm6, %v3550_v13, %v10094_v41  ;;  %v13215_v13 = vld [vmem:[#allocation167_spill] sm:$0xff] }
 0x529   :  { %v3647_v48 = vsel %vm3588_vm6, %v3582_v20, %v10096_v4 }
 0x52b   :  { %v10098_v38 = vpop.permute.xlu0 %2786 }
 0x52c   :  { %v10100_v36 = vpop.permute.xlu1 %2846 }
 0x52f   :  { %v10102_v26 = vpop.permute.xlu0 %2964 }
 0x530   :  { %v10104_v51 = vpop.permute.xlu1 %3024  ;;  %v3680_v23 = vsel %vm3653_vm7, %v3615_v32, %v10102_v26 }
 0x531   :  { %v3712_v37 = vsel %vm3653_vm7, %v3647_v48, %v10104_v51  ;;  %v13216_v48 = vld [vmem:[#allocation224_spill] sm:$0xff] }
 0x533   :  { %v10118_v59 = vpop.permute.xlu0 %2966 }
 0x534   :  { %v10124_v25 = vpop.permute.xlu1 %3026  ;;  %v10126_v44 = vpop.f32.mrb[12].mxu0 }
 0x535   :  { %v10131_v34 = vpop.f32.mrb[12].mxu1  ;;  %v10133_v46 = vpop.f32.mrb[13].mxu0  ;;  %v4390_v19 = vsel %vm151_vm0, %v10126_v44, 0.0 }
 0x536   :  { %13213 = vst [vmem:[#allocation306_spill] sm:$0xff] %v10131_v34  ;;  %v4388_v14 = vsel %vm151_vm0, %v10133_v46, 0.0  ;;  %v10140_v17 = vpop.f32.mrb[13].mxu1  ;;  %v4459_v20 = vsel %vm151_vm0, %v10131_v34, 0.0  ;;  %v13219_v34 = vld [vmem:[#allocation301_spill] sm:$0xff] }
 0x537   :  { %13214 = vst [vmem:[#allocation210_spill] sm:$0xff] %v10140_v17  ;;  %v4389_v29 = vadd.f32 %v4388_v14, %v4387_v52  ;;  %v4457_v0 = vsel %vm151_vm0, %v10140_v17, 0.0  ;;  %v10148_v11 = vpop.permute.xlu0 %3144  ;;  %v3297_v52 = vsel %vm151_vm0, %v13063_v42, %v13215_v13  ;;  %v13218_v42 = vld [vmem:[#allocation93_spill] sm:$0xff] }
 0x538   :  { %v4458_v5 = vadd.f32 %v4457_v0, %v4456_v39  ;;  %v3745_v3 = vsel %vm3718_vm8, %v3680_v23, %v10148_v11  ;;  %v10156_v16 = vpop.permute.xlu1 %3204  ;;  %v3327_v39 = vsel %vm151_vm0, %v13067_v1, %v13216_v48  ;;  %v13217_v23 = vld [vmem:[#allocation256_spill] sm:$0xff] }
 0x539   :  { %v3777_v32 = vsel %vm3718_vm8, %v3712_v37, %v10156_v16  ;;  %5362 = vmatprep.mubr.msk.f32.mxu0 %vm3783_vm9, %v3745_v3  ;;  %v4391_v14 = vadd.f32 %v4390_v19, %v4389_v29  ;;  %v3358_v0 = vsel %vm3332_vm2, %v3297_v52, %v13217_v23  ;;  %v3388_v13 = vsel %vm3332_vm2, %v3327_v39, %v13218_v42  ;;  %v13221_v19 = vld [vmem:[#allocation344_spill] sm:$0xff] }
 0x53a   :  { %5410 = vmatprep.mubr.msk.f32.mxu1 %vm3783_vm9, %v3777_v32  ;;  %v4460_v17 = vadd.f32 %v4459_v20, %v4458_v5  ;;  %v3421_v35 = vsel %vm3393_vm3, %v3358_v0, %v13219_v34  ;;  %v3453_v29 = vsel %vm3393_vm3, %v3388_v13, %v13220_v57  ;;  %v13222_v48 = vld [vmem:[#allocation360_spill] sm:$0xff] }
 0x53b   :  { %v2597_v37 = vpop.permute.xlu0 %2596  ;;  %v3486_v3 = vsel %vm3458_vm4, %v3421_v35, %v13221_v19  ;;  %v3518_v52 = vsel %vm3458_vm4, %v3453_v29, %v13222_v48 }
 0x53c   :  { %v2661_v1 = vpop.permute.xlu1 %2660  ;;  %v3551_v32 = vsel %vm3523_vm5, %v3486_v3, %v2595_v40  ;;  %v3583_v5 = vsel %vm3523_vm5, %v3518_v52, %v2659_v2 }
 0x53d   :  { %v3616_v20 = vsel %vm3588_vm6, %v3551_v32, %v10098_v38  ;;  %v3648_v34 = vsel %vm3588_vm6, %v3583_v5, %v10100_v36  ;;  %v13223_v32 = vld [vmem:[#allocation170_spill] sm:$0xff] }
 0x53e   :  { %v3681_v57 = vsel %vm3653_vm7, %v3616_v20, %v10118_v59  ;;  %v3713_v35 = vsel %vm3653_vm7, %v3648_v34, %v10124_v25  ;;  %v3298_v5 = vsel %vm151_vm0, %v13089_v7, %v13223_v32  ;;  %v13224_v20 = vld [vmem:[#allocation139_spill] sm:$0xff]  ;;  %v13230_v32 = vld [vmem:[#allocation345_spill] sm:$0xff] }
 0x53f   :  { %v10190_v39 = vpop.permute.xlu0 %3146  ;;  %v3328_v34 = vsel %vm151_vm0, %v13090_v8, %v13224_v20 }
 0x540   :  { %v3746_v23 = vsel %vm3718_vm8, %v3681_v57, %v10190_v39  ;;  %v10196_v40 = vpop.permute.xlu1 %3206  ;;  %v13225_v57 = vld [vmem:[#allocation257_spill] sm:$0xff] }
 0x541   :  { %v3778_v2 = vsel %vm3718_vm8, %v3713_v35, %v10196_v40  ;;  %5363 = vmatmul.mubr.msk.f32.gmra.mrb[26].mxu0 %vm3783_vm9, %v3746_v23  ;;  %v3359_v35 = vsel %vm3332_vm2, %v3298_v5, %v13225_v57  ;;  %v13226_v23 = vld [vmem:[#allocation18_spill] sm:$0xff]  ;;  %v13231_v5 = vld [vmem:[#allocation175_spill] sm:$0xff] }
 0x542   :  { %5411 = vmatmul.mubr.msk.f32.gmra.mrb[26].mxu1 %vm3783_vm9, %v3778_v2  ;;  %v3389_v2 = vsel %vm3332_vm2, %v3328_v34, %v13226_v23  ;;  %v3422_v33 = vsel %vm3393_vm3, %v3359_v35, %v13227_v21  ;;  %v3300_v34 = vsel %vm151_vm0, %v13119_v15, %v13231_v5  ;;  %v13232_v57 = vld [vmem:[#allocation227_spill] sm:$0xff]  ;;  %v13233_v35 = vld [vmem:[#allocation98_spill] sm:$0xff] }
 0x543   :  { %v2599_v0 = vpop.permute.xlu0 %2598  ;;  %v3454_v7 = vsel %vm3393_vm3, %v3389_v2, %v13229_v45  ;;  %v3487_v8 = vsel %vm3458_vm4, %v3422_v33, %v13230_v32  ;;  %v3329_v21 = vsel %vm151_vm0, %v13095_v10, %v13232_v57  ;;  %v13234_v33 = vld [vmem:[#allocation232_spill] sm:$0xff] }
 0x544   :  { %v10202_v42 = vpop.permute.xlu1 %2662  ;;  %v3519_v47 = vsel %vm3458_vm4, %v3454_v7, %v13233_v35  ;;  %v3552_v12 = vsel %vm3523_vm5, %v3487_v8, %v2597_v37  ;;  %v3330_v2 = vsel %vm151_vm0, %v13120_v55, %v13234_v33  ;;  %v13235_v33 = vld [vmem:[#allocation259_spill] sm:$0xff] }
 0x545   :  { %v3584_v32 = vsel %vm3523_vm5, %v3519_v47, %v2661_v1  ;;  %v3361_v61 = vsel %vm3332_vm2, %v3300_v34, %v13235_v33 }
 0x547   :  { %v2789_v13 = vpop.permute.xlu0 %2788 }
 0x548   :  { %v2849_v29 = vpop.permute.xlu1 %2848  ;;  %v3617_v15 = vsel %vm3588_vm6, %v3552_v12, %v2789_v13 }
 0x549   :  { %v3649_v7 = vsel %vm3588_vm6, %v3584_v32, %v2849_v29 }
 0x54b   :  { %v2791_v19 = vpop.permute.xlu0 %2790 }
 0x54c   :  { %v10204_v3 = vpop.permute.xlu1 %2850 }
 0x54f   :  { %v2969_v48 = vpop.permute.xlu0 %2968 }
 0x550   :  { %v3029_v52 = vpop.permute.xlu1 %3028  ;;  %v3682_v37 = vsel %vm3653_vm7, %v3617_v15, %v2969_v48  ;;  %v13237_v15 = vld [vmem:[#allocation283_spill] sm:$0xff] }
 0x551   :  { %v3714_v55 = vsel %vm3653_vm7, %v3649_v7, %v3029_v52  ;;  %v13236_v52 = vld [vmem:[#allocation258_spill] sm:$0xff] }
 0x552   :  { %v3360_v32 = vsel %vm3332_vm2, %v3299_v49, %v13236_v52 }
 0x553   :  { %v2971_v22 = vpop.permute.xlu0 %2970 }
 0x554   :  { %v3031_v20 = vpop.permute.xlu1 %3030  ;;  %v10225_v63 = vpop.f32.mrb[14].mxu0 }
 0x555   :  { %v10236_v45 = vpop.f32.mrb[14].mxu1  ;;  %v10238_v23 = vpop.f32.mrb[15].mxu0  ;;  %v4394_v1 = vsel %vm151_vm0, %v10225_v63, 0.0 }
 0x556   :  { %v4392_v10 = vsel %vm151_vm0, %v10238_v23, 0.0  ;;  %v10247_v5 = vpop.f32.mrb[15].mxu1  ;;  %v4463_v29 = vsel %vm151_vm0, %v10236_v45, 0.0 }
 0x557   :  { %v4393_v8 = vadd.f32 %v4392_v10, %v4391_v14  ;;  %v4461_v57 = vsel %vm151_vm0, %v10247_v5, 0.0  ;;  %v3149_v35 = vpop.permute.xlu0 %3148  ;;  %v13238_v10 = vld [vmem:[#allocation304_spill] sm:$0xff] }
 0x558   :  { %v4462_v13 = vadd.f32 %v4461_v57, %v4460_v17  ;;  %v3747_v47 = vsel %vm3718_vm8, %v3682_v37, %v3149_v35  ;;  %v3209_v12 = vpop.permute.xlu1 %3208  ;;  %v3391_v17 = vsel %vm3332_vm2, %v3330_v2, %v13237_v15  ;;  %v3424_v7 = vsel %vm3393_vm3, %v3361_v61, %v13238_v10  ;;  %v13239_v37 = vld [vmem:[#allocation282_spill] sm:$0xff]  ;;  %v13240_v35 = vld [vmem:[#allocation303_spill] sm:$0xff]  ;;  %v13243_v2 = vld [vmem:[#allocation325_spill] sm:$0xff] }
 0x559   :  { %v3779_v14 = vsel %vm3718_vm8, %v3714_v55, %v3209_v12  ;;  %5365 = vmatprep.mubr.msk.f32.mxu0 %vm3783_vm9, %v3747_v47  ;;  %v10263_v48 = vadd.f32 %v4394_v1, %v4393_v8  ;;  %v3390_v57 = vsel %vm3332_vm2, %v3329_v21, %v13239_v37  ;;  %v3423_v55 = vsel %vm3393_vm3, %v3360_v32, %v13240_v35  ;;  %v13241_v8 = vld [vmem:[#allocation326_spill] sm:$0xff]  ;;  %v13242_v47 = vld [vmem:[#allocation347_spill] sm:$0xff]  ;;  %v13246_v32 = vld [vmem:[#allocation361_spill] sm:$0xff] }
 0x55a   :  { %5413 = vmatprep.mubr.msk.f32.mxu1 %vm3783_vm9, %v3779_v14  ;;  %v4464_v34 = vadd.f32 %v4463_v29, %v4462_v13  ;;  %v3456_v1 = vsel %vm3393_vm3, %v3391_v17, %v13241_v8  ;;  %v3489_v49 = vsel %vm3458_vm4, %v3424_v7, %v13242_v47  ;;  %v3455_v33 = vsel %vm3393_vm3, %v3390_v57, %v13243_v2  ;;  %v13244_v61 = vld [vmem:[#allocation346_spill] sm:$0xff]  ;;  %v13247_v47 = vld [vmem:[#allocation176_spill] sm:$0xff] }
 0x55b   :  { %v2601_v12 = vpop.permute.xlu0 %2600  ;;  %v3488_v14 = vsel %vm3458_vm4, %v3423_v55, %v13244_v61  ;;  %v13245_v13 = vld [vmem:[#allocation362_spill] sm:$0xff]  ;;  %v3520_v15 = vsel %vm3458_vm4, %v3455_v33, %v13246_v32  ;;  %v13251_v33 = vld [vmem:[#allocation305_spill] sm:$0xff] }
 0x55c   :  { %v3521_v29 = vsel %vm3458_vm4, %v3456_v1, %v13245_v13  ;;  %v3554_v21 = vsel %vm3523_vm5, %v3489_v49, %v2601_v12  ;;  %v2665_v52 = vpop.permute.xlu1 %2664  ;;  %v3553_v17 = vsel %vm3523_vm5, %v3488_v14, %v2599_v0  ;;  %v3585_v37 = vsel %vm3523_vm5, %v3520_v15, %v10202_v42  ;;  %v13248_v12 = vld [vmem:[#allocation233_spill] sm:$0xff]  ;;  %v13252_v14 = vld [vmem:[#allocation327_spill] sm:$0xff] }
 0x55d   :  { %v3619_v10 = vsel %vm3588_vm6, %v3554_v21, %v10094_v41  ;;  %v3586_v7 = vsel %vm3523_vm5, %v3521_v29, %v2665_v52  ;;  %v3618_v57 = vsel %vm3588_vm6, %v3553_v17, %v2791_v19  ;;  %v3650_v8 = vsel %vm3588_vm6, %v3585_v37, %v10204_v3  ;;  %v13249_v3 = vld [vmem:[#allocation260_spill] sm:$0xff]  ;;  %v13254_v52 = vld [vmem:[#allocation363_spill] sm:$0xff] }
 0x55e   :  { %v3651_v35 = vsel %vm3588_vm6, %v3586_v7, %v10096_v4  ;;  %v3684_v55 = vsel %vm3653_vm7, %v3619_v10, %v10102_v26  ;;  %v3683_v0 = vsel %vm3653_vm7, %v3618_v57, %v2971_v22  ;;  %v3301_v42 = vsel %vm151_vm0, %v13122_v30, %v13247_v47  ;;  %v13250_v30 = vld [vmem:[#allocation284_spill] sm:$0xff] }
 0x55f   :  { %v3151_v1 = vpop.permute.xlu0 %3150  ;;  %v3716_v41 = vsel %vm3653_vm7, %v3651_v35, %v10104_v51  ;;  %v3715_v19 = vsel %vm3653_vm7, %v3650_v8, %v3031_v20  ;;  %v3331_v26 = vsel %vm151_vm0, %v13125_v31, %v13248_v12  ;;  %v3362_v22 = vsel %vm3332_vm2, %v3301_v42, %v13249_v3  ;;  %v13253_v29 = vld [vmem:[#allocation348_spill] sm:$0xff] }
 0x560   :  { %v3748_v4 = vsel %vm3718_vm8, %v3683_v0, %v3151_v1  ;;  %v3211_v49 = vpop.permute.xlu1 %3210  ;;  %v3749_v51 = vsel %vm3718_vm8, %v3684_v55, %v10148_v11  ;;  %v3392_v20 = vsel %vm3332_vm2, %v3331_v26, %v13250_v30  ;;  %v3425_v61 = vsel %vm3393_vm3, %v3362_v22, %v13251_v33 }
 0x561   :  { %v3780_v2 = vsel %vm3718_vm8, %v3715_v19, %v3211_v49  ;;  %5366 = vmatmul.mubr.msk.f32.gmra.mrb[28].mxu0 %vm3783_vm9, %v3748_v4  ;;  %v3781_v31 = vsel %vm3718_vm8, %v3716_v41, %v10156_v16  ;;  %v3457_v13 = vsel %vm3393_vm3, %v3392_v20, %v13252_v14  ;;  %v3490_v21 = vsel %vm3458_vm4, %v3425_v61, %v13253_v29 }
 0x562   :  { %5414 = vmatmul.mubr.msk.f32.gmra.mrb[28].mxu1 %vm3783_vm9, %v3780_v2  ;;  %5368 = vmatprep.mubr.msk.f32.mxu0 %vm3783_vm9, %v3749_v51  ;;  %v3522_v32 = vsel %vm3458_vm4, %v3457_v13, %v13254_v52 }
 0x563   :  { %5416 = vmatprep.mubr.msk.f32.mxu1 %vm3783_vm9, %v3781_v31  ;;  %v2603_v11 = vpop.permute.xlu0 %2602 }
 0x564   :  { %v3555_v15 = vsel %vm3523_vm5, %v3490_v21, %v2603_v11  ;;  %v2667_v17 = vpop.permute.xlu1 %2666 }
 0x565   :  { %v3620_v10 = vsel %vm3588_vm6, %v3555_v15, %v10098_v38  ;;  %v3587_v16 = vsel %vm3523_vm5, %v3522_v32, %v2667_v17 }
 0x566   :  { %v3652_v7 = vsel %vm3588_vm6, %v3587_v16, %v10100_v36  ;;  %v3685_v37 = vsel %vm3653_vm7, %v3620_v10, %v10118_v59 }
 0x567   :  { %v3750_v57 = vsel %vm3718_vm8, %v3685_v37, %v10190_v39  ;;  %v3717_v35 = vsel %vm3653_vm7, %v3652_v7, %v10124_v25 }
 0x568   :  { %5369 = vmatmul.mubr.msk.f32.gmra.mrb[30].mxu0 %vm3783_vm9, %v3750_v57  ;;  %v3782_v55 = vsel %vm3718_vm8, %v3717_v35, %v10196_v40 }
 0x569   :  { %5417 = vmatmul.mubr.msk.f32.gmra.mrb[30].mxu1 %vm3783_vm9, %v3782_v55 }
 0x574   :  { %v10350_v38 = vpop.f32.mrb[16].mxu0 }
 0x575   :  { %v10352_v8 = vpop.f32.mrb[16].mxu1  ;;  %v10354_v36 = vpop.f32.mrb[17].mxu0  ;;  %v4398_v40 = vsel %vm151_vm0, %v10350_v38, 0.0 }
 0x576   :  { %v4396_v59 = vsel %vm151_vm0, %v10354_v36, 0.0  ;;  %v10358_v39 = vpop.f32.mrb[17].mxu1  ;;  %v4467_v41 = vsel %vm151_vm0, %v10352_v8, 0.0 }
 0x577   :  { %v4397_v25 = vadd.f32 %v4396_v59, %v10263_v48  ;;  %v4465_v0 = vsel %vm151_vm0, %v10358_v39, 0.0 }
 0x578   :  { %v4466_v1 = vadd.f32 %v4465_v0, %v4464_v34 }
 0x579   :  { %v4399_v47 = vadd.f32 %v4398_v40, %v4397_v25 }
 0x57a   :  { %v4468_v42 = vadd.f32 %v4467_v41, %v4466_v1 }
 0x594   :  { %v10367_v19 = vpop.f32.mrb[18].mxu0 }
 0x595   :  { %v10369_v4 = vpop.f32.mrb[18].mxu1  ;;  %v10371_v49 = vpop.f32.mrb[19].mxu0  ;;  %v4402_v3 = vsel %vm151_vm0, %v10367_v19, 0.0 }
 0x596   :  { %v4400_v48 = vsel %vm151_vm0, %v10371_v49, 0.0  ;;  %v10375_v12 = vpop.f32.mrb[19].mxu1  ;;  %v4471_v2 = vsel %vm151_vm0, %v10369_v4, 0.0 }
 0x597   :  { %v4401_v26 = vadd.f32 %v4400_v48, %v4399_v47  ;;  %v4469_v34 = vsel %vm151_vm0, %v10375_v12, 0.0 }
 0x598   :  { %v4470_v22 = vadd.f32 %v4469_v34, %v4468_v42 }
 0x599   :  { %v4403_v51 = vadd.f32 %v4402_v3, %v4401_v26 }
 0x59a   :  { %v4472_v30 = vadd.f32 %v4471_v2, %v4470_v22 }
 0x5b4   :  { %v10383_v20 = vpop.f32.mrb[20].mxu0 }
 0x5b5   :  { %v10385_v33 = vpop.f32.mrb[20].mxu1  ;;  %v10387_v61 = vpop.f32.mrb[21].mxu0  ;;  %v4406_v21 = vsel %vm151_vm0, %v10383_v20, 0.0 }
 0x5b6   :  { %v4404_v31 = vsel %vm151_vm0, %v10387_v61, 0.0  ;;  %v10391_v14 = vpop.f32.mrb[21].mxu1  ;;  %v4475_v52 = vsel %vm151_vm0, %v10385_v33, 0.0 }
 0x5b7   :  { %v4405_v13 = vadd.f32 %v4404_v31, %v4403_v51  ;;  %v4473_v29 = vsel %vm151_vm0, %v10391_v14, 0.0 }
 0x5b8   :  { %v4474_v11 = vadd.f32 %v4473_v29, %v4472_v30 }
 0x5b9   :  { %v4407_v32 = vadd.f32 %v4406_v21, %v4405_v13 }
 0x5ba   :  { %v4476_v15 = vadd.f32 %v4475_v52, %v4474_v11 }
 0x5d4   :  { %v10399_v17 = vpop.f32.mrb[22].mxu0 }
 0x5d5   :  { %v10401_v10 = vpop.f32.mrb[22].mxu1  ;;  %v10403_v16 = vpop.f32.mrb[23].mxu0  ;;  %v4410_v55 = vsel %vm151_vm0, %v10399_v17, 0.0 }
 0x5d6   :  { %v4408_v7 = vsel %vm151_vm0, %v10403_v16, 0.0  ;;  %v10407_v37 = vpop.f32.mrb[23].mxu1  ;;  %v4479_v25 = vsel %vm151_vm0, %v10401_v10, 0.0 }
 0x5d7   :  { %v4409_v57 = vadd.f32 %v4408_v7, %v4407_v32  ;;  %v4477_v35 = vsel %vm151_vm0, %v10407_v37, 0.0 }
 0x5d8   :  { %v4478_v59 = vadd.f32 %v4477_v35, %v4476_v15 }
 0x5d9   :  { %v4411_v0 = vadd.f32 %v4410_v55, %v4409_v57 }
 0x5da   :  { %v4480_v40 = vadd.f32 %v4479_v25, %v4478_v59 }
 0x5f4   :  { %v10415_v1 = vpop.f32.mrb[24].mxu0 }
 0x5f5   :  { %v10417_v41 = vpop.f32.mrb[24].mxu1  ;;  %v10419_v47 = vpop.f32.mrb[25].mxu0  ;;  %v4414_v3 = vsel %vm151_vm0, %v10415_v1, 0.0 }
 0x5f6   :  { %13255 = vst [vmem:[#allocation51_spill] sm:$0xff] %v10417_v41  ;;  %v4412_v42 = vsel %vm151_vm0, %v10419_v47, 0.0  ;;  %v10423_v48 = vpop.f32.mrb[25].mxu1  ;;  %v4483_v2 = vsel %vm151_vm0, %v10417_v41, 0.0 }
 0x5f7   :  { %13256 = vst [vmem:[#allocation109_spill] sm:$0xff] %v10423_v48  ;;  %v4413_v26 = vadd.f32 %v4412_v42, %v4411_v0  ;;  %v4481_v34 = vsel %vm151_vm0, %v10423_v48, 0.0 }
 0x5f8   :  { %v4482_v22 = vadd.f32 %v4481_v34, %v4480_v40 }
 0x5f9   :  { %v4415_v51 = vadd.f32 %v4414_v3, %v4413_v26 }
 0x5fa   :  { %v4484_v30 = vadd.f32 %v4483_v2, %v4482_v22 }
 0x614   :  { %v10431_v31 = vpop.f32.mrb[26].mxu0 }
 0x615   :  { %v10433_v13 = vpop.f32.mrb[26].mxu1  ;;  %v10435_v29 = vpop.f32.mrb[27].mxu0  ;;  %v4418_v15 = vsel %vm151_vm0, %v10431_v31, 0.0 }
 0x616   :  { %13257 = vst [vmem:[#allocation52_spill] sm:$0xff] %v10433_v13  ;;  %v4416_v21 = vsel %vm151_vm0, %v10435_v29, 0.0  ;;  %v10439_v11 = vpop.f32.mrb[27].mxu1  ;;  %v4487_v57 = vsel %vm151_vm0, %v10433_v13, 0.0 }
 0x617   :  { %13258 = vst [vmem:[#allocation54_spill] sm:$0xff] %v10439_v11  ;;  %v4417_v52 = vadd.f32 %v4416_v21, %v4415_v51  ;;  %v4485_v32 = vsel %vm151_vm0, %v10439_v11, 0.0 }
 0x618   :  { %v4486_v7 = vadd.f32 %v4485_v32, %v4484_v30 }
 0x619   :  { %v4419_v35 = vadd.f32 %v4418_v15, %v4417_v52 }
 0x61a   :  { %v4488_v55 = vadd.f32 %v4487_v57, %v4486_v7 }
 0x634   :  { %v10447_v59 = vpop.f32.mrb[28].mxu0 }
 0x635   :  { %v10449_v25 = vpop.f32.mrb[28].mxu1  ;;  %v4186_v0 = vpop.f32.mrb[29].mxu0  ;;  %v4422_v3 = vsel %vm151_vm0, %v10447_v59, 0.0 }
 0x636   :  { %13259 = vst [vmem:[#allocation3_spill] sm:$0xff] %v10449_v25  ;;  %v4420_v40 = vsel %vm151_vm0, %v4186_v0, 0.0  ;;  %v10452_v42 = vpop.f32.mrb[29].mxu1  ;;  %v4491_v2 = vsel %vm151_vm0, %v10449_v25, 0.0 }
 0x637   :  { %13260 = vst [vmem:[#allocation106_spill] sm:$0xff] %v10452_v42  ;;  %v4421_v26 = vadd.f32 %v4420_v40, %v4419_v35  ;;  %v4489_v34 = vsel %vm151_vm0, %v10452_v42, 0.0 }
 0x638   :  { %v4490_v22 = vadd.f32 %v4489_v34, %v4488_v55 }
 0x639   :  { %v4423_v51 = vadd.f32 %v4422_v3, %v4421_v26 }
 0x63a   :  { %v4492_v30 = vadd.f32 %v4491_v2, %v4490_v22 }
 0x63b   :  { %v5370_v21 = vpop.f32.mrb[30].mxu0 }
 0x63c   :  { %v10460_v52 = vpop.f32.mrb[30].mxu1  ;;  %v4196_v32 = vpop.f32.mrb[31].mxu0  ;;  %v4426_v40 = vsel %vm151_vm0, %v5370_v21, 0.0 }
 0x63d   :  { %v4424_v15 = vsel %vm151_vm0, %v4196_v32, 0.0  ;;  %v10463_v7 = vpop.f32.mrb[31].mxu1  ;;  %v4495_v34 = vsel %vm151_vm0, %v10460_v52, 0.0 }
 0x63e   :  { %13261 = vst [vmem:[#allocation16_spill] sm:$0xff] %v10463_v7  ;;  %v4425_v57 = vadd.f32 %v4424_v15, %v4423_v51  ;;  %v4493_v35 = vsel %vm151_vm0, %v10463_v7, 0.0 }
 0x63f   :  { %v4494_v55 = vadd.f32 %v4493_v35, %v4492_v30 }
 0x640   :  { %v4427_v26 = vadd.f32 %v4426_v40, %v4425_v57 }
 0x641   :  { %v4496_v3 = vadd.f32 %v4495_v34, %v4494_v55 }
 0x642   :  { %v4428_v22 = vrot.slane %v4427_v26, 4 }
 0x643   :  { %v4497_v42 = vrot.slane %v4496_v3, 4 }
 0x644   :  { %v4429_v2 = vadd.f32 %v4428_v22, %v4427_v26 }
 0x645   :  { %v4498_v41 = vadd.f32 %v4497_v42, %v4496_v3 }
 0x646   :  { %v4430_v25 = vrot.slane %v4429_v2, 2 }
 0x647   :  { %v4499_v15 = vrot.slane %v4498_v41, 2 }
 0x648   :  { %v4431_v13 = vadd.f32 %v4430_v25, %v4429_v2 }
 0x64a   :  { %v4432_v11 = vrot.slane %v4431_v13, 1 }
 0x64c   :  { %v4433_v48 = vadd.f32 %v4432_v11, %v4431_v13 }
 0x64e   :  { %v4503_v51 = vmul.f32 0.00390625, %v4433_v48 }
 0x650   :  { %v10471_v7 = vsub.f32 %v9570_v60, %v4503_v51  ;;  %v10474_v30 = vsub.f32 %v9564_v58, %v4503_v51  ;;  %v10477_v35 = vsub.f32 %v9678_v9, %v4503_v51  ;;  %v10480_v57 = vsub.f32 %v9674_v62, %v4503_v51 }
 0x651   :  { %v10483_v40 = vsub.f32 %v9784_v24, %v4503_v51  ;;  %v10486_v25 = vsub.f32 %v9779_v27, %v4503_v51  ;;  %v10489_v48 = vsub.f32 %v9894_v54, %v4503_v51  ;;  %v10492_v60 = vsub.f32 %v9884_v6, %v4503_v51 }
 0x652   :  { %13262 = vst [vmem:[#allocation71_spill] sm:$0xff] %v10471_v7  ;;  %13263 = vst [vmem:[#allocation21_spill] sm:$0xff] %v10474_v30  ;;  %v10495_v58 = vsub.f32 %v9985_v50, %v4503_v51  ;;  %v10498_v9 = vsub.f32 %v9977_v28, %v4503_v51  ;;  %v10501_v62 = vsub.f32 %v10045_v56, %v4503_v51 }
 0x653   :  { %13264 = vst [vmem:[#allocation55_spill] sm:$0xff] %v10477_v35  ;;  %13265 = vst [vmem:[#allocation236_spill] sm:$0xff] %v10480_v57  ;;  %v10504_v24 = vsub.f32 %v10041_v43, %v4503_v51  ;;  %v10507_v27 = vsub.f32 %v10133_v46, %v4503_v51  ;;  %v10510_v54 = vsub.f32 %v10126_v44, %v4503_v51 }
 0x654   :  { %13266 = vst [vmem:[#allocation264_spill] sm:$0xff] %v10483_v40  ;;  %13267 = vst [vmem:[#allocation4_spill] sm:$0xff] %v10486_v25  ;;  %v10513_v6 = vsub.f32 %v10238_v23, %v4503_v51  ;;  %v10516_v50 = vsub.f32 %v10225_v63, %v4503_v51  ;;  %v10519_v28 = vsub.f32 %v10354_v36, %v4503_v51 }
 0x655   :  { %13268 = vst [vmem:[#allocation286_spill] sm:$0xff] %v10489_v48  ;;  %13269 = vst [vmem:[#allocation308_spill] sm:$0xff] %v10492_v60  ;;  %v10522_v56 = vsub.f32 %v10350_v38, %v4503_v51  ;;  %v10525_v43 = vsub.f32 %v10371_v49, %v4503_v51  ;;  %v10528_v46 = vsub.f32 %v10367_v19, %v4503_v51 }
 0x656   :  { %13270 = vst [vmem:[#allocation330_spill] sm:$0xff] %v10495_v58  ;;  %13271 = vst [vmem:[#allocation111_spill] sm:$0xff] %v10498_v9  ;;  %v10531_v44 = vsub.f32 %v10387_v61, %v4503_v51  ;;  %v10534_v23 = vsub.f32 %v10383_v20, %v4503_v51  ;;  %v10537_v63 = vsub.f32 %v10403_v16, %v4503_v51 }
 0x657   :  { %13272 = vst [vmem:[#allocation17_spill] sm:$0xff] %v10501_v62  ;;  %13273 = vst [vmem:[#allocation53_spill] sm:$0xff] %v10504_v24  ;;  %v10540_v36 = vsub.f32 %v10399_v17, %v4503_v51  ;;  %v10543_v38 = vsub.f32 %v10419_v47, %v4503_v51  ;;  %v10546_v49 = vsub.f32 %v10415_v1, %v4503_v51 }
 0x658   :  { %13274 = vst [vmem:[#allocation237_spill] sm:$0xff] %v10507_v27  ;;  %v10549_v19 = vsub.f32 %v10435_v29, %v4503_v51  ;;  %v10552_v61 = vsub.f32 %v10431_v31, %v4503_v51  ;;  %v10554_v20 = vsub.f32 %v4186_v0, %v4503_v51  ;;  %v10557_v16 = vsub.f32 %v10447_v59, %v4503_v51 }
 0x659   :  { %v10559_v13 = vsub.f32 %v4196_v32, %v4503_v51  ;;  %v10561_v17 = vsub.f32 %v5370_v21, %v4503_v51  ;;  %v4500_v47 = vadd.f32 %v4499_v15, %v4498_v41  ;;  %v4569_v1 = vmul.f32 %v10471_v7, %v10471_v7 }
 0x65a   :  { %v4570_v29 = vmul.f32 %v10474_v30, %v10474_v30  ;;  %v4571_v31 = vmul.f32 %v10477_v35, %v10477_v35  ;;  %v4572_v0 = vmul.f32 %v10480_v57, %v10480_v57  ;;  %v4573_v41 = vmul.f32 %v10483_v40, %v10483_v40 }
 0x65b   :  { %v4501_v11 = vrot.slane %v4500_v47, 1  ;;  %v4633_v59 = vsel %vm151_vm0, %v4569_v1, 0.0  ;;  %v4574_v34 = vmul.f32 %v10486_v25, %v10486_v25  ;;  %v4575_v26 = vmul.f32 %v10489_v48, %v10489_v48 }
 0x65c   :  { %v4634_v42 = vsel %vm151_vm0, %v4570_v29, 0.0  ;;  %v4636_v55 = vsel %vm151_vm0, %v4571_v31, 0.0  ;;  %v4576_v22 = vmul.f32 %v10492_v60, %v10492_v60  ;;  %v4577_v2 = vmul.f32 %v10495_v58, %v10495_v58 }
 0x65d   :  { %v4635_v21 = vadd.f32 %v4634_v42, %v4633_v59  ;;  %v4502_v32 = vadd.f32 %v4501_v11, %v4500_v47  ;;  %v4578_v51 = vmul.f32 %v10498_v9, %v10498_v9  ;;  %v4638_v15 = vsel %vm151_vm0, %v4572_v0, 0.0 }
 0x65e   :  { %v4640_v29 = vsel %vm151_vm0, %v4573_v41, 0.0  ;;  %v4579_v11 = vmul.f32 %v10501_v62, %v10501_v62  ;;  %v4580_v31 = vmul.f32 %v10504_v24, %v10504_v24  ;;  %v4642_v42 = vsel %vm151_vm0, %v4574_v34, 0.0 }
 0x65f   :  { %v4637_v3 = vadd.f32 %v4636_v55, %v4635_v21  ;;  %v4504_v1 = vmul.f32 0.00390625, %v4502_v32  ;;  %v4644_v21 = vsel %vm151_vm0, %v4575_v26, 0.0  ;;  %v4646_v55 = vsel %vm151_vm0, %v4576_v22, 0.0  ;;  %v13281_v26 = vld [vmem:[#allocation5_spill] sm:$0xff]  ;;  %v13283_v22 = vld [vmem:[#allocation180_spill] sm:$0xff] }
 0x660   :  { %v4648_v9 = vsel %vm151_vm0, %v4577_v2, 0.0  ;;  %v4650_v0 = vsel %vm151_vm0, %v4578_v51, 0.0  ;;  %v13285_v51 = vld [vmem:[#allocation285_spill] sm:$0xff] }
 0x661   :  { %v4639_v47 = vadd.f32 %v4638_v15, %v4637_v3  ;;  %v10598_v41 = vsub.f32 %v9584_v18, %v4504_v1  ;;  %v10601_v3 = vsub.f32 %v9578_v53, %v4504_v1  ;;  %v13277_v15 = vld [vmem:[#allocation35_spill] sm:$0xff]  ;;  %v10613_v2 = vsub.f32 %v13283_v22, %v4504_v1  ;;  %v13289_v53 = vld [vmem:[#allocation181_spill] sm:$0xff]  ;;  %v13297_v22 = vld [vmem:[#allocation210_spill] sm:$0xff] }
 0x662   :  { %v10604_v24 = vsub.f32 %v13277_v15, %v4504_v1  ;;  %v10622_v58 = vsub.f32 %v13289_v53, %v4504_v1  ;;  %v13291_v15 = vld [vmem:[#allocation328_spill] sm:$0xff]  ;;  %v10634_v40 = vsub.f32 %v13297_v22, %v4504_v1  ;;  %v10643_v53 = vsub.f32 %v10236_v45, %v4504_v1 }
 0x663   :  { %v4641_v59 = vadd.f32 %v4640_v29, %v4639_v47  ;;  %13275 = vst [vmem:[#allocation110_spill] sm:$0xff] %v10598_v41  ;;  %13276 = vst [vmem:[#allocation287_spill] sm:$0xff] %v10601_v3  ;;  %v13279_v47 = vld [vmem:[#allocation207_spill] sm:$0xff]  ;;  %v10610_v29 = vsub.f32 %v13281_v26, %v4504_v1  ;;  %v10625_v60 = vsub.f32 %v13291_v15, %v4504_v1  ;;  %v13295_v26 = vld [vmem:[#allocation261_spill] sm:$0xff] }
 0x664   :  { %13278 = vst [vmem:[#allocation331_spill] sm:$0xff] %v10604_v24  ;;  %v10607_v34 = vsub.f32 %v13279_v47, %v4504_v1  ;;  %13284 = vst [vmem:[#allocation265_spill] sm:$0xff] %v10613_v2  ;;  %v13293_v47 = vld [vmem:[#allocation173_spill] sm:$0xff]  ;;  %v10631_v25 = vsub.f32 %v13295_v26, %v4504_v1  ;;  %v10646_v15 = vsub.f32 %v10358_v39, %v4504_v1 }
 0x665   :  { %v4643_v32 = vadd.f32 %v4642_v42, %v4641_v59  ;;  %13282 = vst [vmem:[#allocation23_spill] sm:$0xff] %v10610_v29  ;;  %v10616_v59 = vsub.f32 %v13285_v51, %v4504_v1  ;;  %v13287_v42 = vld [vmem:[#allocation209_spill] sm:$0xff]  ;;  %13290 = vst [vmem:[#allocation211_spill] sm:$0xff] %v10622_v58  ;;  %v10628_v48 = vsub.f32 %v13293_v47, %v4504_v1  ;;  %v13299_v51 = vld [vmem:[#allocation306_spill] sm:$0xff] }
 0x666   :  { %13280 = vst [vmem:[#allocation184_spill] sm:$0xff] %v10607_v34  ;;  %v10619_v62 = vsub.f32 %v13287_v42, %v4504_v1  ;;  %13292 = vst [vmem:[#allocation56_spill] sm:$0xff] %v10625_v60  ;;  %v10640_v42 = vsub.f32 %v10247_v5, %v4504_v1  ;;  %v10649_v47 = vsub.f32 %v10352_v8, %v4504_v1  ;;  %v13311_v8 = vld [vmem:[#allocation109_spill] sm:$0xff] }
 0x667   :  { %13286 = vst [vmem:[#allocation174_spill] sm:$0xff] %v10616_v59  ;;  %v4645_v18 = vadd.f32 %v4644_v21, %v4643_v32  ;;  %13294 = vst [vmem:[#allocation112_spill] sm:$0xff] %v10628_v48  ;;  %v10637_v21 = vsub.f32 %v13299_v51, %v4504_v1  ;;  %v10652_v26 = vsub.f32 %v10375_v12, %v4504_v1  ;;  %v13312_v12 = vld [vmem:[#allocation51_spill] sm:$0xff] }
 0x668   :  { %13288 = vst [vmem:[#allocation309_spill] sm:$0xff] %v10619_v62  ;;  %13296 = vst [vmem:[#allocation57_spill] sm:$0xff] %v10631_v25  ;;  %v10655_v22 = vsub.f32 %v10369_v4, %v4504_v1  ;;  %v10664_v45 = vsub.f32 %v10407_v37, %v4504_v1  ;;  %v10667_v39 = vsub.f32 %v10401_v10, %v4504_v1  ;;  %v13313_v4 = vld [vmem:[#allocation54_spill] sm:$0xff]  ;;  %v13316_v37 = vld [vmem:[#allocation3_spill] sm:$0xff] }
 0x669   :  { %13298 = vst [vmem:[#allocation113_spill] sm:$0xff] %v10634_v40  ;;  %13300 = vst [vmem:[#allocation58_spill] sm:$0xff] %v10637_v21  ;;  %v4647_v32 = vadd.f32 %v4646_v55, %v4645_v18  ;;  %v10658_v55 = vsub.f32 %v10391_v14, %v4504_v1  ;;  %v10661_v18 = vsub.f32 %v10385_v33, %v4504_v1  ;;  %v13314_v14 = vld [vmem:[#allocation52_spill] sm:$0xff] }
 0x66a   :  { %13301 = vst [vmem:[#allocation117_spill] sm:$0xff] %v10640_v42  ;;  %13302 = vst [vmem:[#allocation59_spill] sm:$0xff] %v10643_v53  ;;  %v10670_v51 = vsub.f32 %v13311_v8, %v4504_v1  ;;  %v10673_v57 = vsub.f32 %v13312_v12, %v4504_v1  ;;  %v10676_v35 = vsub.f32 %v13313_v4, %v4504_v1  ;;  %v13317_v10 = vld [vmem:[#allocation16_spill] sm:$0xff]  ;;  %v4652_v12 = vsel %vm151_vm0, %v4579_v11, 0.0 }
 0x66b   :  { %13303 = vst [vmem:[#allocation118_spill] sm:$0xff] %v10646_v15  ;;  %13304 = vst [vmem:[#allocation290_spill] sm:$0xff] %v10649_v47  ;;  %v4649_v5 = vadd.f32 %v4648_v9, %v4647_v32  ;;  %v10679_v9 = vsub.f32 %v13314_v14, %v4504_v1  ;;  %v13315_v32 = vld [vmem:[#allocation106_spill] sm:$0xff]  ;;  %v10685_v7 = vsub.f32 %v13316_v37, %v4504_v1 }
 0x66c   :  { %13305 = vst [vmem:[#allocation312_spill] sm:$0xff] %v10652_v26  ;;  %13306 = vst [vmem:[#allocation334_spill] sm:$0xff] %v10655_v22  ;;  %v10682_v30 = vsub.f32 %v13315_v32, %v4504_v1  ;;  %v4581_v8 = vmul.f32 %v10507_v27, %v10507_v27  ;;  %v10694_v4 = vsub.f32 %v10460_v52, %v4504_v1 }
 0x66d   :  { %13307 = vst [vmem:[#allocation177_spill] sm:$0xff] %v10658_v55  ;;  %13308 = vst [vmem:[#allocation213_spill] sm:$0xff] %v10661_v18  ;;  %v4651_v33 = vadd.f32 %v4650_v0, %v4649_v5  ;;  %v4582_v0 = vmul.f32 %v10510_v54, %v10510_v54  ;;  %v4654_v5 = vsel %vm151_vm0, %v4580_v31, 0.0  ;;  %v4583_v37 = vmul.f32 %v10513_v6, %v10513_v6 }
 0x66e   :  { %13309 = vst [vmem:[#allocation291_spill] sm:$0xff] %v10664_v45  ;;  %13310 = vst [vmem:[#allocation335_spill] sm:$0xff] %v10667_v39  ;;  %v10688_v39 = vsub.f32 %v13317_v10, %v4504_v1  ;;  %v4656_v10 = vsel %vm151_vm0, %v4581_v8, 0.0  ;;  %v4601_v27 = vmul.f32 %v10598_v41, %v10598_v41  ;;  %v4602_v52 = vmul.f32 %v10601_v3, %v10601_v3 }
 0x66f   :  { %13319 = vst [vmem:[#allocation178_spill] sm:$0xff] %v10694_v4  ;;  %v4653_v14 = vadd.f32 %v4652_v12, %v4651_v33  ;;  %v4584_v1 = vmul.f32 %v10516_v50, %v10516_v50  ;;  %v4658_v11 = vsel %vm151_vm0, %v4582_v0, 0.0  ;;  %v4603_v31 = vmul.f32 %v10604_v24, %v10604_v24 }
 0x670   :  { %13318 = vst [vmem:[#allocation313_spill] sm:$0xff] %v10688_v39  ;;  %v4585_v12 = vmul.f32 %v10519_v28, %v10519_v28  ;;  %v4660_v8 = vsel %vm151_vm0, %v4583_v37, 0.0  ;;  %v4586_v0 = vmul.f32 %v10522_v56, %v10522_v56  ;;  %v4605_v3 = vmul.f32 %v10610_v29, %v10610_v29 }
 0x671   :  { %v4655_v32 = vadd.f32 %v4654_v5, %v4653_v14  ;;  %v4604_v5 = vmul.f32 %v10607_v34, %v10607_v34  ;;  %v4705_v37 = vsel %vm151_vm0, %v4603_v31, 0.0  ;;  %v4607_v31 = vmul.f32 %v10616_v59, %v10616_v59 }
 0x673   :  { %v4657_v39 = vadd.f32 %v4656_v10, %v4655_v32  ;;  %v4702_v32 = vsel %vm151_vm0, %v4601_v27, 0.0  ;;  %v4703_v10 = vsel %vm151_vm0, %v4602_v52, 0.0  ;;  %v4606_v52 = vmul.f32 %v10613_v2, %v10613_v2 }
 0x674   :  { %v4707_v41 = vsel %vm151_vm0, %v4604_v5, 0.0  ;;  %v4608_v5 = vmul.f32 %v10619_v62, %v10619_v62 }
 0x675   :  { %v4659_v33 = vadd.f32 %v4658_v11, %v4657_v39  ;;  %v4662_v39 = vsel %vm151_vm0, %v4584_v1, 0.0  ;;  %v4704_v11 = vadd.f32 %v4703_v10, %v4702_v32  ;;  %v4588_v1 = vmul.f32 %v10528_v46, %v10528_v46 }
 0x677   :  { %v4661_v14 = vadd.f32 %v4660_v8, %v4659_v33  ;;  %v4587_v33 = vmul.f32 %v10525_v43, %v10525_v43  ;;  %v4664_v8 = vsel %vm151_vm0, %v4585_v12, 0.0  ;;  %v4706_v27 = vadd.f32 %v4705_v37, %v4704_v11 }
 0x679   :  { %v4663_v24 = vadd.f32 %v4662_v39, %v4661_v14  ;;  %v4666_v14 = vsel %vm151_vm0, %v4586_v0, 0.0  ;;  %v4708_v32 = vadd.f32 %v4707_v41, %v4706_v27  ;;  %v4709_v39 = vsel %vm151_vm0, %v4605_v3, 0.0 }
 0x67a   :  { %v4668_v12 = vsel %vm151_vm0, %v4587_v33, 0.0  ;;  %v4590_v41 = vmul.f32 %v10534_v23, %v10534_v23  ;;  %v4609_v3 = vmul.f32 %v10622_v58, %v10622_v58  ;;  %v4591_v33 = vmul.f32 %v10537_v63, %v10537_v63 }
 0x67b   :  { %v4665_v34 = vadd.f32 %v4664_v8, %v4663_v24  ;;  %v4589_v24 = vmul.f32 %v10531_v44, %v10531_v44  ;;  %v4710_v11 = vadd.f32 %v4709_v39, %v4708_v32  ;;  %v4711_v8 = vsel %vm151_vm0, %v4606_v52, 0.0 }
 0x67c   :  { %v4610_v52 = vmul.f32 %v10625_v60, %v10625_v60 }
 0x67d   :  { %v4667_v10 = vadd.f32 %v4666_v14, %v4665_v34  ;;  %v4670_v34 = vsel %vm151_vm0, %v4588_v1, 0.0  ;;  %v4712_v0 = vadd.f32 %v4711_v8, %v4710_v11  ;;  %v4713_v14 = vsel %vm151_vm0, %v4607_v31, 0.0 }
 0x67e   :  { %v4672_v32 = vsel %vm151_vm0, %v4589_v24, 0.0  ;;  %v4592_v1 = vmul.f32 %v10540_v36, %v10540_v36  ;;  %v4674_v11 = vsel %vm151_vm0, %v4590_v41, 0.0  ;;  %v4611_v31 = vmul.f32 %v10628_v48, %v10628_v48 }
 0x67f   :  { %v4669_v37 = vadd.f32 %v4668_v12, %v4667_v10  ;;  %v4714_v10 = vadd.f32 %v4713_v14, %v4712_v0  ;;  %v4715_v12 = vsel %vm151_vm0, %v4608_v5, 0.0  ;;  %v4593_v24 = vmul.f32 %v10543_v38, %v10543_v38 }
 0x680   :  { %v4676_v0 = vsel %vm151_vm0, %v4591_v33, 0.0  ;;  %v4612_v5 = vmul.f32 %v10631_v25, %v10631_v25  ;;  %v4594_v41 = vmul.f32 %v10546_v49, %v10546_v49  ;;  %v4595_v33 = vmul.f32 %v10549_v19, %v10549_v19 }
 0x681   :  { %v4671_v27 = vadd.f32 %v4670_v34, %v4669_v37  ;;  %v4716_v37 = vadd.f32 %v4715_v12, %v4714_v10  ;;  %v4717_v34 = vsel %vm151_vm0, %v4609_v3, 0.0  ;;  %v4678_v10 = vsel %vm151_vm0, %v4592_v1, 0.0 }
 0x682   :  { %v4613_v3 = vmul.f32 %v10634_v40, %v10634_v40  ;;  %v4596_v1 = vmul.f32 %v10552_v61, %v10552_v61  ;;  %v13335_v40 = vld [vmem:[#allocation53_spill] sm:$0xff] }
 0x683   :  { %v4673_v39 = vadd.f32 %v4672_v32, %v4671_v27  ;;  %v4718_v27 = vadd.f32 %v4717_v34, %v4716_v37  ;;  %v4719_v32 = vsel %vm151_vm0, %v4610_v52, 0.0  ;;  %v4680_v37 = vsel %vm151_vm0, %v4593_v24, 0.0 }
 0x684   :  { %v4614_v52 = vmul.f32 %v10637_v21, %v10637_v21  ;;  %v4597_v24 = vmul.f32 %v10554_v20, %v10554_v20  ;;  %v13334_v21 = vld [vmem:[#allocation17_spill] sm:$0xff] }
 0x685   :  { %v4675_v8 = vadd.f32 %v4674_v11, %v4673_v39  ;;  %v4720_v39 = vadd.f32 %v4719_v32, %v4718_v27  ;;  %v4721_v11 = vsel %vm151_vm0, %v4611_v31, 0.0  ;;  %v4682_v27 = vsel %vm151_vm0, %v4594_v41, 0.0 }
 0x686   :  { %v4615_v31 = vmul.f32 %v10640_v42, %v10640_v42  ;;  %v4598_v41 = vmul.f32 %v10557_v16, %v10557_v16  ;;  %v13333_v42 = vld [vmem:[#allocation111_spill] sm:$0xff] }
 0x687   :  { %v4677_v14 = vadd.f32 %v4676_v0, %v4675_v8  ;;  %v4722_v8 = vadd.f32 %v4721_v11, %v4720_v39  ;;  %v4723_v0 = vsel %vm151_vm0, %v4612_v5, 0.0  ;;  %v4684_v39 = vsel %vm151_vm0, %v4595_v33, 0.0 }
 0x688   :  { %v4616_v5 = vmul.f32 %v10643_v53, %v10643_v53  ;;  %v4599_v33 = vmul.f32 %v10559_v13, %v10559_v13 }
 0x689   :  { %v4679_v12 = vadd.f32 %v4678_v10, %v4677_v14  ;;  %v4724_v14 = vadd.f32 %v4723_v0, %v4722_v8  ;;  %v4725_v10 = vsel %vm151_vm0, %v4613_v3, 0.0  ;;  %v4686_v8 = vsel %vm151_vm0, %v4596_v1, 0.0 }
 0x68a   :  { %v4617_v3 = vmul.f32 %v10646_v15, %v10646_v15  ;;  %v4600_v1 = vmul.f32 %v10561_v17, %v10561_v17 }
 0x68b   :  { %v4681_v34 = vadd.f32 %v4680_v37, %v4679_v12  ;;  %v4726_v12 = vadd.f32 %v4725_v10, %v4724_v14  ;;  %v4727_v37 = vsel %vm151_vm0, %v4614_v52, 0.0  ;;  %v4688_v14 = vsel %vm151_vm0, %v4597_v24, 0.0 }
 0x68c   :  { %v4618_v52 = vmul.f32 %v10649_v47, %v10649_v47  ;;  %v4692_v24 = vsel %vm151_vm0, %v4599_v33, 0.0  ;;  %v4622_v33 = vmul.f32 %v10661_v18, %v10661_v18  ;;  %v13328_v18 = vld [vmem:[#allocation264_spill] sm:$0xff] }
 0x68d   :  { %v4683_v32 = vadd.f32 %v4682_v27, %v4681_v34  ;;  %v4728_v34 = vadd.f32 %v4727_v37, %v4726_v12  ;;  %v4729_v27 = vsel %vm151_vm0, %v4615_v31, 0.0  ;;  %v4690_v12 = vsel %vm151_vm0, %v4598_v41, 0.0 }
 0x68e   :  { %v4619_v31 = vmul.f32 %v10652_v26, %v10652_v26  ;;  %v13331_v26 = vld [vmem:[#allocation308_spill] sm:$0xff] }
 0x68f   :  { %v4685_v11 = vadd.f32 %v4684_v39, %v4683_v32  ;;  %v4730_v32 = vadd.f32 %v4729_v27, %v4728_v34  ;;  %v4731_v39 = vsel %vm151_vm0, %v4616_v5, 0.0  ;;  %v4620_v27 = vmul.f32 %v10655_v22, %v10655_v22  ;;  %v13330_v22 = vld [vmem:[#allocation286_spill] sm:$0xff] }
 0x690   :  { %v4735_v5 = vsel %vm151_vm0, %v4618_v52, 0.0  ;;  %v4623_v52 = vmul.f32 %v10664_v45, %v10664_v45 }
 0x691   :  { %v4687_v0 = vadd.f32 %v4686_v8, %v4685_v11  ;;  %v4732_v11 = vadd.f32 %v4731_v39, %v4730_v32  ;;  %v4733_v8 = vsel %vm151_vm0, %v4617_v3, 0.0  ;;  %v4621_v32 = vmul.f32 %v10658_v55, %v10658_v55  ;;  %v13329_v55 = vld [vmem:[#allocation4_spill] sm:$0xff] }
 0x693   :  { %v4689_v10 = vadd.f32 %v4688_v14, %v4687_v0  ;;  %v4734_v34 = vadd.f32 %v4733_v8, %v4732_v11  ;;  %v4694_v14 = vsel %vm151_vm0, %v4600_v1, 0.0  ;;  %v4741_v1 = vsel %vm151_vm0, %v4621_v32, 0.0 }
 0x695   :  { %v4691_v37 = vadd.f32 %v4690_v12, %v4689_v10  ;;  %v4736_v47 = vadd.f32 %v4735_v5, %v4734_v34  ;;  %v4737_v10 = vsel %vm151_vm0, %v4619_v31, 0.0  ;;  %v4739_v12 = vsel %vm151_vm0, %v4620_v27, 0.0  ;;  %v13320_v34 = vld [vmem:[#allocation335_spill] sm:$0xff] }
 0x696   :  { %v4745_v27 = vsel %vm151_vm0, %v4623_v52, 0.0 }
 0x697   :  { %v4693_v0 = vadd.f32 %v4692_v24, %v4691_v37  ;;  %v4738_v39 = vadd.f32 %v4737_v10, %v4736_v47  ;;  %v4743_v47 = vsel %vm151_vm0, %v4622_v33, 0.0 }
 0x699   :  { %v4695_v41 = vadd.f32 %v4694_v14, %v4693_v0  ;;  %v4740_v11 = vadd.f32 %v4739_v12, %v4738_v39  ;;  %v4624_v0 = vmul.f32 %v13320_v34, %v13320_v34  ;;  %v4625_v14 = vmul.f32 %v10670_v51, %v10670_v51 }
 0x69a   :  { %v4626_v39 = vmul.f32 %v10673_v57, %v10673_v57 }
 0x69b   :  { %v4696_v3 = vrot.slane %v4695_v41, 4  ;;  %v4742_v8 = vadd.f32 %v4741_v1, %v4740_v11  ;;  %v4747_v32 = vsel %vm151_vm0, %v4624_v0, 0.0  ;;  %v4627_v11 = vmul.f32 %v10676_v35, %v10676_v35 }
 0x69c   :  { %v4749_v33 = vsel %vm151_vm0, %v4625_v14, 0.0  ;;  %v4751_v52 = vsel %vm151_vm0, %v4626_v39, 0.0 }
 0x69d   :  { %v4697_v37 = vadd.f32 %v4696_v3, %v4695_v41  ;;  %v4744_v31 = vadd.f32 %v4743_v47, %v4742_v8  ;;  %v4628_v8 = vmul.f32 %v10679_v9, %v10679_v9  ;;  %v4753_v0 = vsel %vm151_vm0, %v4627_v11, 0.0 }
 0x69f   :  { %v4698_v24 = vrot.slane %v4697_v37, 2  ;;  %v4746_v41 = vadd.f32 %v4745_v27, %v4744_v31  ;;  %v4629_v31 = vmul.f32 %v10682_v30, %v10682_v30  ;;  %v4630_v27 = vmul.f32 %v10685_v7, %v10685_v7 }
 0x6a0   :  { %v4755_v14 = vsel %vm151_vm0, %v4628_v8, 0.0 }
 0x6a1   :  { %v4699_v5 = vadd.f32 %v4698_v24, %v4697_v37  ;;  %v4748_v3 = vadd.f32 %v4747_v32, %v4746_v41  ;;  %v4757_v39 = vsel %vm151_vm0, %v4629_v31, 0.0 }
 0x6a3   :  { %v4700_v10 = vrot.slane %v4699_v5, 1  ;;  %v4750_v37 = vadd.f32 %v4749_v33, %v4748_v3  ;;  %v4759_v33 = vsel %vm151_vm0, %v4630_v27, 0.0 }
 0x6a5   :  { %v4701_v12 = vadd.f32 %v4700_v10, %v4699_v5  ;;  %v4752_v24 = vadd.f32 %v4751_v52, %v4750_v37  ;;  %v13321_v10 = vld [vmem:[#allocation313_spill] sm:$0xff] }
 0x6a6   :  { %v4631_v32 = vmul.f32 %v13321_v10, %v13321_v10 }
 0x6a7   :  { %v4771_v1 = vmul.f32 0.00390625, %v4701_v12  ;;  %v4754_v5 = vadd.f32 %v4753_v0, %v4752_v24  ;;  %v4632_v12 = vmul.f32 %v10694_v4, %v10694_v4  ;;  %v13322_v0 = vld [vmem:[#allocation39_spill] sm:$0xff] }
 0x6a8   :  { %v4761_v37 = vsel %vm151_vm0, %v4631_v32, 0.0 }
 0x6a9   :  { %v4773_v47 = vadd.f32 1e-05, %v4771_v1  ;;  %v4756_v41 = vadd.f32 %v4755_v14, %v4754_v5  ;;  %v4763_v52 = vsel %vm151_vm0, %v4632_v12, 0.0  ;;  %v12187_v5 = vsub.s32 2, %v13322_v0 }
 0x6aa   :  { %v4853_v14 = vsub.s32 3, %v13322_v0 }
 0x6ab   :  { %5445 = vrsqrt.f32 %v4773_v47  ;;  %v4758_v3 = vadd.f32 %v4757_v39, %v4756_v41  ;;  %v10854_v47 = vld [vmem:[%s11716_s2] sm:$0xf] }
 0x6ac   :  { %v10862_v32 = vrot.slane %v10854_v47, %v4853_v14  ;;  %v13325_v14 = vld [vmem:[#allocation21_spill] sm:$0xff] }
 0x6ad   :  { %v4760_v11 = vadd.f32 %v4759_v33, %v4758_v3 }
 0x6ae   :  { %13323 = vst [vmem:[#allocation214_spill] sm:$0xff] %v10862_v32 }
 0x6af   :  { %v4762_v1 = vadd.f32 %v4761_v37, %v4760_v11 }
 0x6b1   :  { %v4764_v24 = vadd.f32 %v4763_v52, %v4762_v1 }
 0x6b3   :  { %v4765_v41 = vrot.slane %v4764_v24, 4 }
 0x6b5   :  { %v5446_v8 = vpop.eup %5445  ;;  %v10880_v45 = vadd.f32 %v4765_v41, %v4764_v24  ;;  %v13336_v24 = vld [vmem:[#allocation237_spill] sm:$0xff] }
 0x6b6   :  { %v4777_v31 = vmul.f32 %v10854_v47, %v5446_v8 }
 0x6b8   :  { %v4782_v27 = vrot.slane %v4777_v31, %v12187_v5  ;;  %v13324_v31 = vld [vmem:[#allocation71_spill] sm:$0xff] }
 0x6b9   :  { %v13326_v5 = vld [vmem:[#allocation55_spill] sm:$0xff] }
 0x6ba   :  { %v4810_v39 = vmul.f32 %v4782_v27, %v10540_v36  ;;  %v4811_v3 = vmul.f32 %v4782_v27, %v10543_v38  ;;  %v4812_v12 = vmul.f32 %v4782_v27, %v10546_v49  ;;  %v4813_v33 = vmul.f32 %v4782_v27, %v10549_v19  ;;  %v13327_v19 = vld [vmem:[#allocation236_spill] sm:$0xff] }
 0x6bb   :  { %v4814_v11 = vmul.f32 %v4782_v27, %v10552_v61  ;;  %v4815_v37 = vmul.f32 %v4782_v27, %v10554_v20  ;;  %v4816_v1 = vmul.f32 %v4782_v27, %v10557_v16  ;;  %v10872_v52 = vmul.f32 %v4782_v27, %v10559_v13 }
 0x6bc   :  { %v10875_v8 = vmul.f32 %v4782_v27, %v10561_v17  ;;  %v4787_v36 = vmul.f32 %v4782_v27, %v13324_v31  ;;  %v4788_v38 = vmul.f32 %v4782_v27, %v13325_v14  ;;  %v4789_v49 = vmul.f32 %v4782_v27, %v13326_v5  ;;  %v13332_v17 = vld [vmem:[#allocation330_spill] sm:$0xff] }
 0x6bd   :  { %v4790_v61 = vmul.f32 %v4782_v27, %v13327_v19  ;;  %v4791_v20 = vmul.f32 %v4782_v27, %v13328_v18  ;;  %v4792_v16 = vmul.f32 %v4782_v27, %v13329_v55  ;;  %v4793_v13 = vmul.f32 %v4782_v27, %v13330_v22 }
 0x6be   :  { %v4794_v15 = vmul.f32 %v4782_v27, %v13331_v26  ;;  %v4795_v53 = vmul.f32 %v4782_v27, %v13332_v17  ;;  %v4796_v31 = vmul.f32 %v4782_v27, %v13333_v42  ;;  %v4797_v14 = vmul.f32 %v4782_v27, %v13334_v21 }
 0x6bf   :  { %v4798_v5 = vmul.f32 %v4782_v27, %v13335_v40  ;;  %v4799_v41 = vmul.f32 %v4782_v27, %v13336_v24  ;;  %v4800_v19 = vmul.f32 %v4782_v27, %v10510_v54  ;;  %v4801_v18 = vmul.f32 %v4782_v27, %v10513_v6 }
 0x6c0   :  { %v4802_v55 = vmul.f32 %v4782_v27, %v10516_v50  ;;  %v4803_v22 = vmul.f32 %v4782_v27, %v10519_v28  ;;  %v4804_v26 = vmul.f32 %v4782_v27, %v10522_v56  ;;  %v4805_v17 = vmul.f32 %v4782_v27, %v10525_v43 }
 0x6c1   :  { %v4806_v42 = vmul.f32 %v4782_v27, %v10528_v46  ;;  %v4807_v21 = vmul.f32 %v4782_v27, %v10531_v44  ;;  %v4808_v40 = vmul.f32 %v4782_v27, %v10534_v23  ;;  %v4809_v24 = vmul.f32 %v4782_v27, %v10537_v63 }
 0x6c2   :  { %v10903_v54 = vadd.f32 %v10862_v32, %v4787_v36  ;;  %v10906_v6 = vadd.f32 %v10862_v32, %v4788_v38  ;;  %v10909_v50 = vadd.f32 %v10862_v32, %v4789_v49  ;;  %v10912_v28 = vadd.f32 %v10862_v32, %v4790_v61 }
 0x6c3   :  { %v10915_v56 = vadd.f32 %v10862_v32, %v4791_v20  ;;  %v10918_v43 = vadd.f32 %v10862_v32, %v4792_v16  ;;  %v10921_v46 = vadd.f32 %v10862_v32, %v4793_v13  ;;  %v10924_v44 = vadd.f32 %v10862_v32, %v4794_v15 }
 0x6c4   :  { %v10927_v23 = vadd.f32 %v10862_v32, %v4795_v53  ;;  %v10930_v63 = vadd.f32 %v10862_v32, %v4796_v31  ;;  %v10933_v27 = vadd.f32 %v10862_v32, %v4797_v14  ;;  %v10936_v36 = vadd.f32 %v10862_v32, %v4798_v5 }
 0x6c5   :  { %v10939_v38 = vadd.f32 %v10862_v32, %v4799_v41  ;;  %v10942_v49 = vadd.f32 %v10862_v32, %v4800_v19  ;;  %v10945_v15 = vadd.f32 %v10862_v32, %v4801_v18  ;;  %v10948_v53 = vadd.f32 %v10862_v32, %v4802_v55 }
 0x6c6   :  { %v10951_v61 = vadd.f32 %v10862_v32, %v4803_v22  ;;  %v10954_v20 = vadd.f32 %v10862_v32, %v4804_v26  ;;  %v10957_v16 = vadd.f32 %v10862_v32, %v4805_v17  ;;  %v10960_v13 = vadd.f32 %v10862_v32, %v4806_v42 }
 0x6c7   :  { %v10963_v31 = vadd.f32 %v10862_v32, %v4807_v21  ;;  %v10966_v14 = vadd.f32 %v10862_v32, %v4808_v40  ;;  %v10969_v5 = vadd.f32 %v10862_v32, %v4809_v24  ;;  %v10972_v41 = vadd.f32 %v10862_v32, %v4810_v39 }
 0x6c8   :  { %v10975_v19 = vadd.f32 %v10862_v32, %v4811_v3  ;;  %v10978_v18 = vadd.f32 %v10862_v32, %v4812_v12  ;;  %v10981_v55 = vadd.f32 %v10862_v32, %v4813_v33  ;;  %v10984_v22 = vadd.f32 %v10862_v32, %v4814_v11 }
 0x6c9   :  { %v10987_v26 = vadd.f32 %v10862_v32, %v4815_v37  ;;  %v10990_v17 = vadd.f32 %v10862_v32, %v4816_v1  ;;  %vm4919_vm10 = vcmp.ge.f32.partialorder %v10903_v54, 0.0  ;;  %vm4920_vm11 = vcmp.ge.f32.partialorder %v10906_v6, 0.0 }
 0x6ca   :  { %vm4921_vm12 = vcmp.ge.f32.partialorder %v10909_v50, 0.0  ;;  %vm4922_vm13 = vcmp.ge.f32.partialorder %v10912_v28, 0.0  ;;  %vm4923_vm14 = vcmp.ge.f32.partialorder %v10915_v56, 0.0  ;;  %vm4924_vm15 = vcmp.ge.f32.partialorder %v10918_v43, 0.0 }
 0x6cb   :  { %vm4925_vm1 = vcmp.ge.f32.partialorder %v10921_v46, 0.0  ;;  %vm4926_vm2 = vcmp.ge.f32.partialorder %v10924_v44, 0.0  ;;  %v11004_v39 = vadd.f32 %v10862_v32, %v10872_v52  ;;  %v4983_v3 = vmul.f32 0.01, %v10903_v54 }
 0x6cc   :  { %v4984_v12 = vmul.f32 0.01, %v10906_v6  ;;  %v4985_v33 = vmul.f32 0.01, %v10909_v50  ;;  %v11015_v11 = vadd.f32 %v10862_v32, %v10875_v8  ;;  %vm4934_vm5 = vcmp.ge.f32.partialorder %v10948_v53, 0.0 }
 0x6cd   :  { %vm4935_vm6 = vcmp.ge.f32.partialorder %v10951_v61, 0.0  ;;  %v4986_v37 = vmul.f32 0.01, %v10912_v28  ;;  %v4987_v1 = vmul.f32 0.01, %v10915_v56  ;;  %vm4940_vm9 = vcmp.ge.f32.partialorder %v10966_v14, 0.0 }
 0x6ce   :  { %v4988_v52 = vmul.f32 0.01, %v10918_v43  ;;  %v4989_v8 = vmul.f32 0.01, %v10921_v46  ;;  %v4990_v42 = vmul.f32 0.01, %v10924_v44  ;;  %v5047_v40 = vsel %vm4919_vm10, %v10903_v54, %v4983_v3 }
 0x6cf   :  { %v4991_v21 = vmul.f32 0.01, %v10927_v23  ;;  %vm4941_vm7 = vcmp.ge.f32.partialorder %v10969_v5, 0.0  ;;  %v4992_v24 = vmul.f32 0.01, %v10930_v63  ;;  %v5048_v48 = vsel %vm4920_vm11, %v10906_v6, %v4984_v12  ;;  %5111 = vst.msk [vmem:[%s11719_s4] sm:$0xff] %vm151_vm0, %v5047_v40 }
 0x6d0   :  { %v4993_v32 = vmul.f32 0.01, %v10933_v27  ;;  %v4994_v25 = vmul.f32 0.01, %v10936_v36  ;;  %vm4945_vm10 = vcmp.ge.f32.partialorder %v10981_v55, 0.0  ;;  %vm4946_vm4 = vcmp.ge.f32.partialorder %v10984_v22, 0.0 }
 0x6d1   :  { %vm4948_vm8 = vcmp.ge.f32.partialorder %v10990_v17, 0.0  ;;  %v4995_v54 = vmul.f32 0.01, %v10939_v38  ;;  %v4996_v3 = vmul.f32 0.01, %v10942_v49  ;;  %v5049_v6 = vsel %vm4921_vm12, %v10909_v50, %v4985_v33  ;;  %5112 = vst.msk [vmem:[%s11719_s4 + $0x8] sm:$0xff] %vm151_vm0, %v5048_v48 }
 0x6d2   :  { %v4997_v60 = vmul.f32 0.01, %v10945_v15  ;;  %vm4949_vm11 = vcmp.ge.f32.partialorder %v11004_v39, 0.0  ;;  %vm4950_vm3 = vcmp.ge.f32.partialorder %v11015_v11, 0.0  ;;  %v4998_v12 = vmul.f32 0.01, %v10948_v53 }
 0x6d3   :  { %v4999_v40 = vmul.f32 0.01, %v10951_v61  ;;  %v5000_v58 = vmul.f32 0.01, %v10954_v20  ;;  %v5050_v62 = vsel %vm4922_vm13, %v10912_v28, %v4986_v37  ;;  %5113 = vst.msk [vmem:[%s11719_s4 + $0x10] sm:$0xff] %vm151_vm0, %v5049_v6  ;;  %v5051_v59 = vsel %vm4923_vm14, %v10915_v56, %v4987_v1 }
 0x6d4   :  { %v5001_v48 = vmul.f32 0.01, %v10957_v16  ;;  %v5002_v50 = vmul.f32 0.01, %v10960_v13  ;;  %v5003_v33 = vmul.f32 0.01, %v10963_v31  ;;  %v5052_v2 = vsel %vm4924_vm15, %v10918_v43, %v4988_v52 }
 0x6d5   :  { %5114 = vst.msk [vmem:[%s11719_s4 + $0x18] sm:$0xff] %vm151_vm0, %v5050_v62  ;;  %v5004_v28 = vmul.f32 0.01, %v10966_v14  ;;  %v5005_v37 = vmul.f32 0.01, %v10969_v5  ;;  %5115 = vst.msk [vmem:[%s11719_s4 + $0x20] sm:$0xff] %vm151_vm0, %v5051_v59  ;;  %v5053_v29 = vsel %vm4925_vm1, %v10921_v46, %v4989_v8  ;;  %v5054_v4 = vsel %vm4926_vm2, %v10924_v44, %v4990_v42 }
 0x6d6   :  { %v5006_v6 = vmul.f32 0.01, %v10972_v41  ;;  %v5007_v56 = vmul.f32 0.01, %v10975_v19  ;;  %v5008_v1 = vmul.f32 0.01, %v10978_v18 }
 0x6d7   :  { %v5009_v62 = vmul.f32 0.01, %v10981_v55  ;;  %5116 = vst.msk [vmem:[%s11719_s4 + $0x28] sm:$0xff] %vm151_vm0, %v5052_v2  ;;  %v5010_v43 = vmul.f32 0.01, %v10984_v22  ;;  %5117 = vst.msk [vmem:[%s11719_s4 + $0x30] sm:$0xff] %vm151_vm0, %v5053_v29 }
 0x6d8   :  { %v5011_v52 = vmul.f32 0.01, %v10987_v26  ;;  %v5012_v59 = vmul.f32 0.01, %v10990_v17  ;;  %v5013_v46 = vmul.f32 0.01, %v11004_v39 }
 0x6d9   :  { %v5014_v8 = vmul.f32 0.01, %v11015_v11  ;;  %vm13337_vm12 = vcmp.ge.f32.partialorder %v10927_v23, 0.0  ;;  %vm13338_vm13 = vcmp.ge.f32.partialorder %v10930_v63, 0.0  ;;  %5118 = vst.msk [vmem:[%s11719_s4 + $0x38] sm:$0xff] %vm151_vm0, %v5054_v4  ;;  %vm13339_vm14 = vcmp.ge.f32.partialorder %v10933_v27, 0.0 }
 0x6da   :  { %v5055_v2 = vsel %vm13337_vm12, %v10927_v23, %v4991_v21  ;;  %v5056_v10 = vsel %vm13338_vm13, %v10930_v63, %v4992_v24  ;;  %v5057_v29 = vsel %vm13339_vm14, %v10933_v27, %v4993_v32  ;;  %vm13340_vm15 = vcmp.ge.f32.partialorder %v10936_v36, 0.0 }
 0x6db   :  { %v5058_v44 = vsel %vm13340_vm15, %v10936_v36, %v4994_v25  ;;  %vm13341_vm1 = vcmp.ge.f32.partialorder %v10939_v38, 0.0  ;;  %vm13342_vm2 = vcmp.ge.f32.partialorder %v10942_v49, 0.0  ;;  %5119 = vst.msk [vmem:[%s11719_s4 + $0x40] sm:$0xff] %vm151_vm0, %v5055_v2  ;;  %5120 = vst.msk [vmem:[%s11719_s4 + $0x48] sm:$0xff] %vm151_vm0, %v5056_v10  ;;  %vm13343_vm12 = vcmp.ge.f32.partialorder %v10945_v15, 0.0  ;;  %v13365_v2 = vld [vmem:[#allocation112_spill] sm:$0xff] }
 0x6dc   :  { %v5059_v23 = vsel %vm13341_vm1, %v10939_v38, %v4995_v54  ;;  %v5060_v63 = vsel %vm13342_vm2, %v10942_v49, %v4996_v3  ;;  %v5061_v25 = vsel %vm13343_vm12, %v10945_v15, %v4997_v60  ;;  %v5062_v4 = vsel %vm4934_vm5, %v10948_v53, %v4998_v12  ;;  %5121 = vst.msk [vmem:[%s11719_s4 + $0x50] sm:$0xff] %vm151_vm0, %v5057_v29 }
 0x6dd   :  { %v5063_v32 = vsel %vm4935_vm6, %v10951_v61, %v4999_v40  ;;  %vm13344_vm13 = vcmp.ge.f32.partialorder %v10954_v20, 0.0  ;;  %5122 = vst.msk [vmem:[%s11719_s4 + $0x58] sm:$0xff] %vm151_vm0, %v5058_v44  ;;  %5123 = vst.msk [vmem:[%s11719_s4 + $0x60] sm:$0xff] %vm151_vm0, %v5059_v23  ;;  %vm13345_vm5 = vcmp.ge.f32.partialorder %v10957_v16, 0.0  ;;  %vm13346_vm6 = vcmp.ge.f32.partialorder %v10960_v13, 0.0  ;;  %v13353_v40 = vld [vmem:[#allocation313_spill] sm:$0xff] }
 0x6de   :  { %v5064_v27 = vsel %vm13344_vm13, %v10954_v20, %v5000_v58  ;;  %5124 = vst.msk [vmem:[%s11719_s4 + $0x68] sm:$0xff] %vm151_vm0, %v5060_v63  ;;  %v5065_v60 = vsel %vm13345_vm5, %v10957_v16, %v5001_v48  ;;  %v5066_v58 = vsel %vm13346_vm6, %v10960_v13, %v5002_v50  ;;  %vm13347_vm14 = vcmp.ge.f32.partialorder %v10963_v31, 0.0  ;;  %5125 = vst.msk [vmem:[%s11719_s4 + $0x70] sm:$0xff] %vm151_vm0, %v5061_v25  ;;  %v13355_v50 = vld [vmem:[#allocation110_spill] sm:$0xff]  ;;  %v13366_v44 = vld [vmem:[#allocation57_spill] sm:$0xff] }
 0x6df   :  { %v5067_v10 = vsel %vm13347_vm14, %v10963_v31, %v5003_v33  ;;  %v5068_v36 = vsel %vm4940_vm9, %v10966_v14, %v5004_v28  ;;  %5126 = vst.msk [vmem:[%s11719_s4 + $0x78] sm:$0xff] %vm151_vm0, %v5062_v4  ;;  %5127 = vst.msk [vmem:[%s11719_s4 + $0x80] sm:$0xff] %vm151_vm0, %v5063_v32  ;;  %v5069_v38 = vsel %vm4941_vm7, %v10969_v5, %v5005_v37  ;;  %vm13348_vm9 = vcmp.ge.f32.partialorder %v10972_v41, 0.0  ;;  %v13356_v33 = vld [vmem:[#allocation287_spill] sm:$0xff]  ;;  %v13358_v37 = vld [vmem:[#allocation184_spill] sm:$0xff] }
 0x6e0   :  { %5128 = vst.msk [vmem:[%s11719_s4 + $0x88] sm:$0xff] %vm151_vm0, %v5064_v27  ;;  %v5070_v49 = vsel %vm13348_vm9, %v10972_v41, %v5006_v6  ;;  %vm13349_vm15 = vcmp.ge.f32.partialorder %v10975_v19, 0.0  ;;  %vm13350_vm1 = vcmp.ge.f32.partialorder %v10978_v18, 0.0  ;;  %5129 = vst.msk [vmem:[%s11719_s4 + $0x90] sm:$0xff] %vm151_vm0, %v5065_v60  ;;  %v5073_v61 = vsel %vm4945_vm10, %v10981_v55, %v5009_v62  ;;  %v13357_v28 = vld [vmem:[#allocation331_spill] sm:$0xff]  ;;  %v13362_v62 = vld [vmem:[#allocation309_spill] sm:$0xff] }
 0x6e1   :  { %v5071_v15 = vsel %vm13349_vm15, %v10975_v19, %v5007_v56  ;;  %v5072_v53 = vsel %vm13350_vm1, %v10978_v18, %v5008_v1  ;;  %5130 = vst.msk [vmem:[%s11719_s4 + $0x98] sm:$0xff] %vm151_vm0, %v5066_v58  ;;  %5131 = vst.msk [vmem:[%s11719_s4 + $0xa0] sm:$0xff] %vm151_vm0, %v5067_v10  ;;  %v5074_v20 = vsel %vm4946_vm4, %v10984_v22, %v5010_v43  ;;  %vm13351_vm7 = vcmp.ge.f32.partialorder %v10987_v26, 0.0  ;;  %v13359_v6 = vld [vmem:[#allocation23_spill] sm:$0xff]  ;;  %v13360_v56 = vld [vmem:[#allocation265_spill] sm:$0xff] }
 0x6e2   :  { %5132 = vst.msk [vmem:[%s11719_s4 + $0xa8] sm:$0xff] %vm151_vm0, %v5068_v36  ;;  %v5075_v16 = vsel %vm13351_vm7, %v10987_v26, %v5011_v52  ;;  %v5076_v13 = vsel %vm4948_vm8, %v10990_v17, %v5012_v59  ;;  %5133 = vst.msk [vmem:[%s11719_s4 + $0xb0] sm:$0xff] %vm151_vm0, %v5069_v38  ;;  %v5077_v31 = vsel %vm4949_vm11, %v11004_v39, %v5013_v46  ;;  %v4767_v5 = vrot.slane %v10880_v45, 2  ;;  %v13361_v1 = vld [vmem:[#allocation174_spill] sm:$0xff]  ;;  %v13363_v52 = vld [vmem:[#allocation211_spill] sm:$0xff] }
 0x6e3   :  { %5134 = vst.msk [vmem:[%s11719_s4 + $0xb8] sm:$0xff] %vm151_vm0, %v5070_v49  ;;  %5135 = vst.msk [vmem:[%s11719_s4 + $0xc0] sm:$0xff] %vm151_vm0, %v5071_v15  ;;  %v5078_v14 = vsel %vm4950_vm3, %v11015_v11, %v5014_v8  ;;  %v13352_v39 = vsub.s32 2, %v13322_v0  ;;  %v13364_v46 = vld [vmem:[#allocation56_spill] sm:$0xff]  ;;  %v13367_v63 = vld [vmem:[#allocation113_spill] sm:$0xff] }
 0x6e4   :  { %5136 = vst.msk [vmem:[%s11719_s4 + $0xc8] sm:$0xff] %vm151_vm0, %v5072_v53  ;;  %5137 = vst.msk [vmem:[%s11719_s4 + $0xd0] sm:$0xff] %vm151_vm0, %v5073_v61  ;;  %v4768_v41 = vadd.f32 %v4767_v5, %v10880_v45  ;;  %v13368_v4 = vld [vmem:[#allocation58_spill] sm:$0xff]  ;;  %v13369_v27 = vld [vmem:[#allocation117_spill] sm:$0xff] }
 0x6e5   :  { %5138 = vst.msk [vmem:[%s11719_s4 + $0xd8] sm:$0xff] %vm151_vm0, %v5074_v20  ;;  %5139 = vst.msk [vmem:[%s11719_s4 + $0xe0] sm:$0xff] %vm151_vm0, %v5075_v16  ;;  %v13370_v58 = vld [vmem:[#allocation59_spill] sm:$0xff]  ;;  %v13371_v36 = vld [vmem:[#allocation118_spill] sm:$0xff] }
 0x6e6   :  { %5140 = vst.msk [vmem:[%s11719_s4 + $0xe8] sm:$0xff] %vm151_vm0, %v5076_v13  ;;  %5141 = vst.msk [vmem:[%s11719_s4 + $0xf0] sm:$0xff] %vm151_vm0, %v5077_v31  ;;  %v4769_v19 = vrot.slane %v4768_v41, 1  ;;  %v13372_v49 = vld [vmem:[#allocation290_spill] sm:$0xff]  ;;  %v13373_v53 = vld [vmem:[#allocation312_spill] sm:$0xff] }
 0x6e7   :  { %5142 = vst.msk [vmem:[%s11719_s4 + $0xf8] sm:$0xff] %vm151_vm0, %v5078_v14  ;;  %v13374_v20 = vld [vmem:[#allocation334_spill] sm:$0xff]  ;;  %v13375_v13 = vld [vmem:[#allocation177_spill] sm:$0xff] }
 0x6e8   :  { %v4770_v18 = vadd.f32 %v4769_v19, %v4768_v41  ;;  %v13376_v14 = vld [vmem:[#allocation213_spill] sm:$0xff]  ;;  %v13377_v41 = vld [vmem:[#allocation291_spill] sm:$0xff] }
 0x6ea   :  { %v4772_v55 = vmul.f32 0.00390625, %v4770_v18  ;;  %v13378_v18 = vld [vmem:[#allocation214_spill] sm:$0xff] }
 0x6ec   :  { %v4774_v22 = vadd.f32 1e-05, %v4772_v55 }
 0x6ee   :  { %5447 = vrsqrt.f32 %v4774_v22 }
 0x6f8   :  { %v5448_v26 = vpop.eup %5447 }
 0x6f9   :  { %v4778_v17 = vmul.f32 %v10854_v47, %v5448_v26  ;;  %v13354_v47 = vld [vmem:[#allocation178_spill] sm:$0xff] }
 0x6fb   :  { %v4786_v11 = vrot.slane %v4778_v17, %v13352_v39 }
 0x6fd   :  { %v4842_v42 = vmul.f32 %v4786_v11, %v13320_v34  ;;  %v4843_v21 = vmul.f32 %v4786_v11, %v10670_v51  ;;  %v4844_v24 = vmul.f32 %v4786_v11, %v10673_v57  ;;  %v4845_v54 = vmul.f32 %v4786_v11, %v10676_v35 }
 0x6fe   :  { %v4846_v45 = vmul.f32 %v4786_v11, %v10679_v9  ;;  %v4847_v3 = vmul.f32 %v4786_v11, %v10682_v30  ;;  %v4848_v12 = vmul.f32 %v4786_v11, %v10685_v7  ;;  %v11301_v48 = vmul.f32 %v4786_v11, %v13353_v40 }
 0x6ff   :  { %v11304_v0 = vmul.f32 %v4786_v11, %v13354_v47  ;;  %v4819_v34 = vmul.f32 %v4786_v11, %v13355_v50  ;;  %v4820_v51 = vmul.f32 %v4786_v11, %v13356_v33  ;;  %v4821_v57 = vmul.f32 %v4786_v11, %v13357_v28 }
 0x700   :  { %v4822_v35 = vmul.f32 %v4786_v11, %v13358_v37  ;;  %v4823_v9 = vmul.f32 %v4786_v11, %v13359_v6  ;;  %v4824_v30 = vmul.f32 %v4786_v11, %v13360_v56  ;;  %v4825_v7 = vmul.f32 %v4786_v11, %v13361_v1 }
 0x701   :  { %v4826_v43 = vmul.f32 %v4786_v11, %v13362_v62  ;;  %v4827_v59 = vmul.f32 %v4786_v11, %v13363_v52  ;;  %v4828_v8 = vmul.f32 %v4786_v11, %v13364_v46  ;;  %v4829_v29 = vmul.f32 %v4786_v11, %v13365_v2 }
 0x702   :  { %v4830_v23 = vmul.f32 %v4786_v11, %v13366_v44  ;;  %v4831_v25 = vmul.f32 %v4786_v11, %v13367_v63  ;;  %v4832_v32 = vmul.f32 %v4786_v11, %v13368_v4  ;;  %v4833_v60 = vmul.f32 %v4786_v11, %v13369_v27 }
 0x703   :  { %v4834_v10 = vmul.f32 %v4786_v11, %v13370_v58  ;;  %v4835_v38 = vmul.f32 %v4786_v11, %v13371_v36  ;;  %v4836_v15 = vmul.f32 %v4786_v11, %v13372_v49  ;;  %v4837_v61 = vmul.f32 %v4786_v11, %v13373_v53 }
 0x704   :  { %v4838_v16 = vmul.f32 %v4786_v11, %v13374_v20  ;;  %v4839_v31 = vmul.f32 %v4786_v11, %v13375_v13  ;;  %v4840_v5 = vmul.f32 %v4786_v11, %v13376_v14  ;;  %v4841_v19 = vmul.f32 %v4786_v11, %v13377_v41 }
 0x705   :  { %v11330_v55 = vadd.f32 %v13378_v18, %v4819_v34  ;;  %v11333_v22 = vadd.f32 %v13378_v18, %v4820_v51  ;;  %v11336_v26 = vadd.f32 %v13378_v18, %v4821_v57  ;;  %v11339_v17 = vadd.f32 %v13378_v18, %v4822_v35 }
 0x706   :  { %v11342_v39 = vadd.f32 %v13378_v18, %v4823_v9  ;;  %v11345_v40 = vadd.f32 %v13378_v18, %v4824_v30  ;;  %v11348_v11 = vadd.f32 %v13378_v18, %v4825_v7  ;;  %v11351_v47 = vadd.f32 %v13378_v18, %v4826_v43 }
 0x707   :  { %v11354_v50 = vadd.f32 %v13378_v18, %v4827_v59  ;;  %v11357_v34 = vadd.f32 %v13378_v18, %v4828_v8  ;;  %v11360_v33 = vadd.f32 %v13378_v18, %v4829_v29  ;;  %v11363_v51 = vadd.f32 %v13378_v18, %v4830_v23 }
 0x708   :  { %v11366_v28 = vadd.f32 %v13378_v18, %v4831_v25  ;;  %v11369_v57 = vadd.f32 %v13378_v18, %v4832_v32  ;;  %v11372_v37 = vadd.f32 %v13378_v18, %v4833_v60  ;;  %v11375_v35 = vadd.f32 %v13378_v18, %v4834_v10 }
 0x709   :  { %v11378_v6 = vadd.f32 %v13378_v18, %v4835_v38  ;;  %v11381_v9 = vadd.f32 %v13378_v18, %v4836_v15  ;;  %v11384_v56 = vadd.f32 %v13378_v18, %v4837_v61  ;;  %v11387_v30 = vadd.f32 %v13378_v18, %v4838_v16 }
 0x70a   :  { %v11390_v1 = vadd.f32 %v13378_v18, %v4839_v31  ;;  %v11393_v7 = vadd.f32 %v13378_v18, %v4840_v5  ;;  %v11396_v62 = vadd.f32 %v13378_v18, %v4841_v19  ;;  %v11399_v43 = vadd.f32 %v13378_v18, %v4842_v42 }
 0x70b   :  { %v11402_v52 = vadd.f32 %v13378_v18, %v4843_v21  ;;  %v11405_v59 = vadd.f32 %v13378_v18, %v4844_v24  ;;  %v11408_v46 = vadd.f32 %v13378_v18, %v4845_v54  ;;  %v11411_v8 = vadd.f32 %v13378_v18, %v4846_v45 }
 0x70c   :  { %v11414_v2 = vadd.f32 %v13378_v18, %v4847_v3  ;;  %v11417_v29 = vadd.f32 %v13378_v18, %v4848_v12  ;;  %vm4951_vm3 = vcmp.ge.f32.partialorder %v11330_v55, 0.0  ;;  %vm4952_vm4 = vcmp.ge.f32.partialorder %v11333_v22, 0.0 }
 0x70d   :  { %vm4953_vm8 = vcmp.ge.f32.partialorder %v11336_v26, 0.0  ;;  %vm4954_vm10 = vcmp.ge.f32.partialorder %v11339_v17, 0.0  ;;  %vm4955_vm11 = vcmp.ge.f32.partialorder %v11342_v39, 0.0  ;;  %vm4956_vm2 = vcmp.ge.f32.partialorder %v11345_v40, 0.0 }
 0x70e   :  { %vm4957_vm12 = vcmp.ge.f32.partialorder %v11348_v11, 0.0  ;;  %vm4958_vm13 = vcmp.ge.f32.partialorder %v11351_v47, 0.0  ;;  %v11431_v42 = vadd.f32 %v13378_v18, %v11301_v48  ;;  %v5015_v21 = vmul.f32 0.01, %v11330_v55 }
 0x70f   :  { %v5016_v24 = vmul.f32 0.01, %v11333_v22  ;;  %v5017_v54 = vmul.f32 0.01, %v11336_v26  ;;  %v11442_v45 = vadd.f32 %v13378_v18, %v11304_v0  ;;  %vm4966_vm14 = vcmp.ge.f32.partialorder %v11375_v35, 0.0 }
 0x710   :  { %vm4967_vm9 = vcmp.ge.f32.partialorder %v11378_v6, 0.0  ;;  %v5018_v3 = vmul.f32 0.01, %v11339_v17  ;;  %v5019_v12 = vmul.f32 0.01, %v11342_v39  ;;  %vm4972_vm7 = vcmp.ge.f32.partialorder %v11393_v7, 0.0 }
 0x711   :  { %v5020_v48 = vmul.f32 0.01, %v11345_v40  ;;  %v5021_v0 = vmul.f32 0.01, %v11348_v11  ;;  %v5022_v44 = vmul.f32 0.01, %v11351_v47  ;;  %v5079_v63 = vsel %vm4951_vm3, %v11330_v55, %v5015_v21 }
 0x712   :  { %v5023_v23 = vmul.f32 0.01, %v11354_v50  ;;  %vm4973_vm15 = vcmp.ge.f32.partialorder %v11396_v62, 0.0  ;;  %v5024_v25 = vmul.f32 0.01, %v11357_v34  ;;  %v5080_v27 = vsel %vm4952_vm4, %v11333_v22, %v5016_v24  ;;  %5143 = vst.msk [vmem:[%s11719_s4 + $0x100] sm:$0xff] %vm151_vm0, %v5079_v63 }
 0x713   :  { %v5025_v4 = vmul.f32 0.01, %v11360_v33  ;;  %v5026_v32 = vmul.f32 0.01, %v11363_v51  ;;  %vm4977_vm3 = vcmp.ge.f32.partialorder %v11408_v46, 0.0  ;;  %vm4978_vm6 = vcmp.ge.f32.partialorder %v11411_v8, 0.0 }
 0x714   :  { %vm4980_vm1 = vcmp.ge.f32.partialorder %v11417_v29, 0.0  ;;  %v5027_v60 = vmul.f32 0.01, %v11366_v28  ;;  %v5028_v58 = vmul.f32 0.01, %v11369_v57  ;;  %v5081_v36 = vsel %vm4953_vm8, %v11336_v26, %v5017_v54  ;;  %5144 = vst.msk [vmem:[%s11719_s4 + $0x108] sm:$0xff] %vm151_vm0, %v5080_v27 }
 0x715   :  { %v5029_v10 = vmul.f32 0.01, %v11372_v37  ;;  %vm4981_vm4 = vcmp.ge.f32.partialorder %v11431_v42, 0.0  ;;  %vm4982_vm5 = vcmp.ge.f32.partialorder %v11442_v45, 0.0  ;;  %v5030_v38 = vmul.f32 0.01, %v11375_v35 }
 0x716   :  { %v5031_v49 = vmul.f32 0.01, %v11378_v6  ;;  %v5032_v15 = vmul.f32 0.01, %v11381_v9  ;;  %v5082_v53 = vsel %vm4954_vm10, %v11339_v17, %v5018_v3  ;;  %5145 = vst.msk [vmem:[%s11719_s4 + $0x110] sm:$0xff] %vm151_vm0, %v5081_v36  ;;  %v5083_v13 = vsel %vm4955_vm11, %v11342_v39, %v5019_v12 }
 0x717   :  { %v5033_v61 = vmul.f32 0.01, %v11384_v56  ;;  %v5034_v20 = vmul.f32 0.01, %v11387_v30  ;;  %v5035_v16 = vmul.f32 0.01, %v11390_v1  ;;  %v5084_v41 = vsel %vm4956_vm2, %v11345_v40, %v5020_v48 }
 0x718   :  { %5146 = vst.msk [vmem:[%s11719_s4 + $0x118] sm:$0xff] %vm151_vm0, %v5082_v53  ;;  %v5036_v31 = vmul.f32 0.01, %v11393_v7  ;;  %v5037_v14 = vmul.f32 0.01, %v11396_v62  ;;  %5147 = vst.msk [vmem:[%s11719_s4 + $0x120] sm:$0xff] %vm151_vm0, %v5083_v13  ;;  %v5085_v22 = vsel %vm4957_vm12, %v11348_v11, %v5021_v0  ;;  %v5086_v40 = vsel %vm4958_vm13, %v11351_v47, %v5022_v44 }
 0x719   :  { %v5038_v5 = vmul.f32 0.01, %v11399_v43  ;;  %v5039_v19 = vmul.f32 0.01, %v11402_v52  ;;  %v5040_v18 = vmul.f32 0.01, %v11405_v59 }
 0x71a   :  { %v5041_v55 = vmul.f32 0.01, %v11408_v46  ;;  %5148 = vst.msk [vmem:[%s11719_s4 + $0x128] sm:$0xff] %vm151_vm0, %v5084_v41  ;;  %v5042_v26 = vmul.f32 0.01, %v11411_v8  ;;  %5149 = vst.msk [vmem:[%s11719_s4 + $0x130] sm:$0xff] %vm151_vm0, %v5085_v22 }
 0x71b   :  { %v5043_v17 = vmul.f32 0.01, %v11414_v2  ;;  %v5044_v39 = vmul.f32 0.01, %v11417_v29  ;;  %v5045_v11 = vmul.f32 0.01, %v11431_v42 }
 0x71c   :  { %v5046_v21 = vmul.f32 0.01, %v11442_v45  ;;  %vm13379_vm8 = vcmp.ge.f32.partialorder %v11354_v50, 0.0  ;;  %vm13380_vm10 = vcmp.ge.f32.partialorder %v11357_v34, 0.0  ;;  %5150 = vst.msk [vmem:[%s11719_s4 + $0x138] sm:$0xff] %vm151_vm0, %v5086_v40  ;;  %vm13381_vm11 = vcmp.ge.f32.partialorder %v11360_v33, 0.0 }
 0x71d   :  { %v5087_v24 = vsel %vm13379_vm8, %v11354_v50, %v5023_v23  ;;  %v5088_v54 = vsel %vm13380_vm10, %v11357_v34, %v5024_v25  ;;  %v5089_v47 = vsel %vm13381_vm11, %v11360_v33, %v5025_v4  ;;  %vm13382_vm2 = vcmp.ge.f32.partialorder %v11363_v51, 0.0 }
 0x71e   :  { %v5090_v3 = vsel %vm13382_vm2, %v11363_v51, %v5026_v32  ;;  %vm13383_vm12 = vcmp.ge.f32.partialorder %v11366_v28, 0.0  ;;  %vm13384_vm13 = vcmp.ge.f32.partialorder %v11369_v57, 0.0  ;;  %5151 = vst.msk [vmem:[%s11719_s4 + $0x140] sm:$0xff] %vm151_vm0, %v5087_v24  ;;  %5152 = vst.msk [vmem:[%s11719_s4 + $0x148] sm:$0xff] %vm151_vm0, %v5088_v54  ;;  %vm13385_vm8 = vcmp.ge.f32.partialorder %v11372_v37, 0.0 }
 0x71f   :  { %v5091_v50 = vsel %vm13383_vm12, %v11366_v28, %v5027_v60  ;;  %v5092_v34 = vsel %vm13384_vm13, %v11369_v57, %v5028_v58  ;;  %v5093_v33 = vsel %vm13385_vm8, %v11372_v37, %v5029_v10  ;;  %v5094_v51 = vsel %vm4966_vm14, %v11375_v35, %v5030_v38  ;;  %5153 = vst.msk [vmem:[%s11719_s4 + $0x150] sm:$0xff] %vm151_vm0, %v5089_v47 }
 0x720   :  { %v5095_v28 = vsel %vm4967_vm9, %v11378_v6, %v5031_v49  ;;  %vm13386_vm10 = vcmp.ge.f32.partialorder %v11381_v9, 0.0  ;;  %5154 = vst.msk [vmem:[%s11719_s4 + $0x158] sm:$0xff] %vm151_vm0, %v5090_v3  ;;  %5155 = vst.msk [vmem:[%s11719_s4 + $0x160] sm:$0xff] %vm151_vm0, %v5091_v50  ;;  %vm13387_vm14 = vcmp.ge.f32.partialorder %v11384_v56, 0.0  ;;  %vm13388_vm9 = vcmp.ge.f32.partialorder %v11387_v30, 0.0 }
 0x721   :  { %v5096_v57 = vsel %vm13386_vm10, %v11381_v9, %v5032_v15  ;;  %5156 = vst.msk [vmem:[%s11719_s4 + $0x168] sm:$0xff] %vm151_vm0, %v5092_v34  ;;  %v5097_v37 = vsel %vm13387_vm14, %v11384_v56, %v5033_v61  ;;  %v5098_v35 = vsel %vm13388_vm9, %v11387_v30, %v5034_v20  ;;  %vm13389_vm11 = vcmp.ge.f32.partialorder %v11390_v1, 0.0  ;;  %5157 = vst.msk [vmem:[%s11719_s4 + $0x170] sm:$0xff] %vm151_vm0, %v5093_v33 }
 0x722   :  { %v5099_v6 = vsel %vm13389_vm11, %v11390_v1, %v5035_v16  ;;  %v5100_v9 = vsel %vm4972_vm7, %v11393_v7, %v5036_v31  ;;  %5158 = vst.msk [vmem:[%s11719_s4 + $0x178] sm:$0xff] %vm151_vm0, %v5094_v51  ;;  %5159 = vst.msk [vmem:[%s11719_s4 + $0x180] sm:$0xff] %vm151_vm0, %v5095_v28  ;;  %v5101_v56 = vsel %vm4973_vm15, %v11396_v62, %v5037_v14  ;;  %vm13390_vm7 = vcmp.ge.f32.partialorder %v11399_v43, 0.0 }
 0x723   :  { %5160 = vst.msk [vmem:[%s11719_s4 + $0x188] sm:$0xff] %vm151_vm0, %v5096_v57  ;;  %v5102_v30 = vsel %vm13390_vm7, %v11399_v43, %v5038_v5  ;;  %vm13391_vm2 = vcmp.ge.f32.partialorder %v11402_v52, 0.0  ;;  %vm13392_vm12 = vcmp.ge.f32.partialorder %v11405_v59, 0.0  ;;  %5161 = vst.msk [vmem:[%s11719_s4 + $0x190] sm:$0xff] %vm151_vm0, %v5097_v37  ;;  %v5105_v62 = vsel %vm4977_vm3, %v11408_v46, %v5041_v55 }
 0x724   :  { %v5103_v1 = vsel %vm13391_vm2, %v11402_v52, %v5039_v19  ;;  %v5104_v7 = vsel %vm13392_vm12, %v11405_v59, %v5040_v18  ;;  %5162 = vst.msk [vmem:[%s11719_s4 + $0x198] sm:$0xff] %vm151_vm0, %v5098_v35  ;;  %5163 = vst.msk [vmem:[%s11719_s4 + $0x1a0] sm:$0xff] %vm151_vm0, %v5099_v6  ;;  %v5106_v43 = vsel %vm4978_vm6, %v11411_v8, %v5042_v26  ;;  %vm13393_vm15 = vcmp.ge.f32.partialorder %v11414_v2, 0.0 }
 0x725   :  { %5164 = vst.msk [vmem:[%s11719_s4 + $0x1a8] sm:$0xff] %vm151_vm0, %v5100_v9  ;;  %v5107_v52 = vsel %vm13393_vm15, %v11414_v2, %v5043_v17  ;;  %v5108_v59 = vsel %vm4980_vm1, %v11417_v29, %v5044_v39  ;;  %5165 = vst.msk [vmem:[%s11719_s4 + $0x1b0] sm:$0xff] %vm151_vm0, %v5101_v56  ;;  %v5109_v46 = vsel %vm4981_vm4, %v11431_v42, %v5045_v11 }
 0x726   :  { %5166 = vst.msk [vmem:[%s11719_s4 + $0x1b8] sm:$0xff] %vm151_vm0, %v5102_v30  ;;  %5167 = vst.msk [vmem:[%s11719_s4 + $0x1c0] sm:$0xff] %vm151_vm0, %v5103_v1  ;;  %v5110_v8 = vsel %vm4982_vm5, %v11442_v45, %v5046_v21 }
 0x727   :  { %5168 = vst.msk [vmem:[%s11719_s4 + $0x1c8] sm:$0xff] %vm151_vm0, %v5104_v7  ;;  %5169 = vst.msk [vmem:[%s11719_s4 + $0x1d0] sm:$0xff] %vm151_vm0, %v5105_v62 }
 0x728   :  { %5170 = vst.msk [vmem:[%s11719_s4 + $0x1d8] sm:$0xff] %vm151_vm0, %v5106_v43  ;;  %5171 = vst.msk [vmem:[%s11719_s4 + $0x1e0] sm:$0xff] %vm151_vm0, %v5107_v52 }
 0x729   :  { %5172 = vst.msk [vmem:[%s11719_s4 + $0x1e8] sm:$0xff] %vm151_vm0, %v5108_v59  ;;  %5173 = vst.msk [vmem:[%s11719_s4 + $0x1f0] sm:$0xff] %vm151_vm0, %v5109_v46 }
 0x72a   :  { %5174 = vst.msk [vmem:[%s11719_s4 + $0x1f8] sm:$0xff] %vm151_vm0, %v5110_v8 }

</bundles_post_ra>
